<compile_context>
chip_gen: v7x
topology: tpu7x:2x2x1
jax: 0.10.0
libtpu: 0.0.40
codegen_flags: <defaults>
</compile_context>

<pallas_src>
import functools

import jax
import jax.numpy as jnp
from jax.experimental import pallas as pl
from jax.experimental.pallas import tpu as pltpu


# ----------------------------------------------------------------------------
# Kernel: same-padded Conv1d over the sequence axis, one batch block per step
# ----------------------------------------------------------------------------
def _conv1d_same_kernel(x_ref, w_ref, o_ref, *, ksize, pad):
    # x_ref : (TB, S, H)   compute-dtype (bf16) activations (BERT sequence output)
    # w_ref : (k*H, H)     tap-major conv weight (rows = tap-major, c_in fast)
    # o_ref : (TB, S, H)   output (bf16); accumulation is f32 in-registers
    tb, s, h = x_ref.shape
    rows = tb * s

    x_bf = x_ref[...].reshape(rows, h)                    # bf16, fed straight to MXU
    if ksize > 1:
        # 32-bit copy only for the rolled taps (sublane rolls are 32-bit friendly).
        x_f32 = x_bf.astype(jnp.float32)
        # Sequence position of each row within its batch element, width 1 so the
        # boundary compares/selects are lane-cheap and broadcast inside jnp.where.
        pos = jax.lax.broadcasted_iota(jnp.int32, (tb, s, 1), 1).reshape(rows, 1)

    acc = None
    for j in range(ksize):                                # static unroll over taps
        d = j - pad                                       # tap offset in [-pad, +pad]
        w_tap = w_ref[j * h:(j + 1) * h, :]               # (H, H) static slice
        if d == 0:
            piece = x_bf                                  # no f32 round trip
        else:
            # rolled[t] = x[(t + d) mod rows]; rows whose source crossed a sequence /
            # batch boundary are exactly those with pos + d outside [0, S) -> zeroed.
            rolled = pltpu.roll(x_f32, shift=(-d) % rows, axis=0)
            valid = (pos + d >= 0) & (pos + d < s)        # (rows, 1), broadcasts
            piece = jnp.where(valid, rolled, 0.0).astype(w_ref.dtype)
        part = jnp.dot(piece, w_tap, preferred_element_type=jnp.float32)
        acc = part if acc is None else acc + part

    o_ref[...] = acc.reshape(tb, s, h).astype(o_ref.dtype)


# ----------------------------------------------------------------------------
# Host-side sizing helpers
# ----------------------------------------------------------------------------
def _tpu_generation_info():
    """Best-effort (physical VMEM bytes, TensorCores per chip). Robust fallbacks."""
    vmem = 128 << 20
    cores = 1
    try:
        info = pltpu.get_tpu_info()
        vmem = int(getattr(info, "vmem_capacity_bytes", vmem))
        for attr in ("num_tensorcores", "tensorcores_per_chip", "num_cores",
                     "core_count"):
            val = getattr(info, attr, None)
            if val:
                cores = int(val)
                break
    except Exception:
        pass
    try:
        kind = jax.devices()[0].device_kind.lower()
        if "v7" in kind:
            cores = max(cores, 2)
            vmem = min(vmem, 64 << 20)          # v7x: 64 MiB physical per TC
        elif "v4" in kind or "v5p" in kind:
            cores = max(cores, 2)               # megacore chips
    except Exception:
        pass
    return vmem, cores


def _footprint_bytes(tb, seq, hidden, ksize, out_bytes):
    """Estimated per-step VMEM: in-kernel intermediates + double-buffered I/O blocks
    + the (possibly double-buffered) resident weight."""
    weight = 2 * (2 * ksize * hidden * hidden)            # bf16, worst case 2 buffers
    per_row = seq * hidden * ((2 * ksize + 10)            # f32 x, rolls, pieces, acc
                              + 2 * 2                     # bf16 input block x2 buffers
                              + 2 * out_bytes)            # output block x2 buffers
    return weight, per_row, weight + tb * per_row


def _pick_batch_block(batch, seq, hidden, ksize, out_bytes, budget_bytes, num_cores):
    """Largest TB dividing `batch` that fits `budget_bytes`. Only on multi-TC chips
    (v7x) do we additionally prefer >= 2 (ideally an even number of) grid steps so
    dimension_semantics=("parallel",) splits evenly across TensorCores."""
    divisors = [d for d in range(1, batch + 1) if batch % d == 0]
    fitting = [d for d in divisors
               if _footprint_bytes(d, seq, hidden, ksize, out_bytes)[2] <= budget_bytes]
    if not fitting:
        fitting = [1]
    if num_cores >= 2 and batch >= 2:
        even = [d for d in fitting if (batch // d) >= 2 and (batch // d) % 2 == 0]
        atleast2 = [d for d in fitting if (batch // d) >= 2]
        if even:
            return max(even)
        if atleast2:
            return max(atleast2)
    return max(fitting)


# ----------------------------------------------------------------------------
# Wrapper
# ----------------------------------------------------------------------------
def conv1d_same(hidden_states, conv_weight, *, compute_dtype=jnp.bfloat16,
                out_dtype=jnp.bfloat16):
    """CNN module of BertCNN: Conv1d(H, H, k, bias=False, padding=(k-1)//2) over seq.

    hidden_states: (B, S, H) float32   -- bert(x)[0]
    conv_weight:   (H, H, K) float32   -- PyTorch Conv1d weight (out, in, k)
    returns:       (B, S, H) out_dtype (bf16 by default; f32 accumulation in-kernel)
    """
    batch, seq, hidden = hidden_states.shape
    out_ch, in_ch, ksize = conv_weight.shape
    assert out_ch == hidden and in_ch == hidden
    assert ksize % 2 == 1, "padding=(k-1)//2 only gives 'same' length for odd kernel_size"
    pad = (ksize - 1) // 2

    # PyTorch (out, in, k) -> tap-major (k, in, out) -> single (k*H, H) rhs; each tap
    # is a contiguous (H, H) row-block of this rhs.
    w_rhs = jnp.transpose(conv_weight, (2, 1, 0)).reshape(ksize * hidden, hidden)

    x_c = hidden_states.astype(compute_dtype)
    w_c = w_rhs.astype(compute_dtype)

    out_bytes = jnp.dtype(out_dtype).itemsize
    phys_vmem, num_cores = _tpu_generation_info()
    budget = phys_vmem // 4
    tb = _pick_batch_block(batch, seq, hidden, ksize, out_bytes, budget, num_cores)

    weight_b, per_row_b, needed = _footprint_bytes(tb, seq, hidden, ksize, out_bytes)
    vmem_limit = int(min(0.9 * phys_vmem, max(needed + (4 << 20), 32 << 20)))

    kernel = functools.partial(_conv1d_same_kernel, ksize=ksize, pad=pad)
    grid = (batch // tb,)
    io_in_spec = pl.BlockSpec((tb, seq, hidden), lambda b: (b, 0, 0))
    io_out_spec = pl.BlockSpec((tb, seq, hidden), lambda b: (b, 0, 0))
    params = pltpu.CompilerParams(dimension_semantics=("parallel",),
                                  vmem_limit_bytes=vmem_limit)

    # Constant index_map -> the weight block is resident across the grid; request a
    # single buffer for it (saves ~k*H*H*2 bytes of VMEM, most valuable on v7x).
    # Fall back to the default-buffered spec if this JAX build rejects it.
    for single_buffer in (True, False):
        try:
            if single_buffer:
                w_spec = pl.BlockSpec((ksize * hidden, hidden), lambda b: (0, 0),
                                      pipeline_mode=pl.Buffered(1))
            else:
                w_spec = pl.BlockSpec((ksize * hidden, hidden), lambda b: (0, 0))
            return pl.pallas_call(
                kernel,
                out_shape=jax.ShapeDtypeStruct((batch, seq, hidden), out_dtype),
                grid=grid,
                in_specs=[io_in_spec, w_spec],
                out_specs=io_out_spec,
                compiler_params=params,
            )(x_c, w_c)
        except Exception:
            if not single_buffer:
                raise
    raise AssertionError("unreachable")


def bert_cnn_forward(bert_sequence_output, conv_weight, *, out_dtype=jnp.bfloat16):
    """BertCNN.forward: x = bert(x)[0]; x = cnn(x)."""
    # TODO(synk): the pretrained BertModel encoder is not translated; this consumes
    # its (B, S, H) sequence output directly.
    return conv1d_same(bert_sequence_output, conv_weight, out_dtype=out_dtype)


# ----------------------------------------------------------------------------
# Pure-JAX reference (same bf16 input precision, f32 accumulation)
# ----------------------------------------------------------------------------
def reference_forward(bert_sequence_output, conv_weight, *, compute_dtype=jnp.bfloat16):
    b, s, h = bert_sequence_output.shape
    ksize = conv_weight.shape[2]
    pad = (ksize - 1) // 2
    xb = bert_sequence_output.astype(compute_dtype)
    wb = conv_weight.astype(compute_dtype)
    xp = jnp.pad(xb, ((0, 0), (pad, pad), (0, 0)))
    out = jnp.zeros((b, s, h), jnp.float32)
    for j in range(ksize):
        out = out + jnp.einsum("bsh,oh->bso", xp[:, j:j + s, :], wb[:, :, j],
                               preferred_element_type=jnp.float32)
    return out


if __name__ == "__main__":
    B, S, K = 4, 16, 3
    H = 768   # BERT-base hidden size; multiple of 128 keeps the lane axis dense.

    key = jax.random.PRNGKey(0)
    k_x, k_w = jax.random.split(key)
    # Stand-in for bert(x)[0]: the (B, S, H) sequence output of the BERT encoder.
    bert_out = jax.random.normal(k_x, (B, S, H), jnp.float32)
    # PyTorch Conv1d weight layout: (out_channels, in_channels, kernel_size).
    w_conv = jax.random.normal(k_w, (H, H, K), jnp.float32) * 0.02

    out = bert_cnn_forward(bert_out, w_conv)
    out = jax.block_until_ready(out)

    ref = reference_forward(bert_out, w_conv)
    assert out.shape == (B, S, H)
    out_f32 = out.astype(jnp.float32)
    err = float(jnp.max(jnp.abs(out_f32 - ref)))
    assert jnp.allclose(out_f32, ref, atol=5e-2, rtol=5e-2), f"max abs err {err}"

    print("KERNEL_OK")
</pallas_src>

<mosaic_0001>
module attributes {stable_mosaic.version = 11 : i64} {
  func.func @_conv1d_same_kernel(%arg0: i32, %arg1: memref<4x16x768xbf16, #tpu.memory_space<vmem>>, %arg2: memref<2304x768xbf16, #tpu.memory_space<vmem>>, %arg3: memref<4x16x768xbf16, #tpu.memory_space<vmem>>) attributes {dimension_semantics = [#tpu.dimension_semantics<parallel>], iteration_bounds = array<i64: 1>, scalar_prefetch = 0 : i64, scratch_operands = 0 : i64, tpu.core_type = #tpu.core_type<tc>, window_params = [{transform_indices = @transform_0, window_bounds = array<i64: 4, 16, 768>}, {pipeline_mode = #tpu.pipeline_mode<synchronous>, transform_indices = @transform_1, window_bounds = array<i64: 2304, 768>}, {transform_indices = @transform_2, window_bounds = array<i64: 4, 16, 768>}]} {
    %c0 = arith.constant 0 : index
    %c0_0 = arith.constant 0 : index
    %c0_1 = arith.constant 0 : index
    %0 = vector.load %arg1[%c0, %c0_0, %c0_1] : memref<4x16x768xbf16, #tpu.memory_space<vmem>>, vector<4x16x768xbf16>
    %1 = vector.shape_cast %0 : vector<4x16x768xbf16> to vector<64x768xbf16>
    %2 = arith.extf %1 : vector<64x768xbf16> to vector<64x768xf32>
    %3 = tpu.iota {dimensions = array<i32: 1>} : vector<4x16x1xi32>
    %4 = vector.shape_cast %3 : vector<4x16x1xi32> to vector<64x1xi32>
    %c0_2 = arith.constant 0 : index
    %c0_3 = arith.constant 0 : index
    %5 = vector.load %arg2[%c0_2, %c0_3] : memref<2304x768xbf16, #tpu.memory_space<vmem>>, vector<768x768xbf16>
    %c1_i32 = arith.constant 1 : i32
    %6 = tpu.dynamic_rotate %2 by %c1_i32 dim 0 : vector<64x768xf32>, i32 -> vector<64x768xf32>
    %c-1_i32 = arith.constant -1 : i32
    %7 = vector.broadcast %c-1_i32 : i32 to vector<64x1xi32>
    %8 = arith.addi %4, %7 : vector<64x1xi32>
    %c0_i32 = arith.constant 0 : i32
    %9 = vector.broadcast %c0_i32 : i32 to vector<64x1xi32>
    %10 = arith.cmpi sge, %8, %9 : vector<64x1xi32>
    %c-1_i32_4 = arith.constant -1 : i32
    %11 = vector.broadcast %c-1_i32_4 : i32 to vector<64x1xi32>
    %12 = arith.addi %4, %11 : vector<64x1xi32>
    %c16_i32 = arith.constant 16 : i32
    %13 = vector.broadcast %c16_i32 : i32 to vector<64x1xi32>
    %14 = arith.cmpi slt, %12, %13 : vector<64x1xi32>
    %15 = arith.andi %10, %14 : vector<64x1xi1>
    %cst = arith.constant 0.000000e+00 : f32
    %16 = vector.shape_cast %15 : vector<64x1xi1> to vector<64x1xi1>
    %17 = vector.broadcast %16 : vector<64x1xi1> to vector<64x768xi1>
    %18 = vector.broadcast %cst : f32 to vector<64x768xf32>
    %19 = arith.select %17, %6, %18 : vector<64x768xi1>, vector<64x768xf32>
    %20 = arith.truncf %19 : vector<64x768xf32> to vector<64x768xbf16>
    %cst_5 = arith.constant dense<0.000000e+00> : vector<64x768xf32>
    %21 = tpu.matmul %20, %5, %cst_5 {dimension_numbers = #tpu.dot_dimension_numbers<[1], [0], [0], [1], [0, 0, 1, 1], [], []>} : vector<64x768xbf16>, vector<768x768xbf16>, vector<64x768xf32> -> vector<64x768xf32>
    %c768 = arith.constant 768 : index
    %c0_6 = arith.constant 0 : index
    %22 = vector.load %arg2[%c768, %c0_6] : memref<2304x768xbf16, #tpu.memory_space<vmem>>, vector<768x768xbf16>
    %cst_7 = arith.constant dense<0.000000e+00> : vector<64x768xf32>
    %23 = tpu.matmul %1, %22, %cst_7 {dimension_numbers = #tpu.dot_dimension_numbers<[1], [0], [0], [1], [0, 0, 1, 1], [], []>} : vector<64x768xbf16>, vector<768x768xbf16>, vector<64x768xf32> -> vector<64x768xf32>
    %24 = arith.addf %21, %23 : vector<64x768xf32>
    %c1536 = arith.constant 1536 : index
    %c0_8 = arith.constant 0 : index
    %25 = vector.load %arg2[%c1536, %c0_8] : memref<2304x768xbf16, #tpu.memory_space<vmem>>, vector<768x768xbf16>
    %c63_i32 = arith.constant 63 : i32
    %26 = tpu.dynamic_rotate %2 by %c63_i32 dim 0 : vector<64x768xf32>, i32 -> vector<64x768xf32>
    %c1_i32_9 = arith.constant 1 : i32
    %27 = vector.broadcast %c1_i32_9 : i32 to vector<64x1xi32>
    %28 = arith.addi %4, %27 : vector<64x1xi32>
    %c0_i32_10 = arith.constant 0 : i32
    %29 = vector.broadcast %c0_i32_10 : i32 to vector<64x1xi32>
    %30 = arith.cmpi sge, %28, %29 : vector<64x1xi32>
    %c1_i32_11 = arith.constant 1 : i32
    %31 = vector.broadcast %c1_i32_11 : i32 to vector<64x1xi32>
    %32 = arith.addi %4, %31 : vector<64x1xi32>
    %c16_i32_12 = arith.constant 16 : i32
    %33 = vector.broadcast %c16_i32_12 : i32 to vector<64x1xi32>
    %34 = arith.cmpi slt, %32, %33 : vector<64x1xi32>
    %35 = arith.andi %30, %34 : vector<64x1xi1>
    %cst_13 = arith.constant 0.000000e+00 : f32
    %36 = vector.shape_cast %35 : vector<64x1xi1> to vector<64x1xi1>
    %37 = vector.broadcast %36 : vector<64x1xi1> to vector<64x768xi1>
    %38 = vector.broadcast %cst_13 : f32 to vector<64x768xf32>
    %39 = arith.select %37, %26, %38 : vector<64x768xi1>, vector<64x768xf32>
    %40 = arith.truncf %39 : vector<64x768xf32> to vector<64x768xbf16>
    %cst_14 = arith.constant dense<0.000000e+00> : vector<64x768xf32>
    %41 = tpu.matmul %40, %25, %cst_14 {dimension_numbers = #tpu.dot_dimension_numbers<[1], [0], [0], [1], [0, 0, 1, 1], [], []>} : vector<64x768xbf16>, vector<768x768xbf16>, vector<64x768xf32> -> vector<64x768xf32>
    %42 = arith.addf %24, %41 : vector<64x768xf32>
    %43 = vector.shape_cast %42 : vector<64x768xf32> to vector<4x16x768xf32>
    %44 = arith.truncf %43 : vector<4x16x768xf32> to vector<4x16x768xbf16>
    %c0_15 = arith.constant 0 : index
    %c0_16 = arith.constant 0 : index
    %c0_17 = arith.constant 0 : index
    %45 = vector.load %arg3[%c0_15, %c0_16, %c0_17] : memref<4x16x768xbf16, #tpu.memory_space<vmem>>, vector<4x16x768xbf16>
    tpu.vector_store %arg3[%c0_15, %c0_16, %c0_17], %44 {strides = array<i32>} : memref<4x16x768xbf16, #tpu.memory_space<vmem>>, vector<4x16x768xbf16>,
    return
  }
  func.func @transform_0(%arg0: i32) -> (i32, i32, i32) {
    %c0_i32 = arith.constant 0 : i32
    %c0_i32_0 = arith.constant 0 : i32
    %c0_i32_1 = arith.constant 0 : i32
    return %arg0, %c0_i32, %c0_i32_0 : i32, i32, i32
  }
  func.func @transform_1(%arg0: i32) -> (i32, i32) {
    %c0_i32 = arith.constant 0 : i32
    %c0_i32_0 = arith.constant 0 : i32
    %c0_i32_1 = arith.constant 0 : i32
    return %c0_i32, %c0_i32_0 : i32, i32
  }
  func.func @transform_2(%arg0: i32) -> (i32, i32, i32) {
    %c0_i32 = arith.constant 0 : i32
    %c0_i32_0 = arith.constant 0 : i32
    %c0_i32_1 = arith.constant 0 : i32
    return %arg0, %c0_i32, %c0_i32_0 : i32, i32, i32
  }
}

module attributes {stable_mosaic.version = 11 : i64} {
  func.func @_conv1d_same_kernel(%arg0: i32, %arg1: memref<4x16x768xbf16, #tpu.memory_space<vmem>>, %arg2: memref<2304x768xbf16, #tpu.memory_space<vmem>>, %arg3: memref<4x16x768xbf16, #tpu.memory_space<vmem>>) attributes {dimension_semantics = [#tpu.dimension_semantics<parallel>], iteration_bounds = array<i64: 1>, scalar_prefetch = 0 : i64, scratch_operands = 0 : i64, tpu.core_type = #tpu.core_type<tc>, window_params = [{transform_indices = @transform_0, window_bounds = array<i64: 4, 16, 768>}, {pipeline_mode = #tpu.pipeline_mode<synchronous>, transform_indices = @transform_1, window_bounds = array<i64: 2304, 768>}, {transform_indices = @transform_2, window_bounds = array<i64: 4, 16, 768>}]} {
    %c0 = arith.constant 0 : index
    %c0_0 = arith.constant 0 : index
    %c0_1 = arith.constant 0 : index
    %0 = vector.load %arg1[%c0, %c0_0, %c0_1] : memref<4x16x768xbf16, #tpu.memory_space<vmem>>, vector<4x16x768xbf16>
    %1 = vector.shape_cast %0 : vector<4x16x768xbf16> to vector<64x768xbf16>
    %2 = arith.extf %1 : vector<64x768xbf16> to vector<64x768xf32>
    %3 = tpu.iota {dimensions = array<i32: 1>} : vector<4x16x1xi32>
    %4 = vector.shape_cast %3 : vector<4x16x1xi32> to vector<64x1xi32>
    %c0_2 = arith.constant 0 : index
    %c0_3 = arith.constant 0 : index
    %5 = vector.load %arg2[%c0_2, %c0_3] : memref<2304x768xbf16, #tpu.memory_space<vmem>>, vector<768x768xbf16>
    %c1_i32 = arith.constant 1 : i32
    %6 = tpu.dynamic_rotate %2 by %c1_i32 dim 0 : vector<64x768xf32>, i32 -> vector<64x768xf32>
    %c-1_i32 = arith.constant -1 : i32
    %7 = vector.broadcast %c-1_i32 : i32 to vector<64x1xi32>
    %8 = arith.addi %4, %7 : vector<64x1xi32>
    %c0_i32 = arith.constant 0 : i32
    %9 = vector.broadcast %c0_i32 : i32 to vector<64x1xi32>
    %10 = arith.cmpi sge, %8, %9 : vector<64x1xi32>
    %c-1_i32_4 = arith.constant -1 : i32
    %11 = vector.broadcast %c-1_i32_4 : i32 to vector<64x1xi32>
    %12 = arith.addi %4, %11 : vector<64x1xi32>
    %c16_i32 = arith.constant 16 : i32
    %13 = vector.broadcast %c16_i32 : i32 to vector<64x1xi32>
    %14 = arith.cmpi slt, %12, %13 : vector<64x1xi32>
    %15 = arith.andi %10, %14 : vector<64x1xi1>
    %cst = arith.constant 0.000000e+00 : f32
    %16 = vector.shape_cast %15 : vector<64x1xi1> to vector<64x1xi1>
    %17 = vector.broadcast %16 : vector<64x1xi1> to vector<64x768xi1>
    %18 = vector.broadcast %cst : f32 to vector<64x768xf32>
    %19 = arith.select %17, %6, %18 : vector<64x768xi1>, vector<64x768xf32>
    %20 = arith.truncf %19 : vector<64x768xf32> to vector<64x768xbf16>
    %cst_5 = arith.constant dense<0.000000e+00> : vector<64x768xf32>
    %21 = tpu.matmul %20, %5, %cst_5 {dimension_numbers = #tpu.dot_dimension_numbers<[1], [0], [0], [1], [0, 0, 1, 1], [], []>} : vector<64x768xbf16>, vector<768x768xbf16>, vector<64x768xf32> -> vector<64x768xf32>
    %c768 = arith.constant 768 : index
    %c0_6 = arith.constant 0 : index
    %22 = vector.load %arg2[%c768, %c0_6] : memref<2304x768xbf16, #tpu.memory_space<vmem>>, vector<768x768xbf16>
    %cst_7 = arith.constant dense<0.000000e+00> : vector<64x768xf32>
    %23 = tpu.matmul %1, %22, %cst_7 {dimension_numbers = #tpu.dot_dimension_numbers<[1], [0], [0], [1], [0, 0, 1, 1], [], []>} : vector<64x768xbf16>, vector<768x768xbf16>, vector<64x768xf32> -> vector<64x768xf32>
    %24 = arith.addf %21, %23 : vector<64x768xf32>
    %c1536 = arith.constant 1536 : index
    %c0_8 = arith.constant 0 : index
    %25 = vector.load %arg2[%c1536, %c0_8] : memref<2304x768xbf16, #tpu.memory_space<vmem>>, vector<768x768xbf16>
    %c63_i32 = arith.constant 63 : i32
    %26 = tpu.dynamic_rotate %2 by %c63_i32 dim 0 : vector<64x768xf32>, i32 -> vector<64x768xf32>
    %c1_i32_9 = arith.constant 1 : i32
    %27 = vector.broadcast %c1_i32_9 : i32 to vector<64x1xi32>
    %28 = arith.addi %4, %27 : vector<64x1xi32>
    %c0_i32_10 = arith.constant 0 : i32
    %29 = vector.broadcast %c0_i32_10 : i32 to vector<64x1xi32>
    %30 = arith.cmpi sge, %28, %29 : vector<64x1xi32>
    %c1_i32_11 = arith.constant 1 : i32
    %31 = vector.broadcast %c1_i32_11 : i32 to vector<64x1xi32>
    %32 = arith.addi %4, %31 : vector<64x1xi32>
    %c16_i32_12 = arith.constant 16 : i32
    %33 = vector.broadcast %c16_i32_12 : i32 to vector<64x1xi32>
    %34 = arith.cmpi slt, %32, %33 : vector<64x1xi32>
    %35 = arith.andi %30, %34 : vector<64x1xi1>
    %cst_13 = arith.constant 0.000000e+00 : f32
    %36 = vector.shape_cast %35 : vector<64x1xi1> to vector<64x1xi1>
    %37 = vector.broadcast %36 : vector<64x1xi1> to vector<64x768xi1>
    %38 = vector.broadcast %cst_13 : f32 to vector<64x768xf32>
    %39 = arith.select %37, %26, %38 : vector<64x768xi1>, vector<64x768xf32>
    %40 = arith.truncf %39 : vector<64x768xf32> to vector<64x768xbf16>
    %cst_14 = arith.constant dense<0.000000e+00> : vector<64x768xf32>
    %41 = tpu.matmul %40, %25, %cst_14 {dimension_numbers = #tpu.dot_dimension_numbers<[1], [0], [0], [1], [0, 0, 1, 1], [], []>} : vector<64x768xbf16>, vector<768x768xbf16>, vector<64x768xf32> -> vector<64x768xf32>
    %42 = arith.addf %24, %41 : vector<64x768xf32>
    %43 = vector.shape_cast %42 : vector<64x768xf32> to vector<4x16x768xf32>
    %44 = arith.truncf %43 : vector<4x16x768xf32> to vector<4x16x768xbf16>
    %c0_15 = arith.constant 0 : index
    %c0_16 = arith.constant 0 : index
    %c0_17 = arith.constant 0 : index
    %45 = vector.load %arg3[%c0_15, %c0_16, %c0_17] : memref<4x16x768xbf16, #tpu.memory_space<vmem>>, vector<4x16x768xbf16>
    tpu.vector_store %arg3[%c0_15, %c0_16, %c0_17], %44 {strides = array<i32>} : memref<4x16x768xbf16, #tpu.memory_space<vmem>>, vector<4x16x768xbf16>,
    return
  }
  func.func @transform_0(%arg0: i32) -> (i32, i32, i32) {
    %c0_i32 = arith.constant 0 : i32
    %c0_i32_0 = arith.constant 0 : i32
    %c0_i32_1 = arith.constant 0 : i32
    return %arg0, %c0_i32, %c0_i32_0 : i32, i32, i32
  }
  func.func @transform_1(%arg0: i32) -> (i32, i32) {
    %c0_i32 = arith.constant 0 : i32
    %c0_i32_0 = arith.constant 0 : i32
    %c0_i32_1 = arith.constant 0 : i32
    return %c0_i32, %c0_i32_0 : i32, i32
  }
  func.func @transform_2(%arg0: i32) -> (i32, i32, i32) {
    %c0_i32 = arith.constant 0 : i32
    %c0_i32_0 = arith.constant 0 : i32
    %c0_i32_1 = arith.constant 0 : i32
    return %arg0, %c0_i32, %c0_i32_0 : i32, i32, i32
  }
}

</mosaic_0001>

<bundles_post_ra>
// kernel: tpu_custom_call.1
= control target key start
LH: loop header
LB: loop body
LE: loop exit
PB: predicated region body
PF: predicated region fallthrough
CT: control target
= control target key end

     0   :  { %7 = vsyncpa [#allocation3], 0  ;;  %s12646_s0 = inlined_call_operand.hbm [shape: bf16[4,16,768], index: 0, kind: input, shape index: {}]   ;;  %s12647_s1 = inlined_call_operand.hbm [shape: bf16[2304,768], index: 1, kind: input, shape index: {}]   ;;  %s12648_s2 = inlined_call_operand.hbm [shape: bf16[4,16,768], index: 2, kind: output, shape index: {}]  }
   0x1   :  { %8 = vsyncpa [#allocation6], 0 }
   0x2   :  { %9 = vsyncpa [#allocation4], 0  ;;  %s11187_s9 = smov [#allocation2]   ;;  %s11115_s13 = scalar_lea.hbm %s12646_s0, 3072 }
   0x3   :  { %s15_s10 = sshll.u32 %s11187_s9, 4  ;;  %p11116_p0 = scmp.ne.s32.totalorder %s12646_s0, %s11115_s13  ;;  %s16_s10 = int_to_ptr.vmem [resolvable:$true] %s15_s10 }
   0x4   :  { %p11119_p1 = scmp.lt.u32.totalorder %s11115_s13, %s12646_s0 }
   0x6   :  { %p11121_p2 = pnand %p11119_p1, %p11116_p0 }
   0x8   :  { %11124 = shalt.err (!%p11121_p2)
}
   0x9   :  { %s11125_s18 = scalar_lea.vmem %s16_s10, 3072  ;;  %p11130_p4 = scmp.lt.s32.totalorder %s16_s10, %s16_s10 }
   0xa   :  { %p11126_p3 = scmp.ne.s32.totalorder %s16_s10, %s11125_s18  ;;  %p11131_p5 = scmp.lt.s32.totalorder %s11125_s18, %s11125_s18 }
   0xc   :  { %p11132_p6 = por %p11131_p5, %p11130_p4 }
   0xe   :  { %p11133_p7 = pnand %p11132_p6, %p11126_p3 }
  0x10   :  { %11136 = shalt.err (!%p11133_p7)
}
  0x11   :  { %s11188_s19 = smov 384   ;;  %s11189_s20 = smov 24  }
  0x12   :  { %21 = dma.hbm_to_vmem [thread:$0]  %s12646_s0, 3072, %s16_s10, [#allocation3], %s11188_s19, %s11188_s19, %s11189_s20  }
  0x13   :  { %s11190_s23 = smov [#allocation5]   ;;  %s11137_s27 = scalar_lea.hbm %s12647_s1, 110592 }
  0x14   :  { %s27_s24 = sshll.u32 %s11190_s23, 4  ;;  %p11138_p8 = scmp.ne.s32.totalorder %s12647_s1, %s11137_s27  ;;  %s28_s24 = int_to_ptr.vmem [resolvable:$true] %s27_s24 }
  0x15   :  { %p11141_p9 = scmp.lt.u32.totalorder %s11137_s27, %s12647_s1 }
  0x17   :  { %p11143_p10 = pnand %p11141_p9, %p11138_p8 }
  0x19   :  { %11146 = shalt.err (!%p11143_p10)
}
  0x1a   :  { %s11147_s4 = scalar_lea.vmem %s28_s24, 110592  ;;  %p11152_p12 = scmp.lt.s32.totalorder %s28_s24, %s28_s24 }
  0x1b   :  { %p11148_p11 = scmp.ne.s32.totalorder %s28_s24, %s11147_s4  ;;  %p11153_p13 = scmp.lt.s32.totalorder %s11147_s4, %s11147_s4 }
  0x1d   :  { %p11154_p0 = por %p11153_p13, %p11152_p12 }
  0x1f   :  { %p11155_p1 = pnand %p11154_p0, %p11148_p11 }
  0x21   :  { %11158 = shalt.err (!%p11155_p1)
}
  0x22   :  { %33 = dma.hbm_to_vmem [thread:$0]  %s12647_s1, 110592, %s28_s24, [#allocation6], %s11188_s19, %s11188_s19, %s11189_s20  }
  0x23   :  { %11181 = dma.done.wait [#allocation3], 3072  }
  0x24   :  { %11182 = vsyncadd [#allocation3], 4294964224 }
  0x25   :  { %11183 = dma.done.wait [#allocation6], 110592  }
  0x26   :  { %11184 = vsyncadd [#allocation6], 4294856704  ;;  %v9776_v0 = vld [vmem:[#allocation5 + $0x904] ss:$24 sps:$4 sm:$0xff]   ;;  %v9778_v1 = vld [vmem:[#allocation5 + $0xc14] ss:$24 sps:$4 sm:$0xff]  }
  0x27   :  { %2432 = vmatprep.subr.bf16.mxu1 %v9776_v0  ;;  %v9780_v2 = vld [vmem:[#allocation5 + $0x900] ss:$24 sps:$4 sm:$0xff]   ;;  %v9781_v3 = vld [vmem:[#allocation5 + $0xc10] ss:$24 sps:$4 sm:$0xff]   ;;  %2943 = vmatprep.subr.bf16.mxu0 %v9778_v1  ;;  %v9782_v4 = vld [vmem:[#allocation5 + $0x934] ss:$24 sps:$4 sm:$0xff]  }
  0x28   :  { %2433 = vmatpush1.bf16.msra.mxu1 %v9780_v2  ;;  %2944 = vmatpush1.bf16.msra.mxu0 %v9781_v3  ;;  %v9784_v5 = vld [vmem:[#allocation5 + $0xc44] ss:$24 sps:$4 sm:$0xff]   ;;  %v9786_v6 = vld [vmem:[#allocation5 + $0x930] ss:$24 sps:$4 sm:$0xff]   ;;  %v9787_v7 = vld [vmem:[#allocation5 + $0xc40] ss:$24 sps:$4 sm:$0xff]  }
  0x29   :  { %2434 = vmatprep.subr.bf16.mxu1 %v9782_v4  ;;  %2945 = vmatprep.subr.bf16.mxu0 %v9784_v5  ;;  %v9788_v8 = vld [vmem:[#allocation5 + $0x964] ss:$24 sps:$4 sm:$0xff]   ;;  %v9790_v9 = vld [vmem:[#allocation5 + $0xc74] ss:$24 sps:$4 sm:$0xff]   ;;  %v9792_v10 = vld [vmem:[#allocation5 + $0x960] ss:$24 sps:$4 sm:$0xff]  }
  0x2a   :  { %v9793_v11 = vld [vmem:[#allocation5 + $0xc70] ss:$24 sps:$4 sm:$0xff]   ;;  %v9794_v12 = vld [vmem:[#allocation5 + $0x994] ss:$24 sps:$4 sm:$0xff]   ;;  %v9796_v13 = vld [vmem:[#allocation5 + $0xca4] ss:$24 sps:$4 sm:$0xff]  }
  0x2b   :  { %v9798_v14 = vld [vmem:[#allocation5 + $0x990] ss:$24 sps:$4 sm:$0xff]   ;;  %v9799_v15 = vld [vmem:[#allocation5 + $0xca0] ss:$24 sps:$4 sm:$0xff]   ;;  %v9800_v16 = vld [vmem:[#allocation5 + $0x9c4] ss:$24 sps:$4 sm:$0xff]  }
  0x2c   :  { %2435 = vmatpush1.bf16.msra.mxu1 %v9786_v6  ;;  %2946 = vmatpush1.bf16.msra.mxu0 %v9787_v7  ;;  %v9802_v17 = vld [vmem:[#allocation5 + $0xcd4] ss:$24 sps:$4 sm:$0xff]   ;;  %v9804_v18 = vld [vmem:[#allocation5 + $0x9c0] ss:$24 sps:$4 sm:$0xff]   ;;  %v9805_v19 = vld [vmem:[#allocation5 + $0xcd0] ss:$24 sps:$4 sm:$0xff]  }
  0x2d   :  { %2436 = vmatprep.subr.bf16.mxu1 %v9788_v8  ;;  %2947 = vmatprep.subr.bf16.mxu0 %v9790_v9  ;;  %v9806_v20 = vld [vmem:[#allocation5 + $0x9f4] ss:$24 sps:$4 sm:$0xff]   ;;  %v9808_v21 = vld [vmem:[#allocation5 + $0xd04] ss:$24 sps:$4 sm:$0xff]   ;;  %v9810_v22 = vld [vmem:[#allocation5 + $0x9f0] ss:$24 sps:$4 sm:$0xff]   ;;  %v112_v8 = vlaneseq }
  0x2e   :  { %v9811_v23 = vld [vmem:[#allocation5 + $0xd00] ss:$24 sps:$4 sm:$0xff]   ;;  %v9812_v24 = vld [vmem:[#allocation5 + $0xa24] ss:$24 sps:$4 sm:$0xff]   ;;  %v9814_v25 = vld [vmem:[#allocation5 + $0xd34] ss:$24 sps:$4 sm:$0xff]  }
  0x2f   :  { %v9816_v26 = vld [vmem:[#allocation5 + $0xa20] ss:$24 sps:$4 sm:$0xff]   ;;  %v9817_v27 = vld [vmem:[#allocation5 + $0xd30] ss:$24 sps:$4 sm:$0xff]   ;;  %v9818_v28 = vld [vmem:[#allocation5 + $0xa54] ss:$24 sps:$4 sm:$0xff]  }
  0x30   :  { %2437 = vmatpush1.bf16.msra.mxu1 %v9792_v10  ;;  %2948 = vmatpush1.bf16.msra.mxu0 %v9793_v11  ;;  %v9820_v29 = vld [vmem:[#allocation5 + $0xd64] ss:$24 sps:$4 sm:$0xff]   ;;  %v9822_v30 = vld [vmem:[#allocation5 + $0xa50] ss:$24 sps:$4 sm:$0xff]   ;;  %v9823_v31 = vld [vmem:[#allocation5 + $0xd60] ss:$24 sps:$4 sm:$0xff]  }
  0x31   :  { %2438 = vmatprep.subr.bf16.mxu1 %v9794_v12  ;;  %2949 = vmatprep.subr.bf16.mxu0 %v9796_v13  ;;  %v9824_v32 = vld [vmem:[#allocation5 + $0xa84] ss:$24 sps:$4 sm:$0xff]   ;;  %v9826_v33 = vld [vmem:[#allocation5 + $0xd94] ss:$24 sps:$4 sm:$0xff]   ;;  %v9828_v34 = vld [vmem:[#allocation5 + $0xa80] ss:$24 sps:$4 sm:$0xff]  }
  0x32   :  { %v9829_v35 = vld [vmem:[#allocation5 + $0xd90] ss:$24 sps:$4 sm:$0xff]   ;;  %v9830_v36 = vld [vmem:[#allocation5 + $0xab4] ss:$24 sps:$4 sm:$0xff]   ;;  %v9832_v37 = vld [vmem:[#allocation5 + $0xdc4] ss:$24 sps:$4 sm:$0xff]  }
  0x33   :  { %v9834_v38 = vld [vmem:[#allocation5 + $0xab0] ss:$24 sps:$4 sm:$0xff]   ;;  %v9835_v39 = vld [vmem:[#allocation5 + $0xdc0] ss:$24 sps:$4 sm:$0xff]   ;;  %v9836_v40 = vld [vmem:[#allocation5 + $0xae4] ss:$24 sps:$4 sm:$0xff]  }
  0x34   :  { %2439 = vmatpush1.bf16.msra.mxu1 %v9798_v14  ;;  %2950 = vmatpush1.bf16.msra.mxu0 %v9799_v15  ;;  %v9838_v41 = vld [vmem:[#allocation5 + $0xdf4] ss:$24 sps:$4 sm:$0xff]   ;;  %v9840_v42 = vld [vmem:[#allocation5 + $0xae0] ss:$24 sps:$4 sm:$0xff]   ;;  %v9841_v43 = vld [vmem:[#allocation5 + $0xdf0] ss:$24 sps:$4 sm:$0xff]  }
  0x35   :  { %2440 = vmatprep.subr.bf16.mxu1 %v9800_v16  ;;  %2951 = vmatprep.subr.bf16.mxu0 %v9802_v17  ;;  %v9842_v44 = vld [vmem:[#allocation5 + $0xb14] ss:$24 sps:$4 sm:$0xff]   ;;  %v9844_v45 = vld [vmem:[#allocation5 + $0xe24] ss:$24 sps:$4 sm:$0xff]   ;;  %v9846_v46 = vld [vmem:[#allocation5 + $0xb10] ss:$24 sps:$4 sm:$0xff]  }
  0x36   :  { %v9847_v47 = vld [vmem:[#allocation5 + $0xe20] ss:$24 sps:$4 sm:$0xff]   ;;  %v9848_v50 = vld [vmem:[#allocation5 + $0xb44] ss:$24 sps:$4 sm:$0xff]   ;;  %v9850_v51 = vld [vmem:[#allocation5 + $0xe54] ss:$24 sps:$4 sm:$0xff]  }
  0x37   :  { %v11238_v48 = vld [vmem:[#allocation2] sm:$0xff]  ;;  %v11240_v49 = vld [vmem:[#allocation2 + $0x18] sm:$0xff]  ;;  %v11246_v53 = vld [vmem:[#allocation2 + $0x8] sm:$0xff]  ;;  %v11266_v13 = vshrl.u32 %v112_v8, 7  ;;  %vm11191_vm2 = vmmov 1   ;;  %s11192_s1 = smov [#allocation7]  }
  0x38   :  { %2441 = vmatpush1.bf16.msra.mxu1 %v9804_v18  ;;  %2952 = vmatpush1.bf16.msra.mxu0 %v9805_v19  ;;  %12724 = vst [vmem:[#allocation11_spill] sm:$0xff] %v11238_v48  ;;  %12725 = vst [vmem:[#allocation12_spill] sm:$0xff] %v11240_v49  ;;  %v11244_v52 = vcombine.high %v11238_v48, %v11240_v49  ;;  %v11248_v54 = vld [vmem:[#allocation2 + $0x20] sm:$0xff]  ;;  %v9853_v57 = vld [vmem:[#allocation5 + $0xe50] ss:$24 sps:$4 sm:$0xff]   ;;  %v12659_v4 = vunpack.c.l.bf16 %v11238_v48  ;;  %v12658_v5 = vunpack.c.l.bf16 %v11240_v49  ;;  %s7973_s6 = sshll.u32 %s11192_s1, 4  ;;  %s7974_s6 = int_to_ptr.vmem [resolvable:$true] %s7973_s6 }
  0x39   :  { %2442 = vmatprep.subr.bf16.mxu1 %v9806_v20  ;;  %2953 = vmatprep.subr.bf16.mxu0 %v9808_v21  ;;  %12727 = vst [vmem:[#allocation14_spill] sm:$0xff] %v11246_v53  ;;  %12728 = vst [vmem:[#allocation15_spill] sm:$0xff] %v11248_v54  ;;  %v9852_v55 = vld [vmem:[#allocation5 + $0xb40] ss:$24 sps:$4 sm:$0xff]   ;;  %v11253_v56 = vcombine.high %v11246_v53, %v11248_v54  ;;  %v9854_v58 = vld [vmem:[#allocation5 + $0xb74] ss:$24 sps:$4 sm:$0xff]   ;;  %v11270_v15 = vcombine.low %v11238_v48, %v11240_v49  ;;  %p11164_p3 = scmp.lt.s32.totalorder %s7974_s6, %s7974_s6 }
  0x3a   :  { %12726 = vst [vmem:[#allocation13_spill] sm:$0xff] %v11244_v52  ;;  %2464 = vmatprep.mubr.bf16.mxu1 %v11244_v52  ;;  %v9856_v59 = vld [vmem:[#allocation5 + $0xe84] ss:$24 sps:$4 sm:$0xff]   ;;  %v9858_v60 = vld [vmem:[#allocation5 + $0xb70] ss:$24 sps:$4 sm:$0xff]   ;;  %v11260_v10 = vrot.slane %v12659_v4, 7  ;;  %v11274_v16 = vcombine.low %v11246_v53, %v11248_v54 }
  0x3b   :  { %2975 = vmatprep.mubr.bf16.mxu0 %v11253_v56  ;;  %v9859_v61 = vld [vmem:[#allocation5 + $0xe80] ss:$24 sps:$4 sm:$0xff]   ;;  %v9860_v62 = vld [vmem:[#allocation5 + $0xba4] ss:$24 sps:$4 sm:$0xff]   ;;  %v9862_v63 = vld [vmem:[#allocation5 + $0xeb4] ss:$24 sps:$4 sm:$0xff]  }
  0x3c   :  { %2443 = vmatpush1.bf16.msra.mxu1 %v9810_v22  ;;  %2954 = vmatpush1.bf16.msra.mxu0 %v9811_v23  ;;  %v9864_v0 = vld [vmem:[#allocation5 + $0xba0] ss:$24 sps:$4 sm:$0xff]   ;;  %v9865_v1 = vld [vmem:[#allocation5 + $0xeb0] ss:$24 sps:$4 sm:$0xff]   ;;  %v9866_v2 = vld [vmem:[#allocation5 + $0xbd4] ss:$24 sps:$4 sm:$0xff]  }
  0x3d   :  { %2444 = vmatprep.subr.bf16.mxu1 %v9812_v24  ;;  %2955 = vmatprep.subr.bf16.mxu0 %v9814_v25  ;;  %v9868_v3 = vld [vmem:[#allocation5 + $0xee4] ss:$24 sps:$4 sm:$0xff]   ;;  %v9870_v6 = vld [vmem:[#allocation5 + $0xbd0] ss:$24 sps:$4 sm:$0xff]   ;;  %v9871_v7 = vld [vmem:[#allocation5 + $0xee0] ss:$24 sps:$4 sm:$0xff]  }
  0x3e   :  { %v9875_v9 = vld [vmem:[#allocation5 + $0xc04] ss:$24 sps:$4 sm:$0xff]   ;;  %v11264_v11 = vrot.slane %v12658_v5, 7  ;;  %v9879_v12 = vld [vmem:[#allocation5 + $0xf14] ss:$24 sps:$4 sm:$0xff]   ;;  %vm451_vm0 = vcmp.lt.s32.totalorder %v11266_v13, 1 }
  0x3f   :  { %v9873_v14 = vld [vmem:[#allocation5 + $0xc00] ss:$24 sps:$4 sm:$0xff]   ;;  %v9877_v17 = vld [vmem:[#allocation5 + $0xf10] ss:$24 sps:$4 sm:$0xff]   ;;  %v9884_v18 = vld [vmem:[#allocation5 + $0xc34] ss:$24 sps:$4 sm:$0xff]  }
  0x40   :  { %2445 = vmatpush1.bf16.msra.mxu1 %v9816_v26  ;;  %2956 = vmatpush1.bf16.msra.mxu0 %v9817_v27  ;;  %v9887_v19 = vld [vmem:[#allocation5 + $0xf44] ss:$24 sps:$4 sm:$0xff]   ;;  %v11281_v20 = vsel %vm451_vm0, %v11260_v10, %v11264_v11  ;;  %v9882_v21 = vld [vmem:[#allocation5 + $0xc30] ss:$24 sps:$4 sm:$0xff]   ;;  %v9885_v22 = vld [vmem:[#allocation5 + $0xf40] ss:$24 sps:$4 sm:$0xff]  }
  0x41   :  { %2446 = vmatprep.subr.bf16.mxu1 %v9818_v28  ;;  %2957 = vmatprep.subr.bf16.mxu0 %v9820_v29  ;;  %v9890_v23 = vld [vmem:[#allocation5 + $0xc64] ss:$24 sps:$4 sm:$0xff]   ;;  %v9893_v24 = vld [vmem:[#allocation5 + $0xf74] ss:$24 sps:$4 sm:$0xff]   ;;  %v9888_v25 = vld [vmem:[#allocation5 + $0xc60] ss:$24 sps:$4 sm:$0xff]  }
  0x42   :  { %v9891_v26 = vld [vmem:[#allocation5 + $0xf70] ss:$24 sps:$4 sm:$0xff]   ;;  %v9896_v29 = vld [vmem:[#allocation5 + $0xc94] ss:$24 sps:$4 sm:$0xff]   ;;  %vm5522_vm4 = vcmp.lt.s32.totalorder %v11266_v13, 7  ;;  %s11159_s7 = scalar_lea.vmem %s7974_s6, 3072 }
  0x43   :  { %v11285_v27 = vld [vmem:[#allocation2 + $0x30] sm:$0xff]  ;;  %v11287_v28 = vld [vmem:[#allocation2 + $0x48] sm:$0xff]  ;;  %p11160_p2 = scmp.ne.s32.totalorder %s7974_s6, %s11159_s7  ;;  %p11165_p4 = scmp.lt.s32.totalorder %s11159_s7, %s11159_s7 }
  0x44   :  { %2447 = vmatpush1.bf16.msra.mxu1 %v9822_v30  ;;  %2958 = vmatpush1.bf16.msra.mxu0 %v9823_v31  ;;  %12729 = vst [vmem:[#allocation16_spill] sm:$0xff] %v11285_v27  ;;  %12730 = vst [vmem:[#allocation17_spill] sm:$0xff] %v11287_v28  ;;  %v9899_v30 = vld [vmem:[#allocation5 + $0xfa4] ss:$24 sps:$4 sm:$0xff]   ;;  %v11291_v31 = vcombine.high %v11285_v27, %v11287_v28  ;;  %v10028_v5 = vld [vmem:[#allocation5 + $0x1050] ss:$24 sps:$4 sm:$0xff]  }
  0x45   :  { %2448 = vmatprep.subr.bf16.mxu1 %v9824_v32  ;;  %2959 = vmatprep.subr.bf16.mxu0 %v9826_v33  ;;  %v47_v32 = vld [vmem:[#allocation2 + $0x38] sm:$0xff]  ;;  %v50_v33 = vld [vmem:[#allocation2 + $0x50] sm:$0xff]  ;;  %p11166_p5 = por %p11165_p4, %p11164_p3 }
  0x46   :  { %v10031_v4 = vld [vmem:[#allocation5 + $0x150] ss:$24 sps:$4 sm:$0xff]  }
  0x47   :  { %p11167_p6 = pnand %p11166_p5, %p11160_p2 }
  0x48   :  { %2449 = vmatpush1.bf16.msra.mxu1 %v9828_v34  ;;  %2960 = vmatpush1.bf16.msra.mxu0 %v9829_v35  ;;  %v11295_v34 = vcombine.low %v11285_v27, %v11287_v28  ;;  %v9894_v35 = vld [vmem:[#allocation5 + $0xc90] ss:$24 sps:$4 sm:$0xff]  }
  0x49   :  { %2450 = vmatprep.subr.bf16.mxu1 %v9830_v36  ;;  %2961 = vmatprep.subr.bf16.mxu0 %v9832_v37  ;;  %v11298_v36 = vcombine.high %v47_v32, %v50_v33  ;;  %v11300_v37 = vcombine.low %v47_v32, %v50_v33  ;;  %v9927_v32 = vld [vmem:[#allocation5 + $0x1090] ss:$24 sps:$4 sm:$0xff]   ;;  %v9932_v33 = vld [vmem:[#allocation5 + $0xdb4] ss:$24 sps:$4 sm:$0xff]  }
  0x4c   :  { %2451 = vmatpush1.bf16.msra.mxu1 %v9834_v38  ;;  %2962 = vmatpush1.bf16.msra.mxu0 %v9835_v39  ;;  %v9897_v38 = vld [vmem:[#allocation5 + $0xfa0] ss:$24 sps:$4 sm:$0xff]   ;;  %v9902_v39 = vld [vmem:[#allocation5 + $0xcc4] ss:$24 sps:$4 sm:$0xff]  }
  0x4d   :  { %2452 = vmatprep.subr.bf16.mxu1 %v9836_v40  ;;  %2963 = vmatprep.subr.bf16.mxu0 %v9838_v41  ;;  %v9905_v40 = vld [vmem:[#allocation5 + $0xfd4] ss:$24 sps:$4 sm:$0xff]   ;;  %v11302_v41 = vld [vmem:[#allocation2 + $0x60] sm:$0xff] }
  0x4e   :  { %12731 = vst [vmem:[#allocation18_spill] sm:$0xff] %v11302_v41 }
  0x50   :  { %2453 = vmatpush1.bf16.msra.mxu1 %v9840_v42  ;;  %2964 = vmatpush1.bf16.msra.mxu0 %v9841_v43  ;;  %v11306_v42 = vld [vmem:[#allocation2 + $0x78] sm:$0xff] }
  0x51   :  { %2454 = vmatprep.subr.bf16.mxu1 %v9842_v44  ;;  %2965 = vmatprep.subr.bf16.mxu0 %v9844_v45  ;;  %12732 = vst [vmem:[#allocation19_spill] sm:$0xff] %v11306_v42  ;;  %v9900_v43 = vld [vmem:[#allocation5 + $0xcc0] ss:$24 sps:$4 sm:$0xff]   ;;  %v9903_v44 = vld [vmem:[#allocation5 + $0xfd0] ss:$24 sps:$4 sm:$0xff]   ;;  %v11311_v45 = vcombine.high %v11302_v41, %v11306_v42 }
  0x53   :  { %12733 = vst [vmem:[#allocation20_spill] sm:$0xff] %v11311_v45 }
  0x54   :  { %2455 = vmatpush1.bf16.msra.mxu1 %v9846_v46  ;;  %2966 = vmatpush1.bf16.msra.mxu0 %v9847_v47  ;;  %v53_v46 = vld [vmem:[#allocation2 + $0x68] sm:$0xff]  ;;  %v56_v47 = vld [vmem:[#allocation2 + $0x80] sm:$0xff] }
  0x55   :  { %2456 = vmatprep.subr.bf16.mxu1 %v9848_v50  ;;  %2967 = vmatprep.subr.bf16.mxu0 %v9850_v51  ;;  %v9908_v50 = vld [vmem:[#allocation5 + $0xcf4] ss:$24 sps:$4 sm:$0xff]   ;;  %v9911_v51 = vld [vmem:[#allocation5 + $0x1004] ss:$24 sps:$4 sm:$0xff]  }
  0x58   :  { %2457 = vmatpush1.bf16.msra.mxu1 %v9852_v55  ;;  %2968 = vmatpush1.bf16.msra.mxu0 %v9853_v57  ;;  %v11313_v55 = vcombine.high %v53_v46, %v56_v47  ;;  %v9906_v57 = vld [vmem:[#allocation5 + $0xcf0] ss:$24 sps:$4 sm:$0xff]  }
  0x59   :  { %2458 = vmatprep.subr.bf16.mxu1 %v9854_v58  ;;  %2969 = vmatprep.subr.bf16.mxu0 %v9856_v59  ;;  %v11318_v58 = vcombine.low %v11302_v41, %v11306_v42  ;;  %v9909_v59 = vld [vmem:[#allocation5 + $0x1000] ss:$24 sps:$4 sm:$0xff]  }
  0x5c   :  { %2459 = vmatpush1.bf16.msra.mxu1 %v9858_v60  ;;  %2970 = vmatpush1.bf16.msra.mxu0 %v9859_v61  ;;  %v11321_v60 = vcombine.low %v53_v46, %v56_v47  ;;  %v9914_v61 = vld [vmem:[#allocation5 + $0xd24] ss:$24 sps:$4 sm:$0xff]   ;;  %v9943_v46 = vld [vmem:[#allocation5 + $0x10f4] ss:$24 sps:$4 sm:$0xff]   ;;  %v9937_v47 = vld [vmem:[#allocation5 + $0xde0] ss:$24 sps:$4 sm:$0xff]  }
  0x5d   :  { %2460 = vmatprep.subr.bf16.mxu1 %v9860_v62  ;;  %2971 = vmatprep.subr.bf16.mxu0 %v9862_v63  ;;  %v11323_v62 = vld [vmem:[#allocation2 + $0x90] sm:$0xff]  ;;  %v11325_v63 = vld [vmem:[#allocation2 + $0xa8] sm:$0xff] }
  0x5e   :  { %12734 = vst [vmem:[#allocation21_spill] sm:$0xff] %v11323_v62  ;;  %12735 = vst [vmem:[#allocation22_spill] sm:$0xff] %v11325_v63 }
  0x60   :  { %2461 = vmatpush1.bf16.msra.mxu1 %v9864_v0  ;;  %2972 = vmatpush1.bf16.msra.mxu0 %v9865_v1  ;;  %v9917_v0 = vld [vmem:[#allocation5 + $0x1034] ss:$24 sps:$4 sm:$0xff]   ;;  %v12650_v1 = vunpack.c.l.bf16 %v11325_v63 }
  0x61   :  { %2462 = vmatprep.subr.bf16.mxu1 %v9866_v2  ;;  %2973 = vmatprep.subr.bf16.mxu0 %v9868_v3  ;;  %v11331_v2 = vcombine.high %v11323_v62, %v11325_v63  ;;  %v59_v3 = vld [vmem:[#allocation2 + $0x98] sm:$0xff] }
  0x62   :  { %v11338_v8 = vrot.slane %v12650_v1, 7 }
  0x64   :  { %2463 = vmatpush1.bf16.msra.mxu1 %v9870_v6  ;;  %2974 = vmatpush1.bf16.msra.mxu0 %v9871_v7  ;;  %v11333_v6 = vld [vmem:[#allocation2 + $0xb0] sm:$0xff]  ;;  %v9912_v7 = vld [vmem:[#allocation5 + $0xd20] ss:$24 sps:$4 sm:$0xff]  }
  0x65   :  { %2505 = vmatprep.subr.bf16.mxu1 %v9875_v9  ;;  %3016 = vmatprep.subr.bf16.mxu0 %v9879_v12  ;;  %12736 = vst [vmem:[#allocation23_spill] sm:$0xff] %v11333_v6  ;;  %v9915_v9 = vld [vmem:[#allocation5 + $0x1030] ss:$24 sps:$4 sm:$0xff]   ;;  %v11341_v12 = vcombine.high %v59_v3, %v11333_v6 }
  0x67   :  { %2465 = vmatmul.mubr.bf16.vlgmr.msra.gmra.mrb[0].mxu1 %v11270_v15  ;;  %2976 = vmatmul.mubr.bf16.vlgmr.msra.gmra.mrb[0].mxu0 %v11274_v16 }
  0x68   :  { %2506 = vmatpush1.bf16.msra.mxu1 %v9873_v14  ;;  %3017 = vmatpush1.bf16.msra.mxu0 %v9877_v17  ;;  %v9920_v14 = vld [vmem:[#allocation5 + $0xd54] ss:$24 sps:$4 sm:$0xff]   ;;  %v9923_v17 = vld [vmem:[#allocation5 + $0x1064] ss:$24 sps:$4 sm:$0xff]  }
  0x69   :  { %2507 = vmatprep.subr.bf16.mxu1 %v9884_v18  ;;  %3018 = vmatprep.subr.bf16.mxu0 %v9887_v19  ;;  %v494_v18 = vsel %vm451_vm0, %v11338_v8, %v11260_v10  ;;  %v9918_v19 = vld [vmem:[#allocation5 + $0xd50] ss:$24 sps:$4 sm:$0xff]  }
  0x6a   :  { %2474 = vmatprep.mubr.bf16.mxu1 %v11291_v31  ;;  %2985 = vmatprep.mubr.bf16.mxu0 %v11298_v36  ;;  %v11359_v10 = vld [vmem:[#allocation2 + $0x10] sm:$0xff] }
  0x6b   :  { %12737 = vst [vmem:[#allocation24_spill] sm:$0xff] %v11359_v10 }
  0x6c   :  { %2508 = vmatpush1.bf16.msra.mxu1 %v9882_v21  ;;  %3019 = vmatpush1.bf16.msra.mxu0 %v9885_v22  ;;  %v11351_v21 = vcombine.low %v11323_v62, %v11325_v63  ;;  %v11354_v22 = vpack.c.bf16 %v11281_v20, %v494_v18  ;;  %v9959_v18 = vld [vmem:[#allocation5 + $0x1154] ss:$24 sps:$4 sm:$0xff]  }
  0x6d   :  { %2509 = vmatprep.subr.bf16.mxu1 %v9890_v23  ;;  %3020 = vmatprep.subr.bf16.mxu0 %v9893_v24  ;;  %v9921_v23 = vld [vmem:[#allocation5 + $0x1060] ss:$24 sps:$4 sm:$0xff]   ;;  %v11357_v24 = vcombine.low %v59_v3, %v11333_v6 }
  0x6f   :  { %2475 = vmatmul.mubr.bf16.gmra.mrb[4].mxu1 %v11295_v34  ;;  %2986 = vmatmul.mubr.bf16.gmra.mrb[4].mxu0 %v11300_v37 }
  0x70   :  { %2510 = vmatpush1.bf16.msra.mxu1 %v9888_v25  ;;  %3021 = vmatpush1.bf16.msra.mxu0 %v9891_v26  ;;  %v9926_v25 = vld [vmem:[#allocation5 + $0xd84] ss:$24 sps:$4 sm:$0xff]   ;;  %v11361_v26 = vld [vmem:[#allocation2 + $0x28] sm:$0xff] }
  0x71   :  { %2511 = vmatprep.subr.bf16.mxu1 %v9896_v29  ;;  %3022 = vmatprep.subr.bf16.mxu0 %v9899_v30  ;;  %12738 = vst [vmem:[#allocation25_spill] sm:$0xff] %v11361_v26  ;;  %v9929_v29 = vld [vmem:[#allocation5 + $0x1094] ss:$24 sps:$4 sm:$0xff]   ;;  %v11366_v20 = vcombine.high %v11359_v10, %v11361_v26  ;;  %v9924_v30 = vld [vmem:[#allocation5 + $0xd80] ss:$24 sps:$4 sm:$0xff]  }
  0x72   :  { %2484 = vmatprep.mubr.bf16.mxu1 %v11311_v45  ;;  %2995 = vmatprep.mubr.bf16.mxu0 %v11313_v55 }
  0x74   :  { %2512 = vmatpush1.bf16.msra.mxu1 %v9894_v35  ;;  %3023 = vmatpush1.bf16.msra.mxu0 %v9897_v38  ;;  %v9935_v35 = vld [vmem:[#allocation5 + $0x10c4] ss:$24 sps:$4 sm:$0xff]   ;;  %v9930_v38 = vld [vmem:[#allocation5 + $0xdb0] ss:$24 sps:$4 sm:$0xff]  }
  0x75   :  { %2513 = vmatprep.subr.bf16.mxu1 %v9902_v39  ;;  %3024 = vmatprep.subr.bf16.mxu0 %v9905_v40  ;;  %v12654_v39 = vunpack.c.l.bf16 %v11285_v27  ;;  %v9933_v40 = vld [vmem:[#allocation5 + $0x10c0] ss:$24 sps:$4 sm:$0xff]  }
  0x77   :  { %2485 = vmatmul.mubr.bf16.gmra.mrb[8].mxu1 %v11318_v58  ;;  %2996 = vmatmul.mubr.bf16.gmra.mrb[8].mxu0 %v11321_v60 }
  0x78   :  { %2514 = vmatpush1.bf16.msra.mxu1 %v9900_v43  ;;  %3025 = vmatpush1.bf16.msra.mxu0 %v9903_v44  ;;  %v12651_v43 = vunpack.c.l.bf16 %v11287_v28  ;;  %v9939_v44 = vld [vmem:[#allocation5 + $0xde4] ss:$24 sps:$4 sm:$0xff]  }
  0x79   :  { %2515 = vmatprep.subr.bf16.mxu1 %v9908_v50  ;;  %3026 = vmatprep.subr.bf16.mxu0 %v9911_v51  ;;  %v415_v50 = vrot.slane %v12654_v39, 7  ;;  %v9941_v51 = vld [vmem:[#allocation5 + $0x10f0] ss:$24 sps:$4 sm:$0xff]  }
  0x7a   :  { %2494 = vmatprep.mubr.bf16.mxu1 %v11331_v2  ;;  %3005 = vmatprep.mubr.bf16.mxu0 %v11341_v12  ;;  %v10019_v39 = vld [vmem:[#allocation5 + $0xf0] ss:$24 sps:$4 sm:$0xff]  }
  0x7c   :  { %2516 = vmatpush1.bf16.msra.mxu1 %v9906_v57  ;;  %3027 = vmatpush1.bf16.msra.mxu0 %v9909_v59  ;;  %v11377_v57 = vrot.slane %v12651_v43, 7  ;;  %v9948_v59 = vld [vmem:[#allocation5 + $0xe14] ss:$24 sps:$4 sm:$0xff]  }
  0x7d   :  { %2517 = vmatprep.subr.bf16.mxu1 %v9914_v61  ;;  %3028 = vmatprep.subr.bf16.mxu0 %v9917_v0  ;;  %v9951_v61 = vld [vmem:[#allocation5 + $0x1124] ss:$24 sps:$4 sm:$0xff]   ;;  %v482_v0 = vsel %vm451_vm0, %v11264_v11, %v415_v50  ;;  %v9964_v11 = vld [vmem:[#allocation5 + $0xe74] ss:$24 sps:$4 sm:$0xff]  }
  0x7e   :  { %v476_v3 = vsel %vm451_vm0, %v415_v50, %v11377_v57  ;;  %v9983_v50 = vld [vmem:[#allocation5 + $0x11e4] ss:$24 sps:$4 sm:$0xff]  }
  0x7f   :  { %2495 = vmatmul.mubr.bf16.gmra.mrb[12].mxu1 %v11351_v21  ;;  %3006 = vmatmul.mubr.bf16.gmra.mrb[12].mxu0 %v11357_v24 }
  0x80   :  { %2518 = vmatpush1.bf16.msra.mxu1 %v9912_v7  ;;  %3029 = vmatpush1.bf16.msra.mxu0 %v9915_v9  ;;  %v9946_v7 = vld [vmem:[#allocation5 + $0xe10] ss:$24 sps:$4 sm:$0xff]   ;;  %v11385_v9 = vpack.c.bf16 %v476_v3, %v482_v0  ;;  %v9986_v0 = vld [vmem:[#allocation5 + $0xf04] ss:$24 sps:$4 sm:$0xff]  }
  0x81   :  { %2519 = vmatprep.subr.bf16.mxu1 %v9920_v14  ;;  %3030 = vmatprep.subr.bf16.mxu0 %v9923_v17  ;;  %v9949_v14 = vld [vmem:[#allocation5 + $0x1120] ss:$24 sps:$4 sm:$0xff]   ;;  %v9955_v17 = vld [vmem:[#allocation5 + $0xe44] ss:$24 sps:$4 sm:$0xff]  }
  0x82   :  { %2537 = vmatprep.mubr.bf16.mxu1 %v11253_v56  ;;  %3048 = vmatprep.mubr.bf16.mxu0 %v11366_v20 }
  0x84   :  { %2520 = vmatpush1.bf16.msra.mxu1 %v9918_v19  ;;  %3031 = vmatpush1.bf16.msra.mxu0 %v9921_v23  ;;  %v9953_v19 = vld [vmem:[#allocation5 + $0xe40] ss:$24 sps:$4 sm:$0xff]   ;;  %v9957_v23 = vld [vmem:[#allocation5 + $0x1150] ss:$24 sps:$4 sm:$0xff]  }
  0x85   :  { %2521 = vmatprep.subr.bf16.mxu1 %v9926_v25  ;;  %3032 = vmatprep.subr.bf16.mxu0 %v9929_v29  ;;  %v9967_v25 = vld [vmem:[#allocation5 + $0x1184] ss:$24 sps:$4 sm:$0xff]   ;;  %v9962_v29 = vld [vmem:[#allocation5 + $0xe70] ss:$24 sps:$4 sm:$0xff]  }
  0x88   :  { %2522 = vmatpush1.bf16.msra.mxu1 %v9924_v30  ;;  %3033 = vmatpush1.bf16.msra.mxu0 %v9927_v32  ;;  %v9965_v30 = vld [vmem:[#allocation5 + $0x1180] ss:$24 sps:$4 sm:$0xff]   ;;  %v9971_v32 = vld [vmem:[#allocation5 + $0xea4] ss:$24 sps:$4 sm:$0xff]  }
  0x89   :  { %2523 = vmatprep.subr.bf16.mxu1 %v9932_v33  ;;  %3034 = vmatprep.subr.bf16.mxu0 %v9935_v35  ;;  %v9975_v33 = vld [vmem:[#allocation5 + $0x11b4] ss:$24 sps:$4 sm:$0xff]   ;;  %v12653_v35 = vunpack.c.l.bf16 %v11246_v53  ;;  %v10106_v53 = vld [vmem:[#allocation5 + $0x998] ss:$24 sps:$4 sm:$0xff]  }
  0x8c   :  { %2524 = vmatpush1.bf16.msra.mxu1 %v9930_v38  ;;  %3035 = vmatpush1.bf16.msra.mxu0 %v9933_v40  ;;  %v9969_v38 = vld [vmem:[#allocation5 + $0xea0] ss:$24 sps:$4 sm:$0xff]   ;;  %v9973_v40 = vld [vmem:[#allocation5 + $0x11b0] ss:$24 sps:$4 sm:$0xff]  }
  0x8d   :  { %2525 = vmatprep.subr.bf16.mxu1 %v9939_v44  ;;  %3036 = vmatprep.subr.bf16.mxu0 %v9943_v46  ;;  %v9980_v44 = vld [vmem:[#allocation5 + $0xed4] ss:$24 sps:$4 sm:$0xff]   ;;  %v12652_v46 = vunpack.c.l.bf16 %v11248_v54 }
  0x8f   :  { %v11394_v3 = vrot.slane %v12652_v46, 7 }
  0x90   :  { %2526 = vmatpush1.bf16.msra.mxu1 %v9937_v47  ;;  %3037 = vmatpush1.bf16.msra.mxu0 %v9941_v51  ;;  %v12649_v47 = vunpack.c.l.bf16 %v11333_v6  ;;  %v9978_v51 = vld [vmem:[#allocation5 + $0xed0] ss:$24 sps:$4 sm:$0xff]   ;;  %v10056_v6 = vld [vmem:[#allocation5 + $0x1114] ss:$24 sps:$4 sm:$0xff]  }
  0x91   :  { %2527 = vmatprep.subr.bf16.mxu1 %v9948_v59  ;;  %3038 = vmatprep.subr.bf16.mxu0 %v9951_v61  ;;  %v405_v59 = vrot.slane %v12653_v35, 7  ;;  %v9981_v61 = vld [vmem:[#allocation5 + $0x11e0] ss:$24 sps:$4 sm:$0xff]  }
  0x94   :  { %2528 = vmatpush1.bf16.msra.mxu1 %v9946_v7  ;;  %3039 = vmatpush1.bf16.msra.mxu0 %v9949_v14  ;;  %v11398_v7 = vrot.slane %v12649_v47, 7  ;;  %v9990_v14 = vld [vmem:[#allocation5 + $0x4] ss:$24 sps:$4 sm:$0xff]   ;;  %v12657_v47 = vunpack.c.h.bf16 %v11325_v63  ;;  %v10078_v63 = vld [vmem:[#allocation5 + $0x2a0] ss:$24 sps:$4 sm:$0xff]  }
  0x95   :  { %2529 = vmatprep.subr.bf16.mxu1 %v9955_v17  ;;  %3040 = vmatprep.subr.bf16.mxu0 %v9959_v18  ;;  %v9984_v17 = vld [vmem:[#allocation5 + $0xf00] ss:$24 sps:$4 sm:$0xff]  }
  0x96   :  { %v48_v18 = vld [vmem:[#allocation2 + $0x40] sm:$0xff] }
  0x98   :  { %2530 = vmatpush1.bf16.msra.mxu1 %v9953_v19  ;;  %3041 = vmatpush1.bf16.msra.mxu0 %v9957_v23  ;;  %v11402_v19 = vcombine.low %v11359_v10, %v11361_v26  ;;  %v51_v23 = vld [vmem:[#allocation2 + $0x58] sm:$0xff] }
  0x99   :  { %2531 = vmatprep.subr.bf16.mxu1 %v9964_v11  ;;  %3042 = vmatprep.subr.bf16.mxu0 %v9967_v25  ;;  %v9988_v11 = vld [vmem:[#allocation5] ss:$24 sps:$4 sm:$0xff]   ;;  %v9994_v25 = vld [vmem:[#allocation5 + $0xf34] ss:$24 sps:$4 sm:$0xff]  }
  0x9c   :  { %2532 = vmatpush1.bf16.msra.mxu1 %v9962_v29  ;;  %3043 = vmatpush1.bf16.msra.mxu0 %v9965_v30  ;;  %v9997_v29 = vld [vmem:[#allocation5 + $0x34] ss:$24 sps:$4 sm:$0xff]   ;;  %v490_v30 = vsel %vm451_vm0, %v405_v59, %v11394_v3 }
  0x9d   :  { %2533 = vmatprep.subr.bf16.mxu1 %v9971_v32  ;;  %3044 = vmatprep.subr.bf16.mxu0 %v9975_v33  ;;  %v496_v32 = vsel %vm451_vm0, %v11398_v7, %v405_v59  ;;  %v11410_v33 = vcombine.high %v48_v18, %v51_v23  ;;  %v11418_v59 = vcombine.low %v48_v18, %v51_v23  ;;  %v10012_v18 = vld [vmem:[#allocation5 + $0xfc4] ss:$24 sps:$4 sm:$0xff]  }
  0x9e   :  { %v10015_v23 = vld [vmem:[#allocation5 + $0xc4] ss:$24 sps:$4 sm:$0xff]  }
  0xa0   :  { %2534 = vmatpush1.bf16.msra.mxu1 %v9969_v38  ;;  %3045 = vmatpush1.bf16.msra.mxu0 %v9973_v40  ;;  %v11412_v38 = vpack.c.bf16 %v490_v30, %v496_v32  ;;  %v9992_v40 = vld [vmem:[#allocation5 + $0xf30] ss:$24 sps:$4 sm:$0xff]   ;;  %v10001_v30 = vld [vmem:[#allocation5 + $0x60] ss:$24 sps:$4 sm:$0xff]  }
  0xa1   :  { %2535 = vmatprep.subr.bf16.mxu1 %v9980_v44  ;;  %3046 = vmatprep.subr.bf16.mxu0 %v9983_v50  ;;  %v9995_v44 = vld [vmem:[#allocation5 + $0x30] ss:$24 sps:$4 sm:$0xff]   ;;  %v10000_v50 = vld [vmem:[#allocation5 + $0xf64] ss:$24 sps:$4 sm:$0xff]  }
  0xa4   :  { %2536 = vmatpush1.bf16.msra.mxu1 %v9978_v51  ;;  %3047 = vmatpush1.bf16.msra.mxu0 %v9981_v61  ;;  %v10003_v51 = vld [vmem:[#allocation5 + $0x64] ss:$24 sps:$4 sm:$0xff]   ;;  %v9998_v61 = vld [vmem:[#allocation5 + $0xf60] ss:$24 sps:$4 sm:$0xff]  }
  0xa5   :  { %2578 = vmatprep.subr.bf16.mxu1 %v9986_v0  ;;  %4529 = vmatprep.subr.bf16.mxu0 %v9990_v14  ;;  %v54_v0 = vld [vmem:[#allocation2 + $0x70] sm:$0xff]  ;;  %v57_v14 = vld [vmem:[#allocation2 + $0x88] sm:$0xff] }
  0xa6   :  { %v11420_v32 = vcombine.high %v54_v0, %v57_v14  ;;  %v11429_v1 = vcombine.low %v54_v0, %v57_v14  ;;  %v500_v0 = vadd.s32 4294967295, %v11266_v13  ;;  %v10016_v14 = vld [vmem:[#allocation5 + $0xff0] ss:$24 sps:$4 sm:$0xff]  }
  0xa7   :  { %2538 = vmatmul.mubr.bf16.vlgmr.msra.gmra.mrb[0].mxu1 %v11274_v16  ;;  %3049 = vmatmul.mubr.bf16.vlgmr.msra.gmra.mrb[0].mxu0 %v11402_v19 }
  0xa8   :  { %2579 = vmatpush1.bf16.msra.mxu1 %v9984_v17  ;;  %4530 = vmatpush1.bf16.msra.mxu0 %v9988_v11  ;;  %v10006_v17 = vld [vmem:[#allocation5 + $0xf94] ss:$24 sps:$4 sm:$0xff]   ;;  %vm502_vm1 = vcmp.ge.s32.totalorder %v500_v0, 0  ;;  %v10037_v0 = vld [vmem:[#allocation5 + $0x180] ss:$24 sps:$4 sm:$0xff]  }
  0xa9   :  { %2580 = vmatprep.subr.bf16.mxu1 %v9994_v25  ;;  %4531 = vmatprep.subr.bf16.mxu0 %v9997_v29  ;;  %v10009_v11 = vld [vmem:[#allocation5 + $0x94] ss:$24 sps:$4 sm:$0xff]   ;;  %v10004_v25 = vld [vmem:[#allocation5 + $0xf90] ss:$24 sps:$4 sm:$0xff]   ;;  %vm11461_vm3 = vmpackc.low %vm11191_vm2, %vm502_vm1 }
  0xaa   :  { %2547 = vmatprep.mubr.bf16.mxu1 %v11298_v36  ;;  %3058 = vmatprep.mubr.bf16.mxu0 %v11410_v33  ;;  %v10007_v29 = vld [vmem:[#allocation5 + $0x90] ss:$24 sps:$4 sm:$0xff]  }
  0xac   :  { %2581 = vmatpush1.bf16.msra.mxu1 %v9992_v40  ;;  %4532 = vmatpush1.bf16.msra.mxu0 %v9995_v44  ;;  %v12656_v40 = vunpack.c.h.bf16 %v11238_v48  ;;  %v12655_v44 = vunpack.c.h.bf16 %v11240_v49 }
  0xad   :  { %2582 = vmatprep.subr.bf16.mxu1 %v10000_v50  ;;  %4533 = vmatprep.subr.bf16.mxu0 %v10003_v51  ;;  %v10010_v50 = vld [vmem:[#allocation5 + $0xfc0] ss:$24 sps:$4 sm:$0xff]  }
  0xae   :  { %v10013_v51 = vld [vmem:[#allocation5 + $0xc0] ss:$24 sps:$4 sm:$0xff]   ;;  %v404_v46 = vrot.slane %v12656_v40, 7  ;;  %v11440_v35 = vrot.slane %v12655_v44, 7 }
  0xaf   :  { %2548 = vmatmul.mubr.bf16.gmra.mrb[4].mxu1 %v11300_v37  ;;  %3059 = vmatmul.mubr.bf16.gmra.mrb[4].mxu0 %v11418_v59  ;;  %v10025_v44 = vld [vmem:[#allocation5 + $0x120] ss:$24 sps:$4 sm:$0xff]  }
  0xb0   :  { %2583 = vmatpush1.bf16.msra.mxu1 %v9998_v61  ;;  %4534 = vmatpush1.bf16.msra.mxu0 %v10001_v30  ;;  %v60_v61 = vld [vmem:[#allocation2 + $0xa0] sm:$0xff]  ;;  %v11431_v30 = vld [vmem:[#allocation2 + $0xb8] sm:$0xff] }
  0xb1   :  { %2584 = vmatprep.subr.bf16.mxu1 %v10006_v17  ;;  %4535 = vmatprep.subr.bf16.mxu0 %v10009_v11  ;;  %12739 = vst [vmem:[#allocation26_spill] sm:$0xff] %v11431_v30  ;;  %v10018_v17 = vld [vmem:[#allocation5 + $0xff4] ss:$24 sps:$4 sm:$0xff]   ;;  %v11434_v43 = vcombine.high %v60_v61, %v11431_v30  ;;  %v11452_v40 = vcombine.low %v60_v61, %v11431_v30 }
  0xb2   :  { %2557 = vmatprep.mubr.bf16.mxu1 %v11313_v55  ;;  %3068 = vmatprep.mubr.bf16.mxu0 %v11420_v32  ;;  %v10021_v11 = vld [vmem:[#allocation5 + $0xf4] ss:$24 sps:$4 sm:$0xff]  }
  0xb4   :  { %2585 = vmatpush1.bf16.msra.mxu1 %v10004_v25  ;;  %4536 = vmatpush1.bf16.msra.mxu0 %v10007_v29  ;;  %v11447_v25 = vrot.slane %v12657_v47, 7  ;;  %v10024_v29 = vld [vmem:[#allocation5 + $0x1024] ss:$24 sps:$4 sm:$0xff]   ;;  %v489_v47 = vsel %vm451_vm0, %v404_v46, %v11440_v35 }
  0xb5   :  { %2586 = vmatprep.subr.bf16.mxu1 %v10012_v18  ;;  %4537 = vmatprep.subr.bf16.mxu0 %v10015_v23  ;;  %v10027_v18 = vld [vmem:[#allocation5 + $0x124] ss:$24 sps:$4 sm:$0xff]   ;;  %v10022_v23 = vld [vmem:[#allocation5 + $0x1020] ss:$24 sps:$4 sm:$0xff]  }
  0xb7   :  { %2558 = vmatmul.mubr.bf16.gmra.mrb[8].mxu1 %v11321_v60  ;;  %3069 = vmatmul.mubr.bf16.gmra.mrb[8].mxu0 %v11429_v1 }
  0xb8   :  { %2587 = vmatpush1.bf16.msra.mxu1 %v10010_v50  ;;  %4538 = vmatpush1.bf16.msra.mxu0 %v10013_v51  ;;  %v495_v50 = vsel %vm451_vm0, %v11447_v25, %v404_v46  ;;  %v10030_v51 = vld [vmem:[#allocation5 + $0x1054] ss:$24 sps:$4 sm:$0xff]   ;;  %v10039_v46 = vld [vmem:[#allocation5 + $0x184] ss:$24 sps:$4 sm:$0xff]  }
  0xb9   :  { %2588 = vmatprep.subr.bf16.mxu1 %v10018_v17  ;;  %4539 = vmatprep.subr.bf16.mxu0 %v10021_v11  ;;  %v10033_v17 = vld [vmem:[#allocation5 + $0x154] ss:$24 sps:$4 sm:$0xff]   ;;  %v11465_v11 = vpack.c.bf16 %v489_v47, %v495_v50  ;;  %v10034_v47 = vld [vmem:[#allocation5 + $0x1080] ss:$24 sps:$4 sm:$0xff]   ;;  %v10052_v50 = vld [vmem:[#allocation5 + $0x1e4] ss:$24 sps:$4 sm:$0xff]  }
  0xba   :  { %2567 = vmatprep.mubr.bf16.mxu1 %v11341_v12  ;;  %3078 = vmatprep.mubr.bf16.mxu0 %v11434_v43 }
  0xbc   :  { %2589 = vmatpush1.bf16.msra.mxu1 %v10016_v14  ;;  %4540 = vmatpush1.bf16.msra.mxu0 %v10019_v39  ;;  %v10036_v39 = vld [vmem:[#allocation5 + $0x1084] ss:$24 sps:$4 sm:$0xff]   ;;  %v10042_v14 = vld [vmem:[#allocation5 + $0x10b4] ss:$24 sps:$4 sm:$0xff]  }
  0xbd   :  { %2590 = vmatprep.subr.bf16.mxu1 %v10024_v29  ;;  %4541 = vmatprep.subr.bf16.mxu0 %v10027_v18  ;;  %v10045_v29 = vld [vmem:[#allocation5 + $0x1b4] ss:$24 sps:$4 sm:$0xff]   ;;  %v10040_v18 = vld [vmem:[#allocation5 + $0x10b0] ss:$24 sps:$4 sm:$0xff]  }
  0xbf   :  { %2568 = vmatmul.mubr.bf16.gmra.mrb[12].mxu1 %v11357_v24  ;;  %3079 = vmatmul.mubr.bf16.gmra.mrb[12].mxu0 %v11452_v40 }
  0xc0   :  { %2591 = vmatpush1.bf16.msra.mxu1 %v10022_v23  ;;  %4542 = vmatpush1.bf16.msra.mxu0 %v10025_v44  ;;  %v10043_v44 = vld [vmem:[#allocation5 + $0x1b0] ss:$24 sps:$4 sm:$0xff]   ;;  %v10048_v23 = vld [vmem:[#allocation5 + $0x10e4] ss:$24 sps:$4 sm:$0xff]  }
  0xc1   :  { %2592 = vmatprep.subr.bf16.mxu1 %v10030_v51  ;;  %4543 = vmatprep.subr.bf16.mxu0 %v10033_v17  ;;  %v10046_v51 = vld [vmem:[#allocation5 + $0x10e0] ss:$24 sps:$4 sm:$0xff]  }
  0xc2   :  { %2610 = vmatprep.mubr.bf16.mxu1 %v11366_v20  ;;  %8588 = vmatprep.mubr.msk.bf16.mxu0 %vm11461_vm3, %v11465_v11  ;;  %v10050_v17 = vld [vmem:[#allocation5 + $0x1e0] ss:$24 sps:$4 sm:$0xff]  }
  0xc4   :  { %2593 = vmatpush1.bf16.msra.mxu1 %v10028_v5  ;;  %4544 = vmatpush1.bf16.msra.mxu0 %v10031_v4  ;;  %v10059_v4 = vld [vmem:[#allocation5 + $0x214] ss:$24 sps:$4 sm:$0xff]   ;;  %v10054_v5 = vld [vmem:[#allocation5 + $0x1110] ss:$24 sps:$4 sm:$0xff]  }
  0xc5   :  { %2594 = vmatprep.subr.bf16.mxu1 %v10036_v39  ;;  %4545 = vmatprep.subr.bf16.mxu0 %v10039_v46  ;;  %v10057_v39 = vld [vmem:[#allocation5 + $0x210] ss:$24 sps:$4 sm:$0xff]   ;;  %v10062_v46 = vld [vmem:[#allocation5 + $0x1144] ss:$24 sps:$4 sm:$0xff]  }
  0xc8   :  { %2595 = vmatpush1.bf16.msra.mxu1 %v10034_v47  ;;  %4546 = vmatpush1.bf16.msra.mxu0 %v10037_v0  ;;  %v10066_v47 = vld [vmem:[#allocation5 + $0x244] ss:$24 sps:$4 sm:$0xff]   ;;  %v10060_v0 = vld [vmem:[#allocation5 + $0x1140] ss:$24 sps:$4 sm:$0xff]  }
  0xc9   :  { %2596 = vmatprep.subr.bf16.mxu1 %v10042_v14  ;;  %4547 = vmatprep.subr.bf16.mxu0 %v10045_v29  ;;  %v10064_v14 = vld [vmem:[#allocation5 + $0x240] ss:$24 sps:$4 sm:$0xff]   ;;  %v10070_v29 = vld [vmem:[#allocation5 + $0x1174] ss:$24 sps:$4 sm:$0xff]  }
  0xcc   :  { %2597 = vmatpush1.bf16.msra.mxu1 %v10040_v18  ;;  %4548 = vmatpush1.bf16.msra.mxu0 %v10043_v44  ;;  %v10073_v18 = vld [vmem:[#allocation5 + $0x274] ss:$24 sps:$4 sm:$0xff]   ;;  %v10068_v44 = vld [vmem:[#allocation5 + $0x1170] ss:$24 sps:$4 sm:$0xff]  }
  0xcd   :  { %2598 = vmatprep.subr.bf16.mxu1 %v10048_v23  ;;  %4549 = vmatprep.subr.bf16.mxu0 %v10052_v50  ;;  %v10071_v23 = vld [vmem:[#allocation5 + $0x270] ss:$24 sps:$4 sm:$0xff]   ;;  %v10076_v50 = vld [vmem:[#allocation5 + $0x11a4] ss:$24 sps:$4 sm:$0xff]  }
  0xd0   :  { %2599 = vmatpush1.bf16.msra.mxu1 %v10046_v51  ;;  %4550 = vmatpush1.bf16.msra.mxu0 %v10050_v17  ;;  %v10080_v51 = vld [vmem:[#allocation5 + $0x2a4] ss:$24 sps:$4 sm:$0xff]   ;;  %v12667_v17 = vunpack.c.h.bf16 %v11287_v28  ;;  %v12673_v28 = vunpack.c.h.bf16 %v11302_v41 }
  0xd1   :  { %2600 = vmatprep.subr.bf16.mxu1 %v10056_v6  ;;  %4551 = vmatprep.subr.bf16.mxu0 %v10059_v4  ;;  %v12664_v6 = vunpack.c.h.bf16 %v11285_v27  ;;  %v10074_v4 = vld [vmem:[#allocation5 + $0x11a0] ss:$24 sps:$4 sm:$0xff]   ;;  %v10109_v27 = vld [vmem:[#allocation5 + $0x390] ss:$24 sps:$4 sm:$0xff]  }
  0xd2   :  { %v422_v54 = vrot.slane %v12667_v17, 7 }
  0xd4   :  { %2601 = vmatpush1.bf16.msra.mxu1 %v10054_v5  ;;  %4552 = vmatpush1.bf16.msra.mxu0 %v10057_v39  ;;  %v12669_v5 = vunpack.c.l.bf16 %v11359_v10  ;;  %v10084_v39 = vld [vmem:[#allocation5 + $0x11d4] ss:$24 sps:$4 sm:$0xff]   ;;  %v10088_v10 = vld [vmem:[#allocation5 + $0x908] ss:$24 sps:$4 sm:$0xff]  }
  0xd5   :  { %2602 = vmatprep.subr.bf16.mxu1 %v10062_v46  ;;  %4553 = vmatprep.subr.bf16.mxu0 %v10066_v47  ;;  %v12671_v46 = vunpack.c.l.bf16 %v11361_v26  ;;  %v12670_v47 = vunpack.c.l.bf16 %v11431_v30  ;;  %v428_v30 = vrot.slane %v12673_v28, 7  ;;  %v10100_v28 = vld [vmem:[#allocation5 + $0x968] ss:$24 sps:$4 sm:$0xff]  }
  0xd8   :  { %2603 = vmatpush1.bf16.msra.mxu1 %v10060_v0  ;;  %4554 = vmatpush1.bf16.msra.mxu0 %v10064_v14  ;;  %v10087_v0 = vld [vmem:[#allocation5 + $0x2d4] ss:$24 sps:$4 sm:$0xff]   ;;  %v416_v14 = vrot.slane %v12664_v6, 7  ;;  %v10093_v6 = vld [vmem:[#allocation5 + $0x304] ss:$24 sps:$4 sm:$0xff]  }
  0xd9   :  { %2604 = vmatprep.subr.bf16.mxu1 %v10070_v29  ;;  %4555 = vmatprep.subr.bf16.mxu0 %v10073_v18  ;;  %v10082_v29 = vld [vmem:[#allocation5 + $0x11d0] ss:$24 sps:$4 sm:$0xff]  }
  0xda   :  { %v10085_v18 = vld [vmem:[#allocation5 + $0x2d0] ss:$24 sps:$4 sm:$0xff]  }
  0xdc   :  { %2605 = vmatpush1.bf16.msra.mxu1 %v10068_v44  ;;  %4556 = vmatpush1.bf16.msra.mxu0 %v10071_v23  ;;  %v407_v44 = vrot.slane %v12669_v5, 7  ;;  %v10090_v23 = vld [vmem:[#allocation5 + $0x90c] ss:$24 sps:$4 sm:$0xff]   ;;  %v10091_v5 = vld [vmem:[#allocation5 + $0x300] ss:$24 sps:$4 sm:$0xff]  }
  0xdd   :  { %2606 = vmatprep.subr.bf16.mxu1 %v10076_v50  ;;  %4557 = vmatprep.subr.bf16.mxu0 %v10080_v51  ;;  %v11486_v50 = vrot.slane %v12671_v46, 7  ;;  %v11490_v51 = vrot.slane %v12670_v47, 7  ;;  %v10096_v47 = vld [vmem:[#allocation5 + $0x93c] ss:$24 sps:$4 sm:$0xff]  }
  0xdf   :  { %v498_v46 = vsel %vm451_vm0, %v11490_v51, %v407_v44 }
  0xe0   :  { %2607 = vmatpush1.bf16.msra.mxu1 %v10074_v4  ;;  %4558 = vmatpush1.bf16.msra.mxu0 %v10078_v63  ;;  %v477_v63 = vsel %vm451_vm0, %v416_v14, %v422_v54  ;;  %v483_v4 = vsel %vm451_vm0, %v11440_v35, %v416_v14  ;;  %v10097_v14 = vld [vmem:[#allocation5 + $0x330] ss:$24 sps:$4 sm:$0xff]  }
  0xe1   :  { %2608 = vmatprep.subr.bf16.mxu1 %v10084_v39  ;;  %4559 = vmatprep.subr.bf16.mxu0 %v10087_v0  ;;  %v10099_v39 = vld [vmem:[#allocation5 + $0x334] ss:$24 sps:$4 sm:$0xff]   ;;  %v492_v0 = vsel %vm451_vm0, %v407_v44, %v11486_v50  ;;  %v11505_v17 = vpack.c.bf16 %v477_v63, %v483_v4  ;;  %v11520_v63 = vld [vmem:[#allocation2 + $0x78] sm:$0xff] }
  0xe2   :  { %v11509_v35 = vpack.c.bf16 %v492_v0, %v498_v46  ;;  %12744 = vst [vmem:[#allocation28_spill] sm:$0xff] %v11520_v63  ;;  %v12680_v46 = vunpack.c.l.bf16 %v11520_v63  ;;  %v10102_v4 = vld [vmem:[#allocation5 + $0x96c] ss:$24 sps:$4 sm:$0xff]   ;;  %v10103_v44 = vld [vmem:[#allocation5 + $0x360] ss:$24 sps:$4 sm:$0xff]  }
  0xe3   :  { %v10105_v0 = vld [vmem:[#allocation5 + $0x364] ss:$24 sps:$4 sm:$0xff]  }
  0xe4   :  { %2609 = vmatpush1.bf16.msra.mxu1 %v10082_v29  ;;  %4560 = vmatpush1.bf16.msra.mxu0 %v10085_v18  ;;  %v12742_v29 = vunpack.c.h.bf16 %v11306_v42  ;;  %v433_v26 = vrot.slane %v12680_v46, 7  ;;  %v11555_v46 = vld [vmem:[#allocation2 + $0x20] sm:$0xff] }
  0xe5   :  { %2651 = vmatprep.subr.bf16.mxu1 %v10090_v23  ;;  %4602 = vmatprep.subr.bf16.mxu0 %v10093_v6  ;;  %v10094_v6 = vld [vmem:[#allocation5 + $0x938] ss:$24 sps:$4 sm:$0xff]   ;;  %v11517_v23 = vld [vmem:[#allocation2 + $0x60] sm:$0xff]  ;;  %12749 = vst [vmem:[#allocation31_spill] sm:$0xff] %v11555_v46  ;;  %v12753_v49 = vunpack.c.h.bf16 %v11555_v46 }
  0xe6   :  { %v434_v18 = vrot.slane %v12742_v29, 7  ;;  %12743 = vst [vmem:[#allocation27_spill] sm:$0xff] %v11517_v23  ;;  %v10111_v29 = vld [vmem:[#allocation5 + $0x394] ss:$24 sps:$4 sm:$0xff]  }
  0xe7   :  { %2611 = vmatmul.mubr.bf16.vlgmr.msra.gmra.mrb[0].mxu1 %v11402_v19  ;;  %8591 = vmatmul.mubr.msk.bf16.vlgmr.msra.gmra.mrb[16].mxu0 %vm11461_vm3, %v11354_v22 }
  0xe8   :  { %2652 = vmatpush1.bf16.msra.mxu1 %v10088_v10  ;;  %4603 = vmatpush1.bf16.msra.mxu0 %v10091_v5  ;;  %v465_v42 = vsel %vm451_vm0, %v428_v30, %v434_v18  ;;  %v471_v10 = vsel %vm451_vm0, %v422_v54, %v428_v30  ;;  %v10108_v5 = vld [vmem:[#allocation5 + $0x99c] ss:$24 sps:$4 sm:$0xff]   ;;  %v12746_v54 = vunpack.c.h.bf16 %v11323_v62 }
  0xe9   :  { %2653 = vmatprep.subr.bf16.mxu1 %v10096_v47  ;;  %4604 = vmatprep.subr.bf16.mxu0 %v10099_v39  ;;  %v12745_v47 = vunpack.c.l.bf16 %v11517_v23  ;;  %v11536_v41 = vpack.c.bf16 %v465_v42, %v471_v10  ;;  %v10117_v10 = vld [vmem:[#allocation5 + $0x3c4] ss:$24 sps:$4 sm:$0xff]  }
  0xea   :  { %2620 = vmatprep.mubr.bf16.mxu1 %v11410_v33  ;;  %8594 = vmatprep.mubr.msk.bf16.mxu0 %vm11461_vm3, %v11505_v17  ;;  %v440_v30 = vrot.slane %v12746_v54, 7 }
  0xeb   :  { %v427_v39 = vrot.slane %v12745_v47, 7  ;;  %v11552_v47 = vld [vmem:[#allocation2 + $0x8] sm:$0xff] }
  0xec   :  { %2654 = vmatpush1.bf16.msra.mxu1 %v10094_v6  ;;  %4605 = vmatpush1.bf16.msra.mxu0 %v10097_v14  ;;  %v11544_v6 = vld [vmem:[#allocation2 + $0x90] sm:$0xff]  ;;  %12748 = vst [vmem:[#allocation30_spill] sm:$0xff] %v11552_v47  ;;  %v453_v54 = vsel %vm451_vm0, %v440_v30, %v11447_v25  ;;  %v11580_v25 = vrot.slane %v12753_v49, 7 }
  0xed   :  { %2655 = vmatprep.subr.bf16.mxu1 %v10102_v4  ;;  %4606 = vmatprep.subr.bf16.mxu0 %v10105_v0  ;;  %12747 = vst [vmem:[#allocation29_spill] sm:$0xff] %v11544_v6  ;;  %v10114_v4 = vld [vmem:[#allocation5 + $0x9cc] ss:$24 sps:$4 sm:$0xff]   ;;  %v464_v42 = vsel %vm451_vm0, %v427_v39, %v433_v26  ;;  %v470_v0 = vsel %vm451_vm0, %v11377_v57, %v427_v39  ;;  %v10120_v14 = vld [vmem:[#allocation5 + $0x9fc] ss:$24 sps:$4 sm:$0xff]   ;;  %v12751_v63 = vunpack.c.l.bf16 %v11544_v6 }
  0xee   :  { %v11565_v39 = vpack.c.bf16 %v464_v42, %v470_v0  ;;  %v10123_v57 = vld [vmem:[#allocation5 + $0x3f4] ss:$24 sps:$4 sm:$0xff]   ;;  %v12752_v42 = vunpack.c.h.bf16 %v11552_v47  ;;  %v10184_v6 = vld [vmem:[#allocation5 + $0xc08] ss:$24 sps:$4 sm:$0xff]  }
  0xef   :  { %2621 = vmatmul.mubr.bf16.gmra.mrb[4].mxu1 %v11418_v59  ;;  %8597 = vmatmul.mubr.msk.bf16.gmra.mrb[20].mxu0 %vm11461_vm3, %v11385_v9  ;;  %v439_v62 = vrot.slane %v12751_v63, 7  ;;  %v10195_v47 = vld [vmem:[#allocation5 + $0x634] ss:$24 sps:$4 sm:$0xff]  }
  0xf0   :  { %2656 = vmatpush1.bf16.msra.mxu1 %v10100_v28  ;;  %4607 = vmatpush1.bf16.msra.mxu0 %v10103_v44  ;;  %v11562_v44 = vld [vmem:[#allocation2 + $0xb0] sm:$0xff]  ;;  %v459_v28 = vsel %vm451_vm0, %v434_v18, %v440_v30  ;;  %v406_v0 = vrot.slane %v12752_v42, 7  ;;  %v10126_v30 = vld [vmem:[#allocation5 + $0xa2c] ss:$24 sps:$4 sm:$0xff]  }
  0xf1   :  { %2657 = vmatprep.subr.bf16.mxu1 %v10108_v5  ;;  %4608 = vmatprep.subr.bf16.mxu0 %v10111_v29  ;;  %12750 = vst [vmem:[#allocation32_spill] sm:$0xff] %v11562_v44  ;;  %v10112_v29 = vld [vmem:[#allocation5 + $0x9c8] ss:$24 sps:$4 sm:$0xff]   ;;  %v11574_v23 = vpack.c.bf16 %v453_v54, %v459_v28  ;;  %v12754_v18 = vunpack.c.h.bf16 %v11562_v44  ;;  %v452_v49 = vsel %vm451_vm0, %v439_v62, %v11338_v8 }
  0xf2   :  { %2630 = vmatprep.mubr.bf16.mxu1 %v11420_v32  ;;  %8600 = vmatprep.mubr.msk.bf16.mxu0 %vm11461_vm3, %v11536_v41  ;;  %v10115_v5 = vld [vmem:[#allocation5 + $0x3c0] ss:$24 sps:$4 sm:$0xff]   ;;  %v491_v8 = vsel %vm451_vm0, %v406_v0, %v11580_v25  ;;  %v10133_v42 = vld [vmem:[#allocation5 + $0x450] ss:$24 sps:$4 sm:$0xff]  }
  0xf3   :  { %v11588_v63 = vrot.slane %v12754_v18, 7  ;;  %v10124_v54 = vld [vmem:[#allocation5 + $0xa28] ss:$24 sps:$4 sm:$0xff]   ;;  %v10138_v18 = vld [vmem:[#allocation5 + $0xa8c] ss:$24 sps:$4 sm:$0xff]  }
  0xf4   :  { %2658 = vmatpush1.bf16.msra.mxu1 %v10106_v53  ;;  %4609 = vmatpush1.bf16.msra.mxu0 %v10109_v27  ;;  %v10118_v53 = vld [vmem:[#allocation5 + $0x9f8] ss:$24 sps:$4 sm:$0xff]  }
  0xf5   :  { %2659 = vmatprep.subr.bf16.mxu1 %v10114_v4  ;;  %4610 = vmatprep.subr.bf16.mxu0 %v10117_v10  ;;  %v10121_v27 = vld [vmem:[#allocation5 + $0x3f0] ss:$24 sps:$4 sm:$0xff]   ;;  %v458_v4 = vsel %vm451_vm0, %v433_v26, %v439_v62  ;;  %v10129_v10 = vld [vmem:[#allocation5 + $0x424] ss:$24 sps:$4 sm:$0xff]   ;;  %v10127_v28 = vld [vmem:[#allocation5 + $0x420] ss:$24 sps:$4 sm:$0xff]   ;;  %v497_v62 = vsel %vm451_vm0, %v11588_v63, %v406_v0 }
  0xf6   :  { %v10132_v26 = vld [vmem:[#allocation5 + $0xa5c] ss:$24 sps:$4 sm:$0xff]  }
  0xf7   :  { %2631 = vmatmul.mubr.bf16.gmra.mrb[8].mxu1 %v11429_v1  ;;  %8603 = vmatmul.mubr.msk.bf16.gmra.mrb[24].mxu0 %vm11461_vm3, %v11565_v39  ;;  %v10141_v0 = vld [vmem:[#allocation5 + $0x484] ss:$24 sps:$4 sm:$0xff]  }
  0xf8   :  { %2660 = vmatpush1.bf16.msra.mxu1 %v10112_v29  ;;  %4611 = vmatpush1.bf16.msra.mxu0 %v10115_v5  ;;  %v11599_v29 = vpack.c.bf16 %v452_v49, %v458_v4  ;;  %v10130_v5 = vld [vmem:[#allocation5 + $0xa58] ss:$24 sps:$4 sm:$0xff]   ;;  %v10147_v49 = vld [vmem:[#allocation5 + $0x4b4] ss:$24 sps:$4 sm:$0xff]  }
  0xf9   :  { %2661 = vmatprep.subr.bf16.mxu1 %v10120_v14  ;;  %4612 = vmatprep.subr.bf16.mxu0 %v10123_v57  ;;  %v10135_v14 = vld [vmem:[#allocation5 + $0x454] ss:$24 sps:$4 sm:$0xff]   ;;  %v11607_v57 = vpack.c.bf16 %v491_v8, %v497_v62  ;;  %v10142_v4 = vld [vmem:[#allocation5 + $0xab8] ss:$24 sps:$4 sm:$0xff]   ;;  %v10148_v8 = vld [vmem:[#allocation5 + $0xae8] ss:$24 sps:$4 sm:$0xff]  }
  0xfa   :  { %2640 = vmatprep.mubr.bf16.mxu1 %v11434_v43  ;;  %8606 = vmatprep.mubr.msk.bf16.mxu0 %vm11461_vm3, %v11574_v23  ;;  %v10151_v62 = vld [vmem:[#allocation5 + $0x4e0] ss:$24 sps:$4 sm:$0xff]  }
  0xfb   :  { %12755 = vst [vmem:[#allocation33_spill] sm:$0xff] %v11607_v57 }
  0xfc   :  { %2662 = vmatpush1.bf16.msra.mxu1 %v10118_v53  ;;  %4613 = vmatpush1.bf16.msra.mxu0 %v10121_v27  ;;  %v10136_v53 = vld [vmem:[#allocation5 + $0xa88] ss:$24 sps:$4 sm:$0xff]  }
  0xfd   :  { %2663 = vmatprep.subr.bf16.mxu1 %v10126_v30  ;;  %4614 = vmatprep.subr.bf16.mxu0 %v10129_v10  ;;  %v10139_v27 = vld [vmem:[#allocation5 + $0x480] ss:$24 sps:$4 sm:$0xff]   ;;  %v10144_v30 = vld [vmem:[#allocation5 + $0xabc] ss:$24 sps:$4 sm:$0xff]   ;;  %v10145_v10 = vld [vmem:[#allocation5 + $0x4b0] ss:$24 sps:$4 sm:$0xff]  }
  0xff   :  { %2641 = vmatmul.mubr.bf16.gmra.mrb[12].mxu1 %v11452_v40  ;;  %8609 = vmatmul.mubr.msk.bf16.gmra.mrb[28].mxu0 %vm11461_vm3, %v11599_v29 }
 0x100   :  { %2664 = vmatpush1.bf16.msra.mxu1 %v10124_v54  ;;  %4615 = vmatpush1.bf16.msra.mxu0 %v10127_v28  ;;  %v10150_v54 = vld [vmem:[#allocation5 + $0xaec] ss:$24 sps:$4 sm:$0xff]  }
 0x101   :  { %2665 = vmatprep.subr.bf16.mxu1 %v10132_v26  ;;  %4616 = vmatprep.subr.bf16.mxu0 %v10135_v14  ;;  %v10153_v28 = vld [vmem:[#allocation5 + $0x4e4] ss:$24 sps:$4 sm:$0xff]   ;;  %v10159_v14 = vld [vmem:[#allocation5 + $0x514] ss:$24 sps:$4 sm:$0xff]  }
 0x102   :  { %2683 = vmatprep.mubr.bf16.mxu1 %v11244_v52  ;;  %8612 = vmatprep.mubr.msk.bf16.mxu0 %vm11461_vm3, %v11607_v57  ;;  %v10156_v26 = vld [vmem:[#allocation5 + $0xb1c] ss:$24 sps:$4 sm:$0xff]  }
 0x104   :  { %2666 = vmatpush1.bf16.msra.mxu1 %v10130_v5  ;;  %4617 = vmatpush1.bf16.msra.mxu0 %v10133_v42  ;;  %v10154_v5 = vld [vmem:[#allocation5 + $0xb18] ss:$24 sps:$4 sm:$0xff]  }
 0x105   :  { %2667 = vmatprep.subr.bf16.mxu1 %v10138_v18  ;;  %4618 = vmatprep.subr.bf16.mxu0 %v10141_v0  ;;  %v10157_v42 = vld [vmem:[#allocation5 + $0x510] ss:$24 sps:$4 sm:$0xff]   ;;  %v10162_v18 = vld [vmem:[#allocation5 + $0xb4c] ss:$24 sps:$4 sm:$0xff]  }
 0x106   :  { %v10165_v0 = vld [vmem:[#allocation5 + $0x544] ss:$24 sps:$4 sm:$0xff]  }
 0x108   :  { %2668 = vmatpush1.bf16.msra.mxu1 %v10136_v53  ;;  %4619 = vmatpush1.bf16.msra.mxu0 %v10139_v27  ;;  %v10160_v53 = vld [vmem:[#allocation5 + $0xb48] ss:$24 sps:$4 sm:$0xff]  }
 0x109   :  { %2669 = vmatprep.subr.bf16.mxu1 %v10144_v30  ;;  %4620 = vmatprep.subr.bf16.mxu0 %v10147_v49  ;;  %v10163_v27 = vld [vmem:[#allocation5 + $0x540] ss:$24 sps:$4 sm:$0xff]   ;;  %v10168_v30 = vld [vmem:[#allocation5 + $0xb7c] ss:$24 sps:$4 sm:$0xff]  }
 0x10a   :  { %v10171_v49 = vld [vmem:[#allocation5 + $0x574] ss:$24 sps:$4 sm:$0xff]  }
 0x10c   :  { %2670 = vmatpush1.bf16.msra.mxu1 %v10142_v4  ;;  %4621 = vmatpush1.bf16.msra.mxu0 %v10145_v10  ;;  %v10166_v4 = vld [vmem:[#allocation5 + $0xb78] ss:$24 sps:$4 sm:$0xff]  }
 0x10d   :  { %2671 = vmatprep.subr.bf16.mxu1 %v10150_v54  ;;  %4622 = vmatprep.subr.bf16.mxu0 %v10153_v28  ;;  %v10169_v10 = vld [vmem:[#allocation5 + $0x570] ss:$24 sps:$4 sm:$0xff]   ;;  %v10174_v54 = vld [vmem:[#allocation5 + $0xbac] ss:$24 sps:$4 sm:$0xff]  }
 0x10e   :  { %v10177_v28 = vld [vmem:[#allocation5 + $0x5a4] ss:$24 sps:$4 sm:$0xff]  }
 0x110   :  { %2672 = vmatpush1.bf16.msra.mxu1 %v10148_v8  ;;  %4623 = vmatpush1.bf16.msra.mxu0 %v10151_v62  ;;  %v11617_v8 = vld [vmem:[#allocation2 + $0x38] sm:$0xff] }
 0x111   :  { %2673 = vmatprep.subr.bf16.mxu1 %v10156_v26  ;;  %4624 = vmatprep.subr.bf16.mxu0 %v10159_v14  ;;  %12756 = vst [vmem:[#allocation34_spill] sm:$0xff] %v11617_v8  ;;  %v12688_v62 = vunpack.c.h.bf16 %v11617_v8  ;;  %v11620_v26 = vld [vmem:[#allocation2 + $0x50] sm:$0xff] }
 0x112   :  { %12757 = vst [vmem:[#allocation35_spill] sm:$0xff] %v11620_v26  ;;  %v12691_v14 = vunpack.c.h.bf16 %v11620_v26  ;;  %v12697_v46 = vunpack.c.l.bf16 %v11620_v26 }
 0x114   :  { %2674 = vmatpush1.bf16.msra.mxu1 %v10154_v5  ;;  %4625 = vmatpush1.bf16.msra.mxu0 %v10157_v42  ;;  %v10172_v5 = vld [vmem:[#allocation5 + $0xba8] ss:$24 sps:$4 sm:$0xff]  }
 0x115   :  { %2675 = vmatprep.subr.bf16.mxu1 %v10162_v18  ;;  %4626 = vmatprep.subr.bf16.mxu0 %v10165_v0  ;;  %v10175_v42 = vld [vmem:[#allocation5 + $0x5a0] ss:$24 sps:$4 sm:$0xff]   ;;  %v10180_v18 = vld [vmem:[#allocation5 + $0xbdc] ss:$24 sps:$4 sm:$0xff]  }
 0x116   :  { %v10183_v0 = vld [vmem:[#allocation5 + $0x5d4] ss:$24 sps:$4 sm:$0xff]  }
 0x118   :  { %2676 = vmatpush1.bf16.msra.mxu1 %v10160_v53  ;;  %4627 = vmatpush1.bf16.msra.mxu0 %v10163_v27  ;;  %v418_v53 = vrot.slane %v12688_v62, 7  ;;  %v10178_v27 = vld [vmem:[#allocation5 + $0xbd8] ss:$24 sps:$4 sm:$0xff]   ;;  %v11632_v62 = vld [vmem:[#allocation2 + $0x80] sm:$0xff] }
 0x119   :  { %2677 = vmatprep.subr.bf16.mxu1 %v10168_v30  ;;  %4628 = vmatprep.subr.bf16.mxu0 %v10171_v49  ;;  %v10181_v30 = vld [vmem:[#allocation5 + $0x5d0] ss:$24 sps:$4 sm:$0xff]   ;;  %v424_v49 = vrot.slane %v12691_v14, 7  ;;  %12759 = vst [vmem:[#allocation37_spill] sm:$0xff] %v11632_v62  ;;  %v10187_v14 = vld [vmem:[#allocation5 + $0x600] ss:$24 sps:$4 sm:$0xff]   ;;  %v12764_v26 = vunpack.c.l.bf16 %v11632_v62 }
 0x11b   :  { %v479_v44 = vsel %vm451_vm0, %v418_v53, %v424_v49 }
 0x11c   :  { %2678 = vmatpush1.bf16.msra.mxu1 %v10166_v4  ;;  %4629 = vmatpush1.bf16.msra.mxu0 %v10169_v10  ;;  %v10186_v4 = vld [vmem:[#allocation5 + $0xc0c] ss:$24 sps:$4 sm:$0xff]  }
 0x11d   :  { %2679 = vmatprep.subr.bf16.mxu1 %v10174_v54  ;;  %4630 = vmatprep.subr.bf16.mxu0 %v10177_v28  ;;  %v10189_v10 = vld [vmem:[#allocation5 + $0x604] ss:$24 sps:$4 sm:$0xff]   ;;  %v11629_v54 = vld [vmem:[#allocation2 + $0x68] sm:$0xff]  ;;  %v423_v28 = vrot.slane %v12697_v46, 7  ;;  %v10199_v46 = vld [vmem:[#allocation5 + $0x660] ss:$24 sps:$4 sm:$0xff]  }
 0x11e   :  { %12758 = vst [vmem:[#allocation36_spill] sm:$0xff] %v11629_v54  ;;  %v12762_v57 = vunpack.c.h.bf16 %v11629_v54 }
 0x120   :  { %2680 = vmatpush1.bf16.msra.mxu1 %v10172_v5  ;;  %4631 = vmatpush1.bf16.msra.mxu0 %v10175_v42  ;;  %v485_v5 = vsel %vm451_vm0, %v11580_v25, %v418_v53  ;;  %v10192_v42 = vld [vmem:[#allocation5 + $0xc3c] ss:$24 sps:$4 sm:$0xff]   ;;  %v430_v52 = vrot.slane %v12762_v57, 7  ;;  %v10190_v25 = vld [vmem:[#allocation5 + $0xc38] ss:$24 sps:$4 sm:$0xff]  }
 0x121   :  { %2681 = vmatprep.subr.bf16.mxu1 %v10180_v18  ;;  %4632 = vmatprep.subr.bf16.mxu0 %v10183_v0  ;;  %v12760_v18 = vunpack.c.l.bf16 %v11617_v8  ;;  %v11644_v48 = vpack.c.bf16 %v479_v44, %v485_v5  ;;  %v10193_v53 = vld [vmem:[#allocation5 + $0x630] ss:$24 sps:$4 sm:$0xff]   ;;  %v10198_v44 = vld [vmem:[#allocation5 + $0xc6c] ss:$24 sps:$4 sm:$0xff]   ;;  %v435_v8 = vrot.slane %v12764_v26, 7 }
 0x122   :  { %v10210_v26 = vld [vmem:[#allocation5 + $0xccc] ss:$24 sps:$4 sm:$0xff]  }
 0x123   :  { %v417_v0 = vrot.slane %v12760_v18, 7  ;;  %12761 = vst [vmem:[#allocation38_spill] sm:$0xff] %v11644_v48  ;;  %v10201_v18 = vld [vmem:[#allocation5 + $0x664] ss:$24 sps:$4 sm:$0xff]  }
 0x124   :  { %2682 = vmatpush1.bf16.msra.mxu1 %v10178_v27  ;;  %4633 = vmatpush1.bf16.msra.mxu0 %v10181_v30  ;;  %v12763_v27 = vunpack.c.h.bf16 %v11632_v62 }
 0x125   :  { %2724 = vmatprep.subr.bf16.mxu1 %v10186_v4  ;;  %4675 = vmatprep.subr.bf16.mxu0 %v10189_v10  ;;  %v12704_v4 = vunpack.c.l.bf16 %v11629_v54  ;;  %v478_v57 = vsel %vm451_vm0, %v417_v0, %v423_v28  ;;  %v484_v5 = vsel %vm451_vm0, %v11394_v3, %v417_v0 }
 0x126   :  { %v436_v30 = vrot.slane %v12763_v27, 7  ;;  %v11665_v27 = vld [vmem:[#allocation2 + $0x98] sm:$0xff]  ;;  %v11668_v10 = vpack.c.bf16 %v478_v57, %v484_v5 }
 0x127   :  { %2684 = vmatmul.mubr.bf16.vlgmr.msra.gmra.mrb[16].mxu1 %v11270_v15  ;;  %8615 = vmatmul.mubr.msk.bf16.vlgmr.msra.gmra.mrb[16].mxu0 %vm11461_vm3, %v11412_v38  ;;  %v429_v0 = vrot.slane %v12704_v4, 7  ;;  %v10202_v5 = vld [vmem:[#allocation5 + $0xc98] ss:$24 sps:$4 sm:$0xff]   ;;  %v11694_v4 = vld [vmem:[#allocation2 + $0x28] sm:$0xff] }
 0x128   :  { %2725 = vmatpush1.bf16.msra.mxu1 %v10184_v6  ;;  %4676 = vmatpush1.bf16.msra.mxu0 %v10187_v14  ;;  %v10196_v14 = vld [vmem:[#allocation5 + $0xc68] ss:$24 sps:$4 sm:$0xff]   ;;  %v467_v3 = vsel %vm451_vm0, %v430_v52, %v436_v30  ;;  %v10207_v6 = vld [vmem:[#allocation5 + $0x694] ss:$24 sps:$4 sm:$0xff]   ;;  %12768 = vst [vmem:[#allocation41_spill] sm:$0xff] %v11694_v4 }
 0x129   :  { %2726 = vmatprep.subr.bf16.mxu1 %v10192_v42  ;;  %4677 = vmatprep.subr.bf16.mxu0 %v10195_v47  ;;  %v473_v47 = vsel %vm451_vm0, %v424_v49, %v430_v52  ;;  %v10204_v42 = vld [vmem:[#allocation5 + $0xc9c] ss:$24 sps:$4 sm:$0xff]   ;;  %v12766_v52 = vunpack.c.h.bf16 %v11665_v27 }
 0x12a   :  { %2693 = vmatprep.mubr.bf16.mxu1 %v11291_v31  ;;  %8618 = vmatprep.mubr.msk.bf16.mxu0 %vm11461_vm3, %v11644_v48  ;;  %v11678_v57 = vpack.c.bf16 %v467_v3, %v473_v47  ;;  %v10205_v48 = vld [vmem:[#allocation5 + $0x690] ss:$24 sps:$4 sm:$0xff]   ;;  %v10216_v47 = vld [vmem:[#allocation5 + $0xcfc] ss:$24 sps:$4 sm:$0xff]  }
 0x12b   :  { %v442_v49 = vrot.slane %v12766_v52, 7  ;;  %v11691_v3 = vld [vmem:[#allocation2 + $0x10] sm:$0xff] }
 0x12c   :  { %2727 = vmatpush1.bf16.msra.mxu1 %v10190_v25  ;;  %4678 = vmatpush1.bf16.msra.mxu0 %v10193_v53  ;;  %12765 = vst [vmem:[#allocation39_spill] sm:$0xff] %v11678_v57  ;;  %v12712_v25 = vunpack.c.l.bf16 %v11665_v27  ;;  %v466_v53 = vsel %vm451_vm0, %v429_v0, %v435_v8  ;;  %12767 = vst [vmem:[#allocation40_spill] sm:$0xff] %v11691_v3 }
 0x12d   :  { %2728 = vmatprep.subr.bf16.mxu1 %v10198_v44  ;;  %4679 = vmatprep.subr.bf16.mxu0 %v10201_v18  ;;  %v472_v44 = vsel %vm451_vm0, %v423_v28, %v429_v0  ;;  %v10213_v18 = vld [vmem:[#allocation5 + $0x6c4] ss:$24 sps:$4 sm:$0xff]   ;;  %v455_v0 = vsel %vm451_vm0, %v442_v49, %v11588_v63  ;;  %v461_v52 = vsel %vm451_vm0, %v436_v30, %v442_v49  ;;  %v10219_v28 = vld [vmem:[#allocation5 + $0x6f4] ss:$24 sps:$4 sm:$0xff]   ;;  %v10217_v30 = vld [vmem:[#allocation5 + $0x6f0] ss:$24 sps:$4 sm:$0xff]  }
 0x12e   :  { %v441_v62 = vrot.slane %v12712_v25, 7  ;;  %v11713_v54 = vpack.c.bf16 %v455_v0, %v461_v52  ;;  %v10222_v49 = vld [vmem:[#allocation5 + $0xd2c] ss:$24 sps:$4 sm:$0xff]   ;;  %v10220_v52 = vld [vmem:[#allocation5 + $0xd28] ss:$24 sps:$4 sm:$0xff]  }
 0x12f   :  { %2694 = vmatmul.mubr.bf16.gmra.mrb[20].mxu1 %v11295_v34  ;;  %8621 = vmatmul.mubr.msk.bf16.gmra.mrb[20].mxu0 %vm11461_vm3, %v11668_v10  ;;  %v10226_v0 = vld [vmem:[#allocation5 + $0xd58] ss:$24 sps:$4 sm:$0xff]  }
 0x130   :  { %2729 = vmatpush1.bf16.msra.mxu1 %v10196_v14  ;;  %4680 = vmatpush1.bf16.msra.mxu0 %v10199_v46  ;;  %v11701_v46 = vld [vmem:[#allocation2 + $0xb8] sm:$0xff]  ;;  %v10283_v25 = vld [vmem:[#allocation5 + $0x10] ss:$24 sps:$4 sm:$0xff]  }
 0x131   :  { %2730 = vmatprep.subr.bf16.mxu1 %v10204_v42  ;;  %4681 = vmatprep.subr.bf16.mxu0 %v10207_v6  ;;  %12769 = vst [vmem:[#allocation42_spill] sm:$0xff] %v11701_v46  ;;  %v10208_v6 = vld [vmem:[#allocation5 + $0xcc8] ss:$24 sps:$4 sm:$0xff]   ;;  %v11704_v42 = vpack.c.bf16 %v466_v53, %v472_v44  ;;  %v12770_v53 = vunpack.c.h.bf16 %v11691_v3  ;;  %v10291_v3 = vld [vmem:[#allocation5 + $0x44] ss:$24 sps:$4 sm:$0xff]  }
 0x132   :  { %2703 = vmatprep.mubr.bf16.mxu1 %v11311_v45  ;;  %8624 = vmatprep.mubr.msk.bf16.mxu0 %vm11461_vm3, %v11678_v57  ;;  %v10211_v14 = vld [vmem:[#allocation5 + $0x6c0] ss:$24 sps:$4 sm:$0xff]   ;;  %v12771_v57 = vunpack.c.h.bf16 %v11694_v4  ;;  %v11771_v4 = vld [vmem:[#allocation2 + $0x88] sm:$0xff] }
 0x133   :  { %v408_v44 = vrot.slane %v12770_v53, 7  ;;  %v10214_v45 = vld [vmem:[#allocation5 + $0xcf8] ss:$24 sps:$4 sm:$0xff]  }
 0x134   :  { %2731 = vmatpush1.bf16.msra.mxu1 %v10202_v5  ;;  %4682 = vmatpush1.bf16.msra.mxu0 %v10205_v48  ;;  %v11719_v63 = vrot.slane %v12771_v57, 7  ;;  %v12772_v48 = vunpack.c.h.bf16 %v11701_v46  ;;  %v454_v57 = vsel %vm451_vm0, %v441_v62, %v11398_v7  ;;  %v10229_v53 = vld [vmem:[#allocation5 + $0x750] ss:$24 sps:$4 sm:$0xff]  }
 0x135   :  { %2732 = vmatprep.subr.bf16.mxu1 %v10210_v26  ;;  %4683 = vmatprep.subr.bf16.mxu0 %v10213_v18  ;;  %v460_v26 = vsel %vm451_vm0, %v435_v8, %v441_v62  ;;  %v10225_v18 = vld [vmem:[#allocation5 + $0x724] ss:$24 sps:$4 sm:$0xff]   ;;  %v11768_v46 = vld [vmem:[#allocation2 + $0x70] sm:$0xff] }
 0x136   :  { %v11727_v5 = vrot.slane %v12772_v48, 7  ;;  %v493_v7 = vsel %vm451_vm0, %v408_v44, %v11719_v63  ;;  %v10228_v62 = vld [vmem:[#allocation5 + $0xd5c] ss:$24 sps:$4 sm:$0xff]   ;;  %v10235_v48 = vld [vmem:[#allocation5 + $0x780] ss:$24 sps:$4 sm:$0xff]  }
 0x137   :  { %2704 = vmatmul.mubr.bf16.gmra.mrb[24].mxu1 %v11318_v58  ;;  %8627 = vmatmul.mubr.msk.bf16.gmra.mrb[24].mxu0 %vm11461_vm3, %v11704_v42 }
 0x138   :  { %2733 = vmatpush1.bf16.msra.mxu1 %v10208_v6  ;;  %4684 = vmatpush1.bf16.msra.mxu0 %v10211_v14  ;;  %v10223_v6 = vld [vmem:[#allocation5 + $0x720] ss:$24 sps:$4 sm:$0xff]   ;;  %v11738_v14 = vpack.c.bf16 %v454_v57, %v460_v26  ;;  %v499_v8 = vsel %vm451_vm0, %v11727_v5, %v408_v44  ;;  %v10237_v44 = vld [vmem:[#allocation5 + $0x784] ss:$24 sps:$4 sm:$0xff]   ;;  %v10243_v57 = vld [vmem:[#allocation5 + $0x7b4] ss:$24 sps:$4 sm:$0xff]  }
 0x139   :  { %2734 = vmatprep.subr.bf16.mxu1 %v10216_v47  ;;  %4685 = vmatprep.subr.bf16.mxu0 %v10219_v28  ;;  %v10231_v47 = vld [vmem:[#allocation5 + $0x754] ss:$24 sps:$4 sm:$0xff]   ;;  %v11746_v28 = vpack.c.bf16 %v493_v7, %v499_v8  ;;  %v10238_v26 = vld [vmem:[#allocation5 + $0xdb8] ss:$24 sps:$4 sm:$0xff]   ;;  %v10244_v7 = vld [vmem:[#allocation5 + $0xde8] ss:$24 sps:$4 sm:$0xff]  }
 0x13a   :  { %2713 = vmatprep.mubr.bf16.mxu1 %v11331_v2  ;;  %8630 = vmatprep.mubr.msk.bf16.mxu0 %vm11461_vm3, %v11713_v54  ;;  %v10252_v8 = vld [vmem:[#allocation5 + $0xe1c] ss:$24 sps:$4 sm:$0xff]  }
 0x13c   :  { %2735 = vmatpush1.bf16.msra.mxu1 %v10214_v45  ;;  %4686 = vmatpush1.bf16.msra.mxu0 %v10217_v30  ;;  %v10234_v45 = vld [vmem:[#allocation5 + $0xd8c] ss:$24 sps:$4 sm:$0xff]   ;;  %v10232_v30 = vld [vmem:[#allocation5 + $0xd88] ss:$24 sps:$4 sm:$0xff]  }
 0x13d   :  { %2736 = vmatprep.subr.bf16.mxu1 %v10222_v49  ;;  %4687 = vmatprep.subr.bf16.mxu0 %v10225_v18  ;;  %v10240_v49 = vld [vmem:[#allocation5 + $0xdbc] ss:$24 sps:$4 sm:$0xff]   ;;  %v10241_v18 = vld [vmem:[#allocation5 + $0x7b0] ss:$24 sps:$4 sm:$0xff]  }
 0x13f   :  { %2714 = vmatmul.mubr.bf16.gmra.mrb[28].mxu1 %v11351_v21  ;;  %8633 = vmatmul.mubr.msk.bf16.gmra.mrb[28].mxu0 %vm11461_vm3, %v11738_v14 }
 0x140   :  { %2737 = vmatpush1.bf16.msra.mxu1 %v10220_v52  ;;  %4688 = vmatpush1.bf16.msra.mxu0 %v10223_v6  ;;  %v10246_v52 = vld [vmem:[#allocation5 + $0xdec] ss:$24 sps:$4 sm:$0xff]  }
 0x141   :  { %2738 = vmatprep.subr.bf16.mxu1 %v10228_v62  ;;  %4689 = vmatprep.subr.bf16.mxu0 %v10231_v47  ;;  %v10249_v6 = vld [vmem:[#allocation5 + $0x7e4] ss:$24 sps:$4 sm:$0xff]   ;;  %v10255_v62 = vld [vmem:[#allocation5 + $0x814] ss:$24 sps:$4 sm:$0xff]   ;;  %v10250_v47 = vld [vmem:[#allocation5 + $0xe18] ss:$24 sps:$4 sm:$0xff]  }
 0x142   :  { %2756 = vmatprep.mubr.bf16.mxu1 %v11253_v56  ;;  %8636 = vmatprep.mubr.msk.bf16.mxu0 %vm11461_vm3, %v11746_v28  ;;  %v10247_v56 = vld [vmem:[#allocation5 + $0x7e0] ss:$24 sps:$4 sm:$0xff]  }
 0x144   :  { %2739 = vmatpush1.bf16.msra.mxu1 %v10226_v0  ;;  %4690 = vmatpush1.bf16.msra.mxu0 %v10229_v53  ;;  %v10253_v0 = vld [vmem:[#allocation5 + $0x810] ss:$24 sps:$4 sm:$0xff]   ;;  %v10258_v53 = vld [vmem:[#allocation5 + $0xe4c] ss:$24 sps:$4 sm:$0xff]  }
 0x145   :  { %2740 = vmatprep.subr.bf16.mxu1 %v10234_v45  ;;  %4691 = vmatprep.subr.bf16.mxu0 %v10237_v44  ;;  %v10261_v45 = vld [vmem:[#allocation5 + $0x844] ss:$24 sps:$4 sm:$0xff]   ;;  %v10256_v44 = vld [vmem:[#allocation5 + $0xe48] ss:$24 sps:$4 sm:$0xff]  }
 0x148   :  { %2741 = vmatpush1.bf16.msra.mxu1 %v10232_v30  ;;  %4692 = vmatpush1.bf16.msra.mxu0 %v10235_v48  ;;  %v10259_v30 = vld [vmem:[#allocation5 + $0x840] ss:$24 sps:$4 sm:$0xff]   ;;  %v10264_v48 = vld [vmem:[#allocation5 + $0xe7c] ss:$24 sps:$4 sm:$0xff]  }
 0x149   :  { %2742 = vmatprep.subr.bf16.mxu1 %v10240_v49  ;;  %4693 = vmatprep.subr.bf16.mxu0 %v10243_v57  ;;  %v10267_v49 = vld [vmem:[#allocation5 + $0x874] ss:$24 sps:$4 sm:$0xff]   ;;  %v10262_v57 = vld [vmem:[#allocation5 + $0xe78] ss:$24 sps:$4 sm:$0xff]  }
 0x14c   :  { %2743 = vmatpush1.bf16.msra.mxu1 %v10238_v26  ;;  %4694 = vmatpush1.bf16.msra.mxu0 %v10241_v18  ;;  %v10265_v26 = vld [vmem:[#allocation5 + $0x870] ss:$24 sps:$4 sm:$0xff]   ;;  %v10270_v18 = vld [vmem:[#allocation5 + $0xeac] ss:$24 sps:$4 sm:$0xff]  }
 0x14d   :  { %2744 = vmatprep.subr.bf16.mxu1 %v10246_v52  ;;  %4695 = vmatprep.subr.bf16.mxu0 %v10249_v6  ;;  %v10273_v52 = vld [vmem:[#allocation5 + $0x8a4] ss:$24 sps:$4 sm:$0xff]  }
 0x14e   :  { %v11756_v6 = vld [vmem:[#allocation2 + $0x40] sm:$0xff] }
 0x150   :  { %2745 = vmatpush1.bf16.msra.mxu1 %v10244_v7  ;;  %4696 = vmatpush1.bf16.msra.mxu0 %v10247_v56  ;;  %v12714_v7 = vunpack.c.h.bf16 %v11756_v6  ;;  %v11759_v56 = vld [vmem:[#allocation2 + $0x58] sm:$0xff] }
 0x151   :  { %2746 = vmatprep.subr.bf16.mxu1 %v10252_v8  ;;  %4697 = vmatprep.subr.bf16.mxu0 %v10255_v62  ;;  %12773 = vst [vmem:[#allocation43_spill] sm:$0xff] %v11759_v56  ;;  %v12716_v8 = vunpack.c.h.bf16 %v11759_v56  ;;  %v10268_v62 = vld [vmem:[#allocation5 + $0xea8] ss:$24 sps:$4 sm:$0xff]  }
 0x154   :  { %2747 = vmatpush1.bf16.msra.mxu1 %v10250_v47  ;;  %4698 = vmatpush1.bf16.msra.mxu0 %v10253_v0  ;;  %v10271_v47 = vld [vmem:[#allocation5 + $0x8a0] ss:$24 sps:$4 sm:$0xff]   ;;  %v10276_v0 = vld [vmem:[#allocation5 + $0xedc] ss:$24 sps:$4 sm:$0xff]  }
 0x155   :  { %2748 = vmatprep.subr.bf16.mxu1 %v10258_v53  ;;  %4699 = vmatprep.subr.bf16.mxu0 %v10261_v45  ;;  %v10279_v53 = vld [vmem:[#allocation5 + $0x8d4] ss:$24 sps:$4 sm:$0xff]   ;;  %v420_v45 = vrot.slane %v12714_v7, 7 }
 0x156   :  { %v10288_v7 = vld [vmem:[#allocation5 + $0xf3c] ss:$24 sps:$4 sm:$0xff]  }
 0x158   :  { %2749 = vmatpush1.bf16.msra.mxu1 %v10256_v44  ;;  %4700 = vmatpush1.bf16.msra.mxu0 %v10259_v30  ;;  %v426_v44 = vrot.slane %v12716_v8, 7  ;;  %v12719_v30 = vunpack.c.l.bf16 %v11756_v6 }
 0x159   :  { %2750 = vmatprep.subr.bf16.mxu1 %v10264_v48  ;;  %4701 = vmatprep.subr.bf16.mxu0 %v10267_v49  ;;  %v12718_v48 = vunpack.c.l.bf16 %v11759_v56  ;;  %v10274_v49 = vld [vmem:[#allocation5 + $0xed8] ss:$24 sps:$4 sm:$0xff]  }
 0x15c   :  { %2751 = vmatpush1.bf16.msra.mxu1 %v10262_v57  ;;  %4702 = vmatpush1.bf16.msra.mxu0 %v10265_v26  ;;  %v10277_v57 = vld [vmem:[#allocation5 + $0x8d0] ss:$24 sps:$4 sm:$0xff]   ;;  %v10282_v26 = vld [vmem:[#allocation5 + $0xf0c] ss:$24 sps:$4 sm:$0xff]  }
 0x15d   :  { %2752 = vmatprep.subr.bf16.mxu1 %v10270_v18  ;;  %4703 = vmatprep.subr.bf16.mxu0 %v10273_v52  ;;  %v10285_v18 = vld [vmem:[#allocation5 + $0x14] ss:$24 sps:$4 sm:$0xff]   ;;  %v10280_v52 = vld [vmem:[#allocation5 + $0xf08] ss:$24 sps:$4 sm:$0xff]  }
 0x160   :  { %2753 = vmatpush1.bf16.msra.mxu1 %v10268_v62  ;;  %4704 = vmatpush1.bf16.msra.mxu0 %v10271_v47  ;;  %v481_v62 = vsel %vm451_vm0, %v420_v45, %v426_v44  ;;  %v487_v47 = vsel %vm451_vm0, %v11719_v63, %v420_v45  ;;  %v12774_v63 = vunpack.c.h.bf16 %v11768_v46 }
 0x161   :  { %2754 = vmatprep.subr.bf16.mxu1 %v10276_v0  ;;  %4705 = vmatprep.subr.bf16.mxu0 %v10279_v53  ;;  %v419_v0 = vrot.slane %v12719_v30, 7  ;;  %v425_v53 = vrot.slane %v12718_v48, 7  ;;  %v11783_v8 = vpack.c.bf16 %v481_v62, %v487_v47  ;;  %v12723_v48 = vunpack.c.l.bf16 %v11768_v46  ;;  %v10289_v62 = vld [vmem:[#allocation5 + $0x40] ss:$24 sps:$4 sm:$0xff]   ;;  %v10297_v30 = vld [vmem:[#allocation5 + $0x74] ss:$24 sps:$4 sm:$0xff]  }
 0x162   :  { %v432_v45 = vrot.slane %v12774_v63, 7  ;;  %v10294_v63 = vld [vmem:[#allocation5 + $0xf6c] ss:$24 sps:$4 sm:$0xff]  }
 0x163   :  { %v486_v47 = vsel %vm451_vm0, %v11486_v50, %v419_v0 }
 0x164   :  { %2755 = vmatpush1.bf16.msra.mxu1 %v10274_v49  ;;  %4706 = vmatpush1.bf16.msra.mxu0 %v10277_v57  ;;  %v12775_v49 = vunpack.c.h.bf16 %v11771_v4 }
 0x165   :  { %2797 = vmatprep.subr.bf16.mxu1 %v10282_v26  ;;  %4967 = vmatprep.subr.bf16.mxu0 %v10285_v18  ;;  %v10286_v18 = vld [vmem:[#allocation5 + $0xf38] ss:$24 sps:$4 sm:$0xff]  }
 0x166   :  { %v438_v57 = vrot.slane %v12775_v49, 7  ;;  %v10292_v49 = vld [vmem:[#allocation5 + $0xf68] ss:$24 sps:$4 sm:$0xff]  }
 0x167   :  { %2757 = vmatmul.mubr.bf16.vlgmr.msra.gmra.mrb[16].mxu1 %v11274_v16  ;;  %8639 = vmatmul.mubr.msk.bf16.vlgmr.msra.gmra.mrb[16].mxu0 %vm11461_vm3, %v11509_v35  ;;  %v480_v16 = vsel %vm451_vm0, %v419_v0, %v425_v53  ;;  %v12776_v0 = vunpack.c.l.bf16 %v11771_v4 }
 0x168   :  { %2798 = vmatpush1.bf16.msra.mxu1 %v10280_v52  ;;  %4968 = vmatpush1.bf16.msra.mxu0 %v10283_v25  ;;  %v11804_v25 = vld [vmem:[#allocation2 + $0xa0] sm:$0xff]  ;;  %v11807_v26 = vpack.c.bf16 %v480_v16, %v486_v47  ;;  %v469_v50 = vsel %vm451_vm0, %v432_v45, %v438_v57  ;;  %v10300_v52 = vld [vmem:[#allocation5 + $0xf9c] ss:$24 sps:$4 sm:$0xff]  }
 0x169   :  { %2799 = vmatprep.subr.bf16.mxu1 %v10288_v7  ;;  %4969 = vmatprep.subr.bf16.mxu0 %v10291_v3  ;;  %v475_v3 = vsel %vm451_vm0, %v426_v44, %v432_v45  ;;  %v10295_v7 = vld [vmem:[#allocation5 + $0x70] ss:$24 sps:$4 sm:$0xff]   ;;  %v437_v56 = vrot.slane %v12776_v0, 7  ;;  %v10303_v16 = vld [vmem:[#allocation5 + $0xa4] ss:$24 sps:$4 sm:$0xff]   ;;  %v12777_v44 = vunpack.c.h.bf16 %v11804_v25 }
 0x16a   :  { %2766 = vmatprep.mubr.bf16.mxu1 %v11298_v36  ;;  %8642 = vmatprep.mubr.msk.bf16.mxu0 %vm11461_vm3, %v11783_v8  ;;  %v431_v36 = vrot.slane %v12723_v48, 7  ;;  %v11817_v47 = vpack.c.bf16 %v469_v50, %v475_v3  ;;  %v10309_v3 = vld [vmem:[#allocation5 + $0xd4] ss:$24 sps:$4 sm:$0xff]   ;;  %v10468_v48 = vld [vmem:[#allocation5 + $0xbe4] ss:$24 sps:$4 sm:$0xff]  }
 0x16b   :  { %v444_v45 = vrot.slane %v12777_v44, 7 }
 0x16c   :  { %2800 = vmatpush1.bf16.msra.mxu1 %v10286_v18  ;;  %4970 = vmatpush1.bf16.msra.mxu0 %v10289_v62  ;;  %v12722_v18 = vunpack.c.l.bf16 %v11804_v25  ;;  %v10298_v62 = vld [vmem:[#allocation5 + $0xf98] ss:$24 sps:$4 sm:$0xff]   ;;  %v474_v50 = vsel %vm451_vm0, %v425_v53, %v431_v36  ;;  %v10304_v53 = vld [vmem:[#allocation5 + $0xfc8] ss:$24 sps:$4 sm:$0xff]  }
 0x16d   :  { %2801 = vmatprep.subr.bf16.mxu1 %v10294_v63  ;;  %4971 = vmatprep.subr.bf16.mxu0 %v10297_v30  ;;  %v10301_v63 = vld [vmem:[#allocation5 + $0xa0] ss:$24 sps:$4 sm:$0xff]   ;;  %v468_v30 = vsel %vm451_vm0, %v431_v36, %v437_v56  ;;  %v463_v0 = vsel %vm451_vm0, %v438_v57, %v444_v45  ;;  %v10312_v36 = vld [vmem:[#allocation5 + $0xffc] ss:$24 sps:$4 sm:$0xff]  }
 0x16e   :  { %v10313_v57 = vld [vmem:[#allocation5 + $0x100] ss:$24 sps:$4 sm:$0xff]  }
 0x16f   :  { %2767 = vmatmul.mubr.bf16.gmra.mrb[20].mxu1 %v11300_v37  ;;  %8645 = vmatmul.mubr.msk.bf16.gmra.mrb[20].mxu0 %vm11461_vm3, %v11807_v26  ;;  %v10306_v37 = vld [vmem:[#allocation5 + $0xfcc] ss:$24 sps:$4 sm:$0xff]  }
 0x170   :  { %2802 = vmatpush1.bf16.msra.mxu1 %v10292_v49  ;;  %4972 = vmatpush1.bf16.msra.mxu0 %v10295_v7  ;;  %v11834_v49 = vpack.c.bf16 %v468_v30, %v474_v50  ;;  %v457_v7 = vsel %vm451_vm0, %v444_v45, %v11727_v5  ;;  %v10310_v5 = vld [vmem:[#allocation5 + $0xff8] ss:$24 sps:$4 sm:$0xff]   ;;  %v10321_v30 = vld [vmem:[#allocation5 + $0x134] ss:$24 sps:$4 sm:$0xff]   ;;  %v10316_v50 = vld [vmem:[#allocation5 + $0x1028] ss:$24 sps:$4 sm:$0xff]  }
 0x171   :  { %2803 = vmatprep.subr.bf16.mxu1 %v10300_v52  ;;  %4973 = vmatprep.subr.bf16.mxu0 %v10303_v16  ;;  %v10307_v52 = vld [vmem:[#allocation5 + $0xd0] ss:$24 sps:$4 sm:$0xff]   ;;  %v10315_v16 = vld [vmem:[#allocation5 + $0x104] ss:$24 sps:$4 sm:$0xff]   ;;  %v11843_v44 = vpack.c.bf16 %v457_v7, %v463_v0  ;;  %v10333_v0 = vld [vmem:[#allocation5 + $0x194] ss:$24 sps:$4 sm:$0xff]  }
 0x172   :  { %2776 = vmatprep.mubr.bf16.mxu1 %v11313_v55  ;;  %8648 = vmatprep.mubr.msk.bf16.mxu0 %vm11461_vm3, %v11817_v47  ;;  %v443_v55 = vrot.slane %v12722_v18, 7  ;;  %v10330_v7 = vld [vmem:[#allocation5 + $0x108c] ss:$24 sps:$4 sm:$0xff]  }
 0x173   :  { %v10465_v18 = vld [vmem:[#allocation5 + $0x5b4] ss:$24 sps:$4 sm:$0xff]  }
 0x174   :  { %2804 = vmatpush1.bf16.msra.mxu1 %v10298_v62  ;;  %4974 = vmatpush1.bf16.msra.mxu0 %v10301_v63  ;;  %v456_v45 = vsel %vm451_vm0, %v443_v55, %v11490_v51  ;;  %v462_v62 = vsel %vm451_vm0, %v437_v56, %v443_v55  ;;  %v10318_v63 = vld [vmem:[#allocation5 + $0x102c] ss:$24 sps:$4 sm:$0xff]   ;;  %v10324_v51 = vld [vmem:[#allocation5 + $0x105c] ss:$24 sps:$4 sm:$0xff]  }
 0x175   :  { %2805 = vmatprep.subr.bf16.mxu1 %v10306_v37  ;;  %4975 = vmatprep.subr.bf16.mxu0 %v10309_v3  ;;  %v10319_v37 = vld [vmem:[#allocation5 + $0x130] ss:$24 sps:$4 sm:$0xff]   ;;  %v10327_v56 = vld [vmem:[#allocation5 + $0x164] ss:$24 sps:$4 sm:$0xff]   ;;  %v10325_v3 = vld [vmem:[#allocation5 + $0x160] ss:$24 sps:$4 sm:$0xff]  }
 0x176   :  { %v10339_v55 = vld [vmem:[#allocation5 + $0x1c4] ss:$24 sps:$4 sm:$0xff]  }
 0x177   :  { %2777 = vmatmul.mubr.bf16.gmra.mrb[24].mxu1 %v11321_v60  ;;  %8651 = vmatmul.mubr.msk.bf16.gmra.mrb[24].mxu0 %vm11461_vm3, %v11834_v49  ;;  %v11858_v60 = vpack.c.bf16 %v456_v45, %v462_v62  ;;  %v10343_v45 = vld [vmem:[#allocation5 + $0x1f0] ss:$24 sps:$4 sm:$0xff]   ;;  %v10348_v62 = vld [vmem:[#allocation5 + $0x111c] ss:$24 sps:$4 sm:$0xff]  }
 0x178   :  { %2806 = vmatpush1.bf16.msra.mxu1 %v10304_v53  ;;  %4976 = vmatpush1.bf16.msra.mxu0 %v10307_v52  ;;  %v10331_v53 = vld [vmem:[#allocation5 + $0x190] ss:$24 sps:$4 sm:$0xff]   ;;  %v10336_v52 = vld [vmem:[#allocation5 + $0x10bc] ss:$24 sps:$4 sm:$0xff]  }
 0x179   :  { %2807 = vmatprep.subr.bf16.mxu1 %v10312_v36  ;;  %4977 = vmatprep.subr.bf16.mxu0 %v10315_v16  ;;  %v10334_v36 = vld [vmem:[#allocation5 + $0x10b8] ss:$24 sps:$4 sm:$0xff]  }
 0x17a   :  { %2786 = vmatprep.mubr.bf16.mxu1 %v11341_v12  ;;  %8654 = vmatprep.mubr.msk.bf16.mxu0 %vm11461_vm3, %v11843_v44  ;;  %v10322_v12 = vld [vmem:[#allocation5 + $0x1058] ss:$24 sps:$4 sm:$0xff]  }
 0x17b   :  { %v10337_v16 = vld [vmem:[#allocation5 + $0x1c0] ss:$24 sps:$4 sm:$0xff]  }
 0x17c   :  { %2808 = vmatpush1.bf16.msra.mxu1 %v10310_v5  ;;  %4978 = vmatpush1.bf16.msra.mxu0 %v10313_v57  ;;  %v10342_v5 = vld [vmem:[#allocation5 + $0x10ec] ss:$24 sps:$4 sm:$0xff]   ;;  %v10340_v57 = vld [vmem:[#allocation5 + $0x10e8] ss:$24 sps:$4 sm:$0xff]  }
 0x17d   :  { %2809 = vmatprep.subr.bf16.mxu1 %v10318_v63  ;;  %4979 = vmatprep.subr.bf16.mxu0 %v10321_v30  ;;  %v10351_v63 = vld [vmem:[#allocation5 + $0x224] ss:$24 sps:$4 sm:$0xff]   ;;  %v10346_v30 = vld [vmem:[#allocation5 + $0x1118] ss:$24 sps:$4 sm:$0xff]  }
 0x17f   :  { %2787 = vmatmul.mubr.bf16.gmra.mrb[28].mxu1 %v11357_v24  ;;  %8657 = vmatmul.mubr.msk.bf16.gmra.mrb[28].mxu0 %vm11461_vm3, %v11858_v60  ;;  %v10328_v24 = vld [vmem:[#allocation5 + $0x1088] ss:$24 sps:$4 sm:$0xff]  }
 0x180   :  { %2810 = vmatpush1.bf16.msra.mxu1 %v10316_v50  ;;  %4980 = vmatpush1.bf16.msra.mxu0 %v10319_v37  ;;  %v10349_v50 = vld [vmem:[#allocation5 + $0x220] ss:$24 sps:$4 sm:$0xff]   ;;  %v10354_v37 = vld [vmem:[#allocation5 + $0x114c] ss:$24 sps:$4 sm:$0xff]  }
 0x181   :  { %2811 = vmatprep.subr.bf16.mxu1 %v10324_v51  ;;  %4981 = vmatprep.subr.bf16.mxu0 %v10327_v56  ;;  %v10357_v51 = vld [vmem:[#allocation5 + $0x254] ss:$24 sps:$4 sm:$0xff]   ;;  %v10352_v56 = vld [vmem:[#allocation5 + $0x1148] ss:$24 sps:$4 sm:$0xff]  }
 0x182   :  { %2829 = vmatprep.mubr.bf16.mxu1 %v11366_v20  ;;  %8732 = vmatprep.mubr.msk.bf16.mxu0 %vm11461_vm3, %v11465_v11  ;;  %v10345_v20 = vld [vmem:[#allocation5 + $0x1f4] ss:$24 sps:$4 sm:$0xff]  }
 0x184   :  { %2812 = vmatpush1.bf16.msra.mxu1 %v10322_v12  ;;  %4982 = vmatpush1.bf16.msra.mxu0 %v10325_v3  ;;  %v10355_v12 = vld [vmem:[#allocation5 + $0x250] ss:$24 sps:$4 sm:$0xff]   ;;  %v10360_v3 = vld [vmem:[#allocation5 + $0x117c] ss:$24 sps:$4 sm:$0xff]  }
 0x185   :  { %2813 = vmatprep.subr.bf16.mxu1 %v10330_v7  ;;  %4983 = vmatprep.subr.bf16.mxu0 %v10333_v0  ;;  %v10363_v7 = vld [vmem:[#allocation5 + $0x284] ss:$24 sps:$4 sm:$0xff]   ;;  %v10358_v0 = vld [vmem:[#allocation5 + $0x1178] ss:$24 sps:$4 sm:$0xff]  }
 0x188   :  { %2814 = vmatpush1.bf16.msra.mxu1 %v10328_v24  ;;  %4984 = vmatpush1.bf16.msra.mxu0 %v10331_v53  ;;  %v10361_v24 = vld [vmem:[#allocation5 + $0x280] ss:$24 sps:$4 sm:$0xff]   ;;  %v10366_v53 = vld [vmem:[#allocation5 + $0x11ac] ss:$24 sps:$4 sm:$0xff]  }
 0x189   :  { %2815 = vmatprep.subr.bf16.mxu1 %v10336_v52  ;;  %4985 = vmatprep.subr.bf16.mxu0 %v10339_v55  ;;  %v10369_v52 = vld [vmem:[#allocation5 + $0x2b4] ss:$24 sps:$4 sm:$0xff]   ;;  %v10364_v55 = vld [vmem:[#allocation5 + $0x11a8] ss:$24 sps:$4 sm:$0xff]  }
 0x18c   :  { %2816 = vmatpush1.bf16.msra.mxu1 %v10334_v36  ;;  %4986 = vmatpush1.bf16.msra.mxu0 %v10337_v16  ;;  %v10367_v36 = vld [vmem:[#allocation5 + $0x2b0] ss:$24 sps:$4 sm:$0xff]   ;;  %v10372_v16 = vld [vmem:[#allocation5 + $0x11dc] ss:$24 sps:$4 sm:$0xff]  }
 0x18d   :  { %2817 = vmatprep.subr.bf16.mxu1 %v10342_v5  ;;  %4987 = vmatprep.subr.bf16.mxu0 %v10345_v20  ;;  %v10375_v5 = vld [vmem:[#allocation5 + $0x2e4] ss:$24 sps:$4 sm:$0xff]   ;;  %v10370_v20 = vld [vmem:[#allocation5 + $0x11d8] ss:$24 sps:$4 sm:$0xff]  }
 0x190   :  { %2818 = vmatpush1.bf16.msra.mxu1 %v10340_v57  ;;  %4988 = vmatpush1.bf16.msra.mxu0 %v10343_v45  ;;  %v10373_v57 = vld [vmem:[#allocation5 + $0x2e0] ss:$24 sps:$4 sm:$0xff]   ;;  %v10378_v45 = vld [vmem:[#allocation5 + $0x914] ss:$24 sps:$4 sm:$0xff]  }
 0x191   :  { %2819 = vmatprep.subr.bf16.mxu1 %v10348_v62  ;;  %4989 = vmatprep.subr.bf16.mxu0 %v10351_v63  ;;  %v10381_v62 = vld [vmem:[#allocation5 + $0x314] ss:$24 sps:$4 sm:$0xff]   ;;  %v10376_v63 = vld [vmem:[#allocation5 + $0x910] ss:$24 sps:$4 sm:$0xff]  }
 0x194   :  { %2820 = vmatpush1.bf16.msra.mxu1 %v10346_v30  ;;  %4990 = vmatpush1.bf16.msra.mxu0 %v10349_v50  ;;  %v10379_v30 = vld [vmem:[#allocation5 + $0x310] ss:$24 sps:$4 sm:$0xff]   ;;  %v10384_v50 = vld [vmem:[#allocation5 + $0x944] ss:$24 sps:$4 sm:$0xff]  }
 0x195   :  { %2821 = vmatprep.subr.bf16.mxu1 %v10354_v37  ;;  %4991 = vmatprep.subr.bf16.mxu0 %v10357_v51  ;;  %v10387_v37 = vld [vmem:[#allocation5 + $0x344] ss:$24 sps:$4 sm:$0xff]   ;;  %v10382_v51 = vld [vmem:[#allocation5 + $0x940] ss:$24 sps:$4 sm:$0xff]  }
 0x198   :  { %2822 = vmatpush1.bf16.msra.mxu1 %v10352_v56  ;;  %4992 = vmatpush1.bf16.msra.mxu0 %v10355_v12  ;;  %v10385_v56 = vld [vmem:[#allocation5 + $0x340] ss:$24 sps:$4 sm:$0xff]   ;;  %v10390_v12 = vld [vmem:[#allocation5 + $0x974] ss:$24 sps:$4 sm:$0xff]  }
 0x199   :  { %2823 = vmatprep.subr.bf16.mxu1 %v10360_v3  ;;  %4993 = vmatprep.subr.bf16.mxu0 %v10363_v7  ;;  %v10393_v3 = vld [vmem:[#allocation5 + $0x374] ss:$24 sps:$4 sm:$0xff]   ;;  %v10391_v7 = vld [vmem:[#allocation5 + $0x370] ss:$24 sps:$4 sm:$0xff]  }
 0x19c   :  { %2824 = vmatpush1.bf16.msra.mxu1 %v10358_v0  ;;  %4994 = vmatpush1.bf16.msra.mxu0 %v10361_v24  ;;  %v10396_v0 = vld [vmem:[#allocation5 + $0x9a4] ss:$24 sps:$4 sm:$0xff]  }
 0x19d   :  { %2825 = vmatprep.subr.bf16.mxu1 %v10366_v53  ;;  %4995 = vmatprep.subr.bf16.mxu0 %v10369_v52  ;;  %v10399_v24 = vld [vmem:[#allocation5 + $0x3a4] ss:$24 sps:$4 sm:$0xff]   ;;  %v10397_v53 = vld [vmem:[#allocation5 + $0x3a0] ss:$24 sps:$4 sm:$0xff]   ;;  %v10402_v52 = vld [vmem:[#allocation5 + $0x9d4] ss:$24 sps:$4 sm:$0xff]  }
 0x1a0   :  { %2826 = vmatpush1.bf16.msra.mxu1 %v10364_v55  ;;  %4996 = vmatpush1.bf16.msra.mxu0 %v10367_v36  ;;  %v10405_v55 = vld [vmem:[#allocation5 + $0x3d4] ss:$24 sps:$4 sm:$0xff]   ;;  %v10403_v36 = vld [vmem:[#allocation5 + $0x3d0] ss:$24 sps:$4 sm:$0xff]  }
 0x1a1   :  { %2827 = vmatprep.subr.bf16.mxu1 %v10372_v16  ;;  %4997 = vmatprep.subr.bf16.mxu0 %v10375_v5  ;;  %v10408_v16 = vld [vmem:[#allocation5 + $0xa04] ss:$24 sps:$4 sm:$0xff]  }
 0x1a2   :  { %v10411_v5 = vld [vmem:[#allocation5 + $0x404] ss:$24 sps:$4 sm:$0xff]  }
 0x1a4   :  { %2828 = vmatpush1.bf16.msra.mxu1 %v10370_v20  ;;  %4998 = vmatpush1.bf16.msra.mxu0 %v10373_v57  ;;  %v10409_v20 = vld [vmem:[#allocation5 + $0x400] ss:$24 sps:$4 sm:$0xff]   ;;  %v10414_v57 = vld [vmem:[#allocation5 + $0xa34] ss:$24 sps:$4 sm:$0xff]  }
 0x1a5   :  { %2870 = vmatprep.subr.bf16.mxu1 %v10378_v45  ;;  %5040 = vmatprep.subr.bf16.mxu0 %v10381_v62  ;;  %v10417_v45 = vld [vmem:[#allocation5 + $0x434] ss:$24 sps:$4 sm:$0xff]  }
 0x1a7   :  { %2830 = vmatmul.mubr.bf16.vlgmr.msra.gmra.mrb[16].mxu1 %v11402_v19  ;;  %8735 = vmatmul.mubr.msk.bf16.vlgmr.msra.gmra.mrb[0].mxu0 %vm11461_vm3, %v11354_v22  ;;  %v10388_v19 = vld [vmem:[#allocation5 + $0x970] ss:$24 sps:$4 sm:$0xff]  }
 0x1a8   :  { %2871 = vmatpush1.bf16.msra.mxu1 %v10376_v63  ;;  %5041 = vmatpush1.bf16.msra.mxu0 %v10379_v30  ;;  %v10412_v30 = vld [vmem:[#allocation5 + $0xa30] ss:$24 sps:$4 sm:$0xff]  }
 0x1a9   :  { %2872 = vmatprep.subr.bf16.mxu1 %v10384_v50  ;;  %5042 = vmatprep.subr.bf16.mxu0 %v10387_v37  ;;  %v10415_v50 = vld [vmem:[#allocation5 + $0x430] ss:$24 sps:$4 sm:$0xff]  }
 0x1aa   :  { %2839 = vmatprep.mubr.bf16.mxu1 %v11410_v33  ;;  %8738 = vmatprep.mubr.msk.bf16.mxu0 %vm11461_vm3, %v11505_v17  ;;  %v10394_v33 = vld [vmem:[#allocation5 + $0x9a0] ss:$24 sps:$4 sm:$0xff]  }
 0x1ac   :  { %2873 = vmatpush1.bf16.msra.mxu1 %v10382_v51  ;;  %5043 = vmatpush1.bf16.msra.mxu0 %v10385_v56  ;;  %v10420_v51 = vld [vmem:[#allocation5 + $0xa64] ss:$24 sps:$4 sm:$0xff]  }
 0x1ad   :  { %2874 = vmatprep.subr.bf16.mxu1 %v10390_v12  ;;  %5044 = vmatprep.subr.bf16.mxu0 %v10393_v3  ;;  %v10423_v56 = vld [vmem:[#allocation5 + $0x464] ss:$24 sps:$4 sm:$0xff]   ;;  %v10421_v12 = vld [vmem:[#allocation5 + $0x460] ss:$24 sps:$4 sm:$0xff]   ;;  %v10426_v3 = vld [vmem:[#allocation5 + $0xa94] ss:$24 sps:$4 sm:$0xff]  }
 0x1af   :  { %2840 = vmatmul.mubr.bf16.gmra.mrb[20].mxu1 %v11418_v59  ;;  %8741 = vmatmul.mubr.msk.bf16.gmra.mrb[4].mxu0 %vm11461_vm3, %v11385_v9  ;;  %v10400_v59 = vld [vmem:[#allocation5 + $0x9d0] ss:$24 sps:$4 sm:$0xff]  }
 0x1b0   :  { %2875 = vmatpush1.bf16.msra.mxu1 %v10388_v19  ;;  %5045 = vmatpush1.bf16.msra.mxu0 %v10391_v7  ;;  %v10429_v19 = vld [vmem:[#allocation5 + $0x494] ss:$24 sps:$4 sm:$0xff]  }
 0x1b1   :  { %2876 = vmatprep.subr.bf16.mxu1 %v10396_v0  ;;  %5046 = vmatprep.subr.bf16.mxu0 %v10399_v24  ;;  %v12778_v0 = vld [vmem:[#allocation13_spill] sm:$0xff] }
 0x1b2   :  { %2849 = vmatprep.mubr.bf16.mxu1 %v11420_v32  ;;  %8744 = vmatprep.mubr.msk.bf16.mxu0 %vm11461_vm3, %v11536_v41  ;;  %v10406_v32 = vld [vmem:[#allocation5 + $0xa00] ss:$24 sps:$4 sm:$0xff]   ;;  %v12779_v24 = vld [vmem:[#allocation33_spill] sm:$0xff] }
 0x1b4   :  { %2877 = vmatpush1.bf16.msra.mxu1 %v10394_v33  ;;  %5047 = vmatpush1.bf16.msra.mxu0 %v10397_v53  ;;  %v10424_v53 = vld [vmem:[#allocation5 + $0xa90] ss:$24 sps:$4 sm:$0xff]  }
 0x1b5   :  { %2878 = vmatprep.subr.bf16.mxu1 %v10402_v52  ;;  %5048 = vmatprep.subr.bf16.mxu0 %v10405_v55  ;;  %v10427_v52 = vld [vmem:[#allocation5 + $0x490] ss:$24 sps:$4 sm:$0xff]  }
 0x1b7   :  { %2850 = vmatmul.mubr.bf16.gmra.mrb[24].mxu1 %v11429_v1  ;;  %8747 = vmatmul.mubr.msk.bf16.gmra.mrb[8].mxu0 %vm11461_vm3, %v11565_v39 }
 0x1b8   :  { %2879 = vmatpush1.bf16.msra.mxu1 %v10400_v59  ;;  %5049 = vmatpush1.bf16.msra.mxu0 %v10403_v36  ;;  %v10432_v59 = vld [vmem:[#allocation5 + $0xac4] ss:$24 sps:$4 sm:$0xff]  }
 0x1b9   :  { %2880 = vmatprep.subr.bf16.mxu1 %v10408_v16  ;;  %5050 = vmatprep.subr.bf16.mxu0 %v10411_v5  ;;  %v10435_v36 = vld [vmem:[#allocation5 + $0x4c4] ss:$24 sps:$4 sm:$0xff]   ;;  %v10430_v16 = vld [vmem:[#allocation5 + $0xac0] ss:$24 sps:$4 sm:$0xff]  }
 0x1ba   :  { %v11888_v62 = vpop.f32.mrb[0].mxu1  ;;  %2859 = vmatprep.mubr.bf16.mxu1 %v11434_v43  ;;  %8750 = vmatprep.mubr.msk.bf16.mxu0 %vm11461_vm3, %v11574_v23  ;;  %v10418_v43 = vld [vmem:[#allocation5 + $0xa60] ss:$24 sps:$4 sm:$0xff]  }
 0x1bb   :  { %v11894_v1 = vpop.f32.mrb[1].mxu1  ;;  %v10433_v5 = vld [vmem:[#allocation5 + $0x4c0] ss:$24 sps:$4 sm:$0xff]  }
 0x1bc   :  { %v11896_v63 = vpop.f32.mrb[2].mxu1  ;;  %2881 = vmatpush1.bf16.msra.mxu1 %v10406_v32  ;;  %5051 = vmatpush1.bf16.msra.mxu0 %v10409_v20  ;;  %v10438_v32 = vld [vmem:[#allocation5 + $0xaf4] ss:$24 sps:$4 sm:$0xff]  }
 0x1bd   :  { %v11898_v37 = vpop.f32.mrb[3].mxu1  ;;  %2882 = vmatprep.subr.bf16.mxu1 %v10414_v57  ;;  %5052 = vmatprep.subr.bf16.mxu0 %v10417_v45  ;;  %v10441_v20 = vld [vmem:[#allocation5 + $0x4f4] ss:$24 sps:$4 sm:$0xff]  }
 0x1bf   :  { %2860 = vmatmul.mubr.bf16.gmra.mrb[28].mxu1 %v11452_v40  ;;  %8753 = vmatmul.mubr.msk.bf16.gmra.mrb[12].mxu0 %vm11461_vm3, %v11599_v29 }
 0x1c0   :  { %2883 = vmatpush1.bf16.msra.mxu1 %v10412_v30  ;;  %5053 = vmatpush1.bf16.msra.mxu0 %v10415_v50  ;;  %v10436_v50 = vld [vmem:[#allocation5 + $0xaf0] ss:$24 sps:$4 sm:$0xff]  }
 0x1c1   :  { %2884 = vmatprep.subr.bf16.mxu1 %v10420_v51  ;;  %5054 = vmatprep.subr.bf16.mxu0 %v10423_v56  ;;  %v10439_v51 = vld [vmem:[#allocation5 + $0x4f0] ss:$24 sps:$4 sm:$0xff]  }
 0x1c2   :  { %v11904_v7 = vpop.f32.mrb[4].mxu1  ;;  %2902 = vmatprep.mubr.bf16.mxu1 %v12778_v0  ;;  %8756 = vmatprep.mubr.msk.bf16.mxu0 %vm11461_vm3, %v12779_v24  ;;  %v10450_v0 = vld [vmem:[#allocation5 + $0xb54] ss:$24 sps:$4 sm:$0xff]  }
 0x1c3   :  { %v11910_v40 = vpop.f32.mrb[5].mxu1 }
 0x1c4   :  { %v11912_v33 = vpop.f32.mrb[6].mxu1  ;;  %2885 = vmatpush1.bf16.msra.mxu1 %v10418_v43  ;;  %5055 = vmatpush1.bf16.msra.mxu0 %v10421_v12  ;;  %v10444_v43 = vld [vmem:[#allocation5 + $0xb24] ss:$24 sps:$4 sm:$0xff]  }
 0x1c5   :  { %v11914_v55 = vpop.f32.mrb[7].mxu1  ;;  %2886 = vmatprep.subr.bf16.mxu1 %v10426_v3  ;;  %5056 = vmatprep.subr.bf16.mxu0 %v10429_v19  ;;  %v10447_v12 = vld [vmem:[#allocation5 + $0x524] ss:$24 sps:$4 sm:$0xff]   ;;  %v10442_v3 = vld [vmem:[#allocation5 + $0xb20] ss:$24 sps:$4 sm:$0xff]  }
 0x1c6   :  { %v10445_v19 = vld [vmem:[#allocation5 + $0x520] ss:$24 sps:$4 sm:$0xff]  }
 0x1c8   :  { %2887 = vmatpush1.bf16.msra.mxu1 %v10424_v53  ;;  %5057 = vmatpush1.bf16.msra.mxu0 %v10427_v52  ;;  %v10453_v53 = vld [vmem:[#allocation5 + $0x554] ss:$24 sps:$4 sm:$0xff]  }
 0x1c9   :  { %2888 = vmatprep.subr.bf16.mxu1 %v10432_v59  ;;  %5058 = vmatprep.subr.bf16.mxu0 %v10435_v36 }
 0x1ca   :  { %v11916_v57 = vpop.f32.mrb[8].mxu1 }
 0x1cb   :  { %v11918_v45 = vpop.f32.mrb[9].mxu1 }
 0x1cc   :  { %12780 = vst [vmem:[#allocation13_spill] sm:$0xff] %v11918_v45  ;;  %v11920_v30 = vpop.f32.mrb[10].mxu1  ;;  %2889 = vmatpush1.bf16.msra.mxu1 %v10430_v16  ;;  %5059 = vmatpush1.bf16.msra.mxu0 %v10433_v5  ;;  %v10448_v16 = vld [vmem:[#allocation5 + $0xb50] ss:$24 sps:$4 sm:$0xff]  }
 0x1cd   :  { %12781 = vst [vmem:[#allocation33_spill] sm:$0xff] %v11920_v30  ;;  %v11922_v56 = vpop.f32.mrb[11].mxu1  ;;  %2890 = vmatprep.subr.bf16.mxu1 %v10438_v32  ;;  %5060 = vmatprep.subr.bf16.mxu0 %v10441_v20  ;;  %v10451_v5 = vld [vmem:[#allocation5 + $0x550] ss:$24 sps:$4 sm:$0xff]   ;;  %v10456_v20 = vld [vmem:[#allocation5 + $0xb84] ss:$24 sps:$4 sm:$0xff]  }
 0x1ce   :  { %12782 = vst [vmem:[#allocation44_spill] sm:$0xff] %v11922_v56  ;;  %v10475_v56 = vld [vmem:[#allocation5 + $0x610] ss:$24 sps:$4 sm:$0xff]  }
 0x1d0   :  { %2891 = vmatpush1.bf16.msra.mxu1 %v10436_v50  ;;  %5061 = vmatpush1.bf16.msra.mxu0 %v10439_v51  ;;  %v10459_v50 = vld [vmem:[#allocation5 + $0x584] ss:$24 sps:$4 sm:$0xff]   ;;  %v10454_v51 = vld [vmem:[#allocation5 + $0xb80] ss:$24 sps:$4 sm:$0xff]  }
 0x1d1   :  { %2892 = vmatprep.subr.bf16.mxu1 %v10444_v43  ;;  %5062 = vmatprep.subr.bf16.mxu0 %v10447_v12  ;;  %v10457_v43 = vld [vmem:[#allocation5 + $0x580] ss:$24 sps:$4 sm:$0xff]   ;;  %v10462_v12 = vld [vmem:[#allocation5 + $0xbb4] ss:$24 sps:$4 sm:$0xff]  }
 0x1d2   :  { %v11924_v52 = vpop.f32.mrb[12].mxu1 }
 0x1d3   :  { %12783 = vst [vmem:[#allocation45_spill] sm:$0xff] %v11924_v52  ;;  %v11926_v59 = vpop.f32.mrb[13].mxu1  ;;  %v12791_v52 = vld [vmem:[#allocation16_spill] sm:$0xff] }
 0x1d4   :  { %12784 = vst [vmem:[#allocation46_spill] sm:$0xff] %v11926_v59  ;;  %v11928_v36 = vpop.f32.mrb[14].mxu1  ;;  %2893 = vmatpush1.bf16.msra.mxu1 %v10442_v3  ;;  %5063 = vmatpush1.bf16.msra.mxu0 %v10445_v19  ;;  %v10460_v3 = vld [vmem:[#allocation5 + $0xbb0] ss:$24 sps:$4 sm:$0xff]  }
 0x1d5   :  { %12785 = vst [vmem:[#allocation47_spill] sm:$0xff] %v11928_v36  ;;  %v11930_v32 = vpop.f32.mrb[15].mxu1  ;;  %2894 = vmatprep.subr.bf16.mxu1 %v10450_v0  ;;  %5064 = vmatprep.subr.bf16.mxu0 %v10453_v53  ;;  %v10463_v19 = vld [vmem:[#allocation5 + $0x5b0] ss:$24 sps:$4 sm:$0xff]   ;;  %v12787_v0 = vld [vmem:[#allocation11_spill] sm:$0xff] }
 0x1d6   :  { %12786 = vst [vmem:[#allocation48_spill] sm:$0xff] %v11930_v32  ;;  %v10471_v32 = vld [vmem:[#allocation5 + $0x5e4] ss:$24 sps:$4 sm:$0xff]   ;;  %v12788_v53 = vunpack.c.l.bf16 %v12787_v0 }
 0x1d8   :  { %2895 = vmatpush1.bf16.msra.mxu1 %v10448_v16  ;;  %5065 = vmatpush1.bf16.msra.mxu0 %v10451_v5  ;;  %v11934_v36 = vrot.slane %v12788_v53, 1  ;;  %v12789_v16 = vld [vmem:[#allocation12_spill] sm:$0xff] }
 0x1d9   :  { %2896 = vmatprep.subr.bf16.mxu1 %v10456_v20  ;;  %5066 = vmatprep.subr.bf16.mxu0 %v10459_v50  ;;  %v12790_v5 = vunpack.c.l.bf16 %v12789_v16  ;;  %v10466_v20 = vld [vmem:[#allocation5 + $0xbe0] ss:$24 sps:$4 sm:$0xff]  }
 0x1da   :  { %v10469_v50 = vld [vmem:[#allocation5 + $0x5e0] ss:$24 sps:$4 sm:$0xff]  }
 0x1db   :  { %v5480_v59 = vrot.slane %v12790_v5, 1  ;;  %v10472_v53 = vld [vmem:[#allocation5 + $0x8] ss:$24 sps:$4 sm:$0xff]  }
 0x1dc   :  { %2897 = vmatpush1.bf16.msra.mxu1 %v10454_v51  ;;  %5067 = vmatpush1.bf16.msra.mxu0 %v10457_v43  ;;  %v12792_v51 = vunpack.c.l.bf16 %v12791_v52 }
 0x1dd   :  { %2898 = vmatprep.subr.bf16.mxu1 %v10462_v12  ;;  %5068 = vmatprep.subr.bf16.mxu0 %v10465_v18  ;;  %v10474_v18 = vld [vmem:[#allocation5 + $0xc] ss:$24 sps:$4 sm:$0xff]  }
 0x1de   :  { %v11940_v43 = vrot.slane %v12792_v51, 1  ;;  %v10477_v12 = vld [vmem:[#allocation5 + $0x614] ss:$24 sps:$4 sm:$0xff]  }
 0x1df   :  { %v10486_v51 = vld [vmem:[#allocation5 + $0x6c] ss:$24 sps:$4 sm:$0xff]  }
 0x1e0   :  { %2899 = vmatpush1.bf16.msra.mxu1 %v10460_v3  ;;  %5069 = vmatpush1.bf16.msra.mxu0 %v10463_v19  ;;  %v10480_v3 = vld [vmem:[#allocation5 + $0x3c] ss:$24 sps:$4 sm:$0xff]   ;;  %v5553_v5 = vsel %vm5522_vm4, %v5480_v59, %v11940_v43 }
 0x1e1   :  { %2900 = vmatprep.subr.bf16.mxu1 %v10468_v48  ;;  %5070 = vmatprep.subr.bf16.mxu0 %v10471_v32  ;;  %v10483_v19 = vld [vmem:[#allocation5 + $0x644] ss:$24 sps:$4 sm:$0xff]   ;;  %v5559_v48 = vsel %vm5522_vm4, %v11934_v36, %v5480_v59  ;;  %v10487_v59 = vld [vmem:[#allocation5 + $0x670] ss:$24 sps:$4 sm:$0xff]  }
 0x1e2   :  { %v11949_v32 = vpack.c.bf16 %v5553_v5, %v5559_v48  ;;  %v10501_v5 = vld [vmem:[#allocation5 + $0x6d4] ss:$24 sps:$4 sm:$0xff]  }
 0x1e3   :  { %v12794_v48 = vld [vmem:[#allocation20_spill] sm:$0xff] }
 0x1e4   :  { %2901 = vmatpush1.bf16.msra.mxu1 %v10466_v20  ;;  %5071 = vmatpush1.bf16.msra.mxu0 %v10469_v50  ;;  %v10478_v20 = vld [vmem:[#allocation5 + $0x38] ss:$24 sps:$4 sm:$0xff]  }
 0x1e5   :  { %4748 = vmatprep.subr.bf16.mxu1 %v10474_v18  ;;  %5113 = vmatprep.subr.bf16.mxu0 %v10477_v12  ;;  %v10481_v50 = vld [vmem:[#allocation5 + $0x640] ss:$24 sps:$4 sm:$0xff]   ;;  %v10489_v18 = vld [vmem:[#allocation5 + $0x674] ss:$24 sps:$4 sm:$0xff]  }
 0x1e6   :  { %v12793_v12 = vld [vmem:[#allocation38_spill] sm:$0xff] }
 0x1e7   :  { %2903 = vmatmul.mubr.bf16.vlgmr.msra.gmra.mrb[32].mxu1 %v11270_v15  ;;  %8759 = vmatmul.mubr.msk.bf16.vlgmr.msra.gmra.mrb[0].mxu0 %vm11461_vm3, %v11412_v38  ;;  %v10484_v15 = vld [vmem:[#allocation5 + $0x68] ss:$24 sps:$4 sm:$0xff]  }
 0x1e8   :  { %4749 = vmatpush1.bf16.msra.mxu1 %v10472_v53  ;;  %5114 = vmatpush1.bf16.msra.mxu0 %v10475_v56  ;;  %v10492_v53 = vld [vmem:[#allocation5 + $0x9c] ss:$24 sps:$4 sm:$0xff]  }
 0x1e9   :  { %4750 = vmatprep.subr.bf16.mxu1 %v10480_v3  ;;  %5115 = vmatprep.subr.bf16.mxu0 %v10483_v19  ;;  %v10495_v56 = vld [vmem:[#allocation5 + $0x6a4] ss:$24 sps:$4 sm:$0xff]   ;;  %v10493_v3 = vld [vmem:[#allocation5 + $0x6a0] ss:$24 sps:$4 sm:$0xff]  }
 0x1ea   :  { %2912 = vmatprep.mubr.bf16.mxu1 %v11291_v31  ;;  %8762 = vmatprep.mubr.msk.bf16.mxu0 %vm11461_vm3, %v12793_v12  ;;  %v10490_v31 = vld [vmem:[#allocation5 + $0x98] ss:$24 sps:$4 sm:$0xff]   ;;  %v10498_v19 = vld [vmem:[#allocation5 + $0xcc] ss:$24 sps:$4 sm:$0xff]  }
 0x1ec   :  { %4751 = vmatpush1.bf16.msra.mxu1 %v10478_v20  ;;  %5116 = vmatpush1.bf16.msra.mxu0 %v10481_v50  ;;  %v12795_v20 = vld [vmem:[#allocation39_spill] sm:$0xff]  ;;  %v10499_v50 = vld [vmem:[#allocation5 + $0x6d0] ss:$24 sps:$4 sm:$0xff]  }
 0x1ed   :  { %4752 = vmatprep.subr.bf16.mxu1 %v10486_v51  ;;  %5117 = vmatprep.subr.bf16.mxu0 %v10489_v18  ;;  %v10504_v51 = vld [vmem:[#allocation5 + $0xfc] ss:$24 sps:$4 sm:$0xff]  }
 0x1ee   :  { %v10507_v18 = vld [vmem:[#allocation5 + $0x704] ss:$24 sps:$4 sm:$0xff]  }
 0x1ef   :  { %2913 = vmatmul.mubr.bf16.gmra.mrb[36].mxu1 %v11295_v34  ;;  %8765 = vmatmul.mubr.msk.bf16.gmra.mrb[4].mxu0 %vm11461_vm3, %v11668_v10  ;;  %v10496_v34 = vld [vmem:[#allocation5 + $0xc8] ss:$24 sps:$4 sm:$0xff]  }
 0x1f0   :  { %4753 = vmatpush1.bf16.msra.mxu1 %v10484_v15  ;;  %5118 = vmatpush1.bf16.msra.mxu0 %v10487_v59  ;;  %v10502_v15 = vld [vmem:[#allocation5 + $0xf8] ss:$24 sps:$4 sm:$0xff]  }
 0x1f1   :  { %4754 = vmatprep.subr.bf16.mxu1 %v10492_v53  ;;  %5119 = vmatprep.subr.bf16.mxu0 %v10495_v56  ;;  %v10505_v59 = vld [vmem:[#allocation5 + $0x700] ss:$24 sps:$4 sm:$0xff]   ;;  %v10510_v53 = vld [vmem:[#allocation5 + $0x12c] ss:$24 sps:$4 sm:$0xff]  }
 0x1f2   :  { %2922 = vmatprep.mubr.bf16.mxu1 %v12794_v48  ;;  %8768 = vmatprep.mubr.msk.bf16.mxu0 %vm11461_vm3, %v12795_v20  ;;  %v10513_v56 = vld [vmem:[#allocation5 + $0x734] ss:$24 sps:$4 sm:$0xff]  }
 0x1f3   :  { %v10522_v48 = vld [vmem:[#allocation5 + $0x18c] ss:$24 sps:$4 sm:$0xff]  }
 0x1f4   :  { %4755 = vmatpush1.bf16.msra.mxu1 %v10490_v31  ;;  %5120 = vmatpush1.bf16.msra.mxu0 %v10493_v3  ;;  %v10511_v31 = vld [vmem:[#allocation5 + $0x730] ss:$24 sps:$4 sm:$0xff]   ;;  %v10516_v3 = vld [vmem:[#allocation5 + $0x15c] ss:$24 sps:$4 sm:$0xff]  }
 0x1f5   :  { %4756 = vmatprep.subr.bf16.mxu1 %v10498_v19  ;;  %5121 = vmatprep.subr.bf16.mxu0 %v10501_v5  ;;  %v10519_v19 = vld [vmem:[#allocation5 + $0x764] ss:$24 sps:$4 sm:$0xff]   ;;  %v10517_v5 = vld [vmem:[#allocation5 + $0x760] ss:$24 sps:$4 sm:$0xff]  }
 0x1f7   :  { %2923 = vmatmul.mubr.bf16.gmra.mrb[40].mxu1 %v11318_v58  ;;  %8771 = vmatmul.mubr.msk.bf16.gmra.mrb[8].mxu0 %vm11461_vm3, %v11704_v42  ;;  %v10508_v58 = vld [vmem:[#allocation5 + $0x128] ss:$24 sps:$4 sm:$0xff]  }
 0x1f8   :  { %4757 = vmatpush1.bf16.msra.mxu1 %v10496_v34  ;;  %5122 = vmatpush1.bf16.msra.mxu0 %v10499_v50  ;;  %v10525_v34 = vld [vmem:[#allocation5 + $0x794] ss:$24 sps:$4 sm:$0xff]   ;;  %v10523_v50 = vld [vmem:[#allocation5 + $0x790] ss:$24 sps:$4 sm:$0xff]  }
 0x1f9   :  { %4758 = vmatprep.subr.bf16.mxu1 %v10504_v51  ;;  %5123 = vmatprep.subr.bf16.mxu0 %v10507_v18  ;;  %v10528_v51 = vld [vmem:[#allocation5 + $0x1bc] ss:$24 sps:$4 sm:$0xff]  }
 0x1fa   :  { %2932 = vmatprep.mubr.bf16.mxu1 %v11331_v2  ;;  %8774 = vmatprep.mubr.msk.bf16.mxu0 %vm11461_vm3, %v11713_v54  ;;  %v10514_v2 = vld [vmem:[#allocation5 + $0x158] ss:$24 sps:$4 sm:$0xff]   ;;  %v10531_v18 = vld [vmem:[#allocation5 + $0x7c4] ss:$24 sps:$4 sm:$0xff]  }
 0x1fc   :  { %4759 = vmatpush1.bf16.msra.mxu1 %v10502_v15  ;;  %5124 = vmatpush1.bf16.msra.mxu0 %v10505_v59  ;;  %v10526_v15 = vld [vmem:[#allocation5 + $0x1b8] ss:$24 sps:$4 sm:$0xff]  }
 0x1fd   :  { %4760 = vmatprep.subr.bf16.mxu1 %v10510_v53  ;;  %5125 = vmatprep.subr.bf16.mxu0 %v10513_v56  ;;  %v10529_v59 = vld [vmem:[#allocation5 + $0x7c0] ss:$24 sps:$4 sm:$0xff]   ;;  %v10534_v53 = vld [vmem:[#allocation5 + $0x1ec] ss:$24 sps:$4 sm:$0xff]  }
 0x1fe   :  { %v10532_v56 = vld [vmem:[#allocation5 + $0x1e8] ss:$24 sps:$4 sm:$0xff]  }
 0x1ff   :  { %2933 = vmatmul.mubr.bf16.gmra.mrb[44].mxu1 %v11351_v21  ;;  %8777 = vmatmul.mubr.msk.bf16.gmra.mrb[12].mxu0 %vm11461_vm3, %v11738_v14  ;;  %v10520_v21 = vld [vmem:[#allocation5 + $0x188] ss:$24 sps:$4 sm:$0xff]  }
 0x200   :  { %4761 = vmatpush1.bf16.msra.mxu1 %v10508_v58  ;;  %5126 = vmatpush1.bf16.msra.mxu0 %v10511_v31  ;;  %v10535_v58 = vld [vmem:[#allocation5 + $0x7f0] ss:$24 sps:$4 sm:$0xff]   ;;  %v10540_v31 = vld [vmem:[#allocation5 + $0x21c] ss:$24 sps:$4 sm:$0xff]  }
 0x201   :  { %4762 = vmatprep.subr.bf16.mxu1 %v10516_v3  ;;  %5127 = vmatprep.subr.bf16.mxu0 %v10519_v19  ;;  %v10543_v3 = vld [vmem:[#allocation5 + $0x824] ss:$24 sps:$4 sm:$0xff]   ;;  %v10538_v19 = vld [vmem:[#allocation5 + $0x218] ss:$24 sps:$4 sm:$0xff]  }
 0x202   :  { %8660 = vmatprep.mubr.msk.bf16.mxu1 %vm11461_vm3, %v11465_v11  ;;  %8780 = vmatprep.mubr.msk.bf16.mxu0 %vm11461_vm3, %v11746_v28  ;;  %v10537_v11 = vld [vmem:[#allocation5 + $0x7f4] ss:$24 sps:$4 sm:$0xff]  }
 0x204   :  { %4763 = vmatpush1.bf16.msra.mxu1 %v10514_v2  ;;  %5128 = vmatpush1.bf16.msra.mxu0 %v10517_v5  ;;  %v10541_v2 = vld [vmem:[#allocation5 + $0x820] ss:$24 sps:$4 sm:$0xff]   ;;  %v10546_v5 = vld [vmem:[#allocation5 + $0x24c] ss:$24 sps:$4 sm:$0xff]  }
 0x205   :  { %4764 = vmatprep.subr.bf16.mxu1 %v10522_v48  ;;  %5129 = vmatprep.subr.bf16.mxu0 %v10525_v34  ;;  %v10549_v48 = vld [vmem:[#allocation5 + $0x854] ss:$24 sps:$4 sm:$0xff]   ;;  %v10544_v34 = vld [vmem:[#allocation5 + $0x248] ss:$24 sps:$4 sm:$0xff]  }
 0x208   :  { %4765 = vmatpush1.bf16.msra.mxu1 %v10520_v21  ;;  %5130 = vmatpush1.bf16.msra.mxu0 %v10523_v50  ;;  %v10547_v21 = vld [vmem:[#allocation5 + $0x850] ss:$24 sps:$4 sm:$0xff]   ;;  %v10552_v50 = vld [vmem:[#allocation5 + $0x27c] ss:$24 sps:$4 sm:$0xff]  }
 0x209   :  { %4766 = vmatprep.subr.bf16.mxu1 %v10528_v51  ;;  %5131 = vmatprep.subr.bf16.mxu0 %v10531_v18  ;;  %v10555_v51 = vld [vmem:[#allocation5 + $0x884] ss:$24 sps:$4 sm:$0xff]   ;;  %v10550_v18 = vld [vmem:[#allocation5 + $0x278] ss:$24 sps:$4 sm:$0xff]  }
 0x20c   :  { %4767 = vmatpush1.bf16.msra.mxu1 %v10526_v15  ;;  %5132 = vmatpush1.bf16.msra.mxu0 %v10529_v59  ;;  %v10553_v15 = vld [vmem:[#allocation5 + $0x880] ss:$24 sps:$4 sm:$0xff]   ;;  %v10558_v59 = vld [vmem:[#allocation5 + $0x2ac] ss:$24 sps:$4 sm:$0xff]  }
 0x20d   :  { %4768 = vmatprep.subr.bf16.mxu1 %v10534_v53  ;;  %5133 = vmatprep.subr.bf16.mxu0 %v10537_v11  ;;  %v10561_v53 = vld [vmem:[#allocation5 + $0x8b4] ss:$24 sps:$4 sm:$0xff]   ;;  %v10556_v11 = vld [vmem:[#allocation5 + $0x2a8] ss:$24 sps:$4 sm:$0xff]  }
 0x210   :  { %4769 = vmatpush1.bf16.msra.mxu1 %v10532_v56  ;;  %5134 = vmatpush1.bf16.msra.mxu0 %v10535_v58  ;;  %v10559_v56 = vld [vmem:[#allocation5 + $0x8b0] ss:$24 sps:$4 sm:$0xff]   ;;  %v10564_v58 = vld [vmem:[#allocation5 + $0x2dc] ss:$24 sps:$4 sm:$0xff]  }
 0x211   :  { %4770 = vmatprep.subr.bf16.mxu1 %v10540_v31  ;;  %5135 = vmatprep.subr.bf16.mxu0 %v10543_v3  ;;  %v10567_v31 = vld [vmem:[#allocation5 + $0x8e4] ss:$24 sps:$4 sm:$0xff]  }
 0x212   :  { %v12796_v3 = vld [vmem:[#allocation14_spill] sm:$0xff] }
 0x214   :  { %4771 = vmatpush1.bf16.msra.mxu1 %v10538_v19  ;;  %5136 = vmatpush1.bf16.msra.mxu0 %v10541_v2  ;;  %v12797_v19 = vunpack.c.l.bf16 %v12796_v3  ;;  %v10568_v3 = vld [vmem:[#allocation5 + $0x308] ss:$24 sps:$4 sm:$0xff]  }
 0x215   :  { %4772 = vmatprep.subr.bf16.mxu1 %v10546_v5  ;;  %5137 = vmatprep.subr.bf16.mxu0 %v10549_v48  ;;  %v12798_v5 = vld [vmem:[#allocation15_spill] sm:$0xff] }
 0x216   :  { %v11987_v2 = vrot.slane %v12797_v19, 1  ;;  %v12799_v48 = vunpack.c.l.bf16 %v12798_v5  ;;  %v10571_v19 = vld [vmem:[#allocation5 + $0x1200] ss:$24 sps:$4 sm:$0xff]   ;;  %v10576_v5 = vld [vmem:[#allocation5 + $0x33c] ss:$24 sps:$4 sm:$0xff]  }
 0x218   :  { %4773 = vmatpush1.bf16.msra.mxu1 %v10544_v34  ;;  %5138 = vmatpush1.bf16.msra.mxu0 %v10547_v21  ;;  %v5482_v34 = vrot.slane %v12799_v48, 1  ;;  %v10562_v21 = vld [vmem:[#allocation5 + $0x2d8] ss:$24 sps:$4 sm:$0xff]   ;;  %v10579_v48 = vld [vmem:[#allocation5 + $0x1234] ss:$24 sps:$4 sm:$0xff]  }
 0x219   :  { %4774 = vmatprep.subr.bf16.mxu1 %v10552_v50  ;;  %5139 = vmatprep.subr.bf16.mxu0 %v10555_v51  ;;  %v10565_v50 = vld [vmem:[#allocation5 + $0x8e0] ss:$24 sps:$4 sm:$0xff]  }
 0x21a   :  { %v12800_v51 = vld [vmem:[#allocation34_spill] sm:$0xff] }
 0x21c   :  { %4775 = vmatpush1.bf16.msra.mxu1 %v10550_v18  ;;  %5140 = vmatpush1.bf16.msra.mxu0 %v10553_v15  ;;  %v12801_v18 = vunpack.c.l.bf16 %v12800_v51 }
 0x21d   :  { %4776 = vmatprep.subr.bf16.mxu1 %v10558_v59  ;;  %5141 = vmatprep.subr.bf16.mxu0 %v10561_v53  ;;  %v10570_v59 = vld [vmem:[#allocation5 + $0x30c] ss:$24 sps:$4 sm:$0xff]  }
 0x21e   :  { %v11993_v15 = vrot.slane %v12801_v18, 1  ;;  %v10573_v53 = vld [vmem:[#allocation5 + $0x1204] ss:$24 sps:$4 sm:$0xff]  }
 0x21f   :  { %v10585_v18 = vld [vmem:[#allocation5 + $0x1264] ss:$24 sps:$4 sm:$0xff]  }
 0x220   :  { %4777 = vmatpush1.bf16.msra.mxu1 %v10556_v11  ;;  %5142 = vmatpush1.bf16.msra.mxu0 %v10559_v56  ;;  %v5555_v11 = vsel %vm5522_vm4, %v5482_v34, %v11993_v15  ;;  %v5561_v56 = vsel %vm5522_vm4, %v11987_v2, %v5482_v34  ;;  %v10583_v34 = vld [vmem:[#allocation5 + $0x1260] ss:$24 sps:$4 sm:$0xff]  }
 0x221   :  { %4778 = vmatprep.subr.bf16.mxu1 %v10564_v58  ;;  %5143 = vmatprep.subr.bf16.mxu0 %v10567_v31  ;;  %v12001_v58 = vpack.c.bf16 %v5555_v11, %v5561_v56  ;;  %v10574_v31 = vld [vmem:[#allocation5 + $0x338] ss:$24 sps:$4 sm:$0xff]   ;;  %v10600_v56 = vld [vmem:[#allocation5 + $0x3fc] ss:$24 sps:$4 sm:$0xff]  }
 0x222   :  { %v10595_v11 = vld [vmem:[#allocation5 + $0x12c0] ss:$24 sps:$4 sm:$0xff]  }
 0x224   :  { %4779 = vmatpush1.bf16.msra.mxu1 %v10562_v21  ;;  %5144 = vmatpush1.bf16.msra.mxu0 %v10565_v50  ;;  %v10577_v21 = vld [vmem:[#allocation5 + $0x1230] ss:$24 sps:$4 sm:$0xff]   ;;  %v10582_v50 = vld [vmem:[#allocation5 + $0x36c] ss:$24 sps:$4 sm:$0xff]  }
 0x225   :  { %4821 = vmatprep.subr.bf16.mxu1 %v10570_v59  ;;  %7095 = vmatprep.subr.bf16.mxu0 %v10573_v53  ;;  %v10588_v59 = vld [vmem:[#allocation5 + $0x39c] ss:$24 sps:$4 sm:$0xff]  }
 0x226   :  { %v10591_v53 = vld [vmem:[#allocation5 + $0x1294] ss:$24 sps:$4 sm:$0xff]  }
 0x227   :  { %8663 = vmatmul.mubr.msk.bf16.vlgmr.msra.gmra.mrb[16].mxu1 %vm11461_vm3, %v11354_v22  ;;  %8783 = vmatmul.mubr.msk.bf16.vlgmr.msra.gmra.mrb[0].mxu0 %vm11461_vm3, %v11509_v35  ;;  %v10580_v22 = vld [vmem:[#allocation5 + $0x368] ss:$24 sps:$4 sm:$0xff]  }
 0x228   :  { %4822 = vmatpush1.bf16.msra.mxu1 %v10568_v3  ;;  %7096 = vmatpush1.bf16.msra.mxu0 %v10571_v19  ;;  %v10589_v3 = vld [vmem:[#allocation5 + $0x1290] ss:$24 sps:$4 sm:$0xff]   ;;  %v10594_v19 = vld [vmem:[#allocation5 + $0x3cc] ss:$24 sps:$4 sm:$0xff]  }
 0x229   :  { %4823 = vmatprep.subr.bf16.mxu1 %v10576_v5  ;;  %7097 = vmatprep.subr.bf16.mxu0 %v10579_v48  ;;  %v10597_v5 = vld [vmem:[#allocation5 + $0x12c4] ss:$24 sps:$4 sm:$0xff]   ;;  %v10592_v48 = vld [vmem:[#allocation5 + $0x3c8] ss:$24 sps:$4 sm:$0xff]  }
 0x22a   :  { %8666 = vmatprep.mubr.msk.bf16.mxu1 %vm11461_vm3, %v11505_v17  ;;  %8786 = vmatprep.mubr.msk.bf16.mxu0 %vm11461_vm3, %v11783_v8  ;;  %v10586_v17 = vld [vmem:[#allocation5 + $0x398] ss:$24 sps:$4 sm:$0xff]  }
 0x22c   :  { %4824 = vmatpush1.bf16.msra.mxu1 %v10574_v31  ;;  %7098 = vmatpush1.bf16.msra.mxu0 %v10577_v21  ;;  %v10603_v31 = vld [vmem:[#allocation5 + $0x12f4] ss:$24 sps:$4 sm:$0xff]  }
 0x22d   :  { %4825 = vmatprep.subr.bf16.mxu1 %v10582_v50  ;;  %7099 = vmatprep.subr.bf16.mxu0 %v10585_v18  ;;  %v12803_v50 = vunpack.c.h.bf16 %v12789_v16  ;;  %v10604_v16 = vld [vmem:[#allocation5 + $0x428] ss:$24 sps:$4 sm:$0xff]  }
 0x22f   :  { %8669 = vmatmul.mubr.msk.bf16.gmra.mrb[20].mxu1 %vm11461_vm3, %v11385_v9  ;;  %8789 = vmatmul.mubr.msk.bf16.gmra.mrb[4].mxu0 %vm11461_vm3, %v11807_v26  ;;  %v114_v9 = vadd.s32 8, %v11266_v13  ;;  %v5481_v18 = vrot.slane %v12803_v50, 1  ;;  %v10619_v50 = vld [vmem:[#allocation5 + $0x1380] ss:$24 sps:$4 sm:$0xff]   ;;  %v10900_v13 = vld [vmem:[#allocation5 + $0x165c] ss:$24 sps:$4 sm:$0xff]  }
 0x230   :  { %4826 = vmatpush1.bf16.msra.mxu1 %v10580_v22  ;;  %7100 = vmatpush1.bf16.msra.mxu0 %v10583_v34  ;;  %v12804_v22 = vunpack.c.h.bf16 %v12791_v52 }
 0x231   :  { %4827 = vmatprep.subr.bf16.mxu1 %v10588_v59  ;;  %7101 = vmatprep.subr.bf16.mxu0 %v10591_v53  ;;  %v5572_v59 = vadd.s32 1, %v114_v9  ;;  %v10598_v53 = vld [vmem:[#allocation5 + $0x3f8] ss:$24 sps:$4 sm:$0xff]  }
 0x232   :  { %8672 = vmatprep.mubr.msk.bf16.mxu1 %vm11461_vm3, %v11536_v41  ;;  %8792 = vmatprep.mubr.msk.bf16.mxu0 %vm11461_vm3, %v11817_v47  ;;  %v12802_v41 = vunpack.c.h.bf16 %v12787_v0  ;;  %v12042_v34 = vrot.slane %v12804_v22, 1  ;;  %v10627_v22 = vld [vmem:[#allocation5 + $0x13b4] ss:$24 sps:$4 sm:$0xff]  }
 0x233   :  { %vm5576_vm5 = vcmp.lt.s32.totalorder %v5572_v59, 16  ;;  %v10622_v59 = vld [vmem:[#allocation5 + $0x4b8] ss:$24 sps:$4 sm:$0xff]  }
 0x234   :  { %4828 = vmatpush1.bf16.msra.mxu1 %v10586_v17  ;;  %7102 = vmatpush1.bf16.msra.mxu0 %v10589_v3  ;;  %v12036_v21 = vrot.slane %v12802_v41, 1  ;;  %v10606_v17 = vld [vmem:[#allocation5 + $0x42c] ss:$24 sps:$4 sm:$0xff]   ;;  %v5554_v52 = vsel %vm5522_vm4, %v5481_v18, %v12042_v34  ;;  %vm12059_vm6 = vmpackc.low %vm5576_vm5, %vm11191_vm2 }
 0x235   :  { %4829 = vmatprep.subr.bf16.mxu1 %v10594_v19  ;;  %7103 = vmatprep.subr.bf16.mxu0 %v10597_v5  ;;  %v10609_v3 = vld [vmem:[#allocation5 + $0x1324] ss:$24 sps:$4 sm:$0xff]   ;;  %v10607_v19 = vld [vmem:[#allocation5 + $0x1320] ss:$24 sps:$4 sm:$0xff]   ;;  %v10615_v5 = vld [vmem:[#allocation5 + $0x1354] ss:$24 sps:$4 sm:$0xff]  }
 0x236   :  { %v5560_v0 = vsel %vm5522_vm4, %v12036_v21, %v5481_v18  ;;  %v10621_v41 = vld [vmem:[#allocation5 + $0x1384] ss:$24 sps:$4 sm:$0xff]  }
 0x237   :  { %8675 = vmatmul.mubr.msk.bf16.gmra.mrb[24].mxu1 %vm11461_vm3, %v11565_v39  ;;  %8795 = vmatmul.mubr.msk.bf16.gmra.mrb[8].mxu0 %vm11461_vm3, %v11834_v49  ;;  %v10601_v39 = vld [vmem:[#allocation5 + $0x12f0] ss:$24 sps:$4 sm:$0xff]   ;;  %v12056_v9 = vpack.c.bf16 %v5554_v52, %v5560_v0  ;;  %v10624_v18 = vld [vmem:[#allocation5 + $0x4bc] ss:$24 sps:$4 sm:$0xff]  }
 0x238   :  { %4830 = vmatpush1.bf16.msra.mxu1 %v10592_v48  ;;  %7104 = vmatpush1.bf16.msra.mxu0 %v10595_v11  ;;  %v10610_v11 = vld [vmem:[#allocation5 + $0x458] ss:$24 sps:$4 sm:$0xff]   ;;  %v10636_v52 = vld [vmem:[#allocation5 + $0x51c] ss:$24 sps:$4 sm:$0xff]  }
 0x239   :  { %4831 = vmatprep.subr.bf16.mxu1 %v10600_v56  ;;  %7105 = vmatprep.subr.bf16.mxu0 %v10603_v31  ;;  %v10613_v56 = vld [vmem:[#allocation5 + $0x1350] ss:$24 sps:$4 sm:$0xff]   ;;  %v10618_v31 = vld [vmem:[#allocation5 + $0x48c] ss:$24 sps:$4 sm:$0xff]  }
 0x23a   :  { %8678 = vmatprep.mubr.msk.bf16.mxu1 %vm11461_vm3, %v11574_v23  ;;  %8798 = vmatprep.mubr.msk.bf16.mxu0 %vm11461_vm3, %v11843_v44  ;;  %v10612_v23 = vld [vmem:[#allocation5 + $0x45c] ss:$24 sps:$4 sm:$0xff]  }
 0x23b   :  { %v10639_v0 = vld [vmem:[#allocation5 + $0x1414] ss:$24 sps:$4 sm:$0xff]  }
 0x23c   :  { %4832 = vmatpush1.bf16.msra.mxu1 %v10598_v53  ;;  %7106 = vmatpush1.bf16.msra.mxu0 %v10601_v39  ;;  %v10625_v53 = vld [vmem:[#allocation5 + $0x13b0] ss:$24 sps:$4 sm:$0xff]   ;;  %v10630_v39 = vld [vmem:[#allocation5 + $0x4ec] ss:$24 sps:$4 sm:$0xff]  }
 0x23d   :  { %4833 = vmatprep.subr.bf16.mxu1 %v10606_v17  ;;  %7107 = vmatprep.subr.bf16.mxu0 %v10609_v3  ;;  %v10628_v17 = vld [vmem:[#allocation5 + $0x4e8] ss:$24 sps:$4 sm:$0xff]  }
 0x23e   :  { %v10631_v3 = vld [vmem:[#allocation5 + $0x13e0] ss:$24 sps:$4 sm:$0xff]  }
 0x23f   :  { %8681 = vmatmul.mubr.msk.bf16.gmra.mrb[28].mxu1 %vm11461_vm3, %v11599_v29  ;;  %8801 = vmatmul.mubr.msk.bf16.gmra.mrb[12].mxu0 %vm11461_vm3, %v11858_v60  ;;  %v10616_v29 = vld [vmem:[#allocation5 + $0x488] ss:$24 sps:$4 sm:$0xff]  }
 0x240   :  { %4834 = vmatpush1.bf16.msra.mxu1 %v10604_v16  ;;  %7108 = vmatpush1.bf16.msra.mxu0 %v10607_v19  ;;  %v10634_v16 = vld [vmem:[#allocation5 + $0x518] ss:$24 sps:$4 sm:$0xff]  }
 0x241   :  { %4835 = vmatprep.subr.bf16.mxu1 %v10612_v23  ;;  %7109 = vmatprep.subr.bf16.mxu0 %v10615_v5  ;;  %v10637_v19 = vld [vmem:[#allocation5 + $0x1410] ss:$24 sps:$4 sm:$0xff]   ;;  %v10642_v23 = vld [vmem:[#allocation5 + $0x54c] ss:$24 sps:$4 sm:$0xff]  }
 0x242   :  { %8684 = vmatprep.mubr.msk.bf16.mxu1 %vm11461_vm3, %v12779_v24  ;;  %9092 = vmatprep.mubr.msk.bf16.mxu0 %vm12059_vm6, %v12056_v9  ;;  %v10633_v24 = vld [vmem:[#allocation5 + $0x13e4] ss:$24 sps:$4 sm:$0xff]  }
 0x243   :  { %v10645_v5 = vld [vmem:[#allocation5 + $0x1444] ss:$24 sps:$4 sm:$0xff]  }
 0x244   :  { %4836 = vmatpush1.bf16.msra.mxu1 %v10610_v11  ;;  %7110 = vmatpush1.bf16.msra.mxu0 %v10613_v56  ;;  %v10640_v11 = vld [vmem:[#allocation5 + $0x548] ss:$24 sps:$4 sm:$0xff]  }
 0x245   :  { %4837 = vmatprep.subr.bf16.mxu1 %v10618_v31  ;;  %7111 = vmatprep.subr.bf16.mxu0 %v10621_v41  ;;  %v10643_v56 = vld [vmem:[#allocation5 + $0x1440] ss:$24 sps:$4 sm:$0xff]   ;;  %v10648_v31 = vld [vmem:[#allocation5 + $0x57c] ss:$24 sps:$4 sm:$0xff]  }
 0x246   :  { %v10651_v41 = vld [vmem:[#allocation5 + $0x1474] ss:$24 sps:$4 sm:$0xff]  }
 0x248   :  { %4838 = vmatpush1.bf16.msra.mxu1 %v10616_v29  ;;  %7112 = vmatpush1.bf16.msra.mxu0 %v10619_v50  ;;  %v10646_v29 = vld [vmem:[#allocation5 + $0x578] ss:$24 sps:$4 sm:$0xff]  }
 0x249   :  { %4839 = vmatprep.subr.bf16.mxu1 %v10624_v18  ;;  %7113 = vmatprep.subr.bf16.mxu0 %v10627_v22  ;;  %v10649_v50 = vld [vmem:[#allocation5 + $0x1470] ss:$24 sps:$4 sm:$0xff]   ;;  %v10654_v18 = vld [vmem:[#allocation5 + $0x5ac] ss:$24 sps:$4 sm:$0xff]  }
 0x24a   :  { %v10657_v22 = vld [vmem:[#allocation5 + $0x14a4] ss:$24 sps:$4 sm:$0xff]  }
 0x24c   :  { %4840 = vmatpush1.bf16.msra.mxu1 %v10622_v59  ;;  %7114 = vmatpush1.bf16.msra.mxu0 %v10625_v53  ;;  %v10652_v59 = vld [vmem:[#allocation5 + $0x5a8] ss:$24 sps:$4 sm:$0xff]  }
 0x24d   :  { %4841 = vmatprep.subr.bf16.mxu1 %v10630_v39  ;;  %7115 = vmatprep.subr.bf16.mxu0 %v10633_v24  ;;  %v10655_v53 = vld [vmem:[#allocation5 + $0x14a0] ss:$24 sps:$4 sm:$0xff]   ;;  %v10660_v39 = vld [vmem:[#allocation5 + $0x5dc] ss:$24 sps:$4 sm:$0xff]  }
 0x24e   :  { %v10663_v24 = vld [vmem:[#allocation5 + $0x14d4] ss:$24 sps:$4 sm:$0xff]  }
 0x250   :  { %4842 = vmatpush1.bf16.msra.mxu1 %v10628_v17  ;;  %7116 = vmatpush1.bf16.msra.mxu0 %v10631_v3  ;;  %v12807_v17 = vld [vmem:[#allocation24_spill] sm:$0xff] }
 0x251   :  { %4843 = vmatprep.subr.bf16.mxu1 %v10636_v52  ;;  %7117 = vmatprep.subr.bf16.mxu0 %v10639_v0  ;;  %v12808_v3 = vunpack.c.l.bf16 %v12807_v17  ;;  %v12809_v0 = vld [vmem:[#allocation17_spill] sm:$0xff]  ;;  %v10666_v17 = vld [vmem:[#allocation5 + $0x60c] ss:$24 sps:$4 sm:$0xff]  }
 0x253   :  { %v12077_v52 = vrot.slane %v12808_v3, 1  ;;  %v10669_v3 = vld [vmem:[#allocation5 + $0x1504] ss:$24 sps:$4 sm:$0xff]  }
 0x254   :  { %4844 = vmatpush1.bf16.msra.mxu1 %v10634_v16  ;;  %7118 = vmatpush1.bf16.msra.mxu0 %v10637_v19  ;;  %v12810_v16 = vunpack.c.h.bf16 %v12809_v0 }
 0x255   :  { %4845 = vmatprep.subr.bf16.mxu1 %v10642_v23  ;;  %7119 = vmatprep.subr.bf16.mxu0 %v10645_v5  ;;  %v12811_v23 = vld [vmem:[#allocation18_spill] sm:$0xff] }
 0x256   :  { %v5493_v19 = vrot.slane %v12810_v16, 1  ;;  %v12812_v5 = vunpack.c.h.bf16 %v12811_v23 }
 0x258   :  { %4846 = vmatpush1.bf16.msra.mxu1 %v10640_v11  ;;  %7120 = vmatpush1.bf16.msra.mxu0 %v10643_v56  ;;  %v5499_v11 = vrot.slane %v12812_v5, 1  ;;  %v12813_v56 = vld [vmem:[#allocation25_spill] sm:$0xff]  ;;  %v5548_v23 = vsel %vm5522_vm4, %v12042_v34, %v5493_v19  ;;  %v10664_v5 = vld [vmem:[#allocation5 + $0x608] ss:$24 sps:$4 sm:$0xff]  }
 0x259   :  { %4847 = vmatprep.subr.bf16.mxu1 %v10648_v31  ;;  %7121 = vmatprep.subr.bf16.mxu0 %v10651_v41  ;;  %v12814_v31 = vunpack.c.l.bf16 %v12813_v56  ;;  %v10667_v56 = vld [vmem:[#allocation5 + $0x1500] ss:$24 sps:$4 sm:$0xff]   ;;  %v10672_v34 = vld [vmem:[#allocation5 + $0x63c] ss:$24 sps:$4 sm:$0xff]  }
 0x25a   :  { %v5542_v16 = vsel %vm5522_vm4, %v5493_v19, %v5499_v11  ;;  %v10675_v19 = vld [vmem:[#allocation5 + $0x1534] ss:$24 sps:$4 sm:$0xff]  }
 0x25b   :  { %v5484_v41 = vrot.slane %v12814_v31, 1  ;;  %v12817_v31 = vld [vmem:[#allocation27_spill] sm:$0xff] }
 0x25c   :  { %4848 = vmatpush1.bf16.msra.mxu1 %v10646_v29  ;;  %7122 = vmatpush1.bf16.msra.mxu0 %v10649_v50  ;;  %v12815_v29 = vunpack.c.l.bf16 %v11756_v6 }
 0x25d   :  { %4849 = vmatprep.subr.bf16.mxu1 %v10654_v18  ;;  %7123 = vmatprep.subr.bf16.mxu0 %v10657_v22  ;;  %v10658_v18 = vld [vmem:[#allocation5 + $0x5d8] ss:$24 sps:$4 sm:$0xff]   ;;  %v5563_v30 = vsel %vm5522_vm4, %v12077_v52, %v5484_v41 }
 0x25e   :  { %v12087_v50 = vrot.slane %v12815_v29, 1  ;;  %v10661_v22 = vld [vmem:[#allocation5 + $0x14d0] ss:$24 sps:$4 sm:$0xff]   ;;  %v12818_v29 = vunpack.c.l.bf16 %v12817_v31 }
 0x260   :  { %4850 = vmatpush1.bf16.msra.mxu1 %v10652_v59  ;;  %7124 = vmatpush1.bf16.msra.mxu0 %v10655_v53  ;;  %v12816_v59 = vunpack.c.l.bf16 %v12809_v0  ;;  %v12819_v0 = vld [vmem:[#allocation19_spill] sm:$0xff] }
 0x261   :  { %4851 = vmatprep.subr.bf16.mxu1 %v10660_v39  ;;  %7125 = vmatprep.subr.bf16.mxu0 %v10663_v24  ;;  %v5498_v39 = vrot.slane %v12818_v29, 1  ;;  %v5557_v24 = vsel %vm5522_vm4, %v5484_v41, %v12087_v50  ;;  %v12821_v41 = vld [vmem:[#allocation21_spill] sm:$0xff] }
 0x262   :  { %v5492_v53 = vrot.slane %v12816_v59, 1  ;;  %v12820_v59 = vunpack.c.h.bf16 %v12819_v0  ;;  %v10673_v29 = vld [vmem:[#allocation5 + $0x1530] ss:$24 sps:$4 sm:$0xff]  }
 0x264   :  { %4852 = vmatpush1.bf16.msra.mxu1 %v10658_v18  ;;  %7126 = vmatpush1.bf16.msra.mxu0 %v10661_v22  ;;  %v12104_v18 = vpack.c.bf16 %v5557_v24, %v5563_v30  ;;  %v12106_v22 = vpack.c.bf16 %v5542_v16, %v5548_v23  ;;  %v5505_v31 = vrot.slane %v12820_v59, 1  ;;  %v10670_v30 = vld [vmem:[#allocation5 + $0x638] ss:$24 sps:$4 sm:$0xff]   ;;  %v5541_v16 = vsel %vm5522_vm4, %v5492_v53, %v5498_v39  ;;  %v10678_v23 = vld [vmem:[#allocation5 + $0x66c] ss:$24 sps:$4 sm:$0xff]  }
 0x265   :  { %4894 = vmatprep.subr.bf16.mxu1 %v10666_v17  ;;  %7168 = vmatprep.subr.bf16.mxu0 %v10669_v3  ;;  %v12822_v17 = vunpack.c.h.bf16 %v12821_v41  ;;  %v10681_v24 = vld [vmem:[#allocation5 + $0x1564] ss:$24 sps:$4 sm:$0xff]  }
 0x267   :  { %8687 = vmatmul.mubr.msk.bf16.vlgmr.msra.gmra.mrb[16].mxu1 %vm11461_vm3, %v11412_v38  ;;  %9095 = vmatmul.mubr.msk.bf16.vlgmr.msra.gmra.mrb[16].mxu0 %vm12059_vm6, %v11949_v32  ;;  %v5511_v3 = vrot.slane %v12822_v17, 1  ;;  %v5547_v38 = vsel %vm5522_vm4, %v11940_v43, %v5492_v53  ;;  %v5536_v43 = vsel %vm5522_vm4, %v5499_v11, %v5505_v31  ;;  %v10676_v53 = vld [vmem:[#allocation5 + $0x668] ss:$24 sps:$4 sm:$0xff]   ;;  %v12827_v11 = vld [vmem:[#allocation22_spill] sm:$0xff] }
 0x268   :  { %4895 = vmatpush1.bf16.msra.mxu1 %v10664_v5  ;;  %7169 = vmatpush1.bf16.msra.mxu0 %v10667_v56  ;;  %v12129_v5 = vpack.c.bf16 %v5541_v16, %v5547_v38  ;;  %v10684_v16 = vld [vmem:[#allocation5 + $0x69c] ss:$24 sps:$4 sm:$0xff]  }
 0x269   :  { %4896 = vmatprep.subr.bf16.mxu1 %v10672_v34  ;;  %7170 = vmatprep.subr.bf16.mxu0 %v10675_v19  ;;  %v5530_v56 = vsel %vm5522_vm4, %v5505_v31, %v5511_v3  ;;  %v10679_v34 = vld [vmem:[#allocation5 + $0x1560] ss:$24 sps:$4 sm:$0xff]   ;;  %v12823_v19 = vld [vmem:[#allocation28_spill] sm:$0xff]  ;;  %v12828_v31 = vunpack.c.h.bf16 %v12827_v11 }
 0x26a   :  { %8690 = vmatprep.mubr.msk.bf16.mxu1 %vm11461_vm3, %v12793_v12  ;;  %9098 = vmatprep.mubr.msk.bf16.mxu0 %vm12059_vm6, %v12106_v22  ;;  %v12824_v0 = vunpack.c.l.bf16 %v12823_v19  ;;  %v12825_v12 = vld [vmem:[#allocation29_spill] sm:$0xff]  ;;  %v12139_v45 = vpack.c.bf16 %v5530_v56, %v5536_v43  ;;  %v10693_v43 = vld [vmem:[#allocation5 + $0x15c4] ss:$24 sps:$4 sm:$0xff]   ;;  %v10688_v19 = vld [vmem:[#allocation5 + $0x6c8] ss:$24 sps:$4 sm:$0xff]  }
 0x26b   :  { %v12826_v41 = vunpack.c.l.bf16 %v12825_v12  ;;  %v10687_v38 = vld [vmem:[#allocation5 + $0x1594] ss:$24 sps:$4 sm:$0xff]  }
 0x26c   :  { %4897 = vmatpush1.bf16.msra.mxu1 %v10670_v30  ;;  %7171 = vmatpush1.bf16.msra.mxu0 %v10673_v29  ;;  %v5504_v59 = vrot.slane %v12824_v0, 1  ;;  %v5517_v30 = vrot.slane %v12828_v31, 1  ;;  %v10682_v29 = vld [vmem:[#allocation5 + $0x698] ss:$24 sps:$4 sm:$0xff]   ;;  %v10696_v12 = vld [vmem:[#allocation5 + $0x6fc] ss:$24 sps:$4 sm:$0xff]  }
 0x26d   :  { %v5510_v17 = vrot.slane %v12826_v41, 1  ;;  %4898 = vmatprep.subr.bf16.mxu1 %v10678_v23  ;;  %7172 = vmatprep.subr.bf16.mxu0 %v10681_v24  ;;  %v10685_v23 = vld [vmem:[#allocation5 + $0x1590] ss:$24 sps:$4 sm:$0xff]   ;;  %v10691_v0 = vld [vmem:[#allocation5 + $0x15c0] ss:$24 sps:$4 sm:$0xff]  }
 0x26e   :  { %v5535_v56 = vsel %vm5522_vm4, %v5498_v39, %v5504_v59  ;;  %v5566_v39 = vsel %vm5522_vm4, %v5517_v30, %v12036_v21  ;;  %v10699_v41 = vld [vmem:[#allocation5 + $0x15f4] ss:$24 sps:$4 sm:$0xff]   ;;  %v12830_v21 = vld [vmem:[#allocation30_spill] sm:$0xff] }
 0x26f   :  { %8693 = vmatmul.mubr.msk.bf16.gmra.mrb[20].mxu1 %vm11461_vm3, %v11668_v10  ;;  %9101 = vmatmul.mubr.msk.bf16.gmra.mrb[20].mxu0 %vm12059_vm6, %v12129_v5  ;;  %v5529_v24 = vsel %vm5522_vm4, %v5504_v59, %v5510_v17  ;;  %v10690_v10 = vld [vmem:[#allocation5 + $0x6cc] ss:$24 sps:$4 sm:$0xff]   ;;  %v12829_v59 = vunpack.c.l.bf16 %v12827_v11 }
 0x270   :  { %4899 = vmatpush1.bf16.msra.mxu1 %v10676_v53  ;;  %7173 = vmatpush1.bf16.msra.mxu0 %v10679_v34  ;;  %v12159_v53 = vpack.c.bf16 %v5529_v24, %v5535_v56  ;;  %v5524_v34 = vsel %vm5522_vm4, %v5511_v3, %v5517_v30  ;;  %v12831_v3 = vunpack.c.h.bf16 %v12830_v21  ;;  %v12832_v11 = vld [vmem:[#allocation31_spill] sm:$0xff]  ;;  %v10694_v24 = vld [vmem:[#allocation5 + $0x6f8] ss:$24 sps:$4 sm:$0xff]  }
 0x271   :  { %4900 = vmatprep.subr.bf16.mxu1 %v10684_v16  ;;  %7174 = vmatprep.subr.bf16.mxu0 %v10687_v38  ;;  %v12168_v16 = vpack.c.bf16 %v5566_v39, %v5524_v34  ;;  %v12833_v31 = vunpack.c.h.bf16 %v12832_v11  ;;  %v10697_v56 = vld [vmem:[#allocation5 + $0x15f0] ss:$24 sps:$4 sm:$0xff]   ;;  %v10705_v34 = vld [vmem:[#allocation5 + $0x1624] ss:$24 sps:$4 sm:$0xff]  }
 0x272   :  { %8696 = vmatprep.mubr.msk.bf16.mxu1 %vm11461_vm3, %v12795_v20  ;;  %9104 = vmatprep.mubr.msk.bf16.mxu0 %vm12059_vm6, %v12139_v45  ;;  %v5516_v20 = vrot.slane %v12829_v59, 1  ;;  %v12178_v38 = vrot.slane %v12831_v3, 1  ;;  %v10700_v39 = vld [vmem:[#allocation5 + $0x728] ss:$24 sps:$4 sm:$0xff]   ;;  %v10717_v21 = vld [vmem:[#allocation5 + $0x1684] ss:$24 sps:$4 sm:$0xff]  }
 0x273   :  { %v5483_v30 = vrot.slane %v12833_v31, 1  ;;  %v10715_v3 = vld [vmem:[#allocation5 + $0x1680] ss:$24 sps:$4 sm:$0xff]   ;;  %v10720_v11 = vld [vmem:[#allocation5 + $0x7bc] ss:$24 sps:$4 sm:$0xff]  }
 0x274   :  { %4901 = vmatpush1.bf16.msra.mxu1 %v10682_v29  ;;  %7175 = vmatpush1.bf16.msra.mxu0 %v10685_v23  ;;  %v12834_v29 = vunpack.c.h.bf16 %v12800_v51  ;;  %v10723_v31 = vld [vmem:[#allocation5 + $0x16b4] ss:$24 sps:$4 sm:$0xff]  }
 0x275   :  { %4902 = vmatprep.subr.bf16.mxu1 %v10690_v10  ;;  %7176 = vmatprep.subr.bf16.mxu0 %v10693_v43  ;;  %v5565_v10 = vsel %vm5522_vm4, %v5516_v20, %v11934_v36  ;;  %v10702_v43 = vld [vmem:[#allocation5 + $0x72c] ss:$24 sps:$4 sm:$0xff]   ;;  %v5562_v36 = vsel %vm5522_vm4, %v12178_v38, %v5483_v30 }
 0x276   :  { %v12184_v23 = vrot.slane %v12834_v29, 1  ;;  %v10721_v29 = vld [vmem:[#allocation5 + $0x16b0] ss:$24 sps:$4 sm:$0xff]  }
 0x277   :  { %8699 = vmatmul.mubr.msk.bf16.gmra.mrb[24].mxu1 %vm11461_vm3, %v11704_v42  ;;  %9107 = vmatmul.mubr.msk.bf16.gmra.mrb[24].mxu0 %vm12059_vm6, %v12159_v53  ;;  %v5523_v42 = vsel %vm5522_vm4, %v5510_v17, %v5516_v20  ;;  %v10706_v20 = vld [vmem:[#allocation5 + $0x758] ss:$24 sps:$4 sm:$0xff]  }
 0x278   :  { %4903 = vmatpush1.bf16.msra.mxu1 %v10688_v19  ;;  %7177 = vmatpush1.bf16.msra.mxu0 %v10691_v0  ;;  %v12197_v51 = vpack.c.bf16 %v5565_v10, %v5523_v42  ;;  %v5556_v17 = vsel %vm5522_vm4, %v5483_v30, %v12184_v23  ;;  %v10703_v19 = vld [vmem:[#allocation5 + $0x1620] ss:$24 sps:$4 sm:$0xff]   ;;  %v10711_v0 = vld [vmem:[#allocation5 + $0x1654] ss:$24 sps:$4 sm:$0xff]  }
 0x279   :  { %4904 = vmatprep.subr.bf16.mxu1 %v10696_v12  ;;  %7178 = vmatprep.subr.bf16.mxu0 %v10699_v41  ;;  %v12205_v59 = vpack.c.bf16 %v5556_v17, %v5562_v36  ;;  %v10709_v12 = vld [vmem:[#allocation5 + $0x1650] ss:$24 sps:$4 sm:$0xff]   ;;  %v10714_v41 = vld [vmem:[#allocation5 + $0x78c] ss:$24 sps:$4 sm:$0xff]   ;;  %v10727_v42 = vld [vmem:[#allocation5 + $0x16e0] ss:$24 sps:$4 sm:$0xff]  }
 0x27a   :  { %8702 = vmatprep.mubr.msk.bf16.mxu1 %vm11461_vm3, %v11713_v54  ;;  %9110 = vmatprep.mubr.msk.bf16.mxu0 %vm12059_vm6, %v12168_v16  ;;  %v10708_v54 = vld [vmem:[#allocation5 + $0x75c] ss:$24 sps:$4 sm:$0xff]   ;;  %v10718_v30 = vld [vmem:[#allocation5 + $0x7b8] ss:$24 sps:$4 sm:$0xff]   ;;  %v10738_v36 = vld [vmem:[#allocation5 + $0x84c] ss:$24 sps:$4 sm:$0xff]  }
 0x27b   :  { %v10732_v10 = vld [vmem:[#allocation5 + $0x81c] ss:$24 sps:$4 sm:$0xff]   ;;  %v10733_v17 = vld [vmem:[#allocation5 + $0x1710] ss:$24 sps:$4 sm:$0xff]  }
 0x27c   :  { %4905 = vmatpush1.bf16.msra.mxu1 %v10694_v24  ;;  %7179 = vmatpush1.bf16.msra.mxu0 %v10697_v56  ;;  %v10726_v24 = vld [vmem:[#allocation5 + $0x7ec] ss:$24 sps:$4 sm:$0xff]   ;;  %v10724_v56 = vld [vmem:[#allocation5 + $0x7e8] ss:$24 sps:$4 sm:$0xff]  }
 0x27d   :  { %4906 = vmatprep.subr.bf16.mxu1 %v10702_v43  ;;  %7180 = vmatprep.subr.bf16.mxu0 %v10705_v34  ;;  %v10735_v43 = vld [vmem:[#allocation5 + $0x1714] ss:$24 sps:$4 sm:$0xff]   ;;  %v10730_v34 = vld [vmem:[#allocation5 + $0x818] ss:$24 sps:$4 sm:$0xff]  }
 0x27f   :  { %8705 = vmatmul.mubr.msk.bf16.gmra.mrb[28].mxu1 %vm11461_vm3, %v11738_v14  ;;  %9113 = vmatmul.mubr.msk.bf16.gmra.mrb[28].mxu0 %vm12059_vm6, %v12197_v51  ;;  %v10712_v14 = vld [vmem:[#allocation5 + $0x788] ss:$24 sps:$4 sm:$0xff]  }
 0x280   :  { %4907 = vmatpush1.bf16.msra.mxu1 %v10700_v39  ;;  %7181 = vmatpush1.bf16.msra.mxu0 %v10703_v19  ;;  %v10741_v39 = vld [vmem:[#allocation5 + $0x1744] ss:$24 sps:$4 sm:$0xff]   ;;  %v10736_v19 = vld [vmem:[#allocation5 + $0x848] ss:$24 sps:$4 sm:$0xff]  }
 0x281   :  { %4908 = vmatprep.subr.bf16.mxu1 %v10708_v54  ;;  %7182 = vmatprep.subr.bf16.mxu0 %v10711_v0  ;;  %v10739_v54 = vld [vmem:[#allocation5 + $0x1740] ss:$24 sps:$4 sm:$0xff]   ;;  %v10744_v0 = vld [vmem:[#allocation5 + $0x87c] ss:$24 sps:$4 sm:$0xff]  }
 0x282   :  { %8708 = vmatprep.mubr.msk.bf16.mxu1 %vm11461_vm3, %v11746_v28  ;;  %9116 = vmatprep.mubr.msk.bf16.mxu0 %vm12059_vm6, %v12205_v59  ;;  %v10729_v28 = vld [vmem:[#allocation5 + $0x16e4] ss:$24 sps:$4 sm:$0xff]  }
 0x284   :  { %4909 = vmatpush1.bf16.msra.mxu1 %v10706_v20  ;;  %7183 = vmatpush1.bf16.msra.mxu0 %v10709_v12  ;;  %v10747_v20 = vld [vmem:[#allocation5 + $0x1774] ss:$24 sps:$4 sm:$0xff]   ;;  %v10742_v12 = vld [vmem:[#allocation5 + $0x878] ss:$24 sps:$4 sm:$0xff]  }
 0x285   :  { %4910 = vmatprep.subr.bf16.mxu1 %v10714_v41  ;;  %7184 = vmatprep.subr.bf16.mxu0 %v10717_v21  ;;  %v10745_v41 = vld [vmem:[#allocation5 + $0x1770] ss:$24 sps:$4 sm:$0xff]   ;;  %v10750_v21 = vld [vmem:[#allocation5 + $0x8ac] ss:$24 sps:$4 sm:$0xff]  }
 0x288   :  { %4911 = vmatpush1.bf16.msra.mxu1 %v10712_v14  ;;  %7185 = vmatpush1.bf16.msra.mxu0 %v10715_v3  ;;  %v10753_v14 = vld [vmem:[#allocation5 + $0x17a4] ss:$24 sps:$4 sm:$0xff]   ;;  %v10748_v3 = vld [vmem:[#allocation5 + $0x8a8] ss:$24 sps:$4 sm:$0xff]  }
 0x289   :  { %4912 = vmatprep.subr.bf16.mxu1 %v10720_v11  ;;  %7186 = vmatprep.subr.bf16.mxu0 %v10723_v31  ;;  %v10751_v11 = vld [vmem:[#allocation5 + $0x17a0] ss:$24 sps:$4 sm:$0xff]   ;;  %v10756_v31 = vld [vmem:[#allocation5 + $0x8dc] ss:$24 sps:$4 sm:$0xff]  }
 0x28c   :  { %4913 = vmatpush1.bf16.msra.mxu1 %v10718_v30  ;;  %7187 = vmatpush1.bf16.msra.mxu0 %v10721_v29  ;;  %v10759_v30 = vld [vmem:[#allocation5 + $0x17d4] ss:$24 sps:$4 sm:$0xff]   ;;  %v12835_v29 = vld [vmem:[#allocation35_spill] sm:$0xff] }
 0x28d   :  { %4914 = vmatprep.subr.bf16.mxu1 %v10726_v24  ;;  %7188 = vmatprep.subr.bf16.mxu0 %v10729_v28  ;;  %v12836_v24 = vunpack.c.h.bf16 %v12835_v29 }
 0x28f   :  { %v5495_v28 = vrot.slane %v12836_v24, 1 }
 0x290   :  { %4915 = vmatpush1.bf16.msra.mxu1 %v10724_v56  ;;  %7189 = vmatpush1.bf16.msra.mxu0 %v10727_v42  ;;  %v12837_v56 = vld [vmem:[#allocation36_spill] sm:$0xff] }
 0x291   :  { %4916 = vmatprep.subr.bf16.mxu1 %v10732_v10  ;;  %7190 = vmatprep.subr.bf16.mxu0 %v10735_v43  ;;  %v12838_v42 = vunpack.c.h.bf16 %v12837_v56  ;;  %v10754_v43 = vld [vmem:[#allocation5 + $0x8d8] ss:$24 sps:$4 sm:$0xff]  }
 0x293   :  { %v5501_v10 = vrot.slane %v12838_v42, 1 }
 0x294   :  { %4917 = vmatpush1.bf16.msra.mxu1 %v10730_v34  ;;  %7191 = vmatpush1.bf16.msra.mxu0 %v10733_v17  ;;  %v10757_v34 = vld [vmem:[#allocation5 + $0x17d0] ss:$24 sps:$4 sm:$0xff]   ;;  %v10762_v17 = vld [vmem:[#allocation5 + $0x1804] ss:$24 sps:$4 sm:$0xff]  }
 0x295   :  { %4918 = vmatprep.subr.bf16.mxu1 %v10738_v36  ;;  %7192 = vmatprep.subr.bf16.mxu0 %v10741_v39  ;;  %v10765_v36 = vld [vmem:[#allocation5 + $0x120c] ss:$24 sps:$4 sm:$0xff]   ;;  %v5544_v39 = vsel %vm5522_vm4, %v5495_v28, %v5501_v10 }
 0x298   :  { %4919 = vmatpush1.bf16.msra.mxu1 %v10736_v19  ;;  %7193 = vmatpush1.bf16.msra.mxu0 %v10739_v54  ;;  %v5550_v19 = vsel %vm5522_vm4, %v12184_v23, %v5495_v28  ;;  %v10760_v54 = vld [vmem:[#allocation5 + $0x1800] ss:$24 sps:$4 sm:$0xff]   ;;  %v12841_v23 = vld [vmem:[#allocation37_spill] sm:$0xff] }
 0x299   :  { %4920 = vmatprep.subr.bf16.mxu1 %v10744_v0  ;;  %7194 = vmatprep.subr.bf16.mxu0 %v10747_v20  ;;  %v10763_v0 = vld [vmem:[#allocation5 + $0x1208] ss:$24 sps:$4 sm:$0xff]   ;;  %v12839_v20 = vunpack.c.l.bf16 %v12835_v29  ;;  %v12843_v29 = vunpack.c.h.bf16 %v11665_v27 }
 0x29a   :  { %v10766_v28 = vld [vmem:[#allocation5 + $0x1830] ss:$24 sps:$4 sm:$0xff]  }
 0x29b   :  { %v5513_v24 = vrot.slane %v12843_v29, 1 }
 0x29c   :  { %4921 = vmatpush1.bf16.msra.mxu1 %v10742_v12  ;;  %7195 = vmatpush1.bf16.msra.mxu0 %v10745_v41  ;;  %v5494_v12 = vrot.slane %v12839_v20, 1  ;;  %v12840_v41 = vunpack.c.l.bf16 %v12837_v56  ;;  %v10769_v56 = vld [vmem:[#allocation5 + $0x1238] ss:$24 sps:$4 sm:$0xff]   ;;  %v12845_v20 = vunpack.c.l.bf16 %v11665_v27 }
 0x29d   :  { %4922 = vmatprep.subr.bf16.mxu1 %v10750_v21  ;;  %7196 = vmatprep.subr.bf16.mxu0 %v10753_v14  ;;  %v10768_v14 = vld [vmem:[#allocation5 + $0x1834] ss:$24 sps:$4 sm:$0xff]   ;;  %v10778_v27 = vld [vmem:[#allocation5 + $0x1890] ss:$24 sps:$4 sm:$0xff]  }
 0x29e   :  { %v5500_v21 = vrot.slane %v12840_v41, 1  ;;  %v10783_v41 = vld [vmem:[#allocation5 + $0x129c] ss:$24 sps:$4 sm:$0xff]  }
 0x2a0   :  { %4923 = vmatpush1.bf16.msra.mxu1 %v10748_v3  ;;  %7197 = vmatpush1.bf16.msra.mxu0 %v10751_v11  ;;  %v10771_v3 = vld [vmem:[#allocation5 + $0x123c] ss:$24 sps:$4 sm:$0xff]   ;;  %v12232_v11 = vpack.c.bf16 %v5544_v39, %v5550_v19  ;;  %v5543_v42 = vsel %vm5522_vm4, %v5494_v12, %v5500_v21  ;;  %v10772_v39 = vld [vmem:[#allocation5 + $0x1860] ss:$24 sps:$4 sm:$0xff]  }
 0x2a1   :  { %4924 = vmatprep.subr.bf16.mxu1 %v10756_v31  ;;  %7198 = vmatprep.subr.bf16.mxu0 %v10759_v30  ;;  %v12842_v31 = vunpack.c.h.bf16 %v12841_v23  ;;  %v10775_v19 = vld [vmem:[#allocation5 + $0x1268] ss:$24 sps:$4 sm:$0xff]  }
 0x2a3   :  { %v5507_v30 = vrot.slane %v12842_v31, 1  ;;  %v10781_v31 = vld [vmem:[#allocation5 + $0x1298] ss:$24 sps:$4 sm:$0xff]  }
 0x2a4   :  { %4925 = vmatpush1.bf16.msra.mxu1 %v10754_v43  ;;  %7199 = vmatpush1.bf16.msra.mxu0 %v10757_v34  ;;  %v10774_v43 = vld [vmem:[#allocation5 + $0x1864] ss:$24 sps:$4 sm:$0xff]  }
 0x2a5   :  { %7241 = vmatprep.subr.bf16.mxu0 %v10762_v17  ;;  %7314 = vmatprep.subr.bf16.mxu1 %v10765_v36  ;;  %v10777_v34 = vld [vmem:[#allocation5 + $0x126c] ss:$24 sps:$4 sm:$0xff]   ;;  %v5532_v36 = vsel %vm5522_vm4, %v5507_v30, %v5513_v24 }
 0x2a7   :  { %8711 = vmatmul.mubr.msk.bf16.vlgmr.msra.gmra.mrb[16].mxu1 %vm11461_vm3, %v11509_v35  ;;  %9119 = vmatmul.mubr.msk.bf16.vlgmr.msra.gmra.mrb[16].mxu0 %vm12059_vm6, %v12001_v58  ;;  %v5549_v35 = vsel %vm5522_vm4, %v11993_v15, %v5494_v12  ;;  %v5538_v15 = vsel %vm5522_vm4, %v5501_v10, %v5507_v30  ;;  %v5512_v12 = vrot.slane %v12845_v20, 1  ;;  %v12846_v10 = vld [vmem:[#allocation32_spill] sm:$0xff] }
 0x2a8   :  { %7242 = vmatpush1.bf16.msra.mxu0 %v10760_v54  ;;  %7315 = vmatpush1.bf16.msra.mxu1 %v10763_v0  ;;  %v12255_v17 = vpack.c.bf16 %v5543_v42, %v5549_v35  ;;  %v12844_v54 = vunpack.c.l.bf16 %v12841_v23  ;;  %v10784_v35 = vld [vmem:[#allocation5 + $0x18c0] ss:$24 sps:$4 sm:$0xff]  }
 0x2a9   :  { %7243 = vmatprep.subr.bf16.mxu0 %v10768_v14  ;;  %7316 = vmatprep.subr.bf16.mxu1 %v10771_v3  ;;  %v12265_v14 = vpack.c.bf16 %v5532_v36, %v5538_v15  ;;  %v12847_v3 = vunpack.c.h.bf16 %v12846_v10 }
 0x2aa   :  { %9122 = vmatprep.mubr.msk.bf16.mxu0 %vm12059_vm6, %v12232_v11  ;;  %8714 = vmatprep.mubr.msk.bf16.mxu1 %vm11461_vm3, %v11783_v8  ;;  %v5506_v0 = vrot.slane %v12844_v54, 1  ;;  %v10780_v8 = vld [vmem:[#allocation5 + $0x1894] ss:$24 sps:$4 sm:$0xff]  }
 0x2ab   :  { %v5519_v23 = vrot.slane %v12847_v3, 1  ;;  %v10790_v3 = vld [vmem:[#allocation5 + $0x18f0] ss:$24 sps:$4 sm:$0xff]  }
 0x2ac   :  { %7244 = vmatpush1.bf16.msra.mxu0 %v10766_v28  ;;  %7317 = vmatpush1.bf16.msra.mxu1 %v10769_v56  ;;  %v5531_v30 = vsel %vm5522_vm4, %v5506_v0, %v5512_v12  ;;  %v5537_v29 = vsel %vm5522_vm4, %v5500_v21, %v5506_v0  ;;  %v10786_v28 = vld [vmem:[#allocation5 + $0x18c4] ss:$24 sps:$4 sm:$0xff]   ;;  %v12852_v0 = vld [vmem:[#allocation41_spill] sm:$0xff] }
 0x2ad   :  { %7245 = vmatprep.subr.bf16.mxu0 %v10774_v43  ;;  %7318 = vmatprep.subr.bf16.mxu1 %v10777_v34  ;;  %v10789_v56 = vld [vmem:[#allocation5 + $0x12cc] ss:$24 sps:$4 sm:$0xff]   ;;  %v5526_v42 = vsel %vm5522_vm4, %v5513_v24, %v5519_v23  ;;  %v5568_v21 = vsel %vm5522_vm4, %v5519_v23, %v12178_v38  ;;  %v10787_v43 = vld [vmem:[#allocation5 + $0x12c8] ss:$24 sps:$4 sm:$0xff]   ;;  %v12853_v20 = vunpack.c.h.bf16 %v12852_v0  ;;  %v10793_v23 = vld [vmem:[#allocation5 + $0x12f8] ss:$24 sps:$4 sm:$0xff]  }
 0x2ae   :  { %v12848_v34 = vld [vmem:[#allocation23_spill] sm:$0xff]  ;;  %v12850_v38 = vld [vmem:[#allocation40_spill] sm:$0xff] }
 0x2af   :  { %9125 = vmatmul.mubr.msk.bf16.gmra.mrb[20].mxu0 %vm12059_vm6, %v12255_v17  ;;  %8717 = vmatmul.mubr.msk.bf16.gmra.mrb[20].mxu1 %vm11461_vm3, %v11807_v26  ;;  %v12285_v26 = vpack.c.bf16 %v5531_v30, %v5537_v29  ;;  %v12849_v36 = vunpack.c.l.bf16 %v12848_v34  ;;  %v12851_v24 = vunpack.c.h.bf16 %v12850_v38  ;;  %v10801_v30 = vld [vmem:[#allocation5 + $0x132c] ss:$24 sps:$4 sm:$0xff]  }
 0x2b0   :  { %7246 = vmatpush1.bf16.msra.mxu0 %v10772_v39  ;;  %7319 = vmatpush1.bf16.msra.mxu1 %v10775_v19  ;;  %v10792_v39 = vld [vmem:[#allocation5 + $0x18f4] ss:$24 sps:$4 sm:$0xff]   ;;  %v12294_v19 = vpack.c.bf16 %v5568_v21, %v5526_v42  ;;  %v10796_v42 = vld [vmem:[#allocation5 + $0x1920] ss:$24 sps:$4 sm:$0xff]  }
 0x2b1   :  { %7247 = vmatprep.subr.bf16.mxu0 %v10780_v8  ;;  %7320 = vmatprep.subr.bf16.mxu1 %v10783_v41  ;;  %v5518_v15 = vrot.slane %v12849_v36, 1  ;;  %v12304_v54 = vrot.slane %v12851_v24, 1  ;;  %v5485_v8 = vrot.slane %v12853_v20, 1  ;;  %v12854_v41 = vunpack.c.h.bf16 %v11756_v6  ;;  %v10799_v21 = vld [vmem:[#allocation5 + $0x1328] ss:$24 sps:$4 sm:$0xff]  }
 0x2b2   :  { %9128 = vmatprep.mubr.msk.bf16.mxu0 %vm12059_vm6, %v12265_v14  ;;  %8720 = vmatprep.mubr.msk.bf16.mxu1 %vm11461_vm3, %v11817_v47  ;;  %v10795_v47 = vld [vmem:[#allocation5 + $0x12fc] ss:$24 sps:$4 sm:$0xff]   ;;  %v10802_v36 = vld [vmem:[#allocation5 + $0x1950] ss:$24 sps:$4 sm:$0xff]  }
 0x2b3   :  { %v12310_v10 = vrot.slane %v12854_v41, 1  ;;  %v10811_v24 = vld [vmem:[#allocation5 + $0x1388] ss:$24 sps:$4 sm:$0xff]   ;;  %v10816_v20 = vld [vmem:[#allocation5 + $0x19b4] ss:$24 sps:$4 sm:$0xff]  }
 0x2b4   :  { %7248 = vmatpush1.bf16.msra.mxu0 %v10778_v27  ;;  %7321 = vmatpush1.bf16.msra.mxu1 %v10781_v31  ;;  %v5525_v27 = vsel %vm5522_vm4, %v5512_v12, %v5518_v15  ;;  %v10798_v31 = vld [vmem:[#allocation5 + $0x1924] ss:$24 sps:$4 sm:$0xff]  }
 0x2b5   :  { %7249 = vmatprep.subr.bf16.mxu0 %v10786_v28  ;;  %7322 = vmatprep.subr.bf16.mxu1 %v10789_v56  ;;  %v5564_v28 = vsel %vm5522_vm4, %v12304_v54, %v5485_v8 }
 0x2b7   :  { %9131 = vmatmul.mubr.msk.bf16.gmra.mrb[24].mxu0 %vm12059_vm6, %v12285_v26  ;;  %8723 = vmatmul.mubr.msk.bf16.gmra.mrb[24].mxu1 %vm11461_vm3, %v11834_v49  ;;  %v5567_v49 = vsel %vm5522_vm4, %v5518_v15, %v11987_v2  ;;  %v5558_v2 = vsel %vm5522_vm4, %v5485_v8, %v12310_v10  ;;  %v10805_v15 = vld [vmem:[#allocation5 + $0x1358] ss:$24 sps:$4 sm:$0xff]   ;;  %v10819_v8 = vld [vmem:[#allocation5 + $0x13bc] ss:$24 sps:$4 sm:$0xff]  }
 0x2b8   :  { %7250 = vmatpush1.bf16.msra.mxu0 %v10784_v35  ;;  %7323 = vmatpush1.bf16.msra.mxu1 %v10787_v43  ;;  %v12327_v12 = vpack.c.bf16 %v5567_v49, %v5525_v27  ;;  %v10807_v43 = vld [vmem:[#allocation5 + $0x135c] ss:$24 sps:$4 sm:$0xff]   ;;  %v12339_v34 = vpack.c.bf16 %v5558_v2, %v5564_v28  ;;  %v10825_v49 = vld [vmem:[#allocation5 + $0x13ec] ss:$24 sps:$4 sm:$0xff]   ;;  %v10820_v2 = vld [vmem:[#allocation5 + $0x19e0] ss:$24 sps:$4 sm:$0xff]  }
 0x2b9   :  { %7251 = vmatprep.subr.bf16.mxu0 %v10792_v39  ;;  %7324 = vmatprep.subr.bf16.mxu1 %v10795_v47  ;;  %v10810_v39 = vld [vmem:[#allocation5 + $0x1984] ss:$24 sps:$4 sm:$0xff]   ;;  %v10823_v28 = vld [vmem:[#allocation5 + $0x13e8] ss:$24 sps:$4 sm:$0xff]  }
 0x2ba   :  { %v12317_v29 = vpop.f32.mrb[32].mxu1  ;;  %9134 = vmatprep.mubr.msk.bf16.mxu0 %vm12059_vm6, %v12294_v19  ;;  %8726 = vmatprep.mubr.msk.bf16.mxu1 %vm11461_vm3, %v11843_v44  ;;  %v10804_v44 = vld [vmem:[#allocation5 + $0x1954] ss:$24 sps:$4 sm:$0xff]   ;;  %v10822_v27 = vld [vmem:[#allocation5 + $0x19e4] ss:$24 sps:$4 sm:$0xff]  }
 0x2bb   :  { %v12325_v6 = vpop.f32.mrb[33].mxu1  ;;  %v10813_v47 = vld [vmem:[#allocation5 + $0x138c] ss:$24 sps:$4 sm:$0xff]  }
 0x2bc   :  { %v12335_v56 = vpop.f32.mrb[34].mxu1  ;;  %7252 = vmatpush1.bf16.msra.mxu0 %v10790_v3  ;;  %7325 = vmatpush1.bf16.msra.mxu1 %v10793_v23  ;;  %v10814_v3 = vld [vmem:[#allocation5 + $0x19b0] ss:$24 sps:$4 sm:$0xff]  }
 0x2bd   :  { %12855 = vst [vmem:[#allocation11_spill] sm:$0xff] %v12335_v56  ;;  %v12337_v35 = vpop.f32.mrb[35].mxu1  ;;  %7253 = vmatprep.subr.bf16.mxu0 %v10798_v31  ;;  %7326 = vmatprep.subr.bf16.mxu1 %v10801_v30  ;;  %v10817_v23 = vld [vmem:[#allocation5 + $0x13b8] ss:$24 sps:$4 sm:$0xff]  }
 0x2be   :  { %12856 = vst [vmem:[#allocation12_spill] sm:$0xff] %v12337_v35  ;;  %v10867_v35 = vld [vmem:[#allocation5 + $0x1244] ss:$24 sps:$4 sm:$0xff]  }
 0x2bf   :  { %9137 = vmatmul.mubr.msk.bf16.gmra.mrb[28].mxu0 %vm12059_vm6, %v12327_v12  ;;  %8729 = vmatmul.mubr.msk.bf16.gmra.mrb[28].mxu1 %vm11461_vm3, %v11858_v60  ;;  %v10808_v60 = vld [vmem:[#allocation5 + $0x1980] ss:$24 sps:$4 sm:$0xff]  }
 0x2c0   :  { %7254 = vmatpush1.bf16.msra.mxu0 %v10796_v42  ;;  %7327 = vmatpush1.bf16.msra.mxu1 %v10799_v21  ;;  %v10828_v21 = vld [vmem:[#allocation5 + $0x1a14] ss:$24 sps:$4 sm:$0xff]  }
 0x2c1   :  { %7255 = vmatprep.subr.bf16.mxu0 %v10804_v44  ;;  %7328 = vmatprep.subr.bf16.mxu1 %v10807_v43  ;;  %v10831_v44 = vld [vmem:[#allocation5 + $0x141c] ss:$24 sps:$4 sm:$0xff]  }
 0x2c2   :  { %v12347_v38 = vpop.f32.mrb[36].mxu1  ;;  %9140 = vmatprep.mubr.msk.bf16.mxu0 %vm12059_vm6, %v12339_v34  ;;  %9164 = vmatprep.mubr.msk.bf16.mxu1 %vm12059_vm6, %v12056_v9 }
 0x2c3   :  { %12857 = vst [vmem:[#allocation16_spill] sm:$0xff] %v12347_v38  ;;  %v12355_v61 = vpop.f32.mrb[37].mxu1  ;;  %v10859_v38 = vld [vmem:[#allocation5 + $0x1210] ss:$24 sps:$4 sm:$0xff]  }
 0x2c4   :  { %12858 = vst [vmem:[#allocation38_spill] sm:$0xff] %v12355_v61  ;;  %7256 = vmatpush1.bf16.msra.mxu0 %v10802_v36  ;;  %7329 = vmatpush1.bf16.msra.mxu1 %v10805_v15  ;;  %v12357_v0 = vpop.f32.mrb[38].mxu1  ;;  %v10826_v36 = vld [vmem:[#allocation5 + $0x1a10] ss:$24 sps:$4 sm:$0xff]  }
 0x2c5   :  { %12859 = vst [vmem:[#allocation20_spill] sm:$0xff] %v12357_v0  ;;  %7257 = vmatprep.subr.bf16.mxu0 %v10810_v39  ;;  %7330 = vmatprep.subr.bf16.mxu1 %v10813_v47  ;;  %v12359_v41 = vpop.f32.mrb[39].mxu1  ;;  %v10829_v15 = vld [vmem:[#allocation5 + $0x1418] ss:$24 sps:$4 sm:$0xff]   ;;  %v10834_v39 = vld [vmem:[#allocation5 + $0x1a44] ss:$24 sps:$4 sm:$0xff]  }
 0x2c6   :  { %12860 = vst [vmem:[#allocation39_spill] sm:$0xff] %v12359_v41  ;;  %v10837_v47 = vld [vmem:[#allocation5 + $0x144c] ss:$24 sps:$4 sm:$0xff]  }
 0x2c7   :  { %v12861_v41 = vld [vmem:[#allocation43_spill] sm:$0xff] }
 0x2c8   :  { %7258 = vmatpush1.bf16.msra.mxu0 %v10808_v60  ;;  %7331 = vmatpush1.bf16.msra.mxu1 %v10811_v24  ;;  %v12862_v0 = vunpack.c.h.bf16 %v12861_v41 }
 0x2c9   :  { %7259 = vmatprep.subr.bf16.mxu0 %v10816_v20  ;;  %7332 = vmatprep.subr.bf16.mxu1 %v10819_v8  ;;  %v10832_v20 = vld [vmem:[#allocation5 + $0x1a40] ss:$24 sps:$4 sm:$0xff]  }
 0x2ca   :  { %v12361_v31 = vpop.f32.mrb[40].mxu1  ;;  %v10835_v8 = vld [vmem:[#allocation5 + $0x1448] ss:$24 sps:$4 sm:$0xff]   ;;  %v5497_v61 = vrot.slane %v12862_v0, 1 }
 0x2cb   :  { %v12363_v30 = vpop.f32.mrb[41].mxu1  ;;  %v10856_v0 = vld [vmem:[#allocation5 + $0x1508] ss:$24 sps:$4 sm:$0xff]  }
 0x2cc   :  { %7260 = vmatpush1.bf16.msra.mxu0 %v10814_v3  ;;  %7333 = vmatpush1.bf16.msra.mxu1 %v10817_v23  ;;  %v12365_v42 = vpop.f32.mrb[42].mxu1  ;;  %v10840_v23 = vld [vmem:[#allocation5 + $0x1a74] ss:$24 sps:$4 sm:$0xff]  }
 0x2cd   :  { %7261 = vmatprep.subr.bf16.mxu0 %v10822_v27  ;;  %7334 = vmatprep.subr.bf16.mxu1 %v10825_v49  ;;  %v12367_v43 = vpop.f32.mrb[43].mxu1  ;;  %v10843_v27 = vld [vmem:[#allocation5 + $0x147c] ss:$24 sps:$4 sm:$0xff]  }
 0x2d0   :  { %7262 = vmatpush1.bf16.msra.mxu0 %v10820_v2  ;;  %7335 = vmatpush1.bf16.msra.mxu1 %v10823_v28  ;;  %v10838_v2 = vld [vmem:[#allocation5 + $0x1a70] ss:$24 sps:$4 sm:$0xff]  }
 0x2d1   :  { %7263 = vmatprep.subr.bf16.mxu0 %v10828_v21  ;;  %7336 = vmatprep.subr.bf16.mxu1 %v10831_v44  ;;  %v10841_v28 = vld [vmem:[#allocation5 + $0x1478] ss:$24 sps:$4 sm:$0xff]   ;;  %v10846_v21 = vld [vmem:[#allocation5 + $0x1aa4] ss:$24 sps:$4 sm:$0xff]  }
 0x2d2   :  { %v12369_v60 = vpop.f32.mrb[44].mxu1  ;;  %v10849_v44 = vld [vmem:[#allocation5 + $0x14ac] ss:$24 sps:$4 sm:$0xff]  }
 0x2d3   :  { %v12371_v24 = vpop.f32.mrb[45].mxu1 }
 0x2d4   :  { %7264 = vmatpush1.bf16.msra.mxu0 %v10826_v36  ;;  %7337 = vmatpush1.bf16.msra.mxu1 %v10829_v15  ;;  %v12373_v3 = vpop.f32.mrb[46].mxu1  ;;  %v10844_v36 = vld [vmem:[#allocation5 + $0x1aa0] ss:$24 sps:$4 sm:$0xff]  }
 0x2d5   :  { %7265 = vmatprep.subr.bf16.mxu0 %v10834_v39  ;;  %7338 = vmatprep.subr.bf16.mxu1 %v10837_v47  ;;  %v12375_v49 = vpop.f32.mrb[47].mxu1  ;;  %v10847_v15 = vld [vmem:[#allocation5 + $0x14a8] ss:$24 sps:$4 sm:$0xff]   ;;  %v10852_v39 = vld [vmem:[#allocation5 + $0x1ad4] ss:$24 sps:$4 sm:$0xff]  }
 0x2d6   :  { %v10855_v47 = vld [vmem:[#allocation5 + $0x14dc] ss:$24 sps:$4 sm:$0xff]  }
 0x2d8   :  { %7266 = vmatpush1.bf16.msra.mxu0 %v10832_v20  ;;  %7339 = vmatpush1.bf16.msra.mxu1 %v10835_v8  ;;  %v12863_v20 = vunpack.c.h.bf16 %v11768_v46 }
 0x2d9   :  { %7267 = vmatprep.subr.bf16.mxu0 %v10840_v23  ;;  %7340 = vmatprep.subr.bf16.mxu1 %v10843_v27  ;;  %v10850_v23 = vld [vmem:[#allocation5 + $0x1ad0] ss:$24 sps:$4 sm:$0xff]  }
 0x2da   :  { %v5503_v8 = vrot.slane %v12863_v20, 1  ;;  %v10853_v27 = vld [vmem:[#allocation5 + $0x14d8] ss:$24 sps:$4 sm:$0xff]   ;;  %v12865_v20 = vunpack.c.l.bf16 %v11768_v46  ;;  %v12867_v46 = vunpack.c.h.bf16 %v11804_v25 }
 0x2dc   :  { %7268 = vmatpush1.bf16.msra.mxu0 %v10838_v2  ;;  %7341 = vmatpush1.bf16.msra.mxu1 %v10841_v28  ;;  %v10858_v2 = vld [vmem:[#allocation5 + $0x150c] ss:$24 sps:$4 sm:$0xff]  }
 0x2dd   :  { %7269 = vmatprep.subr.bf16.mxu0 %v10846_v21  ;;  %7342 = vmatprep.subr.bf16.mxu1 %v10849_v44  ;;  %v10861_v28 = vld [vmem:[#allocation5 + $0x1214] ss:$24 sps:$4 sm:$0xff]   ;;  %v5546_v21 = vsel %vm5522_vm4, %v5497_v61, %v5503_v8  ;;  %v5552_v44 = vsel %vm5522_vm4, %v12310_v10, %v5497_v61  ;;  %v12866_v10 = vunpack.c.h.bf16 %v11771_v4 }
 0x2de   :  { %v12390_v56 = vpack.c.bf16 %v5546_v21, %v5552_v44  ;;  %v10870_v21 = vld [vmem:[#allocation5 + $0x156c] ss:$24 sps:$4 sm:$0xff]  }
 0x2df   :  { %v5509_v61 = vrot.slane %v12866_v10, 1  ;;  %v10873_v44 = vld [vmem:[#allocation5 + $0x1274] ss:$24 sps:$4 sm:$0xff]  }
 0x2e0   :  { %7270 = vmatpush1.bf16.msra.mxu0 %v10844_v36  ;;  %7343 = vmatpush1.bf16.msra.mxu1 %v10847_v15  ;;  %v12864_v36 = vunpack.c.l.bf16 %v12861_v41  ;;  %v5515_v41 = vrot.slane %v12867_v46, 1  ;;  %v10876_v46 = vld [vmem:[#allocation5 + $0x159c] ss:$24 sps:$4 sm:$0xff]  }
 0x2e1   :  { %7271 = vmatprep.subr.bf16.mxu0 %v10852_v39  ;;  %7344 = vmatprep.subr.bf16.mxu1 %v10855_v47  ;;  %v5502_v39 = vrot.slane %v12865_v20, 1  ;;  %v10864_v47 = vld [vmem:[#allocation5 + $0x153c] ss:$24 sps:$4 sm:$0xff]  }
 0x2e2   :  { %v5496_v15 = vrot.slane %v12864_v36, 1  ;;  %v10871_v36 = vld [vmem:[#allocation5 + $0x1270] ss:$24 sps:$4 sm:$0xff]  }
 0x2e4   :  { %7272 = vmatpush1.bf16.msra.mxu0 %v10850_v23  ;;  %7345 = vmatpush1.bf16.msra.mxu1 %v10853_v27  ;;  %v10862_v23 = vld [vmem:[#allocation5 + $0x1538] ss:$24 sps:$4 sm:$0xff]  }
 0x2e5   :  { %7387 = vmatprep.subr.bf16.mxu1 %v10858_v2  ;;  %7533 = vmatprep.subr.bf16.mxu0 %v10861_v28  ;;  %v10865_v27 = vld [vmem:[#allocation5 + $0x1240] ss:$24 sps:$4 sm:$0xff]   ;;  %v5545_v2 = vsel %vm5522_vm4, %v5496_v15, %v5502_v39  ;;  %v5551_v28 = vsel %vm5522_vm4, %v12087_v50, %v5496_v15  ;;  %v5540_v50 = vsel %vm5522_vm4, %v5503_v8, %v5509_v61  ;;  %v12868_v15 = vunpack.c.l.bf16 %v11771_v4 }
 0x2e6   :  { %v12870_v8 = vld [vmem:[#allocation42_spill] sm:$0xff] }
 0x2e7   :  { %9143 = vmatmul.mubr.msk.bf16.vlgmr.msra.gmra.mrb[16].mxu0 %vm12059_vm6, %v12104_v18  ;;  %9167 = vmatmul.mubr.msk.bf16.vlgmr.msra.gmra.mrb[16].mxu1 %vm12059_vm6, %v11949_v32  ;;  %v5508_v20 = vrot.slane %v12868_v15, 1  ;;  %v10874_v4 = vld [vmem:[#allocation5 + $0x1598] ss:$24 sps:$4 sm:$0xff]  }
 0x2e8   :  { %7388 = vmatpush1.bf16.msra.mxu1 %v10856_v0  ;;  %7534 = vmatpush1.bf16.msra.mxu0 %v10859_v38  ;;  %v12413_v38 = vpack.c.bf16 %v5545_v2, %v5551_v28  ;;  %v5534_v0 = vsel %vm5522_vm4, %v5509_v61, %v5515_v41  ;;  %v10879_v2 = vld [vmem:[#allocation5 + $0x12a4] ss:$24 sps:$4 sm:$0xff]   ;;  %v12871_v61 = vunpack.c.h.bf16 %v12870_v8  ;;  %v10883_v15 = vld [vmem:[#allocation5 + $0x12d0] ss:$24 sps:$4 sm:$0xff]  }
 0x2e9   :  { %7389 = vmatprep.subr.bf16.mxu1 %v10864_v47  ;;  %7535 = vmatprep.subr.bf16.mxu0 %v10867_v35  ;;  %v10868_v35 = vld [vmem:[#allocation5 + $0x1568] ss:$24 sps:$4 sm:$0xff]   ;;  %v12869_v47 = vunpack.c.l.bf16 %v11804_v25  ;;  %v12423_v28 = vpack.c.bf16 %v5534_v0, %v5540_v50  ;;  %v10885_v0 = vld [vmem:[#allocation5 + $0x12d4] ss:$24 sps:$4 sm:$0xff]   ;;  %v10891_v8 = vld [vmem:[#allocation5 + $0x1304] ss:$24 sps:$4 sm:$0xff]  }
 0x2ea   :  { %9146 = vmatprep.mubr.msk.bf16.mxu0 %vm12059_vm6, %v12390_v56  ;;  %9170 = vmatprep.mubr.msk.bf16.mxu1 %vm12059_vm6, %v12106_v22  ;;  %v10877_v25 = vld [vmem:[#allocation5 + $0x12a0] ss:$24 sps:$4 sm:$0xff]  }
 0x2eb   :  { %v5514_v10 = vrot.slane %v12869_v47, 1 }
 0x2ec   :  { %7390 = vmatpush1.bf16.msra.mxu1 %v10862_v23  ;;  %7536 = vmatpush1.bf16.msra.mxu0 %v10865_v27  ;;  %v5521_v23 = vrot.slane %v12871_v61, 1 }
 0x2ed   :  { %7391 = vmatprep.subr.bf16.mxu1 %v10870_v21  ;;  %7537 = vmatprep.subr.bf16.mxu0 %v10873_v44  ;;  %v5533_v27 = vsel %vm5522_vm4, %v5508_v20, %v5514_v10  ;;  %v5539_v21 = vsel %vm5522_vm4, %v5502_v39, %v5508_v20  ;;  %v10882_v44 = vld [vmem:[#allocation5 + $0x15cc] ss:$24 sps:$4 sm:$0xff]   ;;  %v12872_v20 = vld [vmem:[#allocation26_spill] sm:$0xff] }
 0x2ee   :  { %v12443_v50 = vpack.c.bf16 %v5533_v27, %v5539_v21  ;;  %v5570_v39 = vsel %vm5522_vm4, %v5521_v23, %v12304_v54  ;;  %v12873_v47 = vunpack.c.l.bf16 %v12872_v20  ;;  %v10886_v54 = vld [vmem:[#allocation5 + $0x15f8] ss:$24 sps:$4 sm:$0xff]   ;;  %v10897_v27 = vld [vmem:[#allocation5 + $0x1334] ss:$24 sps:$4 sm:$0xff]  }
 0x2ef   :  { %9149 = vmatmul.mubr.msk.bf16.gmra.mrb[20].mxu0 %vm12059_vm6, %v12413_v38  ;;  %9173 = vmatmul.mubr.msk.bf16.gmra.mrb[20].mxu1 %vm12059_vm6, %v12129_v5  ;;  %v10907_v20 = vld [vmem:[#allocation5 + $0x1390] ss:$24 sps:$4 sm:$0xff]  }
 0x2f0   :  { %7392 = vmatpush1.bf16.msra.mxu1 %v10868_v35  ;;  %7538 = vmatpush1.bf16.msra.mxu0 %v10871_v36  ;;  %v5528_v35 = vsel %vm5522_vm4, %v5515_v41, %v5521_v23  ;;  %v10880_v36 = vld [vmem:[#allocation5 + $0x15c8] ss:$24 sps:$4 sm:$0xff]  }
 0x2f1   :  { %7393 = vmatprep.subr.bf16.mxu1 %v10876_v46  ;;  %7539 = vmatprep.subr.bf16.mxu0 %v10879_v2  ;;  %v5520_v46 = vrot.slane %v12873_v47, 1  ;;  %v10888_v2 = vld [vmem:[#allocation5 + $0x15fc] ss:$24 sps:$4 sm:$0xff]   ;;  %v12452_v61 = vpack.c.bf16 %v5570_v39, %v5528_v35  ;;  %v10889_v41 = vld [vmem:[#allocation5 + $0x1300] ss:$24 sps:$4 sm:$0xff]  }
 0x2f2   :  { %9152 = vmatprep.mubr.msk.bf16.mxu0 %vm12059_vm6, %v12423_v28  ;;  %9176 = vmatprep.mubr.msk.bf16.mxu1 %vm12059_vm6, %v12139_v45  ;;  %v10901_v35 = vld [vmem:[#allocation5 + $0x1360] ss:$24 sps:$4 sm:$0xff]   ;;  %v10906_v39 = vld [vmem:[#allocation5 + $0x168c] ss:$24 sps:$4 sm:$0xff]   ;;  %v10912_v47 = vld [vmem:[#allocation5 + $0x16bc] ss:$24 sps:$4 sm:$0xff]  }
 0x2f3   :  { %v5527_v23 = vsel %vm5522_vm4, %v5514_v10, %v5520_v46  ;;  %v10892_v10 = vld [vmem:[#allocation5 + $0x1628] ss:$24 sps:$4 sm:$0xff]  }
 0x2f4   :  { %7394 = vmatpush1.bf16.msra.mxu1 %v10874_v4  ;;  %7540 = vmatpush1.bf16.msra.mxu0 %v10877_v25  ;;  %v5569_v4 = vsel %vm5522_vm4, %v5520_v46, %v12077_v52  ;;  %v10894_v25 = vld [vmem:[#allocation5 + $0x162c] ss:$24 sps:$4 sm:$0xff]  }
 0x2f5   :  { %7395 = vmatprep.subr.bf16.mxu1 %v10882_v44  ;;  %7541 = vmatprep.subr.bf16.mxu0 %v10885_v0  ;;  %v12471_v21 = vpack.c.bf16 %v5569_v4, %v5527_v23  ;;  %v10895_v44 = vld [vmem:[#allocation5 + $0x1330] ss:$24 sps:$4 sm:$0xff]   ;;  %v10903_v52 = vld [vmem:[#allocation5 + $0x1364] ss:$24 sps:$4 sm:$0xff]  }
 0x2f6   :  { %v10898_v0 = vld [vmem:[#allocation5 + $0x1658] ss:$24 sps:$4 sm:$0xff]   ;;  %v10915_v46 = vld [vmem:[#allocation5 + $0x13c4] ss:$24 sps:$4 sm:$0xff]   ;;  %v10916_v23 = vld [vmem:[#allocation5 + $0x16e8] ss:$24 sps:$4 sm:$0xff]  }
 0x2f7   :  { %9155 = vmatmul.mubr.msk.bf16.gmra.mrb[24].mxu0 %vm12059_vm6, %v12443_v50  ;;  %9179 = vmatmul.mubr.msk.bf16.gmra.mrb[24].mxu1 %vm12059_vm6, %v12159_v53  ;;  %v10924_v4 = vld [vmem:[#allocation5 + $0x171c] ss:$24 sps:$4 sm:$0xff]  }
 0x2f8   :  { %7396 = vmatpush1.bf16.msra.mxu1 %v10880_v36  ;;  %7542 = vmatpush1.bf16.msra.mxu0 %v10883_v15  ;;  %v10909_v36 = vld [vmem:[#allocation5 + $0x1394] ss:$24 sps:$4 sm:$0xff]   ;;  %v10904_v15 = vld [vmem:[#allocation5 + $0x1688] ss:$24 sps:$4 sm:$0xff]  }
 0x2f9   :  { %7397 = vmatprep.subr.bf16.mxu1 %v10888_v2  ;;  %7543 = vmatprep.subr.bf16.mxu0 %v10891_v8  ;;  %v10910_v2 = vld [vmem:[#allocation5 + $0x16b8] ss:$24 sps:$4 sm:$0xff]  }
 0x2fa   :  { %9158 = vmatprep.mubr.msk.bf16.mxu0 %vm12059_vm6, %v12452_v61  ;;  %9182 = vmatprep.mubr.msk.bf16.mxu1 %vm12059_vm6, %v12168_v16  ;;  %v10913_v8 = vld [vmem:[#allocation5 + $0x13c0] ss:$24 sps:$4 sm:$0xff]  }
 0x2fc   :  { %7398 = vmatpush1.bf16.msra.mxu1 %v10886_v54  ;;  %7544 = vmatpush1.bf16.msra.mxu0 %v10889_v41  ;;  %v10918_v54 = vld [vmem:[#allocation5 + $0x16ec] ss:$24 sps:$4 sm:$0xff]  }
 0x2fd   :  { %7399 = vmatprep.subr.bf16.mxu1 %v10894_v25  ;;  %7545 = vmatprep.subr.bf16.mxu0 %v10897_v27  ;;  %v10921_v41 = vld [vmem:[#allocation5 + $0x13f4] ss:$24 sps:$4 sm:$0xff]   ;;  %v10927_v25 = vld [vmem:[#allocation5 + $0x1424] ss:$24 sps:$4 sm:$0xff]   ;;  %v10922_v27 = vld [vmem:[#allocation5 + $0x1718] ss:$24 sps:$4 sm:$0xff]  }
 0x2ff   :  { %9161 = vmatmul.mubr.msk.bf16.gmra.mrb[28].mxu0 %vm12059_vm6, %v12471_v21  ;;  %9185 = vmatmul.mubr.msk.bf16.gmra.mrb[28].mxu1 %vm12059_vm6, %v12197_v51 }
 0x300   :  { %7400 = vmatpush1.bf16.msra.mxu1 %v10892_v10  ;;  %7546 = vmatpush1.bf16.msra.mxu0 %v10895_v44  ;;  %v10925_v10 = vld [vmem:[#allocation5 + $0x1420] ss:$24 sps:$4 sm:$0xff]   ;;  %v10930_v44 = vld [vmem:[#allocation5 + $0x174c] ss:$24 sps:$4 sm:$0xff]  }
 0x301   :  { %7401 = vmatprep.subr.bf16.mxu1 %v10900_v13  ;;  %7547 = vmatprep.subr.bf16.mxu0 %v10903_v52  ;;  %v10933_v13 = vld [vmem:[#allocation5 + $0x1454] ss:$24 sps:$4 sm:$0xff]   ;;  %v10928_v52 = vld [vmem:[#allocation5 + $0x1748] ss:$24 sps:$4 sm:$0xff]  }
 0x302   :  { %9188 = vmatprep.mubr.msk.bf16.mxu1 %vm12059_vm6, %v12205_v59  ;;  %9236 = vmatprep.mubr.msk.bf16.mxu0 %vm12059_vm6, %v12056_v9  ;;  %v10919_v9 = vld [vmem:[#allocation5 + $0x13f0] ss:$24 sps:$4 sm:$0xff]  }
 0x304   :  { %7402 = vmatpush1.bf16.msra.mxu1 %v10898_v0  ;;  %7548 = vmatpush1.bf16.msra.mxu0 %v10901_v35  ;;  %v10931_v0 = vld [vmem:[#allocation5 + $0x1450] ss:$24 sps:$4 sm:$0xff]   ;;  %v10936_v35 = vld [vmem:[#allocation5 + $0x177c] ss:$24 sps:$4 sm:$0xff]  }
 0x305   :  { %7403 = vmatprep.subr.bf16.mxu1 %v10906_v39  ;;  %7549 = vmatprep.subr.bf16.mxu0 %v10909_v36  ;;  %v10939_v39 = vld [vmem:[#allocation5 + $0x1484] ss:$24 sps:$4 sm:$0xff]   ;;  %v10934_v36 = vld [vmem:[#allocation5 + $0x1778] ss:$24 sps:$4 sm:$0xff]  }
 0x308   :  { %7404 = vmatpush1.bf16.msra.mxu1 %v10904_v15  ;;  %7550 = vmatpush1.bf16.msra.mxu0 %v10907_v20  ;;  %v10937_v15 = vld [vmem:[#allocation5 + $0x1480] ss:$24 sps:$4 sm:$0xff]   ;;  %v10942_v20 = vld [vmem:[#allocation5 + $0x17ac] ss:$24 sps:$4 sm:$0xff]  }
 0x309   :  { %7405 = vmatprep.subr.bf16.mxu1 %v10912_v47  ;;  %7551 = vmatprep.subr.bf16.mxu0 %v10915_v46  ;;  %v10945_v47 = vld [vmem:[#allocation5 + $0x14b4] ss:$24 sps:$4 sm:$0xff]   ;;  %v10940_v46 = vld [vmem:[#allocation5 + $0x17a8] ss:$24 sps:$4 sm:$0xff]  }
 0x30c   :  { %7406 = vmatpush1.bf16.msra.mxu1 %v10910_v2  ;;  %7552 = vmatpush1.bf16.msra.mxu0 %v10913_v8  ;;  %v10943_v2 = vld [vmem:[#allocation5 + $0x14b0] ss:$24 sps:$4 sm:$0xff]   ;;  %v10948_v8 = vld [vmem:[#allocation5 + $0x17dc] ss:$24 sps:$4 sm:$0xff]  }
 0x30d   :  { %7407 = vmatprep.subr.bf16.mxu1 %v10918_v54  ;;  %7553 = vmatprep.subr.bf16.mxu0 %v10921_v41  ;;  %v10951_v54 = vld [vmem:[#allocation5 + $0x14e4] ss:$24 sps:$4 sm:$0xff]   ;;  %v10946_v41 = vld [vmem:[#allocation5 + $0x17d8] ss:$24 sps:$4 sm:$0xff]  }
 0x310   :  { %7408 = vmatpush1.bf16.msra.mxu1 %v10916_v23  ;;  %7554 = vmatpush1.bf16.msra.mxu0 %v10919_v9  ;;  %v10949_v23 = vld [vmem:[#allocation5 + $0x14e0] ss:$24 sps:$4 sm:$0xff]   ;;  %v10954_v9 = vld [vmem:[#allocation5 + $0x180c] ss:$24 sps:$4 sm:$0xff]  }
 0x311   :  { %7409 = vmatprep.subr.bf16.mxu1 %v10924_v4  ;;  %7555 = vmatprep.subr.bf16.mxu0 %v10927_v25  ;;  %v10957_v4 = vld [vmem:[#allocation5 + $0x1514] ss:$24 sps:$4 sm:$0xff]   ;;  %v10952_v25 = vld [vmem:[#allocation5 + $0x1808] ss:$24 sps:$4 sm:$0xff]  }
 0x314   :  { %7410 = vmatpush1.bf16.msra.mxu1 %v10922_v27  ;;  %7556 = vmatpush1.bf16.msra.mxu0 %v10925_v10  ;;  %v10955_v27 = vld [vmem:[#allocation5 + $0x1510] ss:$24 sps:$4 sm:$0xff]   ;;  %v10960_v10 = vld [vmem:[#allocation5 + $0x183c] ss:$24 sps:$4 sm:$0xff]  }
 0x315   :  { %7411 = vmatprep.subr.bf16.mxu1 %v10930_v44  ;;  %7557 = vmatprep.subr.bf16.mxu0 %v10933_v13  ;;  %v10963_v44 = vld [vmem:[#allocation5 + $0x1544] ss:$24 sps:$4 sm:$0xff]   ;;  %v10958_v13 = vld [vmem:[#allocation5 + $0x1838] ss:$24 sps:$4 sm:$0xff]  }
 0x318   :  { %7412 = vmatpush1.bf16.msra.mxu1 %v10928_v52  ;;  %7558 = vmatpush1.bf16.msra.mxu0 %v10931_v0  ;;  %v10961_v52 = vld [vmem:[#allocation5 + $0x1540] ss:$24 sps:$4 sm:$0xff]   ;;  %v10966_v0 = vld [vmem:[#allocation5 + $0x186c] ss:$24 sps:$4 sm:$0xff]  }
 0x319   :  { %7413 = vmatprep.subr.bf16.mxu1 %v10936_v35  ;;  %7559 = vmatprep.subr.bf16.mxu0 %v10939_v39  ;;  %v10969_v35 = vld [vmem:[#allocation5 + $0x1574] ss:$24 sps:$4 sm:$0xff]   ;;  %v10964_v39 = vld [vmem:[#allocation5 + $0x1868] ss:$24 sps:$4 sm:$0xff]  }
 0x31c   :  { %7414 = vmatpush1.bf16.msra.mxu1 %v10934_v36  ;;  %7560 = vmatpush1.bf16.msra.mxu0 %v10937_v15  ;;  %v10972_v36 = vld [vmem:[#allocation5 + $0x189c] ss:$24 sps:$4 sm:$0xff]  }
 0x31d   :  { %7415 = vmatprep.subr.bf16.mxu1 %v10942_v20  ;;  %7561 = vmatprep.subr.bf16.mxu0 %v10945_v47  ;;  %v10975_v15 = vld [vmem:[#allocation5 + $0x15a4] ss:$24 sps:$4 sm:$0xff]   ;;  %v10970_v20 = vld [vmem:[#allocation5 + $0x1898] ss:$24 sps:$4 sm:$0xff]  }
 0x31e   :  { %v10978_v47 = vld [vmem:[#allocation5 + $0x18cc] ss:$24 sps:$4 sm:$0xff]  }
 0x320   :  { %7416 = vmatpush1.bf16.msra.mxu1 %v10940_v46  ;;  %7562 = vmatpush1.bf16.msra.mxu0 %v10943_v2  ;;  %v10981_v46 = vld [vmem:[#allocation5 + $0x15d4] ss:$24 sps:$4 sm:$0xff]   ;;  %v10976_v2 = vld [vmem:[#allocation5 + $0x18c8] ss:$24 sps:$4 sm:$0xff]  }
 0x321   :  { %7417 = vmatprep.subr.bf16.mxu1 %v10948_v8  ;;  %7563 = vmatprep.subr.bf16.mxu0 %v10951_v54  ;;  %v10984_v8 = vld [vmem:[#allocation5 + $0x18fc] ss:$24 sps:$4 sm:$0xff]  }
 0x322   :  { %v10987_v54 = vld [vmem:[#allocation5 + $0x1604] ss:$24 sps:$4 sm:$0xff]  }
 0x324   :  { %7418 = vmatpush1.bf16.msra.mxu1 %v10946_v41  ;;  %7564 = vmatpush1.bf16.msra.mxu0 %v10949_v23  ;;  %v10982_v41 = vld [vmem:[#allocation5 + $0x18f8] ss:$24 sps:$4 sm:$0xff]   ;;  %v10990_v23 = vld [vmem:[#allocation5 + $0x192c] ss:$24 sps:$4 sm:$0xff]  }
 0x325   :  { %7460 = vmatprep.subr.bf16.mxu1 %v10954_v9  ;;  %7606 = vmatprep.subr.bf16.mxu0 %v10957_v4  ;;  %v10993_v9 = vld [vmem:[#allocation5 + $0x1634] ss:$24 sps:$4 sm:$0xff]   ;;  %v10988_v4 = vld [vmem:[#allocation5 + $0x1928] ss:$24 sps:$4 sm:$0xff]  }
 0x327   :  { %9191 = vmatmul.mubr.msk.bf16.vlgmr.msra.gmra.mrb[16].mxu1 %vm12059_vm6, %v12001_v58  ;;  %9239 = vmatmul.mubr.msk.bf16.vlgmr.msra.gmra.mrb[0].mxu0 %vm12059_vm6, %v11949_v32  ;;  %v10967_v32 = vld [vmem:[#allocation5 + $0x1570] ss:$24 sps:$4 sm:$0xff]  }
 0x328   :  { %7461 = vmatpush1.bf16.msra.mxu1 %v10952_v25  ;;  %7607 = vmatpush1.bf16.msra.mxu0 %v10955_v27  ;;  %v10996_v25 = vld [vmem:[#allocation5 + $0x195c] ss:$24 sps:$4 sm:$0xff]  }
 0x329   :  { %7462 = vmatprep.subr.bf16.mxu1 %v10960_v10  ;;  %7608 = vmatprep.subr.bf16.mxu0 %v10963_v44  ;;  %v10999_v27 = vld [vmem:[#allocation5 + $0x1664] ss:$24 sps:$4 sm:$0xff]   ;;  %v10994_v10 = vld [vmem:[#allocation5 + $0x1958] ss:$24 sps:$4 sm:$0xff]  }
 0x32a   :  { %9194 = vmatprep.mubr.msk.bf16.mxu1 %vm12059_vm6, %v12232_v11  ;;  %9242 = vmatprep.mubr.msk.bf16.mxu0 %vm12059_vm6, %v12106_v22  ;;  %v10973_v22 = vld [vmem:[#allocation5 + $0x15a0] ss:$24 sps:$4 sm:$0xff]   ;;  %v11002_v44 = vld [vmem:[#allocation5 + $0x198c] ss:$24 sps:$4 sm:$0xff]  }
 0x32c   :  { %7463 = vmatpush1.bf16.msra.mxu1 %v10958_v13  ;;  %7609 = vmatpush1.bf16.msra.mxu0 %v10961_v52  ;;  %v11005_v13 = vld [vmem:[#allocation5 + $0x1694] ss:$24 sps:$4 sm:$0xff]   ;;  %v11000_v52 = vld [vmem:[#allocation5 + $0x1988] ss:$24 sps:$4 sm:$0xff]  }
 0x32d   :  { %7464 = vmatprep.subr.bf16.mxu1 %v10966_v0  ;;  %7610 = vmatprep.subr.bf16.mxu0 %v10969_v35  ;;  %v11008_v0 = vld [vmem:[#allocation5 + $0x19bc] ss:$24 sps:$4 sm:$0xff]  }
 0x32e   :  { %v11011_v35 = vld [vmem:[#allocation5 + $0x16c4] ss:$24 sps:$4 sm:$0xff]  }
 0x32f   :  { %9197 = vmatmul.mubr.msk.bf16.gmra.mrb[20].mxu1 %vm12059_vm6, %v12255_v17  ;;  %9245 = vmatmul.mubr.msk.bf16.gmra.mrb[4].mxu0 %vm12059_vm6, %v12129_v5  ;;  %v10979_v5 = vld [vmem:[#allocation5 + $0x15d0] ss:$24 sps:$4 sm:$0xff]  }
 0x330   :  { %7465 = vmatpush1.bf16.msra.mxu1 %v10964_v39  ;;  %7611 = vmatpush1.bf16.msra.mxu0 %v10967_v32  ;;  %v11006_v39 = vld [vmem:[#allocation5 + $0x19b8] ss:$24 sps:$4 sm:$0xff]  }
 0x331   :  { %7466 = vmatprep.subr.bf16.mxu1 %v10972_v36  ;;  %7612 = vmatprep.subr.bf16.mxu0 %v10975_v15  ;;  %v11009_v32 = vld [vmem:[#allocation5 + $0x16c0] ss:$24 sps:$4 sm:$0xff]   ;;  %v11014_v36 = vld [vmem:[#allocation5 + $0x19ec] ss:$24 sps:$4 sm:$0xff]  }
 0x332   :  { %9200 = vmatprep.mubr.msk.bf16.mxu1 %vm12059_vm6, %v12265_v14  ;;  %9248 = vmatprep.mubr.msk.bf16.mxu0 %vm12059_vm6, %v12139_v45  ;;  %v10985_v45 = vld [vmem:[#allocation5 + $0x1600] ss:$24 sps:$4 sm:$0xff]   ;;  %v11017_v15 = vld [vmem:[#allocation5 + $0x16f4] ss:$24 sps:$4 sm:$0xff]  }
 0x334   :  { %7467 = vmatpush1.bf16.msra.mxu1 %v10970_v20  ;;  %7613 = vmatpush1.bf16.msra.mxu0 %v10973_v22  ;;  %v11012_v20 = vld [vmem:[#allocation5 + $0x19e8] ss:$24 sps:$4 sm:$0xff]   ;;  %v11020_v22 = vld [vmem:[#allocation5 + $0x1a1c] ss:$24 sps:$4 sm:$0xff]  }
 0x335   :  { %7468 = vmatprep.subr.bf16.mxu1 %v10978_v47  ;;  %7614 = vmatprep.subr.bf16.mxu0 %v10981_v46  ;;  %v11023_v47 = vld [vmem:[#allocation5 + $0x1724] ss:$24 sps:$4 sm:$0xff]   ;;  %v11018_v46 = vld [vmem:[#allocation5 + $0x1a18] ss:$24 sps:$4 sm:$0xff]  }
 0x337   :  { %9203 = vmatmul.mubr.msk.bf16.gmra.mrb[24].mxu1 %vm12059_vm6, %v12285_v26  ;;  %9251 = vmatmul.mubr.msk.bf16.gmra.mrb[8].mxu0 %vm12059_vm6, %v12159_v53  ;;  %v10991_v53 = vld [vmem:[#allocation5 + $0x1630] ss:$24 sps:$4 sm:$0xff]  }
 0x338   :  { %7469 = vmatpush1.bf16.msra.mxu1 %v10976_v2  ;;  %7615 = vmatpush1.bf16.msra.mxu0 %v10979_v5  ;;  %v11021_v2 = vld [vmem:[#allocation5 + $0x1720] ss:$24 sps:$4 sm:$0xff]   ;;  %v11026_v5 = vld [vmem:[#allocation5 + $0x1a4c] ss:$24 sps:$4 sm:$0xff]  }
 0x339   :  { %7470 = vmatprep.subr.bf16.mxu1 %v10984_v8  ;;  %7616 = vmatprep.subr.bf16.mxu0 %v10987_v54  ;;  %v11029_v8 = vld [vmem:[#allocation5 + $0x1754] ss:$24 sps:$4 sm:$0xff]   ;;  %v11024_v54 = vld [vmem:[#allocation5 + $0x1a48] ss:$24 sps:$4 sm:$0xff]  }
 0x33a   :  { %9206 = vmatprep.mubr.msk.bf16.mxu1 %vm12059_vm6, %v12294_v19  ;;  %9254 = vmatprep.mubr.msk.bf16.mxu0 %vm12059_vm6, %v12168_v16  ;;  %v10997_v16 = vld [vmem:[#allocation5 + $0x1660] ss:$24 sps:$4 sm:$0xff]  }
 0x33c   :  { %7471 = vmatpush1.bf16.msra.mxu1 %v10982_v41  ;;  %7617 = vmatpush1.bf16.msra.mxu0 %v10985_v45  ;;  %v11027_v41 = vld [vmem:[#allocation5 + $0x1750] ss:$24 sps:$4 sm:$0xff]   ;;  %v11032_v45 = vld [vmem:[#allocation5 + $0x1a7c] ss:$24 sps:$4 sm:$0xff]  }
 0x33d   :  { %7472 = vmatprep.subr.bf16.mxu1 %v10990_v23  ;;  %7618 = vmatprep.subr.bf16.mxu0 %v10993_v9  ;;  %v11035_v23 = vld [vmem:[#allocation5 + $0x1784] ss:$24 sps:$4 sm:$0xff]   ;;  %v11030_v9 = vld [vmem:[#allocation5 + $0x1a78] ss:$24 sps:$4 sm:$0xff]  }
 0x33f   :  { %9209 = vmatmul.mubr.msk.bf16.gmra.mrb[28].mxu1 %vm12059_vm6, %v12327_v12  ;;  %9257 = vmatmul.mubr.msk.bf16.gmra.mrb[12].mxu0 %vm12059_vm6, %v12197_v51  ;;  %v11003_v51 = vld [vmem:[#allocation5 + $0x1690] ss:$24 sps:$4 sm:$0xff]  }
 0x340   :  { %7473 = vmatpush1.bf16.msra.mxu1 %v10988_v4  ;;  %7619 = vmatpush1.bf16.msra.mxu0 %v10991_v53  ;;  %v11033_v4 = vld [vmem:[#allocation5 + $0x1780] ss:$24 sps:$4 sm:$0xff]   ;;  %v11038_v53 = vld [vmem:[#allocation5 + $0x1aac] ss:$24 sps:$4 sm:$0xff]  }
 0x341   :  { %7474 = vmatprep.subr.bf16.mxu1 %v10996_v25  ;;  %7620 = vmatprep.subr.bf16.mxu0 %v10999_v27  ;;  %v11041_v25 = vld [vmem:[#allocation5 + $0x17b4] ss:$24 sps:$4 sm:$0xff]   ;;  %v11036_v27 = vld [vmem:[#allocation5 + $0x1aa8] ss:$24 sps:$4 sm:$0xff]  }
 0x342   :  { %9212 = vmatprep.mubr.msk.bf16.mxu1 %vm12059_vm6, %v12339_v34  ;;  %9260 = vmatprep.mubr.msk.bf16.mxu0 %vm12059_vm6, %v12205_v59  ;;  %v11015_v59 = vld [vmem:[#allocation5 + $0x16f0] ss:$24 sps:$4 sm:$0xff]  }
 0x344   :  { %7475 = vmatpush1.bf16.msra.mxu1 %v10994_v10  ;;  %7621 = vmatpush1.bf16.msra.mxu0 %v10997_v16  ;;  %v11039_v10 = vld [vmem:[#allocation5 + $0x17b0] ss:$24 sps:$4 sm:$0xff]   ;;  %v11044_v16 = vld [vmem:[#allocation5 + $0x1adc] ss:$24 sps:$4 sm:$0xff]  }
 0x345   :  { %7476 = vmatprep.subr.bf16.mxu1 %v11002_v44  ;;  %7622 = vmatprep.subr.bf16.mxu0 %v11005_v13  ;;  %v11047_v44 = vld [vmem:[#allocation5 + $0x17e4] ss:$24 sps:$4 sm:$0xff]   ;;  %v11042_v13 = vld [vmem:[#allocation5 + $0x1ad8] ss:$24 sps:$4 sm:$0xff]  }
 0x348   :  { %7477 = vmatpush1.bf16.msra.mxu1 %v11000_v52  ;;  %7623 = vmatpush1.bf16.msra.mxu0 %v11003_v51  ;;  %v11045_v52 = vld [vmem:[#allocation5 + $0x17e0] ss:$24 sps:$4 sm:$0xff]   ;;  %v11050_v51 = vld [vmem:[#allocation5 + $0x1814] ss:$24 sps:$4 sm:$0xff]  }
 0x349   :  { %7478 = vmatprep.subr.bf16.mxu1 %v11008_v0  ;;  %7624 = vmatprep.subr.bf16.mxu0 %v11011_v35  ;;  %v11048_v0 = vld [vmem:[#allocation5 + $0x1810] ss:$24 sps:$4 sm:$0xff]   ;;  %v11053_v35 = vld [vmem:[#allocation5 + $0x1844] ss:$24 sps:$4 sm:$0xff]  }
 0x34c   :  { %7479 = vmatpush1.bf16.msra.mxu1 %v11006_v39  ;;  %7625 = vmatpush1.bf16.msra.mxu0 %v11009_v32  ;;  %v11051_v39 = vld [vmem:[#allocation5 + $0x1840] ss:$24 sps:$4 sm:$0xff]   ;;  %v11056_v32 = vld [vmem:[#allocation5 + $0x1874] ss:$24 sps:$4 sm:$0xff]  }
 0x34d   :  { %7480 = vmatprep.subr.bf16.mxu1 %v11014_v36  ;;  %7626 = vmatprep.subr.bf16.mxu0 %v11017_v15  ;;  %v11054_v36 = vld [vmem:[#allocation5 + $0x1870] ss:$24 sps:$4 sm:$0xff]   ;;  %v11057_v15 = vld [vmem:[#allocation5 + $0x18a0] ss:$24 sps:$4 sm:$0xff]  }
 0x350   :  { %7481 = vmatpush1.bf16.msra.mxu1 %v11012_v20  ;;  %7627 = vmatpush1.bf16.msra.mxu0 %v11015_v59  ;;  %v11060_v20 = vld [vmem:[#allocation5 + $0x18d0] ss:$24 sps:$4 sm:$0xff]   ;;  %v11063_v59 = vld [vmem:[#allocation5 + $0x1900] ss:$24 sps:$4 sm:$0xff]  }
 0x351   :  { %7482 = vmatprep.subr.bf16.mxu1 %v11020_v22  ;;  %7628 = vmatprep.subr.bf16.mxu0 %v11023_v47  ;;  %v11066_v22 = vld [vmem:[#allocation5 + $0x1930] ss:$24 sps:$4 sm:$0xff]   ;;  %v11069_v47 = vld [vmem:[#allocation5 + $0x1960] ss:$24 sps:$4 sm:$0xff]  }
 0x354   :  { %7483 = vmatpush1.bf16.msra.mxu1 %v11018_v46  ;;  %7629 = vmatpush1.bf16.msra.mxu0 %v11021_v2  ;;  %v11072_v46 = vld [vmem:[#allocation5 + $0x1990] ss:$24 sps:$4 sm:$0xff]   ;;  %v11075_v2 = vld [vmem:[#allocation5 + $0x19c0] ss:$24 sps:$4 sm:$0xff]  }
 0x355   :  { %7484 = vmatprep.subr.bf16.mxu1 %v11026_v5  ;;  %7630 = vmatprep.subr.bf16.mxu0 %v11029_v8  ;;  %v11080_v5 = vld [vmem:[#allocation5 + $0x19f4] ss:$24 sps:$4 sm:$0xff]   ;;  %v11078_v8 = vld [vmem:[#allocation5 + $0x19f0] ss:$24 sps:$4 sm:$0xff]  }
 0x358   :  { %7485 = vmatpush1.bf16.msra.mxu1 %v11024_v54  ;;  %7631 = vmatpush1.bf16.msra.mxu0 %v11027_v41  ;;  %v11086_v54 = vld [vmem:[#allocation5 + $0x1a54] ss:$24 sps:$4 sm:$0xff]   ;;  %v11084_v41 = vld [vmem:[#allocation5 + $0x1a50] ss:$24 sps:$4 sm:$0xff]  }
 0x359   :  { %7486 = vmatprep.subr.bf16.mxu1 %v11032_v45  ;;  %7632 = vmatprep.subr.bf16.mxu0 %v11035_v23  ;;  %v11089_v45 = vld [vmem:[#allocation5 + $0x1a84] ss:$24 sps:$4 sm:$0xff]   ;;  %v11087_v23 = vld [vmem:[#allocation5 + $0x1a80] ss:$24 sps:$4 sm:$0xff]  }
 0x35c   :  { %7487 = vmatpush1.bf16.msra.mxu1 %v11030_v9  ;;  %7633 = vmatpush1.bf16.msra.mxu0 %v11033_v4  ;;  %v11092_v9 = vld [vmem:[#allocation5 + $0x1ab4] ss:$24 sps:$4 sm:$0xff]   ;;  %v11090_v4 = vld [vmem:[#allocation5 + $0x1ab0] ss:$24 sps:$4 sm:$0xff]  }
 0x35d   :  { %7488 = vmatprep.subr.bf16.mxu1 %v11038_v53  ;;  %7634 = vmatprep.subr.bf16.mxu0 %v11041_v25  ;;  %v11095_v53 = vld [vmem:[#allocation5 + $0x1ae4] ss:$24 sps:$4 sm:$0xff]   ;;  %v11093_v25 = vld [vmem:[#allocation5 + $0x1ae0] ss:$24 sps:$4 sm:$0xff]  }
 0x360   :  { %7489 = vmatpush1.bf16.msra.mxu1 %v11036_v27  ;;  %7635 = vmatpush1.bf16.msra.mxu0 %v11039_v10 }
 0x361   :  { %7490 = vmatprep.subr.bf16.mxu1 %v11044_v16  ;;  %7636 = vmatprep.subr.bf16.mxu0 %v11047_v44 }
 0x364   :  { %7491 = vmatpush1.bf16.msra.mxu1 %v11042_v13  ;;  %7637 = vmatpush1.bf16.msra.mxu0 %v11045_v52 }
 0x365   :  { %7679 = vmatprep.subr.bf16.mxu0 %v11050_v51  ;;  %9354 = vmatprep.subr.bf16.mxu1 %v11050_v51 }
 0x367   :  { %9215 = vmatmul.mubr.msk.bf16.vlgmr.msra.gmra.mrb[16].mxu1 %vm12059_vm6, %v12104_v18  ;;  %9263 = vmatmul.mubr.msk.bf16.vlgmr.msra.gmra.mrb[0].mxu0 %vm12059_vm6, %v12001_v58  ;;  %v11059_v58 = vld [vmem:[#allocation5 + $0x18a4] ss:$24 sps:$4 sm:$0xff]  }
 0x368   :  { %7680 = vmatpush1.bf16.msra.mxu0 %v11048_v0  ;;  %9370 = vmatpush1.bf16.msra.mxu1 %v11048_v0 }
 0x369   :  { %7681 = vmatprep.subr.bf16.mxu0 %v11053_v35  ;;  %9355 = vmatprep.subr.bf16.mxu1 %v11053_v35 }
 0x36a   :  { %9218 = vmatprep.mubr.msk.bf16.mxu1 %vm12059_vm6, %v12390_v56  ;;  %9266 = vmatprep.mubr.msk.bf16.mxu0 %vm12059_vm6, %v12232_v11  ;;  %v11062_v11 = vld [vmem:[#allocation5 + $0x18d4] ss:$24 sps:$4 sm:$0xff]  }
 0x36c   :  { %7682 = vmatpush1.bf16.msra.mxu0 %v11051_v39  ;;  %9371 = vmatpush1.bf16.msra.mxu1 %v11051_v39 }
 0x36d   :  { %7683 = vmatprep.subr.bf16.mxu0 %v11056_v32  ;;  %9356 = vmatprep.subr.bf16.mxu1 %v11056_v32 }
 0x36f   :  { %9221 = vmatmul.mubr.msk.bf16.gmra.mrb[20].mxu1 %vm12059_vm6, %v12413_v38  ;;  %9269 = vmatmul.mubr.msk.bf16.gmra.mrb[4].mxu0 %vm12059_vm6, %v12255_v17  ;;  %v11065_v17 = vld [vmem:[#allocation5 + $0x1904] ss:$24 sps:$4 sm:$0xff]  }
 0x370   :  { %7684 = vmatpush1.bf16.msra.mxu0 %v11054_v36  ;;  %9372 = vmatpush1.bf16.msra.mxu1 %v11054_v36 }
 0x371   :  { %7685 = vmatprep.subr.bf16.mxu0 %v11059_v58  ;;  %9357 = vmatprep.subr.bf16.mxu1 %v11059_v58  ;;  %v12874_v58 = vld [vmem:[#allocation13_spill] sm:$0xff] }
 0x372   :  { %9224 = vmatprep.mubr.msk.bf16.mxu1 %vm12059_vm6, %v12423_v28  ;;  %9272 = vmatprep.mubr.msk.bf16.mxu0 %vm12059_vm6, %v12265_v14  ;;  %v11068_v14 = vld [vmem:[#allocation5 + $0x1934] ss:$24 sps:$4 sm:$0xff]  }
 0x374   :  { %7686 = vmatpush1.bf16.msra.mxu0 %v11057_v15  ;;  %9373 = vmatpush1.bf16.msra.mxu1 %v11057_v15 }
 0x375   :  { %7687 = vmatprep.subr.bf16.mxu0 %v11062_v11  ;;  %9358 = vmatprep.subr.bf16.mxu1 %v11062_v11  ;;  %v12875_v11 = vld [vmem:[#allocation33_spill] sm:$0xff] }
 0x377   :  { %9227 = vmatmul.mubr.msk.bf16.gmra.mrb[24].mxu1 %vm12059_vm6, %v12443_v50  ;;  %9275 = vmatmul.mubr.msk.bf16.gmra.mrb[8].mxu0 %vm12059_vm6, %v12285_v26  ;;  %v11071_v26 = vld [vmem:[#allocation5 + $0x1964] ss:$24 sps:$4 sm:$0xff]  }
 0x378   :  { %7688 = vmatpush1.bf16.msra.mxu0 %v11060_v20  ;;  %9374 = vmatpush1.bf16.msra.mxu1 %v11060_v20 }
 0x379   :  { %7689 = vmatprep.subr.bf16.mxu0 %v11065_v17  ;;  %9359 = vmatprep.subr.bf16.mxu1 %v11065_v17 }
 0x37a   :  { %9230 = vmatprep.mubr.msk.bf16.mxu1 %vm12059_vm6, %v12452_v61  ;;  %9278 = vmatprep.mubr.msk.bf16.mxu0 %vm12059_vm6, %v12294_v19  ;;  %v11074_v19 = vld [vmem:[#allocation5 + $0x1994] ss:$24 sps:$4 sm:$0xff]  }
 0x37c   :  { %7690 = vmatpush1.bf16.msra.mxu0 %v11063_v59  ;;  %9375 = vmatpush1.bf16.msra.mxu1 %v11063_v59  ;;  %v12876_v59 = vld [vmem:[#allocation44_spill] sm:$0xff] }
 0x37d   :  { %7691 = vmatprep.subr.bf16.mxu0 %v11068_v14  ;;  %9360 = vmatprep.subr.bf16.mxu1 %v11068_v14 }
 0x37f   :  { %9233 = vmatmul.mubr.msk.bf16.gmra.mrb[28].mxu1 %vm12059_vm6, %v12471_v21  ;;  %9281 = vmatmul.mubr.msk.bf16.gmra.mrb[12].mxu0 %vm12059_vm6, %v12327_v12  ;;  %v11077_v12 = vld [vmem:[#allocation5 + $0x19c4] ss:$24 sps:$4 sm:$0xff]  }
 0x380   :  { %7692 = vmatpush1.bf16.msra.mxu0 %v11066_v22  ;;  %9376 = vmatpush1.bf16.msra.mxu1 %v11066_v22  ;;  %v12877_v22 = vld [vmem:[#allocation45_spill] sm:$0xff] }
 0x381   :  { %7693 = vmatprep.subr.bf16.mxu0 %v11071_v26  ;;  %9361 = vmatprep.subr.bf16.mxu1 %v11071_v26 }
 0x382   :  { %9284 = vmatprep.mubr.msk.bf16.mxu0 %vm12059_vm6, %v12339_v34  ;;  %9296 = vmatprep.mubr.msk.bf16.mxu1 %vm12059_vm6, %v12423_v28  ;;  %v11083_v34 = vld [vmem:[#allocation5 + $0x1a24] ss:$24 sps:$4 sm:$0xff]   ;;  %v11081_v28 = vld [vmem:[#allocation5 + $0x1a20] ss:$24 sps:$4 sm:$0xff]  }
 0x384   :  { %7694 = vmatpush1.bf16.msra.mxu0 %v11069_v47  ;;  %9377 = vmatpush1.bf16.msra.mxu1 %v11069_v47 }
 0x385   :  { %7695 = vmatprep.subr.bf16.mxu0 %v11074_v19  ;;  %9362 = vmatprep.subr.bf16.mxu1 %v11074_v19  ;;  %v12878_v19 = vld [vmem:[#allocation46_spill] sm:$0xff] }
 0x388   :  { %7696 = vmatpush1.bf16.msra.mxu0 %v11072_v46  ;;  %9378 = vmatpush1.bf16.msra.mxu1 %v11072_v46 }
 0x389   :  { %7697 = vmatprep.subr.bf16.mxu0 %v11077_v12  ;;  %9363 = vmatprep.subr.bf16.mxu1 %v11077_v12  ;;  %v12879_v12 = vld [vmem:[#allocation47_spill] sm:$0xff] }
 0x38c   :  { %7698 = vmatpush1.bf16.msra.mxu0 %v11075_v2  ;;  %9379 = vmatpush1.bf16.msra.mxu1 %v11075_v2 }
 0x38d   :  { %7699 = vmatprep.subr.bf16.mxu0 %v11080_v5  ;;  %9364 = vmatprep.subr.bf16.mxu1 %v11080_v5 }
 0x390   :  { %7700 = vmatpush1.bf16.msra.mxu0 %v11078_v8  ;;  %9380 = vmatpush1.bf16.msra.mxu1 %v11078_v8 }
 0x391   :  { %7701 = vmatprep.subr.bf16.mxu0 %v11083_v34  ;;  %9365 = vmatprep.subr.bf16.mxu1 %v11083_v34  ;;  %v12880_v34 = vld [vmem:[#allocation48_spill] sm:$0xff] }
 0x394   :  { %7702 = vmatpush1.bf16.msra.mxu0 %v11081_v28  ;;  %9381 = vmatpush1.bf16.msra.mxu1 %v11081_v28 }
 0x395   :  { %7703 = vmatprep.subr.bf16.mxu0 %v11086_v54  ;;  %9366 = vmatprep.subr.bf16.mxu1 %v11086_v54 }
 0x398   :  { %7704 = vmatpush1.bf16.msra.mxu0 %v11084_v41  ;;  %9382 = vmatpush1.bf16.msra.mxu1 %v11084_v41 }
 0x399   :  { %7705 = vmatprep.subr.bf16.mxu0 %v11089_v45  ;;  %9367 = vmatprep.subr.bf16.mxu1 %v11089_v45 }
 0x39c   :  { %7706 = vmatpush1.bf16.msra.mxu0 %v11087_v23  ;;  %9383 = vmatpush1.bf16.msra.mxu1 %v11087_v23 }
 0x39d   :  { %7707 = vmatprep.subr.bf16.mxu0 %v11092_v9  ;;  %9368 = vmatprep.subr.bf16.mxu1 %v11092_v9 }
 0x3a0   :  { %7708 = vmatpush1.bf16.msra.mxu0 %v11090_v4  ;;  %9384 = vmatpush1.bf16.msra.mxu1 %v11090_v4 }
 0x3a1   :  { %7709 = vmatprep.subr.bf16.mxu0 %v11095_v53  ;;  %9369 = vmatprep.subr.bf16.mxu1 %v11095_v53 }
 0x3a4   :  { %7710 = vmatpush1.bf16.msra.mxu0 %v11093_v25  ;;  %9385 = vmatpush1.bf16.msra.mxu1 %v11093_v25 }
 0x3a7   :  { %9287 = vmatmul.mubr.msk.bf16.vlgmr.msra.gmra.mrb[0].mxu0 %vm12059_vm6, %v12104_v18  ;;  %9299 = vmatmul.mubr.msk.bf16.vlgmr.msra.gmra.mrb[48].mxu1 %vm12059_vm6, %v12443_v50 }
 0x3a8   :  { %9290 = vmatprep.mubr.msk.bf16.mxu0 %vm12059_vm6, %v12390_v56  ;;  %9302 = vmatprep.mubr.msk.bf16.mxu1 %vm12059_vm6, %v12452_v61 }
 0x3af   :  { %9293 = vmatmul.mubr.msk.bf16.gmra.mrb[4].mxu0 %vm12059_vm6, %v12413_v38  ;;  %9305 = vmatmul.mubr.msk.bf16.gmra.mrb[52].mxu1 %vm12059_vm6, %v12471_v21 }
 0x3ba   :  { %v7275_v18 = vpop.f32.mrb[16].mxu0 }
 0x3bb   :  { %v9386_v27 = vadd.f32 %v7275_v18, %v11888_v62  ;;  %v7277_v50 = vpop.f32.mrb[17].mxu0 }
 0x3bc   :  { %v9387_v10 = vadd.f32 %v7277_v50, %v11894_v1  ;;  %v7279_v16 = vpop.f32.mrb[18].mxu0 }
 0x3bd   :  { %v9388_v56 = vadd.f32 %v7279_v16, %v11896_v63  ;;  %v7281_v44 = vpop.f32.mrb[19].mxu0 }
 0x3be   :  { %v9330_v13 = vpack.c.bf16 %v9387_v10, %v9386_v27  ;;  %v9389_v61 = vadd.f32 %v7281_v44, %v11898_v37 }
 0x3c0   :  { %7944 = vst [vmem:[#allocation7] sm:$0xff] %v9330_v13  ;;  %v9333_v52 = vpack.c.bf16 %v9389_v61, %v9388_v56 }
 0x3c2   :  { %7947 = vst [vmem:[#allocation7 + $0x18] sm:$0xff] %v9333_v52  ;;  %v7285_v38 = vpop.f32.mrb[20].mxu0 }
 0x3c3   :  { %v9390_v48 = vadd.f32 %v7285_v38, %v11904_v7  ;;  %v7287_v21 = vpop.f32.mrb[21].mxu0 }
 0x3c4   :  { %v9391_v51 = vadd.f32 %v7287_v21, %v11910_v40  ;;  %v7289_v62 = vpop.f32.mrb[22].mxu0 }
 0x3c5   :  { %v9392_v0 = vadd.f32 %v7289_v62, %v11912_v33  ;;  %v7291_v1 = vpop.f32.mrb[23].mxu0 }
 0x3c6   :  { %v9336_v35 = vpack.c.bf16 %v9391_v51, %v9390_v48  ;;  %v9393_v63 = vadd.f32 %v7291_v1, %v11914_v55 }
 0x3c8   :  { %7950 = vst [vmem:[#allocation7 + $0x30] sm:$0xff] %v9336_v35  ;;  %v9339_v39 = vpack.c.bf16 %v9393_v63, %v9392_v0 }
 0x3ca   :  { %7953 = vst [vmem:[#allocation7 + $0x48] sm:$0xff] %v9339_v39  ;;  %v7295_v37 = vpop.f32.mrb[24].mxu0 }
 0x3cb   :  { %v9394_v32 = vadd.f32 %v7295_v37, %v11916_v57  ;;  %v7297_v36 = vpop.f32.mrb[25].mxu0 }
 0x3cc   :  { %v9395_v15 = vadd.f32 %v7297_v36, %v12874_v58  ;;  %v7299_v7 = vpop.f32.mrb[26].mxu0 }
 0x3cd   :  { %v9396_v20 = vadd.f32 %v7299_v7, %v12875_v11  ;;  %v7301_v40 = vpop.f32.mrb[27].mxu0 }
 0x3ce   :  { %v9342_v17 = vpack.c.bf16 %v9395_v15, %v9394_v32  ;;  %v9397_v33 = vadd.f32 %v7301_v40, %v12876_v59 }
 0x3d0   :  { %7956 = vst [vmem:[#allocation7 + $0x60] sm:$0xff] %v9342_v17  ;;  %v9345_v14 = vpack.c.bf16 %v9397_v33, %v9396_v20 }
 0x3d2   :  { %7959 = vst [vmem:[#allocation7 + $0x78] sm:$0xff] %v9345_v14  ;;  %v7305_v55 = vpop.f32.mrb[28].mxu0 }
 0x3d3   :  { %v9398_v26 = vadd.f32 %v7305_v55, %v12877_v22  ;;  %v7307_v47 = vpop.f32.mrb[29].mxu0 }
 0x3d4   :  { %v9399_v46 = vadd.f32 %v7307_v47, %v12878_v19  ;;  %v7309_v57 = vpop.f32.mrb[30].mxu0 }
 0x3d5   :  { %v9400_v2 = vadd.f32 %v7309_v57, %v12879_v12  ;;  %v7311_v5 = vpop.f32.mrb[31].mxu0 }
 0x3d6   :  { %v9348_v8 = vpack.c.bf16 %v9399_v46, %v9398_v26  ;;  %v9401_v28 = vadd.f32 %v7311_v5, %v12880_v34  ;;  %v12882_v5 = vld [vmem:[#allocation12_spill] sm:$0xff] }
 0x3d8   :  { %7962 = vst [vmem:[#allocation7 + $0x90] sm:$0xff] %v9348_v8  ;;  %v9351_v54 = vpack.c.bf16 %v9401_v28, %v9400_v2 }
 0x3da   :  { %7965 = vst [vmem:[#allocation7 + $0xa8] sm:$0xff] %v9351_v54 }
 0x43a   :  { %v7494_v41 = vpop.f32.mrb[16].mxu1 }
 0x43b   :  { %v7496_v45 = vpop.f32.mrb[17].mxu1 }
 0x43c   :  { %v9331_v23 = vpack.c.bf16 %v7496_v45, %v7494_v41  ;;  %v7498_v9 = vpop.f32.mrb[18].mxu1  ;;  %v12883_v41 = vld [vmem:[#allocation16_spill] sm:$0xff] }
 0x43d   :  { %v7500_v4 = vpop.f32.mrb[19].mxu1 }
 0x43e   :  { %7945 = vst [vmem:[#allocation7 + $0x8] sm:$0xff] %v9331_v23  ;;  %v9334_v53 = vpack.c.bf16 %v7500_v4, %v7498_v9 }
 0x440   :  { %7948 = vst [vmem:[#allocation7 + $0x20] sm:$0xff] %v9334_v53  ;;  %v12884_v53 = vld [vmem:[#allocation38_spill] sm:$0xff] }
 0x442   :  { %v7504_v25 = vpop.f32.mrb[20].mxu1 }
 0x443   :  { %v7506_v18 = vpop.f32.mrb[21].mxu1 }
 0x444   :  { %v9337_v27 = vpack.c.bf16 %v7506_v18, %v7504_v25  ;;  %v7508_v50 = vpop.f32.mrb[22].mxu1 }
 0x445   :  { %v7510_v10 = vpop.f32.mrb[23].mxu1 }
 0x446   :  { %7951 = vst [vmem:[#allocation7 + $0x38] sm:$0xff] %v9337_v27  ;;  %v9340_v16 = vpack.c.bf16 %v7510_v10, %v7508_v50  ;;  %v12885_v10 = vld [vmem:[#allocation20_spill] sm:$0xff] }
 0x448   :  { %7954 = vst [vmem:[#allocation7 + $0x50] sm:$0xff] %v9340_v16 }
 0x44a   :  { %v7514_v56 = vpop.f32.mrb[24].mxu1  ;;  %v7660_v44 = vpop.f32.mrb[8].mxu0 }
 0x44b   :  { %v9410_v13 = vadd.f32 %v7660_v44, %v12361_v31  ;;  %v7516_v61 = vpop.f32.mrb[25].mxu1  ;;  %v7662_v52 = vpop.f32.mrb[9].mxu0 }
 0x44c   :  { %v9343_v38 = vpack.c.bf16 %v7516_v61, %v7514_v56  ;;  %v9412_v48 = vadd.f32 %v7662_v52, %v12363_v30  ;;  %v7518_v21 = vpop.f32.mrb[26].mxu1  ;;  %v7664_v51 = vpop.f32.mrb[10].mxu0 }
 0x44d   :  { %v9414_v62 = vadd.f32 %v7664_v51, %v12365_v42  ;;  %v7520_v0 = vpop.f32.mrb[27].mxu1  ;;  %v7666_v1 = vpop.f32.mrb[11].mxu0 }
 0x44e   :  { %7957 = vst [vmem:[#allocation7 + $0x68] sm:$0xff] %v9343_v38  ;;  %v9346_v35 = vpack.c.bf16 %v7520_v0, %v7518_v21  ;;  %v9416_v63 = vadd.f32 %v7666_v1, %v12367_v43  ;;  %v12886_v38 = vld [vmem:[#allocation39_spill] sm:$0xff] }
 0x450   :  { %7960 = vst [vmem:[#allocation7 + $0x80] sm:$0xff] %v9346_v35 }
 0x452   :  { %v7524_v39 = vpop.f32.mrb[28].mxu1  ;;  %v7670_v37 = vpop.f32.mrb[12].mxu0 }
 0x453   :  { %v9418_v31 = vadd.f32 %v7670_v37, %v12369_v60  ;;  %v7526_v32 = vpop.f32.mrb[29].mxu1  ;;  %v7672_v36 = vpop.f32.mrb[13].mxu0 }
 0x454   :  { %v9349_v58 = vpack.c.bf16 %v7526_v32, %v7524_v39  ;;  %v9420_v30 = vadd.f32 %v7672_v36, %v12371_v24  ;;  %v7528_v15 = vpop.f32.mrb[30].mxu1  ;;  %v7674_v7 = vpop.f32.mrb[14].mxu0 }
 0x455   :  { %v9422_v42 = vadd.f32 %v7674_v7, %v12373_v3  ;;  %v7530_v11 = vpop.f32.mrb[31].mxu1  ;;  %v7676_v20 = vpop.f32.mrb[15].mxu0  ;;  %v12881_v3 = vld [vmem:[#allocation11_spill] sm:$0xff] }
 0x456   :  { %7963 = vst [vmem:[#allocation7 + $0x98] sm:$0xff] %v9349_v58  ;;  %v9352_v40 = vpack.c.bf16 %v7530_v11, %v7528_v15  ;;  %v9424_v43 = vadd.f32 %v7676_v20, %v12375_v49 }
 0x458   :  { %7966 = vst [vmem:[#allocation7 + $0xb0] sm:$0xff] %v9352_v40 }
 0x47a   :  { %v7713_v17 = vpop.f32.mrb[0].mxu0  ;;  %v7733_v59 = vpop.f32.mrb[48].mxu1 }
 0x47b   :  { %v9402_v60 = vadd.f32 %v7713_v17, %v12317_v29  ;;  %v9411_v33 = vadd.f32 %v9410_v13, %v7733_v59  ;;  %v7715_v14 = vpop.f32.mrb[1].mxu0  ;;  %v7735_v55 = vpop.f32.mrb[49].mxu1 }
 0x47c   :  { %v9403_v24 = vadd.f32 %v7715_v14, %v12325_v6  ;;  %v9413_v22 = vadd.f32 %v9412_v48, %v7735_v55  ;;  %v7717_v26 = vpop.f32.mrb[2].mxu0  ;;  %v7737_v47 = vpop.f32.mrb[50].mxu1 }
 0x47d   :  { %v9404_v19 = vadd.f32 %v7717_v26, %v12881_v3  ;;  %v9415_v46 = vadd.f32 %v9414_v62, %v7737_v47  ;;  %v7719_v57 = vpop.f32.mrb[3].mxu0  ;;  %v7739_v12 = vpop.f32.mrb[51].mxu1 }
 0x47e   :  { %v9332_v2 = vpack.c.bf16 %v9403_v24, %v9402_v60  ;;  %v9344_v49 = vpack.c.bf16 %v9413_v22, %v9411_v33  ;;  %v9405_v8 = vadd.f32 %v7719_v57, %v12882_v5  ;;  %v9417_v34 = vadd.f32 %v9416_v63, %v7739_v12 }
 0x480   :  { %7946 = vst [vmem:[#allocation7 + $0x10] sm:$0xff] %v9332_v2  ;;  %7958 = vst [vmem:[#allocation7 + $0x70] sm:$0xff] %v9344_v49  ;;  %v9335_v29 = vpack.c.bf16 %v9405_v8, %v9404_v19  ;;  %v9347_v28 = vpack.c.bf16 %v9417_v34, %v9415_v46 }
 0x482   :  { %7949 = vst [vmem:[#allocation7 + $0x28] sm:$0xff] %v9335_v29  ;;  %7961 = vst [vmem:[#allocation7 + $0x88] sm:$0xff] %v9347_v28  ;;  %v7723_v6 = vpop.f32.mrb[4].mxu0  ;;  %v7743_v54 = vpop.f32.mrb[52].mxu1 }
 0x483   :  { %v9406_v45 = vadd.f32 %v7723_v6, %v12883_v41  ;;  %v9419_v23 = vadd.f32 %v9418_v31, %v7743_v54  ;;  %v7725_v9 = vpop.f32.mrb[5].mxu0  ;;  %v7745_v4 = vpop.f32.mrb[53].mxu1 }
 0x484   :  { %v9407_v25 = vadd.f32 %v7725_v9, %v12884_v53  ;;  %v9421_v18 = vadd.f32 %v9420_v30, %v7745_v4  ;;  %v7727_v27 = vpop.f32.mrb[6].mxu0  ;;  %v7747_v50 = vpop.f32.mrb[54].mxu1 }
 0x485   :  { %v9408_v16 = vadd.f32 %v7727_v27, %v12885_v10  ;;  %v9423_v56 = vadd.f32 %v9422_v42, %v7747_v50  ;;  %v7729_v44 = vpop.f32.mrb[7].mxu0  ;;  %v7749_v13 = vpop.f32.mrb[55].mxu1 }
 0x486   :  { %v9338_v61 = vpack.c.bf16 %v9407_v25, %v9406_v45  ;;  %v9350_v52 = vpack.c.bf16 %v9421_v18, %v9419_v23  ;;  %v9409_v48 = vadd.f32 %v7729_v44, %v12886_v38  ;;  %v9425_v21 = vadd.f32 %v9424_v43, %v7749_v13 }
 0x488   :  { %7952 = vst [vmem:[#allocation7 + $0x40] sm:$0xff] %v9338_v61  ;;  %7964 = vst [vmem:[#allocation7 + $0xa0] sm:$0xff] %v9350_v52  ;;  %v9341_v51 = vpack.c.bf16 %v9409_v48, %v9408_v16  ;;  %v9353_v62 = vpack.c.bf16 %v9425_v21, %v9423_v56 }
 0x48a   :  { %7955 = vst [vmem:[#allocation7 + $0x58] sm:$0xff] %v9341_v51  ;;  %7967 = vst [vmem:[#allocation7 + $0xb8] sm:$0xff] %v9353_v62 }
 0x48b   :  { %11170 = shalt.err (!%p11167_p6)
}
 0x48c   :  { %s11171_s10 = scalar_lea.hbm %s12648_s2, 3072 }
 0x48d   :  { %p11172_p7 = scmp.ne.s32.totalorder %s12648_s2, %s11171_s10  ;;  %p11175_p8 = scmp.lt.u32.totalorder %s11171_s10, %s12648_s2 }
 0x48f   :  { %p11177_p9 = pnand %p11175_p8, %p11172_p7 }
 0x491   :  { %11180 = shalt.err (!%p11177_p9)
}
 0x492   :  { %7979 = dma.vmem_to_hbm [thread:$0]  %s7974_s6, 3072, %s12648_s2, [#allocation4], %s11188_s19, %s11188_s19, %s11189_s20  }
 0x493   :  { %11185 = dma.done.wait [#allocation4], 3072  }
 0x494   :  { %11186 = vsyncadd [#allocation4], 4294964224 }
 0x495   :  { %7983 = vsyncpa [#allocation3], 1 }
 0x496   :  { %7984 = vsyncpa [#allocation6], 1 }
 0x497   :  { %7985 = vsyncpa [#allocation4], 1 }

// kernel: tpu_custom_call.1
= control target key start
LH: loop header
LB: loop body
LE: loop exit
PB: predicated region body
PF: predicated region fallthrough
CT: control target
= control target key end

     0   :  { %7 = vsyncpa [#allocation3], 0  ;;  %s12646_s0 = inlined_call_operand.hbm [shape: bf16[4,16,768], index: 0, kind: input, shape index: {}]   ;;  %s12647_s1 = inlined_call_operand.hbm [shape: bf16[2304,768], index: 1, kind: input, shape index: {}]   ;;  %s12648_s2 = inlined_call_operand.hbm [shape: bf16[4,16,768], index: 2, kind: output, shape index: {}]  }
   0x1   :  { %8 = vsyncpa [#allocation6], 0 }
   0x2   :  { %9 = vsyncpa [#allocation4], 0  ;;  %s11187_s9 = smov [#allocation2]   ;;  %s11115_s13 = scalar_lea.hbm %s12646_s0, 3072 }
   0x3   :  { %s15_s10 = sshll.u32 %s11187_s9, 4  ;;  %p11116_p0 = scmp.ne.s32.totalorder %s12646_s0, %s11115_s13  ;;  %s16_s10 = int_to_ptr.vmem [resolvable:$true] %s15_s10 }
   0x4   :  { %p11119_p1 = scmp.lt.u32.totalorder %s11115_s13, %s12646_s0 }
   0x6   :  { %p11121_p2 = pnand %p11119_p1, %p11116_p0 }
   0x8   :  { %11124 = shalt.err (!%p11121_p2)
}
   0x9   :  { %s11125_s18 = scalar_lea.vmem %s16_s10, 3072  ;;  %p11130_p4 = scmp.lt.s32.totalorder %s16_s10, %s16_s10 }
   0xa   :  { %p11126_p3 = scmp.ne.s32.totalorder %s16_s10, %s11125_s18  ;;  %p11131_p5 = scmp.lt.s32.totalorder %s11125_s18, %s11125_s18 }
   0xc   :  { %p11132_p6 = por %p11131_p5, %p11130_p4 }
   0xe   :  { %p11133_p7 = pnand %p11132_p6, %p11126_p3 }
  0x10   :  { %11136 = shalt.err (!%p11133_p7)
}
  0x11   :  { %s11188_s19 = smov 384   ;;  %s11189_s20 = smov 24  }
  0x12   :  { %21 = dma.hbm_to_vmem [thread:$0]  %s12646_s0, 3072, %s16_s10, [#allocation3], %s11188_s19, %s11188_s19, %s11189_s20  }
  0x13   :  { %s11190_s23 = smov [#allocation5]   ;;  %s11137_s27 = scalar_lea.hbm %s12647_s1, 110592 }
  0x14   :  { %s27_s24 = sshll.u32 %s11190_s23, 4  ;;  %p11138_p8 = scmp.ne.s32.totalorder %s12647_s1, %s11137_s27  ;;  %s28_s24 = int_to_ptr.vmem [resolvable:$true] %s27_s24 }
  0x15   :  { %p11141_p9 = scmp.lt.u32.totalorder %s11137_s27, %s12647_s1 }
  0x17   :  { %p11143_p10 = pnand %p11141_p9, %p11138_p8 }
  0x19   :  { %11146 = shalt.err (!%p11143_p10)
}
  0x1a   :  { %s11147_s4 = scalar_lea.vmem %s28_s24, 110592  ;;  %p11152_p12 = scmp.lt.s32.totalorder %s28_s24, %s28_s24 }
  0x1b   :  { %p11148_p11 = scmp.ne.s32.totalorder %s28_s24, %s11147_s4  ;;  %p11153_p13 = scmp.lt.s32.totalorder %s11147_s4, %s11147_s4 }
  0x1d   :  { %p11154_p0 = por %p11153_p13, %p11152_p12 }
  0x1f   :  { %p11155_p1 = pnand %p11154_p0, %p11148_p11 }
  0x21   :  { %11158 = shalt.err (!%p11155_p1)
}
  0x22   :  { %33 = dma.hbm_to_vmem [thread:$0]  %s12647_s1, 110592, %s28_s24, [#allocation6], %s11188_s19, %s11188_s19, %s11189_s20  }
  0x23   :  { %11181 = dma.done.wait [#allocation3], 3072  }
  0x24   :  { %11182 = vsyncadd [#allocation3], 4294964224 }
  0x25   :  { %11183 = dma.done.wait [#allocation6], 110592  }
  0x26   :  { %11184 = vsyncadd [#allocation6], 4294856704  ;;  %v9776_v0 = vld [vmem:[#allocation5 + $0x904] ss:$24 sps:$4 sm:$0xff]   ;;  %v9778_v1 = vld [vmem:[#allocation5 + $0xc14] ss:$24 sps:$4 sm:$0xff]  }
  0x27   :  { %2432 = vmatprep.subr.bf16.mxu1 %v9776_v0  ;;  %v9780_v2 = vld [vmem:[#allocation5 + $0x900] ss:$24 sps:$4 sm:$0xff]   ;;  %v9781_v3 = vld [vmem:[#allocation5 + $0xc10] ss:$24 sps:$4 sm:$0xff]   ;;  %2943 = vmatprep.subr.bf16.mxu0 %v9778_v1  ;;  %v9782_v4 = vld [vmem:[#allocation5 + $0x934] ss:$24 sps:$4 sm:$0xff]  }
  0x28   :  { %2433 = vmatpush1.bf16.msra.mxu1 %v9780_v2  ;;  %2944 = vmatpush1.bf16.msra.mxu0 %v9781_v3  ;;  %v9784_v5 = vld [vmem:[#allocation5 + $0xc44] ss:$24 sps:$4 sm:$0xff]   ;;  %v9786_v6 = vld [vmem:[#allocation5 + $0x930] ss:$24 sps:$4 sm:$0xff]   ;;  %v9787_v7 = vld [vmem:[#allocation5 + $0xc40] ss:$24 sps:$4 sm:$0xff]  }
  0x29   :  { %2434 = vmatprep.subr.bf16.mxu1 %v9782_v4  ;;  %2945 = vmatprep.subr.bf16.mxu0 %v9784_v5  ;;  %v9788_v8 = vld [vmem:[#allocation5 + $0x964] ss:$24 sps:$4 sm:$0xff]   ;;  %v9790_v9 = vld [vmem:[#allocation5 + $0xc74] ss:$24 sps:$4 sm:$0xff]   ;;  %v9792_v10 = vld [vmem:[#allocation5 + $0x960] ss:$24 sps:$4 sm:$0xff]  }
  0x2a   :  { %v9793_v11 = vld [vmem:[#allocation5 + $0xc70] ss:$24 sps:$4 sm:$0xff]   ;;  %v9794_v12 = vld [vmem:[#allocation5 + $0x994] ss:$24 sps:$4 sm:$0xff]   ;;  %v9796_v13 = vld [vmem:[#allocation5 + $0xca4] ss:$24 sps:$4 sm:$0xff]  }
  0x2b   :  { %v9798_v14 = vld [vmem:[#allocation5 + $0x990] ss:$24 sps:$4 sm:$0xff]   ;;  %v9799_v15 = vld [vmem:[#allocation5 + $0xca0] ss:$24 sps:$4 sm:$0xff]   ;;  %v9800_v16 = vld [vmem:[#allocation5 + $0x9c4] ss:$24 sps:$4 sm:$0xff]  }
  0x2c   :  { %2435 = vmatpush1.bf16.msra.mxu1 %v9786_v6  ;;  %2946 = vmatpush1.bf16.msra.mxu0 %v9787_v7  ;;  %v9802_v17 = vld [vmem:[#allocation5 + $0xcd4] ss:$24 sps:$4 sm:$0xff]   ;;  %v9804_v18 = vld [vmem:[#allocation5 + $0x9c0] ss:$24 sps:$4 sm:$0xff]   ;;  %v9805_v19 = vld [vmem:[#allocation5 + $0xcd0] ss:$24 sps:$4 sm:$0xff]  }
  0x2d   :  { %2436 = vmatprep.subr.bf16.mxu1 %v9788_v8  ;;  %2947 = vmatprep.subr.bf16.mxu0 %v9790_v9  ;;  %v9806_v20 = vld [vmem:[#allocation5 + $0x9f4] ss:$24 sps:$4 sm:$0xff]   ;;  %v9808_v21 = vld [vmem:[#allocation5 + $0xd04] ss:$24 sps:$4 sm:$0xff]   ;;  %v9810_v22 = vld [vmem:[#allocation5 + $0x9f0] ss:$24 sps:$4 sm:$0xff]   ;;  %v112_v8 = vlaneseq }
  0x2e   :  { %v9811_v23 = vld [vmem:[#allocation5 + $0xd00] ss:$24 sps:$4 sm:$0xff]   ;;  %v9812_v24 = vld [vmem:[#allocation5 + $0xa24] ss:$24 sps:$4 sm:$0xff]   ;;  %v9814_v25 = vld [vmem:[#allocation5 + $0xd34] ss:$24 sps:$4 sm:$0xff]  }
  0x2f   :  { %v9816_v26 = vld [vmem:[#allocation5 + $0xa20] ss:$24 sps:$4 sm:$0xff]   ;;  %v9817_v27 = vld [vmem:[#allocation5 + $0xd30] ss:$24 sps:$4 sm:$0xff]   ;;  %v9818_v28 = vld [vmem:[#allocation5 + $0xa54] ss:$24 sps:$4 sm:$0xff]  }
  0x30   :  { %2437 = vmatpush1.bf16.msra.mxu1 %v9792_v10  ;;  %2948 = vmatpush1.bf16.msra.mxu0 %v9793_v11  ;;  %v9820_v29 = vld [vmem:[#allocation5 + $0xd64] ss:$24 sps:$4 sm:$0xff]   ;;  %v9822_v30 = vld [vmem:[#allocation5 + $0xa50] ss:$24 sps:$4 sm:$0xff]   ;;  %v9823_v31 = vld [vmem:[#allocation5 + $0xd60] ss:$24 sps:$4 sm:$0xff]  }
  0x31   :  { %2438 = vmatprep.subr.bf16.mxu1 %v9794_v12  ;;  %2949 = vmatprep.subr.bf16.mxu0 %v9796_v13  ;;  %v9824_v32 = vld [vmem:[#allocation5 + $0xa84] ss:$24 sps:$4 sm:$0xff]   ;;  %v9826_v33 = vld [vmem:[#allocation5 + $0xd94] ss:$24 sps:$4 sm:$0xff]   ;;  %v9828_v34 = vld [vmem:[#allocation5 + $0xa80] ss:$24 sps:$4 sm:$0xff]  }
  0x32   :  { %v9829_v35 = vld [vmem:[#allocation5 + $0xd90] ss:$24 sps:$4 sm:$0xff]   ;;  %v9830_v36 = vld [vmem:[#allocation5 + $0xab4] ss:$24 sps:$4 sm:$0xff]   ;;  %v9832_v37 = vld [vmem:[#allocation5 + $0xdc4] ss:$24 sps:$4 sm:$0xff]  }
  0x33   :  { %v9834_v38 = vld [vmem:[#allocation5 + $0xab0] ss:$24 sps:$4 sm:$0xff]   ;;  %v9835_v39 = vld [vmem:[#allocation5 + $0xdc0] ss:$24 sps:$4 sm:$0xff]   ;;  %v9836_v40 = vld [vmem:[#allocation5 + $0xae4] ss:$24 sps:$4 sm:$0xff]  }
  0x34   :  { %2439 = vmatpush1.bf16.msra.mxu1 %v9798_v14  ;;  %2950 = vmatpush1.bf16.msra.mxu0 %v9799_v15  ;;  %v9838_v41 = vld [vmem:[#allocation5 + $0xdf4] ss:$24 sps:$4 sm:$0xff]   ;;  %v9840_v42 = vld [vmem:[#allocation5 + $0xae0] ss:$24 sps:$4 sm:$0xff]   ;;  %v9841_v43 = vld [vmem:[#allocation5 + $0xdf0] ss:$24 sps:$4 sm:$0xff]  }
  0x35   :  { %2440 = vmatprep.subr.bf16.mxu1 %v9800_v16  ;;  %2951 = vmatprep.subr.bf16.mxu0 %v9802_v17  ;;  %v9842_v44 = vld [vmem:[#allocation5 + $0xb14] ss:$24 sps:$4 sm:$0xff]   ;;  %v9844_v45 = vld [vmem:[#allocation5 + $0xe24] ss:$24 sps:$4 sm:$0xff]   ;;  %v9846_v46 = vld [vmem:[#allocation5 + $0xb10] ss:$24 sps:$4 sm:$0xff]  }
  0x36   :  { %v9847_v47 = vld [vmem:[#allocation5 + $0xe20] ss:$24 sps:$4 sm:$0xff]   ;;  %v9848_v50 = vld [vmem:[#allocation5 + $0xb44] ss:$24 sps:$4 sm:$0xff]   ;;  %v9850_v51 = vld [vmem:[#allocation5 + $0xe54] ss:$24 sps:$4 sm:$0xff]  }
  0x37   :  { %v11238_v48 = vld [vmem:[#allocation2] sm:$0xff]  ;;  %v11240_v49 = vld [vmem:[#allocation2 + $0x18] sm:$0xff]  ;;  %v11246_v53 = vld [vmem:[#allocation2 + $0x8] sm:$0xff]  ;;  %v11266_v13 = vshrl.u32 %v112_v8, 7  ;;  %vm11191_vm2 = vmmov 1   ;;  %s11192_s1 = smov [#allocation7]  }
  0x38   :  { %2441 = vmatpush1.bf16.msra.mxu1 %v9804_v18  ;;  %2952 = vmatpush1.bf16.msra.mxu0 %v9805_v19  ;;  %12724 = vst [vmem:[#allocation11_spill] sm:$0xff] %v11238_v48  ;;  %12725 = vst [vmem:[#allocation12_spill] sm:$0xff] %v11240_v49  ;;  %v11244_v52 = vcombine.high %v11238_v48, %v11240_v49  ;;  %v11248_v54 = vld [vmem:[#allocation2 + $0x20] sm:$0xff]  ;;  %v9853_v57 = vld [vmem:[#allocation5 + $0xe50] ss:$24 sps:$4 sm:$0xff]   ;;  %v12659_v4 = vunpack.c.l.bf16 %v11238_v48  ;;  %v12658_v5 = vunpack.c.l.bf16 %v11240_v49  ;;  %s7973_s6 = sshll.u32 %s11192_s1, 4  ;;  %s7974_s6 = int_to_ptr.vmem [resolvable:$true] %s7973_s6 }
  0x39   :  { %2442 = vmatprep.subr.bf16.mxu1 %v9806_v20  ;;  %2953 = vmatprep.subr.bf16.mxu0 %v9808_v21  ;;  %12727 = vst [vmem:[#allocation14_spill] sm:$0xff] %v11246_v53  ;;  %12728 = vst [vmem:[#allocation15_spill] sm:$0xff] %v11248_v54  ;;  %v9852_v55 = vld [vmem:[#allocation5 + $0xb40] ss:$24 sps:$4 sm:$0xff]   ;;  %v11253_v56 = vcombine.high %v11246_v53, %v11248_v54  ;;  %v9854_v58 = vld [vmem:[#allocation5 + $0xb74] ss:$24 sps:$4 sm:$0xff]   ;;  %v11270_v15 = vcombine.low %v11238_v48, %v11240_v49  ;;  %p11164_p3 = scmp.lt.s32.totalorder %s7974_s6, %s7974_s6 }
  0x3a   :  { %12726 = vst [vmem:[#allocation13_spill] sm:$0xff] %v11244_v52  ;;  %2464 = vmatprep.mubr.bf16.mxu1 %v11244_v52  ;;  %v9856_v59 = vld [vmem:[#allocation5 + $0xe84] ss:$24 sps:$4 sm:$0xff]   ;;  %v9858_v60 = vld [vmem:[#allocation5 + $0xb70] ss:$24 sps:$4 sm:$0xff]   ;;  %v11260_v10 = vrot.slane %v12659_v4, 7  ;;  %v11274_v16 = vcombine.low %v11246_v53, %v11248_v54 }
  0x3b   :  { %2975 = vmatprep.mubr.bf16.mxu0 %v11253_v56  ;;  %v9859_v61 = vld [vmem:[#allocation5 + $0xe80] ss:$24 sps:$4 sm:$0xff]   ;;  %v9860_v62 = vld [vmem:[#allocation5 + $0xba4] ss:$24 sps:$4 sm:$0xff]   ;;  %v9862_v63 = vld [vmem:[#allocation5 + $0xeb4] ss:$24 sps:$4 sm:$0xff]  }
  0x3c   :  { %2443 = vmatpush1.bf16.msra.mxu1 %v9810_v22  ;;  %2954 = vmatpush1.bf16.msra.mxu0 %v9811_v23  ;;  %v9864_v0 = vld [vmem:[#allocation5 + $0xba0] ss:$24 sps:$4 sm:$0xff]   ;;  %v9865_v1 = vld [vmem:[#allocation5 + $0xeb0] ss:$24 sps:$4 sm:$0xff]   ;;  %v9866_v2 = vld [vmem:[#allocation5 + $0xbd4] ss:$24 sps:$4 sm:$0xff]  }
  0x3d   :  { %2444 = vmatprep.subr.bf16.mxu1 %v9812_v24  ;;  %2955 = vmatprep.subr.bf16.mxu0 %v9814_v25  ;;  %v9868_v3 = vld [vmem:[#allocation5 + $0xee4] ss:$24 sps:$4 sm:$0xff]   ;;  %v9870_v6 = vld [vmem:[#allocation5 + $0xbd0] ss:$24 sps:$4 sm:$0xff]   ;;  %v9871_v7 = vld [vmem:[#allocation5 + $0xee0] ss:$24 sps:$4 sm:$0xff]  }
  0x3e   :  { %v9875_v9 = vld [vmem:[#allocation5 + $0xc04] ss:$24 sps:$4 sm:$0xff]   ;;  %v11264_v11 = vrot.slane %v12658_v5, 7  ;;  %v9879_v12 = vld [vmem:[#allocation5 + $0xf14] ss:$24 sps:$4 sm:$0xff]   ;;  %vm451_vm0 = vcmp.lt.s32.totalorder %v11266_v13, 1 }
  0x3f   :  { %v9873_v14 = vld [vmem:[#allocation5 + $0xc00] ss:$24 sps:$4 sm:$0xff]   ;;  %v9877_v17 = vld [vmem:[#allocation5 + $0xf10] ss:$24 sps:$4 sm:$0xff]   ;;  %v9884_v18 = vld [vmem:[#allocation5 + $0xc34] ss:$24 sps:$4 sm:$0xff]  }
  0x40   :  { %2445 = vmatpush1.bf16.msra.mxu1 %v9816_v26  ;;  %2956 = vmatpush1.bf16.msra.mxu0 %v9817_v27  ;;  %v9887_v19 = vld [vmem:[#allocation5 + $0xf44] ss:$24 sps:$4 sm:$0xff]   ;;  %v11281_v20 = vsel %vm451_vm0, %v11260_v10, %v11264_v11  ;;  %v9882_v21 = vld [vmem:[#allocation5 + $0xc30] ss:$24 sps:$4 sm:$0xff]   ;;  %v9885_v22 = vld [vmem:[#allocation5 + $0xf40] ss:$24 sps:$4 sm:$0xff]  }
  0x41   :  { %2446 = vmatprep.subr.bf16.mxu1 %v9818_v28  ;;  %2957 = vmatprep.subr.bf16.mxu0 %v9820_v29  ;;  %v9890_v23 = vld [vmem:[#allocation5 + $0xc64] ss:$24 sps:$4 sm:$0xff]   ;;  %v9893_v24 = vld [vmem:[#allocation5 + $0xf74] ss:$24 sps:$4 sm:$0xff]   ;;  %v9888_v25 = vld [vmem:[#allocation5 + $0xc60] ss:$24 sps:$4 sm:$0xff]  }
  0x42   :  { %v9891_v26 = vld [vmem:[#allocation5 + $0xf70] ss:$24 sps:$4 sm:$0xff]   ;;  %v9896_v29 = vld [vmem:[#allocation5 + $0xc94] ss:$24 sps:$4 sm:$0xff]   ;;  %vm5522_vm4 = vcmp.lt.s32.totalorder %v11266_v13, 7  ;;  %s11159_s7 = scalar_lea.vmem %s7974_s6, 3072 }
  0x43   :  { %v11285_v27 = vld [vmem:[#allocation2 + $0x30] sm:$0xff]  ;;  %v11287_v28 = vld [vmem:[#allocation2 + $0x48] sm:$0xff]  ;;  %p11160_p2 = scmp.ne.s32.totalorder %s7974_s6, %s11159_s7  ;;  %p11165_p4 = scmp.lt.s32.totalorder %s11159_s7, %s11159_s7 }
  0x44   :  { %2447 = vmatpush1.bf16.msra.mxu1 %v9822_v30  ;;  %2958 = vmatpush1.bf16.msra.mxu0 %v9823_v31  ;;  %12729 = vst [vmem:[#allocation16_spill] sm:$0xff] %v11285_v27  ;;  %12730 = vst [vmem:[#allocation17_spill] sm:$0xff] %v11287_v28  ;;  %v9899_v30 = vld [vmem:[#allocation5 + $0xfa4] ss:$24 sps:$4 sm:$0xff]   ;;  %v11291_v31 = vcombine.high %v11285_v27, %v11287_v28  ;;  %v10028_v5 = vld [vmem:[#allocation5 + $0x1050] ss:$24 sps:$4 sm:$0xff]  }
  0x45   :  { %2448 = vmatprep.subr.bf16.mxu1 %v9824_v32  ;;  %2959 = vmatprep.subr.bf16.mxu0 %v9826_v33  ;;  %v47_v32 = vld [vmem:[#allocation2 + $0x38] sm:$0xff]  ;;  %v50_v33 = vld [vmem:[#allocation2 + $0x50] sm:$0xff]  ;;  %p11166_p5 = por %p11165_p4, %p11164_p3 }
  0x46   :  { %v10031_v4 = vld [vmem:[#allocation5 + $0x150] ss:$24 sps:$4 sm:$0xff]  }
  0x47   :  { %p11167_p6 = pnand %p11166_p5, %p11160_p2 }
  0x48   :  { %2449 = vmatpush1.bf16.msra.mxu1 %v9828_v34  ;;  %2960 = vmatpush1.bf16.msra.mxu0 %v9829_v35  ;;  %v11295_v34 = vcombine.low %v11285_v27, %v11287_v28  ;;  %v9894_v35 = vld [vmem:[#allocation5 + $0xc90] ss:$24 sps:$4 sm:$0xff]  }
  0x49   :  { %2450 = vmatprep.subr.bf16.mxu1 %v9830_v36  ;;  %2961 = vmatprep.subr.bf16.mxu0 %v9832_v37  ;;  %v11298_v36 = vcombine.high %v47_v32, %v50_v33  ;;  %v11300_v37 = vcombine.low %v47_v32, %v50_v33  ;;  %v9927_v32 = vld [vmem:[#allocation5 + $0x1090] ss:$24 sps:$4 sm:$0xff]   ;;  %v9932_v33 = vld [vmem:[#allocation5 + $0xdb4] ss:$24 sps:$4 sm:$0xff]  }
  0x4c   :  { %2451 = vmatpush1.bf16.msra.mxu1 %v9834_v38  ;;  %2962 = vmatpush1.bf16.msra.mxu0 %v9835_v39  ;;  %v9897_v38 = vld [vmem:[#allocation5 + $0xfa0] ss:$24 sps:$4 sm:$0xff]   ;;  %v9902_v39 = vld [vmem:[#allocation5 + $0xcc4] ss:$24 sps:$4 sm:$0xff]  }
  0x4d   :  { %2452 = vmatprep.subr.bf16.mxu1 %v9836_v40  ;;  %2963 = vmatprep.subr.bf16.mxu0 %v9838_v41  ;;  %v9905_v40 = vld [vmem:[#allocation5 + $0xfd4] ss:$24 sps:$4 sm:$0xff]   ;;  %v11302_v41 = vld [vmem:[#allocation2 + $0x60] sm:$0xff] }
  0x4e   :  { %12731 = vst [vmem:[#allocation18_spill] sm:$0xff] %v11302_v41 }
  0x50   :  { %2453 = vmatpush1.bf16.msra.mxu1 %v9840_v42  ;;  %2964 = vmatpush1.bf16.msra.mxu0 %v9841_v43  ;;  %v11306_v42 = vld [vmem:[#allocation2 + $0x78] sm:$0xff] }
  0x51   :  { %2454 = vmatprep.subr.bf16.mxu1 %v9842_v44  ;;  %2965 = vmatprep.subr.bf16.mxu0 %v9844_v45  ;;  %12732 = vst [vmem:[#allocation19_spill] sm:$0xff] %v11306_v42  ;;  %v9900_v43 = vld [vmem:[#allocation5 + $0xcc0] ss:$24 sps:$4 sm:$0xff]   ;;  %v9903_v44 = vld [vmem:[#allocation5 + $0xfd0] ss:$24 sps:$4 sm:$0xff]   ;;  %v11311_v45 = vcombine.high %v11302_v41, %v11306_v42 }
  0x53   :  { %12733 = vst [vmem:[#allocation20_spill] sm:$0xff] %v11311_v45 }
  0x54   :  { %2455 = vmatpush1.bf16.msra.mxu1 %v9846_v46  ;;  %2966 = vmatpush1.bf16.msra.mxu0 %v9847_v47  ;;  %v53_v46 = vld [vmem:[#allocation2 + $0x68] sm:$0xff]  ;;  %v56_v47 = vld [vmem:[#allocation2 + $0x80] sm:$0xff] }
  0x55   :  { %2456 = vmatprep.subr.bf16.mxu1 %v9848_v50  ;;  %2967 = vmatprep.subr.bf16.mxu0 %v9850_v51  ;;  %v9908_v50 = vld [vmem:[#allocation5 + $0xcf4] ss:$24 sps:$4 sm:$0xff]   ;;  %v9911_v51 = vld [vmem:[#allocation5 + $0x1004] ss:$24 sps:$4 sm:$0xff]  }
  0x58   :  { %2457 = vmatpush1.bf16.msra.mxu1 %v9852_v55  ;;  %2968 = vmatpush1.bf16.msra.mxu0 %v9853_v57  ;;  %v11313_v55 = vcombine.high %v53_v46, %v56_v47  ;;  %v9906_v57 = vld [vmem:[#allocation5 + $0xcf0] ss:$24 sps:$4 sm:$0xff]  }
  0x59   :  { %2458 = vmatprep.subr.bf16.mxu1 %v9854_v58  ;;  %2969 = vmatprep.subr.bf16.mxu0 %v9856_v59  ;;  %v11318_v58 = vcombine.low %v11302_v41, %v11306_v42  ;;  %v9909_v59 = vld [vmem:[#allocation5 + $0x1000] ss:$24 sps:$4 sm:$0xff]  }
  0x5c   :  { %2459 = vmatpush1.bf16.msra.mxu1 %v9858_v60  ;;  %2970 = vmatpush1.bf16.msra.mxu0 %v9859_v61  ;;  %v11321_v60 = vcombine.low %v53_v46, %v56_v47  ;;  %v9914_v61 = vld [vmem:[#allocation5 + $0xd24] ss:$24 sps:$4 sm:$0xff]   ;;  %v9943_v46 = vld [vmem:[#allocation5 + $0x10f4] ss:$24 sps:$4 sm:$0xff]   ;;  %v9937_v47 = vld [vmem:[#allocation5 + $0xde0] ss:$24 sps:$4 sm:$0xff]  }
  0x5d   :  { %2460 = vmatprep.subr.bf16.mxu1 %v9860_v62  ;;  %2971 = vmatprep.subr.bf16.mxu0 %v9862_v63  ;;  %v11323_v62 = vld [vmem:[#allocation2 + $0x90] sm:$0xff]  ;;  %v11325_v63 = vld [vmem:[#allocation2 + $0xa8] sm:$0xff] }
  0x5e   :  { %12734 = vst [vmem:[#allocation21_spill] sm:$0xff] %v11323_v62  ;;  %12735 = vst [vmem:[#allocation22_spill] sm:$0xff] %v11325_v63 }
  0x60   :  { %2461 = vmatpush1.bf16.msra.mxu1 %v9864_v0  ;;  %2972 = vmatpush1.bf16.msra.mxu0 %v9865_v1  ;;  %v9917_v0 = vld [vmem:[#allocation5 + $0x1034] ss:$24 sps:$4 sm:$0xff]   ;;  %v12650_v1 = vunpack.c.l.bf16 %v11325_v63 }
  0x61   :  { %2462 = vmatprep.subr.bf16.mxu1 %v9866_v2  ;;  %2973 = vmatprep.subr.bf16.mxu0 %v9868_v3  ;;  %v11331_v2 = vcombine.high %v11323_v62, %v11325_v63  ;;  %v59_v3 = vld [vmem:[#allocation2 + $0x98] sm:$0xff] }
  0x62   :  { %v11338_v8 = vrot.slane %v12650_v1, 7 }
  0x64   :  { %2463 = vmatpush1.bf16.msra.mxu1 %v9870_v6  ;;  %2974 = vmatpush1.bf16.msra.mxu0 %v9871_v7  ;;  %v11333_v6 = vld [vmem:[#allocation2 + $0xb0] sm:$0xff]  ;;  %v9912_v7 = vld [vmem:[#allocation5 + $0xd20] ss:$24 sps:$4 sm:$0xff]  }
  0x65   :  { %2505 = vmatprep.subr.bf16.mxu1 %v9875_v9  ;;  %3016 = vmatprep.subr.bf16.mxu0 %v9879_v12  ;;  %12736 = vst [vmem:[#allocation23_spill] sm:$0xff] %v11333_v6  ;;  %v9915_v9 = vld [vmem:[#allocation5 + $0x1030] ss:$24 sps:$4 sm:$0xff]   ;;  %v11341_v12 = vcombine.high %v59_v3, %v11333_v6 }
  0x67   :  { %2465 = vmatmul.mubr.bf16.vlgmr.msra.gmra.mrb[0].mxu1 %v11270_v15  ;;  %2976 = vmatmul.mubr.bf16.vlgmr.msra.gmra.mrb[0].mxu0 %v11274_v16 }
  0x68   :  { %2506 = vmatpush1.bf16.msra.mxu1 %v9873_v14  ;;  %3017 = vmatpush1.bf16.msra.mxu0 %v9877_v17  ;;  %v9920_v14 = vld [vmem:[#allocation5 + $0xd54] ss:$24 sps:$4 sm:$0xff]   ;;  %v9923_v17 = vld [vmem:[#allocation5 + $0x1064] ss:$24 sps:$4 sm:$0xff]  }
  0x69   :  { %2507 = vmatprep.subr.bf16.mxu1 %v9884_v18  ;;  %3018 = vmatprep.subr.bf16.mxu0 %v9887_v19  ;;  %v494_v18 = vsel %vm451_vm0, %v11338_v8, %v11260_v10  ;;  %v9918_v19 = vld [vmem:[#allocation5 + $0xd50] ss:$24 sps:$4 sm:$0xff]  }
  0x6a   :  { %2474 = vmatprep.mubr.bf16.mxu1 %v11291_v31  ;;  %2985 = vmatprep.mubr.bf16.mxu0 %v11298_v36  ;;  %v11359_v10 = vld [vmem:[#allocation2 + $0x10] sm:$0xff] }
  0x6b   :  { %12737 = vst [vmem:[#allocation24_spill] sm:$0xff] %v11359_v10 }
  0x6c   :  { %2508 = vmatpush1.bf16.msra.mxu1 %v9882_v21  ;;  %3019 = vmatpush1.bf16.msra.mxu0 %v9885_v22  ;;  %v11351_v21 = vcombine.low %v11323_v62, %v11325_v63  ;;  %v11354_v22 = vpack.c.bf16 %v11281_v20, %v494_v18  ;;  %v9959_v18 = vld [vmem:[#allocation5 + $0x1154] ss:$24 sps:$4 sm:$0xff]  }
  0x6d   :  { %2509 = vmatprep.subr.bf16.mxu1 %v9890_v23  ;;  %3020 = vmatprep.subr.bf16.mxu0 %v9893_v24  ;;  %v9921_v23 = vld [vmem:[#allocation5 + $0x1060] ss:$24 sps:$4 sm:$0xff]   ;;  %v11357_v24 = vcombine.low %v59_v3, %v11333_v6 }
  0x6f   :  { %2475 = vmatmul.mubr.bf16.gmra.mrb[4].mxu1 %v11295_v34  ;;  %2986 = vmatmul.mubr.bf16.gmra.mrb[4].mxu0 %v11300_v37 }
  0x70   :  { %2510 = vmatpush1.bf16.msra.mxu1 %v9888_v25  ;;  %3021 = vmatpush1.bf16.msra.mxu0 %v9891_v26  ;;  %v9926_v25 = vld [vmem:[#allocation5 + $0xd84] ss:$24 sps:$4 sm:$0xff]   ;;  %v11361_v26 = vld [vmem:[#allocation2 + $0x28] sm:$0xff] }
  0x71   :  { %2511 = vmatprep.subr.bf16.mxu1 %v9896_v29  ;;  %3022 = vmatprep.subr.bf16.mxu0 %v9899_v30  ;;  %12738 = vst [vmem:[#allocation25_spill] sm:$0xff] %v11361_v26  ;;  %v9929_v29 = vld [vmem:[#allocation5 + $0x1094] ss:$24 sps:$4 sm:$0xff]   ;;  %v11366_v20 = vcombine.high %v11359_v10, %v11361_v26  ;;  %v9924_v30 = vld [vmem:[#allocation5 + $0xd80] ss:$24 sps:$4 sm:$0xff]  }
  0x72   :  { %2484 = vmatprep.mubr.bf16.mxu1 %v11311_v45  ;;  %2995 = vmatprep.mubr.bf16.mxu0 %v11313_v55 }
  0x74   :  { %2512 = vmatpush1.bf16.msra.mxu1 %v9894_v35  ;;  %3023 = vmatpush1.bf16.msra.mxu0 %v9897_v38  ;;  %v9935_v35 = vld [vmem:[#allocation5 + $0x10c4] ss:$24 sps:$4 sm:$0xff]   ;;  %v9930_v38 = vld [vmem:[#allocation5 + $0xdb0] ss:$24 sps:$4 sm:$0xff]  }
  0x75   :  { %2513 = vmatprep.subr.bf16.mxu1 %v9902_v39  ;;  %3024 = vmatprep.subr.bf16.mxu0 %v9905_v40  ;;  %v12654_v39 = vunpack.c.l.bf16 %v11285_v27  ;;  %v9933_v40 = vld [vmem:[#allocation5 + $0x10c0] ss:$24 sps:$4 sm:$0xff]  }
  0x77   :  { %2485 = vmatmul.mubr.bf16.gmra.mrb[8].mxu1 %v11318_v58  ;;  %2996 = vmatmul.mubr.bf16.gmra.mrb[8].mxu0 %v11321_v60 }
  0x78   :  { %2514 = vmatpush1.bf16.msra.mxu1 %v9900_v43  ;;  %3025 = vmatpush1.bf16.msra.mxu0 %v9903_v44  ;;  %v12651_v43 = vunpack.c.l.bf16 %v11287_v28  ;;  %v9939_v44 = vld [vmem:[#allocation5 + $0xde4] ss:$24 sps:$4 sm:$0xff]  }
  0x79   :  { %2515 = vmatprep.subr.bf16.mxu1 %v9908_v50  ;;  %3026 = vmatprep.subr.bf16.mxu0 %v9911_v51  ;;  %v415_v50 = vrot.slane %v12654_v39, 7  ;;  %v9941_v51 = vld [vmem:[#allocation5 + $0x10f0] ss:$24 sps:$4 sm:$0xff]  }
  0x7a   :  { %2494 = vmatprep.mubr.bf16.mxu1 %v11331_v2  ;;  %3005 = vmatprep.mubr.bf16.mxu0 %v11341_v12  ;;  %v10019_v39 = vld [vmem:[#allocation5 + $0xf0] ss:$24 sps:$4 sm:$0xff]  }
  0x7c   :  { %2516 = vmatpush1.bf16.msra.mxu1 %v9906_v57  ;;  %3027 = vmatpush1.bf16.msra.mxu0 %v9909_v59  ;;  %v11377_v57 = vrot.slane %v12651_v43, 7  ;;  %v9948_v59 = vld [vmem:[#allocation5 + $0xe14] ss:$24 sps:$4 sm:$0xff]  }
  0x7d   :  { %2517 = vmatprep.subr.bf16.mxu1 %v9914_v61  ;;  %3028 = vmatprep.subr.bf16.mxu0 %v9917_v0  ;;  %v9951_v61 = vld [vmem:[#allocation5 + $0x1124] ss:$24 sps:$4 sm:$0xff]   ;;  %v482_v0 = vsel %vm451_vm0, %v11264_v11, %v415_v50  ;;  %v9964_v11 = vld [vmem:[#allocation5 + $0xe74] ss:$24 sps:$4 sm:$0xff]  }
  0x7e   :  { %v476_v3 = vsel %vm451_vm0, %v415_v50, %v11377_v57  ;;  %v9983_v50 = vld [vmem:[#allocation5 + $0x11e4] ss:$24 sps:$4 sm:$0xff]  }
  0x7f   :  { %2495 = vmatmul.mubr.bf16.gmra.mrb[12].mxu1 %v11351_v21  ;;  %3006 = vmatmul.mubr.bf16.gmra.mrb[12].mxu0 %v11357_v24 }
  0x80   :  { %2518 = vmatpush1.bf16.msra.mxu1 %v9912_v7  ;;  %3029 = vmatpush1.bf16.msra.mxu0 %v9915_v9  ;;  %v9946_v7 = vld [vmem:[#allocation5 + $0xe10] ss:$24 sps:$4 sm:$0xff]   ;;  %v11385_v9 = vpack.c.bf16 %v476_v3, %v482_v0  ;;  %v9986_v0 = vld [vmem:[#allocation5 + $0xf04] ss:$24 sps:$4 sm:$0xff]  }
  0x81   :  { %2519 = vmatprep.subr.bf16.mxu1 %v9920_v14  ;;  %3030 = vmatprep.subr.bf16.mxu0 %v9923_v17  ;;  %v9949_v14 = vld [vmem:[#allocation5 + $0x1120] ss:$24 sps:$4 sm:$0xff]   ;;  %v9955_v17 = vld [vmem:[#allocation5 + $0xe44] ss:$24 sps:$4 sm:$0xff]  }
  0x82   :  { %2537 = vmatprep.mubr.bf16.mxu1 %v11253_v56  ;;  %3048 = vmatprep.mubr.bf16.mxu0 %v11366_v20 }
  0x84   :  { %2520 = vmatpush1.bf16.msra.mxu1 %v9918_v19  ;;  %3031 = vmatpush1.bf16.msra.mxu0 %v9921_v23  ;;  %v9953_v19 = vld [vmem:[#allocation5 + $0xe40] ss:$24 sps:$4 sm:$0xff]   ;;  %v9957_v23 = vld [vmem:[#allocation5 + $0x1150] ss:$24 sps:$4 sm:$0xff]  }
  0x85   :  { %2521 = vmatprep.subr.bf16.mxu1 %v9926_v25  ;;  %3032 = vmatprep.subr.bf16.mxu0 %v9929_v29  ;;  %v9967_v25 = vld [vmem:[#allocation5 + $0x1184] ss:$24 sps:$4 sm:$0xff]   ;;  %v9962_v29 = vld [vmem:[#allocation5 + $0xe70] ss:$24 sps:$4 sm:$0xff]  }
  0x88   :  { %2522 = vmatpush1.bf16.msra.mxu1 %v9924_v30  ;;  %3033 = vmatpush1.bf16.msra.mxu0 %v9927_v32  ;;  %v9965_v30 = vld [vmem:[#allocation5 + $0x1180] ss:$24 sps:$4 sm:$0xff]   ;;  %v9971_v32 = vld [vmem:[#allocation5 + $0xea4] ss:$24 sps:$4 sm:$0xff]  }
  0x89   :  { %2523 = vmatprep.subr.bf16.mxu1 %v9932_v33  ;;  %3034 = vmatprep.subr.bf16.mxu0 %v9935_v35  ;;  %v9975_v33 = vld [vmem:[#allocation5 + $0x11b4] ss:$24 sps:$4 sm:$0xff]   ;;  %v12653_v35 = vunpack.c.l.bf16 %v11246_v53  ;;  %v10106_v53 = vld [vmem:[#allocation5 + $0x998] ss:$24 sps:$4 sm:$0xff]  }
  0x8c   :  { %2524 = vmatpush1.bf16.msra.mxu1 %v9930_v38  ;;  %3035 = vmatpush1.bf16.msra.mxu0 %v9933_v40  ;;  %v9969_v38 = vld [vmem:[#allocation5 + $0xea0] ss:$24 sps:$4 sm:$0xff]   ;;  %v9973_v40 = vld [vmem:[#allocation5 + $0x11b0] ss:$24 sps:$4 sm:$0xff]  }
  0x8d   :  { %2525 = vmatprep.subr.bf16.mxu1 %v9939_v44  ;;  %3036 = vmatprep.subr.bf16.mxu0 %v9943_v46  ;;  %v9980_v44 = vld [vmem:[#allocation5 + $0xed4] ss:$24 sps:$4 sm:$0xff]   ;;  %v12652_v46 = vunpack.c.l.bf16 %v11248_v54 }
  0x8f   :  { %v11394_v3 = vrot.slane %v12652_v46, 7 }
  0x90   :  { %2526 = vmatpush1.bf16.msra.mxu1 %v9937_v47  ;;  %3037 = vmatpush1.bf16.msra.mxu0 %v9941_v51  ;;  %v12649_v47 = vunpack.c.l.bf16 %v11333_v6  ;;  %v9978_v51 = vld [vmem:[#allocation5 + $0xed0] ss:$24 sps:$4 sm:$0xff]   ;;  %v10056_v6 = vld [vmem:[#allocation5 + $0x1114] ss:$24 sps:$4 sm:$0xff]  }
  0x91   :  { %2527 = vmatprep.subr.bf16.mxu1 %v9948_v59  ;;  %3038 = vmatprep.subr.bf16.mxu0 %v9951_v61  ;;  %v405_v59 = vrot.slane %v12653_v35, 7  ;;  %v9981_v61 = vld [vmem:[#allocation5 + $0x11e0] ss:$24 sps:$4 sm:$0xff]  }
  0x94   :  { %2528 = vmatpush1.bf16.msra.mxu1 %v9946_v7  ;;  %3039 = vmatpush1.bf16.msra.mxu0 %v9949_v14  ;;  %v11398_v7 = vrot.slane %v12649_v47, 7  ;;  %v9990_v14 = vld [vmem:[#allocation5 + $0x4] ss:$24 sps:$4 sm:$0xff]   ;;  %v12657_v47 = vunpack.c.h.bf16 %v11325_v63  ;;  %v10078_v63 = vld [vmem:[#allocation5 + $0x2a0] ss:$24 sps:$4 sm:$0xff]  }
  0x95   :  { %2529 = vmatprep.subr.bf16.mxu1 %v9955_v17  ;;  %3040 = vmatprep.subr.bf16.mxu0 %v9959_v18  ;;  %v9984_v17 = vld [vmem:[#allocation5 + $0xf00] ss:$24 sps:$4 sm:$0xff]  }
  0x96   :  { %v48_v18 = vld [vmem:[#allocation2 + $0x40] sm:$0xff] }
  0x98   :  { %2530 = vmatpush1.bf16.msra.mxu1 %v9953_v19  ;;  %3041 = vmatpush1.bf16.msra.mxu0 %v9957_v23  ;;  %v11402_v19 = vcombine.low %v11359_v10, %v11361_v26  ;;  %v51_v23 = vld [vmem:[#allocation2 + $0x58] sm:$0xff] }
  0x99   :  { %2531 = vmatprep.subr.bf16.mxu1 %v9964_v11  ;;  %3042 = vmatprep.subr.bf16.mxu0 %v9967_v25  ;;  %v9988_v11 = vld [vmem:[#allocation5] ss:$24 sps:$4 sm:$0xff]   ;;  %v9994_v25 = vld [vmem:[#allocation5 + $0xf34] ss:$24 sps:$4 sm:$0xff]  }
  0x9c   :  { %2532 = vmatpush1.bf16.msra.mxu1 %v9962_v29  ;;  %3043 = vmatpush1.bf16.msra.mxu0 %v9965_v30  ;;  %v9997_v29 = vld [vmem:[#allocation5 + $0x34] ss:$24 sps:$4 sm:$0xff]   ;;  %v490_v30 = vsel %vm451_vm0, %v405_v59, %v11394_v3 }
  0x9d   :  { %2533 = vmatprep.subr.bf16.mxu1 %v9971_v32  ;;  %3044 = vmatprep.subr.bf16.mxu0 %v9975_v33  ;;  %v496_v32 = vsel %vm451_vm0, %v11398_v7, %v405_v59  ;;  %v11410_v33 = vcombine.high %v48_v18, %v51_v23  ;;  %v11418_v59 = vcombine.low %v48_v18, %v51_v23  ;;  %v10012_v18 = vld [vmem:[#allocation5 + $0xfc4] ss:$24 sps:$4 sm:$0xff]  }
  0x9e   :  { %v10015_v23 = vld [vmem:[#allocation5 + $0xc4] ss:$24 sps:$4 sm:$0xff]  }
  0xa0   :  { %2534 = vmatpush1.bf16.msra.mxu1 %v9969_v38  ;;  %3045 = vmatpush1.bf16.msra.mxu0 %v9973_v40  ;;  %v11412_v38 = vpack.c.bf16 %v490_v30, %v496_v32  ;;  %v9992_v40 = vld [vmem:[#allocation5 + $0xf30] ss:$24 sps:$4 sm:$0xff]   ;;  %v10001_v30 = vld [vmem:[#allocation5 + $0x60] ss:$24 sps:$4 sm:$0xff]  }
  0xa1   :  { %2535 = vmatprep.subr.bf16.mxu1 %v9980_v44  ;;  %3046 = vmatprep.subr.bf16.mxu0 %v9983_v50  ;;  %v9995_v44 = vld [vmem:[#allocation5 + $0x30] ss:$24 sps:$4 sm:$0xff]   ;;  %v10000_v50 = vld [vmem:[#allocation5 + $0xf64] ss:$24 sps:$4 sm:$0xff]  }
  0xa4   :  { %2536 = vmatpush1.bf16.msra.mxu1 %v9978_v51  ;;  %3047 = vmatpush1.bf16.msra.mxu0 %v9981_v61  ;;  %v10003_v51 = vld [vmem:[#allocation5 + $0x64] ss:$24 sps:$4 sm:$0xff]   ;;  %v9998_v61 = vld [vmem:[#allocation5 + $0xf60] ss:$24 sps:$4 sm:$0xff]  }
  0xa5   :  { %2578 = vmatprep.subr.bf16.mxu1 %v9986_v0  ;;  %4529 = vmatprep.subr.bf16.mxu0 %v9990_v14  ;;  %v54_v0 = vld [vmem:[#allocation2 + $0x70] sm:$0xff]  ;;  %v57_v14 = vld [vmem:[#allocation2 + $0x88] sm:$0xff] }
  0xa6   :  { %v11420_v32 = vcombine.high %v54_v0, %v57_v14  ;;  %v11429_v1 = vcombine.low %v54_v0, %v57_v14  ;;  %v500_v0 = vadd.s32 4294967295, %v11266_v13  ;;  %v10016_v14 = vld [vmem:[#allocation5 + $0xff0] ss:$24 sps:$4 sm:$0xff]  }
  0xa7   :  { %2538 = vmatmul.mubr.bf16.vlgmr.msra.gmra.mrb[0].mxu1 %v11274_v16  ;;  %3049 = vmatmul.mubr.bf16.vlgmr.msra.gmra.mrb[0].mxu0 %v11402_v19 }
  0xa8   :  { %2579 = vmatpush1.bf16.msra.mxu1 %v9984_v17  ;;  %4530 = vmatpush1.bf16.msra.mxu0 %v9988_v11  ;;  %v10006_v17 = vld [vmem:[#allocation5 + $0xf94] ss:$24 sps:$4 sm:$0xff]   ;;  %vm502_vm1 = vcmp.ge.s32.totalorder %v500_v0, 0  ;;  %v10037_v0 = vld [vmem:[#allocation5 + $0x180] ss:$24 sps:$4 sm:$0xff]  }
  0xa9   :  { %2580 = vmatprep.subr.bf16.mxu1 %v9994_v25  ;;  %4531 = vmatprep.subr.bf16.mxu0 %v9997_v29  ;;  %v10009_v11 = vld [vmem:[#allocation5 + $0x94] ss:$24 sps:$4 sm:$0xff]   ;;  %v10004_v25 = vld [vmem:[#allocation5 + $0xf90] ss:$24 sps:$4 sm:$0xff]   ;;  %vm11461_vm3 = vmpackc.low %vm11191_vm2, %vm502_vm1 }
  0xaa   :  { %2547 = vmatprep.mubr.bf16.mxu1 %v11298_v36  ;;  %3058 = vmatprep.mubr.bf16.mxu0 %v11410_v33  ;;  %v10007_v29 = vld [vmem:[#allocation5 + $0x90] ss:$24 sps:$4 sm:$0xff]  }
  0xac   :  { %2581 = vmatpush1.bf16.msra.mxu1 %v9992_v40  ;;  %4532 = vmatpush1.bf16.msra.mxu0 %v9995_v44  ;;  %v12656_v40 = vunpack.c.h.bf16 %v11238_v48  ;;  %v12655_v44 = vunpack.c.h.bf16 %v11240_v49 }
  0xad   :  { %2582 = vmatprep.subr.bf16.mxu1 %v10000_v50  ;;  %4533 = vmatprep.subr.bf16.mxu0 %v10003_v51  ;;  %v10010_v50 = vld [vmem:[#allocation5 + $0xfc0] ss:$24 sps:$4 sm:$0xff]  }
  0xae   :  { %v10013_v51 = vld [vmem:[#allocation5 + $0xc0] ss:$24 sps:$4 sm:$0xff]   ;;  %v404_v46 = vrot.slane %v12656_v40, 7  ;;  %v11440_v35 = vrot.slane %v12655_v44, 7 }
  0xaf   :  { %2548 = vmatmul.mubr.bf16.gmra.mrb[4].mxu1 %v11300_v37  ;;  %3059 = vmatmul.mubr.bf16.gmra.mrb[4].mxu0 %v11418_v59  ;;  %v10025_v44 = vld [vmem:[#allocation5 + $0x120] ss:$24 sps:$4 sm:$0xff]  }
  0xb0   :  { %2583 = vmatpush1.bf16.msra.mxu1 %v9998_v61  ;;  %4534 = vmatpush1.bf16.msra.mxu0 %v10001_v30  ;;  %v60_v61 = vld [vmem:[#allocation2 + $0xa0] sm:$0xff]  ;;  %v11431_v30 = vld [vmem:[#allocation2 + $0xb8] sm:$0xff] }
  0xb1   :  { %2584 = vmatprep.subr.bf16.mxu1 %v10006_v17  ;;  %4535 = vmatprep.subr.bf16.mxu0 %v10009_v11  ;;  %12739 = vst [vmem:[#allocation26_spill] sm:$0xff] %v11431_v30  ;;  %v10018_v17 = vld [vmem:[#allocation5 + $0xff4] ss:$24 sps:$4 sm:$0xff]   ;;  %v11434_v43 = vcombine.high %v60_v61, %v11431_v30  ;;  %v11452_v40 = vcombine.low %v60_v61, %v11431_v30 }
  0xb2   :  { %2557 = vmatprep.mubr.bf16.mxu1 %v11313_v55  ;;  %3068 = vmatprep.mubr.bf16.mxu0 %v11420_v32  ;;  %v10021_v11 = vld [vmem:[#allocation5 + $0xf4] ss:$24 sps:$4 sm:$0xff]  }
  0xb4   :  { %2585 = vmatpush1.bf16.msra.mxu1 %v10004_v25  ;;  %4536 = vmatpush1.bf16.msra.mxu0 %v10007_v29  ;;  %v11447_v25 = vrot.slane %v12657_v47, 7  ;;  %v10024_v29 = vld [vmem:[#allocation5 + $0x1024] ss:$24 sps:$4 sm:$0xff]   ;;  %v489_v47 = vsel %vm451_vm0, %v404_v46, %v11440_v35 }
  0xb5   :  { %2586 = vmatprep.subr.bf16.mxu1 %v10012_v18  ;;  %4537 = vmatprep.subr.bf16.mxu0 %v10015_v23  ;;  %v10027_v18 = vld [vmem:[#allocation5 + $0x124] ss:$24 sps:$4 sm:$0xff]   ;;  %v10022_v23 = vld [vmem:[#allocation5 + $0x1020] ss:$24 sps:$4 sm:$0xff]  }
  0xb7   :  { %2558 = vmatmul.mubr.bf16.gmra.mrb[8].mxu1 %v11321_v60  ;;  %3069 = vmatmul.mubr.bf16.gmra.mrb[8].mxu0 %v11429_v1 }
  0xb8   :  { %2587 = vmatpush1.bf16.msra.mxu1 %v10010_v50  ;;  %4538 = vmatpush1.bf16.msra.mxu0 %v10013_v51  ;;  %v495_v50 = vsel %vm451_vm0, %v11447_v25, %v404_v46  ;;  %v10030_v51 = vld [vmem:[#allocation5 + $0x1054] ss:$24 sps:$4 sm:$0xff]   ;;  %v10039_v46 = vld [vmem:[#allocation5 + $0x184] ss:$24 sps:$4 sm:$0xff]  }
  0xb9   :  { %2588 = vmatprep.subr.bf16.mxu1 %v10018_v17  ;;  %4539 = vmatprep.subr.bf16.mxu0 %v10021_v11  ;;  %v10033_v17 = vld [vmem:[#allocation5 + $0x154] ss:$24 sps:$4 sm:$0xff]   ;;  %v11465_v11 = vpack.c.bf16 %v489_v47, %v495_v50  ;;  %v10034_v47 = vld [vmem:[#allocation5 + $0x1080] ss:$24 sps:$4 sm:$0xff]   ;;  %v10052_v50 = vld [vmem:[#allocation5 + $0x1e4] ss:$24 sps:$4 sm:$0xff]  }
  0xba   :  { %2567 = vmatprep.mubr.bf16.mxu1 %v11341_v12  ;;  %3078 = vmatprep.mubr.bf16.mxu0 %v11434_v43 }
  0xbc   :  { %2589 = vmatpush1.bf16.msra.mxu1 %v10016_v14  ;;  %4540 = vmatpush1.bf16.msra.mxu0 %v10019_v39  ;;  %v10036_v39 = vld [vmem:[#allocation5 + $0x1084] ss:$24 sps:$4 sm:$0xff]   ;;  %v10042_v14 = vld [vmem:[#allocation5 + $0x10b4] ss:$24 sps:$4 sm:$0xff]  }
  0xbd   :  { %2590 = vmatprep.subr.bf16.mxu1 %v10024_v29  ;;  %4541 = vmatprep.subr.bf16.mxu0 %v10027_v18  ;;  %v10045_v29 = vld [vmem:[#allocation5 + $0x1b4] ss:$24 sps:$4 sm:$0xff]   ;;  %v10040_v18 = vld [vmem:[#allocation5 + $0x10b0] ss:$24 sps:$4 sm:$0xff]  }
  0xbf   :  { %2568 = vmatmul.mubr.bf16.gmra.mrb[12].mxu1 %v11357_v24  ;;  %3079 = vmatmul.mubr.bf16.gmra.mrb[12].mxu0 %v11452_v40 }
  0xc0   :  { %2591 = vmatpush1.bf16.msra.mxu1 %v10022_v23  ;;  %4542 = vmatpush1.bf16.msra.mxu0 %v10025_v44  ;;  %v10043_v44 = vld [vmem:[#allocation5 + $0x1b0] ss:$24 sps:$4 sm:$0xff]   ;;  %v10048_v23 = vld [vmem:[#allocation5 + $0x10e4] ss:$24 sps:$4 sm:$0xff]  }
  0xc1   :  { %2592 = vmatprep.subr.bf16.mxu1 %v10030_v51  ;;  %4543 = vmatprep.subr.bf16.mxu0 %v10033_v17  ;;  %v10046_v51 = vld [vmem:[#allocation5 + $0x10e0] ss:$24 sps:$4 sm:$0xff]  }
  0xc2   :  { %2610 = vmatprep.mubr.bf16.mxu1 %v11366_v20  ;;  %8588 = vmatprep.mubr.msk.bf16.mxu0 %vm11461_vm3, %v11465_v11  ;;  %v10050_v17 = vld [vmem:[#allocation5 + $0x1e0] ss:$24 sps:$4 sm:$0xff]  }
  0xc4   :  { %2593 = vmatpush1.bf16.msra.mxu1 %v10028_v5  ;;  %4544 = vmatpush1.bf16.msra.mxu0 %v10031_v4  ;;  %v10059_v4 = vld [vmem:[#allocation5 + $0x214] ss:$24 sps:$4 sm:$0xff]   ;;  %v10054_v5 = vld [vmem:[#allocation5 + $0x1110] ss:$24 sps:$4 sm:$0xff]  }
  0xc5   :  { %2594 = vmatprep.subr.bf16.mxu1 %v10036_v39  ;;  %4545 = vmatprep.subr.bf16.mxu0 %v10039_v46  ;;  %v10057_v39 = vld [vmem:[#allocation5 + $0x210] ss:$24 sps:$4 sm:$0xff]   ;;  %v10062_v46 = vld [vmem:[#allocation5 + $0x1144] ss:$24 sps:$4 sm:$0xff]  }
  0xc8   :  { %2595 = vmatpush1.bf16.msra.mxu1 %v10034_v47  ;;  %4546 = vmatpush1.bf16.msra.mxu0 %v10037_v0  ;;  %v10066_v47 = vld [vmem:[#allocation5 + $0x244] ss:$24 sps:$4 sm:$0xff]   ;;  %v10060_v0 = vld [vmem:[#allocation5 + $0x1140] ss:$24 sps:$4 sm:$0xff]  }
  0xc9   :  { %2596 = vmatprep.subr.bf16.mxu1 %v10042_v14  ;;  %4547 = vmatprep.subr.bf16.mxu0 %v10045_v29  ;;  %v10064_v14 = vld [vmem:[#allocation5 + $0x240] ss:$24 sps:$4 sm:$0xff]   ;;  %v10070_v29 = vld [vmem:[#allocation5 + $0x1174] ss:$24 sps:$4 sm:$0xff]  }
  0xcc   :  { %2597 = vmatpush1.bf16.msra.mxu1 %v10040_v18  ;;  %4548 = vmatpush1.bf16.msra.mxu0 %v10043_v44  ;;  %v10073_v18 = vld [vmem:[#allocation5 + $0x274] ss:$24 sps:$4 sm:$0xff]   ;;  %v10068_v44 = vld [vmem:[#allocation5 + $0x1170] ss:$24 sps:$4 sm:$0xff]  }
  0xcd   :  { %2598 = vmatprep.subr.bf16.mxu1 %v10048_v23  ;;  %4549 = vmatprep.subr.bf16.mxu0 %v10052_v50  ;;  %v10071_v23 = vld [vmem:[#allocation5 + $0x270] ss:$24 sps:$4 sm:$0xff]   ;;  %v10076_v50 = vld [vmem:[#allocation5 + $0x11a4] ss:$24 sps:$4 sm:$0xff]  }
  0xd0   :  { %2599 = vmatpush1.bf16.msra.mxu1 %v10046_v51  ;;  %4550 = vmatpush1.bf16.msra.mxu0 %v10050_v17  ;;  %v10080_v51 = vld [vmem:[#allocation5 + $0x2a4] ss:$24 sps:$4 sm:$0xff]   ;;  %v12667_v17 = vunpack.c.h.bf16 %v11287_v28  ;;  %v12673_v28 = vunpack.c.h.bf16 %v11302_v41 }
  0xd1   :  { %2600 = vmatprep.subr.bf16.mxu1 %v10056_v6  ;;  %4551 = vmatprep.subr.bf16.mxu0 %v10059_v4  ;;  %v12664_v6 = vunpack.c.h.bf16 %v11285_v27  ;;  %v10074_v4 = vld [vmem:[#allocation5 + $0x11a0] ss:$24 sps:$4 sm:$0xff]   ;;  %v10109_v27 = vld [vmem:[#allocation5 + $0x390] ss:$24 sps:$4 sm:$0xff]  }
  0xd2   :  { %v422_v54 = vrot.slane %v12667_v17, 7 }
  0xd4   :  { %2601 = vmatpush1.bf16.msra.mxu1 %v10054_v5  ;;  %4552 = vmatpush1.bf16.msra.mxu0 %v10057_v39  ;;  %v12669_v5 = vunpack.c.l.bf16 %v11359_v10  ;;  %v10084_v39 = vld [vmem:[#allocation5 + $0x11d4] ss:$24 sps:$4 sm:$0xff]   ;;  %v10088_v10 = vld [vmem:[#allocation5 + $0x908] ss:$24 sps:$4 sm:$0xff]  }
  0xd5   :  { %2602 = vmatprep.subr.bf16.mxu1 %v10062_v46  ;;  %4553 = vmatprep.subr.bf16.mxu0 %v10066_v47  ;;  %v12671_v46 = vunpack.c.l.bf16 %v11361_v26  ;;  %v12670_v47 = vunpack.c.l.bf16 %v11431_v30  ;;  %v428_v30 = vrot.slane %v12673_v28, 7  ;;  %v10100_v28 = vld [vmem:[#allocation5 + $0x968] ss:$24 sps:$4 sm:$0xff]  }
  0xd8   :  { %2603 = vmatpush1.bf16.msra.mxu1 %v10060_v0  ;;  %4554 = vmatpush1.bf16.msra.mxu0 %v10064_v14  ;;  %v10087_v0 = vld [vmem:[#allocation5 + $0x2d4] ss:$24 sps:$4 sm:$0xff]   ;;  %v416_v14 = vrot.slane %v12664_v6, 7  ;;  %v10093_v6 = vld [vmem:[#allocation5 + $0x304] ss:$24 sps:$4 sm:$0xff]  }
  0xd9   :  { %2604 = vmatprep.subr.bf16.mxu1 %v10070_v29  ;;  %4555 = vmatprep.subr.bf16.mxu0 %v10073_v18  ;;  %v10082_v29 = vld [vmem:[#allocation5 + $0x11d0] ss:$24 sps:$4 sm:$0xff]  }
  0xda   :  { %v10085_v18 = vld [vmem:[#allocation5 + $0x2d0] ss:$24 sps:$4 sm:$0xff]  }
  0xdc   :  { %2605 = vmatpush1.bf16.msra.mxu1 %v10068_v44  ;;  %4556 = vmatpush1.bf16.msra.mxu0 %v10071_v23  ;;  %v407_v44 = vrot.slane %v12669_v5, 7  ;;  %v10090_v23 = vld [vmem:[#allocation5 + $0x90c] ss:$24 sps:$4 sm:$0xff]   ;;  %v10091_v5 = vld [vmem:[#allocation5 + $0x300] ss:$24 sps:$4 sm:$0xff]  }
  0xdd   :  { %2606 = vmatprep.subr.bf16.mxu1 %v10076_v50  ;;  %4557 = vmatprep.subr.bf16.mxu0 %v10080_v51  ;;  %v11486_v50 = vrot.slane %v12671_v46, 7  ;;  %v11490_v51 = vrot.slane %v12670_v47, 7  ;;  %v10096_v47 = vld [vmem:[#allocation5 + $0x93c] ss:$24 sps:$4 sm:$0xff]  }
  0xdf   :  { %v498_v46 = vsel %vm451_vm0, %v11490_v51, %v407_v44 }
  0xe0   :  { %2607 = vmatpush1.bf16.msra.mxu1 %v10074_v4  ;;  %4558 = vmatpush1.bf16.msra.mxu0 %v10078_v63  ;;  %v477_v63 = vsel %vm451_vm0, %v416_v14, %v422_v54  ;;  %v483_v4 = vsel %vm451_vm0, %v11440_v35, %v416_v14  ;;  %v10097_v14 = vld [vmem:[#allocation5 + $0x330] ss:$24 sps:$4 sm:$0xff]  }
  0xe1   :  { %2608 = vmatprep.subr.bf16.mxu1 %v10084_v39  ;;  %4559 = vmatprep.subr.bf16.mxu0 %v10087_v0  ;;  %v10099_v39 = vld [vmem:[#allocation5 + $0x334] ss:$24 sps:$4 sm:$0xff]   ;;  %v492_v0 = vsel %vm451_vm0, %v407_v44, %v11486_v50  ;;  %v11505_v17 = vpack.c.bf16 %v477_v63, %v483_v4  ;;  %v11520_v63 = vld [vmem:[#allocation2 + $0x78] sm:$0xff] }
  0xe2   :  { %v11509_v35 = vpack.c.bf16 %v492_v0, %v498_v46  ;;  %12744 = vst [vmem:[#allocation28_spill] sm:$0xff] %v11520_v63  ;;  %v12680_v46 = vunpack.c.l.bf16 %v11520_v63  ;;  %v10102_v4 = vld [vmem:[#allocation5 + $0x96c] ss:$24 sps:$4 sm:$0xff]   ;;  %v10103_v44 = vld [vmem:[#allocation5 + $0x360] ss:$24 sps:$4 sm:$0xff]  }
  0xe3   :  { %v10105_v0 = vld [vmem:[#allocation5 + $0x364] ss:$24 sps:$4 sm:$0xff]  }
  0xe4   :  { %2609 = vmatpush1.bf16.msra.mxu1 %v10082_v29  ;;  %4560 = vmatpush1.bf16.msra.mxu0 %v10085_v18  ;;  %v12742_v29 = vunpack.c.h.bf16 %v11306_v42  ;;  %v433_v26 = vrot.slane %v12680_v46, 7  ;;  %v11555_v46 = vld [vmem:[#allocation2 + $0x20] sm:$0xff] }
  0xe5   :  { %2651 = vmatprep.subr.bf16.mxu1 %v10090_v23  ;;  %4602 = vmatprep.subr.bf16.mxu0 %v10093_v6  ;;  %v10094_v6 = vld [vmem:[#allocation5 + $0x938] ss:$24 sps:$4 sm:$0xff]   ;;  %v11517_v23 = vld [vmem:[#allocation2 + $0x60] sm:$0xff]  ;;  %12749 = vst [vmem:[#allocation31_spill] sm:$0xff] %v11555_v46  ;;  %v12753_v49 = vunpack.c.h.bf16 %v11555_v46 }
  0xe6   :  { %v434_v18 = vrot.slane %v12742_v29, 7  ;;  %12743 = vst [vmem:[#allocation27_spill] sm:$0xff] %v11517_v23  ;;  %v10111_v29 = vld [vmem:[#allocation5 + $0x394] ss:$24 sps:$4 sm:$0xff]  }
  0xe7   :  { %2611 = vmatmul.mubr.bf16.vlgmr.msra.gmra.mrb[0].mxu1 %v11402_v19  ;;  %8591 = vmatmul.mubr.msk.bf16.vlgmr.msra.gmra.mrb[16].mxu0 %vm11461_vm3, %v11354_v22 }
  0xe8   :  { %2652 = vmatpush1.bf16.msra.mxu1 %v10088_v10  ;;  %4603 = vmatpush1.bf16.msra.mxu0 %v10091_v5  ;;  %v465_v42 = vsel %vm451_vm0, %v428_v30, %v434_v18  ;;  %v471_v10 = vsel %vm451_vm0, %v422_v54, %v428_v30  ;;  %v10108_v5 = vld [vmem:[#allocation5 + $0x99c] ss:$24 sps:$4 sm:$0xff]   ;;  %v12746_v54 = vunpack.c.h.bf16 %v11323_v62 }
  0xe9   :  { %2653 = vmatprep.subr.bf16.mxu1 %v10096_v47  ;;  %4604 = vmatprep.subr.bf16.mxu0 %v10099_v39  ;;  %v12745_v47 = vunpack.c.l.bf16 %v11517_v23  ;;  %v11536_v41 = vpack.c.bf16 %v465_v42, %v471_v10  ;;  %v10117_v10 = vld [vmem:[#allocation5 + $0x3c4] ss:$24 sps:$4 sm:$0xff]  }
  0xea   :  { %2620 = vmatprep.mubr.bf16.mxu1 %v11410_v33  ;;  %8594 = vmatprep.mubr.msk.bf16.mxu0 %vm11461_vm3, %v11505_v17  ;;  %v440_v30 = vrot.slane %v12746_v54, 7 }
  0xeb   :  { %v427_v39 = vrot.slane %v12745_v47, 7  ;;  %v11552_v47 = vld [vmem:[#allocation2 + $0x8] sm:$0xff] }
  0xec   :  { %2654 = vmatpush1.bf16.msra.mxu1 %v10094_v6  ;;  %4605 = vmatpush1.bf16.msra.mxu0 %v10097_v14  ;;  %v11544_v6 = vld [vmem:[#allocation2 + $0x90] sm:$0xff]  ;;  %12748 = vst [vmem:[#allocation30_spill] sm:$0xff] %v11552_v47  ;;  %v453_v54 = vsel %vm451_vm0, %v440_v30, %v11447_v25  ;;  %v11580_v25 = vrot.slane %v12753_v49, 7 }
  0xed   :  { %2655 = vmatprep.subr.bf16.mxu1 %v10102_v4  ;;  %4606 = vmatprep.subr.bf16.mxu0 %v10105_v0  ;;  %12747 = vst [vmem:[#allocation29_spill] sm:$0xff] %v11544_v6  ;;  %v10114_v4 = vld [vmem:[#allocation5 + $0x9cc] ss:$24 sps:$4 sm:$0xff]   ;;  %v464_v42 = vsel %vm451_vm0, %v427_v39, %v433_v26  ;;  %v470_v0 = vsel %vm451_vm0, %v11377_v57, %v427_v39  ;;  %v10120_v14 = vld [vmem:[#allocation5 + $0x9fc] ss:$24 sps:$4 sm:$0xff]   ;;  %v12751_v63 = vunpack.c.l.bf16 %v11544_v6 }
  0xee   :  { %v11565_v39 = vpack.c.bf16 %v464_v42, %v470_v0  ;;  %v10123_v57 = vld [vmem:[#allocation5 + $0x3f4] ss:$24 sps:$4 sm:$0xff]   ;;  %v12752_v42 = vunpack.c.h.bf16 %v11552_v47  ;;  %v10184_v6 = vld [vmem:[#allocation5 + $0xc08] ss:$24 sps:$4 sm:$0xff]  }
  0xef   :  { %2621 = vmatmul.mubr.bf16.gmra.mrb[4].mxu1 %v11418_v59  ;;  %8597 = vmatmul.mubr.msk.bf16.gmra.mrb[20].mxu0 %vm11461_vm3, %v11385_v9  ;;  %v439_v62 = vrot.slane %v12751_v63, 7  ;;  %v10195_v47 = vld [vmem:[#allocation5 + $0x634] ss:$24 sps:$4 sm:$0xff]  }
  0xf0   :  { %2656 = vmatpush1.bf16.msra.mxu1 %v10100_v28  ;;  %4607 = vmatpush1.bf16.msra.mxu0 %v10103_v44  ;;  %v11562_v44 = vld [vmem:[#allocation2 + $0xb0] sm:$0xff]  ;;  %v459_v28 = vsel %vm451_vm0, %v434_v18, %v440_v30  ;;  %v406_v0 = vrot.slane %v12752_v42, 7  ;;  %v10126_v30 = vld [vmem:[#allocation5 + $0xa2c] ss:$24 sps:$4 sm:$0xff]  }
  0xf1   :  { %2657 = vmatprep.subr.bf16.mxu1 %v10108_v5  ;;  %4608 = vmatprep.subr.bf16.mxu0 %v10111_v29  ;;  %12750 = vst [vmem:[#allocation32_spill] sm:$0xff] %v11562_v44  ;;  %v10112_v29 = vld [vmem:[#allocation5 + $0x9c8] ss:$24 sps:$4 sm:$0xff]   ;;  %v11574_v23 = vpack.c.bf16 %v453_v54, %v459_v28  ;;  %v12754_v18 = vunpack.c.h.bf16 %v11562_v44  ;;  %v452_v49 = vsel %vm451_vm0, %v439_v62, %v11338_v8 }
  0xf2   :  { %2630 = vmatprep.mubr.bf16.mxu1 %v11420_v32  ;;  %8600 = vmatprep.mubr.msk.bf16.mxu0 %vm11461_vm3, %v11536_v41  ;;  %v10115_v5 = vld [vmem:[#allocation5 + $0x3c0] ss:$24 sps:$4 sm:$0xff]   ;;  %v491_v8 = vsel %vm451_vm0, %v406_v0, %v11580_v25  ;;  %v10133_v42 = vld [vmem:[#allocation5 + $0x450] ss:$24 sps:$4 sm:$0xff]  }
  0xf3   :  { %v11588_v63 = vrot.slane %v12754_v18, 7  ;;  %v10124_v54 = vld [vmem:[#allocation5 + $0xa28] ss:$24 sps:$4 sm:$0xff]   ;;  %v10138_v18 = vld [vmem:[#allocation5 + $0xa8c] ss:$24 sps:$4 sm:$0xff]  }
  0xf4   :  { %2658 = vmatpush1.bf16.msra.mxu1 %v10106_v53  ;;  %4609 = vmatpush1.bf16.msra.mxu0 %v10109_v27  ;;  %v10118_v53 = vld [vmem:[#allocation5 + $0x9f8] ss:$24 sps:$4 sm:$0xff]  }
  0xf5   :  { %2659 = vmatprep.subr.bf16.mxu1 %v10114_v4  ;;  %4610 = vmatprep.subr.bf16.mxu0 %v10117_v10  ;;  %v10121_v27 = vld [vmem:[#allocation5 + $0x3f0] ss:$24 sps:$4 sm:$0xff]   ;;  %v458_v4 = vsel %vm451_vm0, %v433_v26, %v439_v62  ;;  %v10129_v10 = vld [vmem:[#allocation5 + $0x424] ss:$24 sps:$4 sm:$0xff]   ;;  %v10127_v28 = vld [vmem:[#allocation5 + $0x420] ss:$24 sps:$4 sm:$0xff]   ;;  %v497_v62 = vsel %vm451_vm0, %v11588_v63, %v406_v0 }
  0xf6   :  { %v10132_v26 = vld [vmem:[#allocation5 + $0xa5c] ss:$24 sps:$4 sm:$0xff]  }
  0xf7   :  { %2631 = vmatmul.mubr.bf16.gmra.mrb[8].mxu1 %v11429_v1  ;;  %8603 = vmatmul.mubr.msk.bf16.gmra.mrb[24].mxu0 %vm11461_vm3, %v11565_v39  ;;  %v10141_v0 = vld [vmem:[#allocation5 + $0x484] ss:$24 sps:$4 sm:$0xff]  }
  0xf8   :  { %2660 = vmatpush1.bf16.msra.mxu1 %v10112_v29  ;;  %4611 = vmatpush1.bf16.msra.mxu0 %v10115_v5  ;;  %v11599_v29 = vpack.c.bf16 %v452_v49, %v458_v4  ;;  %v10130_v5 = vld [vmem:[#allocation5 + $0xa58] ss:$24 sps:$4 sm:$0xff]   ;;  %v10147_v49 = vld [vmem:[#allocation5 + $0x4b4] ss:$24 sps:$4 sm:$0xff]  }
  0xf9   :  { %2661 = vmatprep.subr.bf16.mxu1 %v10120_v14  ;;  %4612 = vmatprep.subr.bf16.mxu0 %v10123_v57  ;;  %v10135_v14 = vld [vmem:[#allocation5 + $0x454] ss:$24 sps:$4 sm:$0xff]   ;;  %v11607_v57 = vpack.c.bf16 %v491_v8, %v497_v62  ;;  %v10142_v4 = vld [vmem:[#allocation5 + $0xab8] ss:$24 sps:$4 sm:$0xff]   ;;  %v10148_v8 = vld [vmem:[#allocation5 + $0xae8] ss:$24 sps:$4 sm:$0xff]  }
  0xfa   :  { %2640 = vmatprep.mubr.bf16.mxu1 %v11434_v43  ;;  %8606 = vmatprep.mubr.msk.bf16.mxu0 %vm11461_vm3, %v11574_v23  ;;  %v10151_v62 = vld [vmem:[#allocation5 + $0x4e0] ss:$24 sps:$4 sm:$0xff]  }
  0xfb   :  { %12755 = vst [vmem:[#allocation33_spill] sm:$0xff] %v11607_v57 }
  0xfc   :  { %2662 = vmatpush1.bf16.msra.mxu1 %v10118_v53  ;;  %4613 = vmatpush1.bf16.msra.mxu0 %v10121_v27  ;;  %v10136_v53 = vld [vmem:[#allocation5 + $0xa88] ss:$24 sps:$4 sm:$0xff]  }
  0xfd   :  { %2663 = vmatprep.subr.bf16.mxu1 %v10126_v30  ;;  %4614 = vmatprep.subr.bf16.mxu0 %v10129_v10  ;;  %v10139_v27 = vld [vmem:[#allocation5 + $0x480] ss:$24 sps:$4 sm:$0xff]   ;;  %v10144_v30 = vld [vmem:[#allocation5 + $0xabc] ss:$24 sps:$4 sm:$0xff]   ;;  %v10145_v10 = vld [vmem:[#allocation5 + $0x4b0] ss:$24 sps:$4 sm:$0xff]  }
  0xff   :  { %2641 = vmatmul.mubr.bf16.gmra.mrb[12].mxu1 %v11452_v40  ;;  %8609 = vmatmul.mubr.msk.bf16.gmra.mrb[28].mxu0 %vm11461_vm3, %v11599_v29 }
 0x100   :  { %2664 = vmatpush1.bf16.msra.mxu1 %v10124_v54  ;;  %4615 = vmatpush1.bf16.msra.mxu0 %v10127_v28  ;;  %v10150_v54 = vld [vmem:[#allocation5 + $0xaec] ss:$24 sps:$4 sm:$0xff]  }
 0x101   :  { %2665 = vmatprep.subr.bf16.mxu1 %v10132_v26  ;;  %4616 = vmatprep.subr.bf16.mxu0 %v10135_v14  ;;  %v10153_v28 = vld [vmem:[#allocation5 + $0x4e4] ss:$24 sps:$4 sm:$0xff]   ;;  %v10159_v14 = vld [vmem:[#allocation5 + $0x514] ss:$24 sps:$4 sm:$0xff]  }
 0x102   :  { %2683 = vmatprep.mubr.bf16.mxu1 %v11244_v52  ;;  %8612 = vmatprep.mubr.msk.bf16.mxu0 %vm11461_vm3, %v11607_v57  ;;  %v10156_v26 = vld [vmem:[#allocation5 + $0xb1c] ss:$24 sps:$4 sm:$0xff]  }
 0x104   :  { %2666 = vmatpush1.bf16.msra.mxu1 %v10130_v5  ;;  %4617 = vmatpush1.bf16.msra.mxu0 %v10133_v42  ;;  %v10154_v5 = vld [vmem:[#allocation5 + $0xb18] ss:$24 sps:$4 sm:$0xff]  }
 0x105   :  { %2667 = vmatprep.subr.bf16.mxu1 %v10138_v18  ;;  %4618 = vmatprep.subr.bf16.mxu0 %v10141_v0  ;;  %v10157_v42 = vld [vmem:[#allocation5 + $0x510] ss:$24 sps:$4 sm:$0xff]   ;;  %v10162_v18 = vld [vmem:[#allocation5 + $0xb4c] ss:$24 sps:$4 sm:$0xff]  }
 0x106   :  { %v10165_v0 = vld [vmem:[#allocation5 + $0x544] ss:$24 sps:$4 sm:$0xff]  }
 0x108   :  { %2668 = vmatpush1.bf16.msra.mxu1 %v10136_v53  ;;  %4619 = vmatpush1.bf16.msra.mxu0 %v10139_v27  ;;  %v10160_v53 = vld [vmem:[#allocation5 + $0xb48] ss:$24 sps:$4 sm:$0xff]  }
 0x109   :  { %2669 = vmatprep.subr.bf16.mxu1 %v10144_v30  ;;  %4620 = vmatprep.subr.bf16.mxu0 %v10147_v49  ;;  %v10163_v27 = vld [vmem:[#allocation5 + $0x540] ss:$24 sps:$4 sm:$0xff]   ;;  %v10168_v30 = vld [vmem:[#allocation5 + $0xb7c] ss:$24 sps:$4 sm:$0xff]  }
 0x10a   :  { %v10171_v49 = vld [vmem:[#allocation5 + $0x574] ss:$24 sps:$4 sm:$0xff]  }
 0x10c   :  { %2670 = vmatpush1.bf16.msra.mxu1 %v10142_v4  ;;  %4621 = vmatpush1.bf16.msra.mxu0 %v10145_v10  ;;  %v10166_v4 = vld [vmem:[#allocation5 + $0xb78] ss:$24 sps:$4 sm:$0xff]  }
 0x10d   :  { %2671 = vmatprep.subr.bf16.mxu1 %v10150_v54  ;;  %4622 = vmatprep.subr.bf16.mxu0 %v10153_v28  ;;  %v10169_v10 = vld [vmem:[#allocation5 + $0x570] ss:$24 sps:$4 sm:$0xff]   ;;  %v10174_v54 = vld [vmem:[#allocation5 + $0xbac] ss:$24 sps:$4 sm:$0xff]  }
 0x10e   :  { %v10177_v28 = vld [vmem:[#allocation5 + $0x5a4] ss:$24 sps:$4 sm:$0xff]  }
 0x110   :  { %2672 = vmatpush1.bf16.msra.mxu1 %v10148_v8  ;;  %4623 = vmatpush1.bf16.msra.mxu0 %v10151_v62  ;;  %v11617_v8 = vld [vmem:[#allocation2 + $0x38] sm:$0xff] }
 0x111   :  { %2673 = vmatprep.subr.bf16.mxu1 %v10156_v26  ;;  %4624 = vmatprep.subr.bf16.mxu0 %v10159_v14  ;;  %12756 = vst [vmem:[#allocation34_spill] sm:$0xff] %v11617_v8  ;;  %v12688_v62 = vunpack.c.h.bf16 %v11617_v8  ;;  %v11620_v26 = vld [vmem:[#allocation2 + $0x50] sm:$0xff] }
 0x112   :  { %12757 = vst [vmem:[#allocation35_spill] sm:$0xff] %v11620_v26  ;;  %v12691_v14 = vunpack.c.h.bf16 %v11620_v26  ;;  %v12697_v46 = vunpack.c.l.bf16 %v11620_v26 }
 0x114   :  { %2674 = vmatpush1.bf16.msra.mxu1 %v10154_v5  ;;  %4625 = vmatpush1.bf16.msra.mxu0 %v10157_v42  ;;  %v10172_v5 = vld [vmem:[#allocation5 + $0xba8] ss:$24 sps:$4 sm:$0xff]  }
 0x115   :  { %2675 = vmatprep.subr.bf16.mxu1 %v10162_v18  ;;  %4626 = vmatprep.subr.bf16.mxu0 %v10165_v0  ;;  %v10175_v42 = vld [vmem:[#allocation5 + $0x5a0] ss:$24 sps:$4 sm:$0xff]   ;;  %v10180_v18 = vld [vmem:[#allocation5 + $0xbdc] ss:$24 sps:$4 sm:$0xff]  }
 0x116   :  { %v10183_v0 = vld [vmem:[#allocation5 + $0x5d4] ss:$24 sps:$4 sm:$0xff]  }
 0x118   :  { %2676 = vmatpush1.bf16.msra.mxu1 %v10160_v53  ;;  %4627 = vmatpush1.bf16.msra.mxu0 %v10163_v27  ;;  %v418_v53 = vrot.slane %v12688_v62, 7  ;;  %v10178_v27 = vld [vmem:[#allocation5 + $0xbd8] ss:$24 sps:$4 sm:$0xff]   ;;  %v11632_v62 = vld [vmem:[#allocation2 + $0x80] sm:$0xff] }
 0x119   :  { %2677 = vmatprep.subr.bf16.mxu1 %v10168_v30  ;;  %4628 = vmatprep.subr.bf16.mxu0 %v10171_v49  ;;  %v10181_v30 = vld [vmem:[#allocation5 + $0x5d0] ss:$24 sps:$4 sm:$0xff]   ;;  %v424_v49 = vrot.slane %v12691_v14, 7  ;;  %12759 = vst [vmem:[#allocation37_spill] sm:$0xff] %v11632_v62  ;;  %v10187_v14 = vld [vmem:[#allocation5 + $0x600] ss:$24 sps:$4 sm:$0xff]   ;;  %v12764_v26 = vunpack.c.l.bf16 %v11632_v62 }
 0x11b   :  { %v479_v44 = vsel %vm451_vm0, %v418_v53, %v424_v49 }
 0x11c   :  { %2678 = vmatpush1.bf16.msra.mxu1 %v10166_v4  ;;  %4629 = vmatpush1.bf16.msra.mxu0 %v10169_v10  ;;  %v10186_v4 = vld [vmem:[#allocation5 + $0xc0c] ss:$24 sps:$4 sm:$0xff]  }
 0x11d   :  { %2679 = vmatprep.subr.bf16.mxu1 %v10174_v54  ;;  %4630 = vmatprep.subr.bf16.mxu0 %v10177_v28  ;;  %v10189_v10 = vld [vmem:[#allocation5 + $0x604] ss:$24 sps:$4 sm:$0xff]   ;;  %v11629_v54 = vld [vmem:[#allocation2 + $0x68] sm:$0xff]  ;;  %v423_v28 = vrot.slane %v12697_v46, 7  ;;  %v10199_v46 = vld [vmem:[#allocation5 + $0x660] ss:$24 sps:$4 sm:$0xff]  }
 0x11e   :  { %12758 = vst [vmem:[#allocation36_spill] sm:$0xff] %v11629_v54  ;;  %v12762_v57 = vunpack.c.h.bf16 %v11629_v54 }
 0x120   :  { %2680 = vmatpush1.bf16.msra.mxu1 %v10172_v5  ;;  %4631 = vmatpush1.bf16.msra.mxu0 %v10175_v42  ;;  %v485_v5 = vsel %vm451_vm0, %v11580_v25, %v418_v53  ;;  %v10192_v42 = vld [vmem:[#allocation5 + $0xc3c] ss:$24 sps:$4 sm:$0xff]   ;;  %v430_v52 = vrot.slane %v12762_v57, 7  ;;  %v10190_v25 = vld [vmem:[#allocation5 + $0xc38] ss:$24 sps:$4 sm:$0xff]  }
 0x121   :  { %2681 = vmatprep.subr.bf16.mxu1 %v10180_v18  ;;  %4632 = vmatprep.subr.bf16.mxu0 %v10183_v0  ;;  %v12760_v18 = vunpack.c.l.bf16 %v11617_v8  ;;  %v11644_v48 = vpack.c.bf16 %v479_v44, %v485_v5  ;;  %v10193_v53 = vld [vmem:[#allocation5 + $0x630] ss:$24 sps:$4 sm:$0xff]   ;;  %v10198_v44 = vld [vmem:[#allocation5 + $0xc6c] ss:$24 sps:$4 sm:$0xff]   ;;  %v435_v8 = vrot.slane %v12764_v26, 7 }
 0x122   :  { %v10210_v26 = vld [vmem:[#allocation5 + $0xccc] ss:$24 sps:$4 sm:$0xff]  }
 0x123   :  { %v417_v0 = vrot.slane %v12760_v18, 7  ;;  %12761 = vst [vmem:[#allocation38_spill] sm:$0xff] %v11644_v48  ;;  %v10201_v18 = vld [vmem:[#allocation5 + $0x664] ss:$24 sps:$4 sm:$0xff]  }
 0x124   :  { %2682 = vmatpush1.bf16.msra.mxu1 %v10178_v27  ;;  %4633 = vmatpush1.bf16.msra.mxu0 %v10181_v30  ;;  %v12763_v27 = vunpack.c.h.bf16 %v11632_v62 }
 0x125   :  { %2724 = vmatprep.subr.bf16.mxu1 %v10186_v4  ;;  %4675 = vmatprep.subr.bf16.mxu0 %v10189_v10  ;;  %v12704_v4 = vunpack.c.l.bf16 %v11629_v54  ;;  %v478_v57 = vsel %vm451_vm0, %v417_v0, %v423_v28  ;;  %v484_v5 = vsel %vm451_vm0, %v11394_v3, %v417_v0 }
 0x126   :  { %v436_v30 = vrot.slane %v12763_v27, 7  ;;  %v11665_v27 = vld [vmem:[#allocation2 + $0x98] sm:$0xff]  ;;  %v11668_v10 = vpack.c.bf16 %v478_v57, %v484_v5 }
 0x127   :  { %2684 = vmatmul.mubr.bf16.vlgmr.msra.gmra.mrb[16].mxu1 %v11270_v15  ;;  %8615 = vmatmul.mubr.msk.bf16.vlgmr.msra.gmra.mrb[16].mxu0 %vm11461_vm3, %v11412_v38  ;;  %v429_v0 = vrot.slane %v12704_v4, 7  ;;  %v10202_v5 = vld [vmem:[#allocation5 + $0xc98] ss:$24 sps:$4 sm:$0xff]   ;;  %v11694_v4 = vld [vmem:[#allocation2 + $0x28] sm:$0xff] }
 0x128   :  { %2725 = vmatpush1.bf16.msra.mxu1 %v10184_v6  ;;  %4676 = vmatpush1.bf16.msra.mxu0 %v10187_v14  ;;  %v10196_v14 = vld [vmem:[#allocation5 + $0xc68] ss:$24 sps:$4 sm:$0xff]   ;;  %v467_v3 = vsel %vm451_vm0, %v430_v52, %v436_v30  ;;  %v10207_v6 = vld [vmem:[#allocation5 + $0x694] ss:$24 sps:$4 sm:$0xff]   ;;  %12768 = vst [vmem:[#allocation41_spill] sm:$0xff] %v11694_v4 }
 0x129   :  { %2726 = vmatprep.subr.bf16.mxu1 %v10192_v42  ;;  %4677 = vmatprep.subr.bf16.mxu0 %v10195_v47  ;;  %v473_v47 = vsel %vm451_vm0, %v424_v49, %v430_v52  ;;  %v10204_v42 = vld [vmem:[#allocation5 + $0xc9c] ss:$24 sps:$4 sm:$0xff]   ;;  %v12766_v52 = vunpack.c.h.bf16 %v11665_v27 }
 0x12a   :  { %2693 = vmatprep.mubr.bf16.mxu1 %v11291_v31  ;;  %8618 = vmatprep.mubr.msk.bf16.mxu0 %vm11461_vm3, %v11644_v48  ;;  %v11678_v57 = vpack.c.bf16 %v467_v3, %v473_v47  ;;  %v10205_v48 = vld [vmem:[#allocation5 + $0x690] ss:$24 sps:$4 sm:$0xff]   ;;  %v10216_v47 = vld [vmem:[#allocation5 + $0xcfc] ss:$24 sps:$4 sm:$0xff]  }
 0x12b   :  { %v442_v49 = vrot.slane %v12766_v52, 7  ;;  %v11691_v3 = vld [vmem:[#allocation2 + $0x10] sm:$0xff] }
 0x12c   :  { %2727 = vmatpush1.bf16.msra.mxu1 %v10190_v25  ;;  %4678 = vmatpush1.bf16.msra.mxu0 %v10193_v53  ;;  %12765 = vst [vmem:[#allocation39_spill] sm:$0xff] %v11678_v57  ;;  %v12712_v25 = vunpack.c.l.bf16 %v11665_v27  ;;  %v466_v53 = vsel %vm451_vm0, %v429_v0, %v435_v8  ;;  %12767 = vst [vmem:[#allocation40_spill] sm:$0xff] %v11691_v3 }
 0x12d   :  { %2728 = vmatprep.subr.bf16.mxu1 %v10198_v44  ;;  %4679 = vmatprep.subr.bf16.mxu0 %v10201_v18  ;;  %v472_v44 = vsel %vm451_vm0, %v423_v28, %v429_v0  ;;  %v10213_v18 = vld [vmem:[#allocation5 + $0x6c4] ss:$24 sps:$4 sm:$0xff]   ;;  %v455_v0 = vsel %vm451_vm0, %v442_v49, %v11588_v63  ;;  %v461_v52 = vsel %vm451_vm0, %v436_v30, %v442_v49  ;;  %v10219_v28 = vld [vmem:[#allocation5 + $0x6f4] ss:$24 sps:$4 sm:$0xff]   ;;  %v10217_v30 = vld [vmem:[#allocation5 + $0x6f0] ss:$24 sps:$4 sm:$0xff]  }
 0x12e   :  { %v441_v62 = vrot.slane %v12712_v25, 7  ;;  %v11713_v54 = vpack.c.bf16 %v455_v0, %v461_v52  ;;  %v10222_v49 = vld [vmem:[#allocation5 + $0xd2c] ss:$24 sps:$4 sm:$0xff]   ;;  %v10220_v52 = vld [vmem:[#allocation5 + $0xd28] ss:$24 sps:$4 sm:$0xff]  }
 0x12f   :  { %2694 = vmatmul.mubr.bf16.gmra.mrb[20].mxu1 %v11295_v34  ;;  %8621 = vmatmul.mubr.msk.bf16.gmra.mrb[20].mxu0 %vm11461_vm3, %v11668_v10  ;;  %v10226_v0 = vld [vmem:[#allocation5 + $0xd58] ss:$24 sps:$4 sm:$0xff]  }
 0x130   :  { %2729 = vmatpush1.bf16.msra.mxu1 %v10196_v14  ;;  %4680 = vmatpush1.bf16.msra.mxu0 %v10199_v46  ;;  %v11701_v46 = vld [vmem:[#allocation2 + $0xb8] sm:$0xff]  ;;  %v10283_v25 = vld [vmem:[#allocation5 + $0x10] ss:$24 sps:$4 sm:$0xff]  }
 0x131   :  { %2730 = vmatprep.subr.bf16.mxu1 %v10204_v42  ;;  %4681 = vmatprep.subr.bf16.mxu0 %v10207_v6  ;;  %12769 = vst [vmem:[#allocation42_spill] sm:$0xff] %v11701_v46  ;;  %v10208_v6 = vld [vmem:[#allocation5 + $0xcc8] ss:$24 sps:$4 sm:$0xff]   ;;  %v11704_v42 = vpack.c.bf16 %v466_v53, %v472_v44  ;;  %v12770_v53 = vunpack.c.h.bf16 %v11691_v3  ;;  %v10291_v3 = vld [vmem:[#allocation5 + $0x44] ss:$24 sps:$4 sm:$0xff]  }
 0x132   :  { %2703 = vmatprep.mubr.bf16.mxu1 %v11311_v45  ;;  %8624 = vmatprep.mubr.msk.bf16.mxu0 %vm11461_vm3, %v11678_v57  ;;  %v10211_v14 = vld [vmem:[#allocation5 + $0x6c0] ss:$24 sps:$4 sm:$0xff]   ;;  %v12771_v57 = vunpack.c.h.bf16 %v11694_v4  ;;  %v11771_v4 = vld [vmem:[#allocation2 + $0x88] sm:$0xff] }
 0x133   :  { %v408_v44 = vrot.slane %v12770_v53, 7  ;;  %v10214_v45 = vld [vmem:[#allocation5 + $0xcf8] ss:$24 sps:$4 sm:$0xff]  }
 0x134   :  { %2731 = vmatpush1.bf16.msra.mxu1 %v10202_v5  ;;  %4682 = vmatpush1.bf16.msra.mxu0 %v10205_v48  ;;  %v11719_v63 = vrot.slane %v12771_v57, 7  ;;  %v12772_v48 = vunpack.c.h.bf16 %v11701_v46  ;;  %v454_v57 = vsel %vm451_vm0, %v441_v62, %v11398_v7  ;;  %v10229_v53 = vld [vmem:[#allocation5 + $0x750] ss:$24 sps:$4 sm:$0xff]  }
 0x135   :  { %2732 = vmatprep.subr.bf16.mxu1 %v10210_v26  ;;  %4683 = vmatprep.subr.bf16.mxu0 %v10213_v18  ;;  %v460_v26 = vsel %vm451_vm0, %v435_v8, %v441_v62  ;;  %v10225_v18 = vld [vmem:[#allocation5 + $0x724] ss:$24 sps:$4 sm:$0xff]   ;;  %v11768_v46 = vld [vmem:[#allocation2 + $0x70] sm:$0xff] }
 0x136   :  { %v11727_v5 = vrot.slane %v12772_v48, 7  ;;  %v493_v7 = vsel %vm451_vm0, %v408_v44, %v11719_v63  ;;  %v10228_v62 = vld [vmem:[#allocation5 + $0xd5c] ss:$24 sps:$4 sm:$0xff]   ;;  %v10235_v48 = vld [vmem:[#allocation5 + $0x780] ss:$24 sps:$4 sm:$0xff]  }
 0x137   :  { %2704 = vmatmul.mubr.bf16.gmra.mrb[24].mxu1 %v11318_v58  ;;  %8627 = vmatmul.mubr.msk.bf16.gmra.mrb[24].mxu0 %vm11461_vm3, %v11704_v42 }
 0x138   :  { %2733 = vmatpush1.bf16.msra.mxu1 %v10208_v6  ;;  %4684 = vmatpush1.bf16.msra.mxu0 %v10211_v14  ;;  %v10223_v6 = vld [vmem:[#allocation5 + $0x720] ss:$24 sps:$4 sm:$0xff]   ;;  %v11738_v14 = vpack.c.bf16 %v454_v57, %v460_v26  ;;  %v499_v8 = vsel %vm451_vm0, %v11727_v5, %v408_v44  ;;  %v10237_v44 = vld [vmem:[#allocation5 + $0x784] ss:$24 sps:$4 sm:$0xff]   ;;  %v10243_v57 = vld [vmem:[#allocation5 + $0x7b4] ss:$24 sps:$4 sm:$0xff]  }
 0x139   :  { %2734 = vmatprep.subr.bf16.mxu1 %v10216_v47  ;;  %4685 = vmatprep.subr.bf16.mxu0 %v10219_v28  ;;  %v10231_v47 = vld [vmem:[#allocation5 + $0x754] ss:$24 sps:$4 sm:$0xff]   ;;  %v11746_v28 = vpack.c.bf16 %v493_v7, %v499_v8  ;;  %v10238_v26 = vld [vmem:[#allocation5 + $0xdb8] ss:$24 sps:$4 sm:$0xff]   ;;  %v10244_v7 = vld [vmem:[#allocation5 + $0xde8] ss:$24 sps:$4 sm:$0xff]  }
 0x13a   :  { %2713 = vmatprep.mubr.bf16.mxu1 %v11331_v2  ;;  %8630 = vmatprep.mubr.msk.bf16.mxu0 %vm11461_vm3, %v11713_v54  ;;  %v10252_v8 = vld [vmem:[#allocation5 + $0xe1c] ss:$24 sps:$4 sm:$0xff]  }
 0x13c   :  { %2735 = vmatpush1.bf16.msra.mxu1 %v10214_v45  ;;  %4686 = vmatpush1.bf16.msra.mxu0 %v10217_v30  ;;  %v10234_v45 = vld [vmem:[#allocation5 + $0xd8c] ss:$24 sps:$4 sm:$0xff]   ;;  %v10232_v30 = vld [vmem:[#allocation5 + $0xd88] ss:$24 sps:$4 sm:$0xff]  }
 0x13d   :  { %2736 = vmatprep.subr.bf16.mxu1 %v10222_v49  ;;  %4687 = vmatprep.subr.bf16.mxu0 %v10225_v18  ;;  %v10240_v49 = vld [vmem:[#allocation5 + $0xdbc] ss:$24 sps:$4 sm:$0xff]   ;;  %v10241_v18 = vld [vmem:[#allocation5 + $0x7b0] ss:$24 sps:$4 sm:$0xff]  }
 0x13f   :  { %2714 = vmatmul.mubr.bf16.gmra.mrb[28].mxu1 %v11351_v21  ;;  %8633 = vmatmul.mubr.msk.bf16.gmra.mrb[28].mxu0 %vm11461_vm3, %v11738_v14 }
 0x140   :  { %2737 = vmatpush1.bf16.msra.mxu1 %v10220_v52  ;;  %4688 = vmatpush1.bf16.msra.mxu0 %v10223_v6  ;;  %v10246_v52 = vld [vmem:[#allocation5 + $0xdec] ss:$24 sps:$4 sm:$0xff]  }
 0x141   :  { %2738 = vmatprep.subr.bf16.mxu1 %v10228_v62  ;;  %4689 = vmatprep.subr.bf16.mxu0 %v10231_v47  ;;  %v10249_v6 = vld [vmem:[#allocation5 + $0x7e4] ss:$24 sps:$4 sm:$0xff]   ;;  %v10255_v62 = vld [vmem:[#allocation5 + $0x814] ss:$24 sps:$4 sm:$0xff]   ;;  %v10250_v47 = vld [vmem:[#allocation5 + $0xe18] ss:$24 sps:$4 sm:$0xff]  }
 0x142   :  { %2756 = vmatprep.mubr.bf16.mxu1 %v11253_v56  ;;  %8636 = vmatprep.mubr.msk.bf16.mxu0 %vm11461_vm3, %v11746_v28  ;;  %v10247_v56 = vld [vmem:[#allocation5 + $0x7e0] ss:$24 sps:$4 sm:$0xff]  }
 0x144   :  { %2739 = vmatpush1.bf16.msra.mxu1 %v10226_v0  ;;  %4690 = vmatpush1.bf16.msra.mxu0 %v10229_v53  ;;  %v10253_v0 = vld [vmem:[#allocation5 + $0x810] ss:$24 sps:$4 sm:$0xff]   ;;  %v10258_v53 = vld [vmem:[#allocation5 + $0xe4c] ss:$24 sps:$4 sm:$0xff]  }
 0x145   :  { %2740 = vmatprep.subr.bf16.mxu1 %v10234_v45  ;;  %4691 = vmatprep.subr.bf16.mxu0 %v10237_v44  ;;  %v10261_v45 = vld [vmem:[#allocation5 + $0x844] ss:$24 sps:$4 sm:$0xff]   ;;  %v10256_v44 = vld [vmem:[#allocation5 + $0xe48] ss:$24 sps:$4 sm:$0xff]  }
 0x148   :  { %2741 = vmatpush1.bf16.msra.mxu1 %v10232_v30  ;;  %4692 = vmatpush1.bf16.msra.mxu0 %v10235_v48  ;;  %v10259_v30 = vld [vmem:[#allocation5 + $0x840] ss:$24 sps:$4 sm:$0xff]   ;;  %v10264_v48 = vld [vmem:[#allocation5 + $0xe7c] ss:$24 sps:$4 sm:$0xff]  }
 0x149   :  { %2742 = vmatprep.subr.bf16.mxu1 %v10240_v49  ;;  %4693 = vmatprep.subr.bf16.mxu0 %v10243_v57  ;;  %v10267_v49 = vld [vmem:[#allocation5 + $0x874] ss:$24 sps:$4 sm:$0xff]   ;;  %v10262_v57 = vld [vmem:[#allocation5 + $0xe78] ss:$24 sps:$4 sm:$0xff]  }
 0x14c   :  { %2743 = vmatpush1.bf16.msra.mxu1 %v10238_v26  ;;  %4694 = vmatpush1.bf16.msra.mxu0 %v10241_v18  ;;  %v10265_v26 = vld [vmem:[#allocation5 + $0x870] ss:$24 sps:$4 sm:$0xff]   ;;  %v10270_v18 = vld [vmem:[#allocation5 + $0xeac] ss:$24 sps:$4 sm:$0xff]  }
 0x14d   :  { %2744 = vmatprep.subr.bf16.mxu1 %v10246_v52  ;;  %4695 = vmatprep.subr.bf16.mxu0 %v10249_v6  ;;  %v10273_v52 = vld [vmem:[#allocation5 + $0x8a4] ss:$24 sps:$4 sm:$0xff]  }
 0x14e   :  { %v11756_v6 = vld [vmem:[#allocation2 + $0x40] sm:$0xff] }
 0x150   :  { %2745 = vmatpush1.bf16.msra.mxu1 %v10244_v7  ;;  %4696 = vmatpush1.bf16.msra.mxu0 %v10247_v56  ;;  %v12714_v7 = vunpack.c.h.bf16 %v11756_v6  ;;  %v11759_v56 = vld [vmem:[#allocation2 + $0x58] sm:$0xff] }
 0x151   :  { %2746 = vmatprep.subr.bf16.mxu1 %v10252_v8  ;;  %4697 = vmatprep.subr.bf16.mxu0 %v10255_v62  ;;  %12773 = vst [vmem:[#allocation43_spill] sm:$0xff] %v11759_v56  ;;  %v12716_v8 = vunpack.c.h.bf16 %v11759_v56  ;;  %v10268_v62 = vld [vmem:[#allocation5 + $0xea8] ss:$24 sps:$4 sm:$0xff]  }
 0x154   :  { %2747 = vmatpush1.bf16.msra.mxu1 %v10250_v47  ;;  %4698 = vmatpush1.bf16.msra.mxu0 %v10253_v0  ;;  %v10271_v47 = vld [vmem:[#allocation5 + $0x8a0] ss:$24 sps:$4 sm:$0xff]   ;;  %v10276_v0 = vld [vmem:[#allocation5 + $0xedc] ss:$24 sps:$4 sm:$0xff]  }
 0x155   :  { %2748 = vmatprep.subr.bf16.mxu1 %v10258_v53  ;;  %4699 = vmatprep.subr.bf16.mxu0 %v10261_v45  ;;  %v10279_v53 = vld [vmem:[#allocation5 + $0x8d4] ss:$24 sps:$4 sm:$0xff]   ;;  %v420_v45 = vrot.slane %v12714_v7, 7 }
 0x156   :  { %v10288_v7 = vld [vmem:[#allocation5 + $0xf3c] ss:$24 sps:$4 sm:$0xff]  }
 0x158   :  { %2749 = vmatpush1.bf16.msra.mxu1 %v10256_v44  ;;  %4700 = vmatpush1.bf16.msra.mxu0 %v10259_v30  ;;  %v426_v44 = vrot.slane %v12716_v8, 7  ;;  %v12719_v30 = vunpack.c.l.bf16 %v11756_v6 }
 0x159   :  { %2750 = vmatprep.subr.bf16.mxu1 %v10264_v48  ;;  %4701 = vmatprep.subr.bf16.mxu0 %v10267_v49  ;;  %v12718_v48 = vunpack.c.l.bf16 %v11759_v56  ;;  %v10274_v49 = vld [vmem:[#allocation5 + $0xed8] ss:$24 sps:$4 sm:$0xff]  }
 0x15c   :  { %2751 = vmatpush1.bf16.msra.mxu1 %v10262_v57  ;;  %4702 = vmatpush1.bf16.msra.mxu0 %v10265_v26  ;;  %v10277_v57 = vld [vmem:[#allocation5 + $0x8d0] ss:$24 sps:$4 sm:$0xff]   ;;  %v10282_v26 = vld [vmem:[#allocation5 + $0xf0c] ss:$24 sps:$4 sm:$0xff]  }
 0x15d   :  { %2752 = vmatprep.subr.bf16.mxu1 %v10270_v18  ;;  %4703 = vmatprep.subr.bf16.mxu0 %v10273_v52  ;;  %v10285_v18 = vld [vmem:[#allocation5 + $0x14] ss:$24 sps:$4 sm:$0xff]   ;;  %v10280_v52 = vld [vmem:[#allocation5 + $0xf08] ss:$24 sps:$4 sm:$0xff]  }
 0x160   :  { %2753 = vmatpush1.bf16.msra.mxu1 %v10268_v62  ;;  %4704 = vmatpush1.bf16.msra.mxu0 %v10271_v47  ;;  %v481_v62 = vsel %vm451_vm0, %v420_v45, %v426_v44  ;;  %v487_v47 = vsel %vm451_vm0, %v11719_v63, %v420_v45  ;;  %v12774_v63 = vunpack.c.h.bf16 %v11768_v46 }
 0x161   :  { %2754 = vmatprep.subr.bf16.mxu1 %v10276_v0  ;;  %4705 = vmatprep.subr.bf16.mxu0 %v10279_v53  ;;  %v419_v0 = vrot.slane %v12719_v30, 7  ;;  %v425_v53 = vrot.slane %v12718_v48, 7  ;;  %v11783_v8 = vpack.c.bf16 %v481_v62, %v487_v47  ;;  %v12723_v48 = vunpack.c.l.bf16 %v11768_v46  ;;  %v10289_v62 = vld [vmem:[#allocation5 + $0x40] ss:$24 sps:$4 sm:$0xff]   ;;  %v10297_v30 = vld [vmem:[#allocation5 + $0x74] ss:$24 sps:$4 sm:$0xff]  }
 0x162   :  { %v432_v45 = vrot.slane %v12774_v63, 7  ;;  %v10294_v63 = vld [vmem:[#allocation5 + $0xf6c] ss:$24 sps:$4 sm:$0xff]  }
 0x163   :  { %v486_v47 = vsel %vm451_vm0, %v11486_v50, %v419_v0 }
 0x164   :  { %2755 = vmatpush1.bf16.msra.mxu1 %v10274_v49  ;;  %4706 = vmatpush1.bf16.msra.mxu0 %v10277_v57  ;;  %v12775_v49 = vunpack.c.h.bf16 %v11771_v4 }
 0x165   :  { %2797 = vmatprep.subr.bf16.mxu1 %v10282_v26  ;;  %4967 = vmatprep.subr.bf16.mxu0 %v10285_v18  ;;  %v10286_v18 = vld [vmem:[#allocation5 + $0xf38] ss:$24 sps:$4 sm:$0xff]  }
 0x166   :  { %v438_v57 = vrot.slane %v12775_v49, 7  ;;  %v10292_v49 = vld [vmem:[#allocation5 + $0xf68] ss:$24 sps:$4 sm:$0xff]  }
 0x167   :  { %2757 = vmatmul.mubr.bf16.vlgmr.msra.gmra.mrb[16].mxu1 %v11274_v16  ;;  %8639 = vmatmul.mubr.msk.bf16.vlgmr.msra.gmra.mrb[16].mxu0 %vm11461_vm3, %v11509_v35  ;;  %v480_v16 = vsel %vm451_vm0, %v419_v0, %v425_v53  ;;  %v12776_v0 = vunpack.c.l.bf16 %v11771_v4 }
 0x168   :  { %2798 = vmatpush1.bf16.msra.mxu1 %v10280_v52  ;;  %4968 = vmatpush1.bf16.msra.mxu0 %v10283_v25  ;;  %v11804_v25 = vld [vmem:[#allocation2 + $0xa0] sm:$0xff]  ;;  %v11807_v26 = vpack.c.bf16 %v480_v16, %v486_v47  ;;  %v469_v50 = vsel %vm451_vm0, %v432_v45, %v438_v57  ;;  %v10300_v52 = vld [vmem:[#allocation5 + $0xf9c] ss:$24 sps:$4 sm:$0xff]  }
 0x169   :  { %2799 = vmatprep.subr.bf16.mxu1 %v10288_v7  ;;  %4969 = vmatprep.subr.bf16.mxu0 %v10291_v3  ;;  %v475_v3 = vsel %vm451_vm0, %v426_v44, %v432_v45  ;;  %v10295_v7 = vld [vmem:[#allocation5 + $0x70] ss:$24 sps:$4 sm:$0xff]   ;;  %v437_v56 = vrot.slane %v12776_v0, 7  ;;  %v10303_v16 = vld [vmem:[#allocation5 + $0xa4] ss:$24 sps:$4 sm:$0xff]   ;;  %v12777_v44 = vunpack.c.h.bf16 %v11804_v25 }
 0x16a   :  { %2766 = vmatprep.mubr.bf16.mxu1 %v11298_v36  ;;  %8642 = vmatprep.mubr.msk.bf16.mxu0 %vm11461_vm3, %v11783_v8  ;;  %v431_v36 = vrot.slane %v12723_v48, 7  ;;  %v11817_v47 = vpack.c.bf16 %v469_v50, %v475_v3  ;;  %v10309_v3 = vld [vmem:[#allocation5 + $0xd4] ss:$24 sps:$4 sm:$0xff]   ;;  %v10468_v48 = vld [vmem:[#allocation5 + $0xbe4] ss:$24 sps:$4 sm:$0xff]  }
 0x16b   :  { %v444_v45 = vrot.slane %v12777_v44, 7 }
 0x16c   :  { %2800 = vmatpush1.bf16.msra.mxu1 %v10286_v18  ;;  %4970 = vmatpush1.bf16.msra.mxu0 %v10289_v62  ;;  %v12722_v18 = vunpack.c.l.bf16 %v11804_v25  ;;  %v10298_v62 = vld [vmem:[#allocation5 + $0xf98] ss:$24 sps:$4 sm:$0xff]   ;;  %v474_v50 = vsel %vm451_vm0, %v425_v53, %v431_v36  ;;  %v10304_v53 = vld [vmem:[#allocation5 + $0xfc8] ss:$24 sps:$4 sm:$0xff]  }
 0x16d   :  { %2801 = vmatprep.subr.bf16.mxu1 %v10294_v63  ;;  %4971 = vmatprep.subr.bf16.mxu0 %v10297_v30  ;;  %v10301_v63 = vld [vmem:[#allocation5 + $0xa0] ss:$24 sps:$4 sm:$0xff]   ;;  %v468_v30 = vsel %vm451_vm0, %v431_v36, %v437_v56  ;;  %v463_v0 = vsel %vm451_vm0, %v438_v57, %v444_v45  ;;  %v10312_v36 = vld [vmem:[#allocation5 + $0xffc] ss:$24 sps:$4 sm:$0xff]  }
 0x16e   :  { %v10313_v57 = vld [vmem:[#allocation5 + $0x100] ss:$24 sps:$4 sm:$0xff]  }
 0x16f   :  { %2767 = vmatmul.mubr.bf16.gmra.mrb[20].mxu1 %v11300_v37  ;;  %8645 = vmatmul.mubr.msk.bf16.gmra.mrb[20].mxu0 %vm11461_vm3, %v11807_v26  ;;  %v10306_v37 = vld [vmem:[#allocation5 + $0xfcc] ss:$24 sps:$4 sm:$0xff]  }
 0x170   :  { %2802 = vmatpush1.bf16.msra.mxu1 %v10292_v49  ;;  %4972 = vmatpush1.bf16.msra.mxu0 %v10295_v7  ;;  %v11834_v49 = vpack.c.bf16 %v468_v30, %v474_v50  ;;  %v457_v7 = vsel %vm451_vm0, %v444_v45, %v11727_v5  ;;  %v10310_v5 = vld [vmem:[#allocation5 + $0xff8] ss:$24 sps:$4 sm:$0xff]   ;;  %v10321_v30 = vld [vmem:[#allocation5 + $0x134] ss:$24 sps:$4 sm:$0xff]   ;;  %v10316_v50 = vld [vmem:[#allocation5 + $0x1028] ss:$24 sps:$4 sm:$0xff]  }
 0x171   :  { %2803 = vmatprep.subr.bf16.mxu1 %v10300_v52  ;;  %4973 = vmatprep.subr.bf16.mxu0 %v10303_v16  ;;  %v10307_v52 = vld [vmem:[#allocation5 + $0xd0] ss:$24 sps:$4 sm:$0xff]   ;;  %v10315_v16 = vld [vmem:[#allocation5 + $0x104] ss:$24 sps:$4 sm:$0xff]   ;;  %v11843_v44 = vpack.c.bf16 %v457_v7, %v463_v0  ;;  %v10333_v0 = vld [vmem:[#allocation5 + $0x194] ss:$24 sps:$4 sm:$0xff]  }
 0x172   :  { %2776 = vmatprep.mubr.bf16.mxu1 %v11313_v55  ;;  %8648 = vmatprep.mubr.msk.bf16.mxu0 %vm11461_vm3, %v11817_v47  ;;  %v443_v55 = vrot.slane %v12722_v18, 7  ;;  %v10330_v7 = vld [vmem:[#allocation5 + $0x108c] ss:$24 sps:$4 sm:$0xff]  }
 0x173   :  { %v10465_v18 = vld [vmem:[#allocation5 + $0x5b4] ss:$24 sps:$4 sm:$0xff]  }
 0x174   :  { %2804 = vmatpush1.bf16.msra.mxu1 %v10298_v62  ;;  %4974 = vmatpush1.bf16.msra.mxu0 %v10301_v63  ;;  %v456_v45 = vsel %vm451_vm0, %v443_v55, %v11490_v51  ;;  %v462_v62 = vsel %vm451_vm0, %v437_v56, %v443_v55  ;;  %v10318_v63 = vld [vmem:[#allocation5 + $0x102c] ss:$24 sps:$4 sm:$0xff]   ;;  %v10324_v51 = vld [vmem:[#allocation5 + $0x105c] ss:$24 sps:$4 sm:$0xff]  }
 0x175   :  { %2805 = vmatprep.subr.bf16.mxu1 %v10306_v37  ;;  %4975 = vmatprep.subr.bf16.mxu0 %v10309_v3  ;;  %v10319_v37 = vld [vmem:[#allocation5 + $0x130] ss:$24 sps:$4 sm:$0xff]   ;;  %v10327_v56 = vld [vmem:[#allocation5 + $0x164] ss:$24 sps:$4 sm:$0xff]   ;;  %v10325_v3 = vld [vmem:[#allocation5 + $0x160] ss:$24 sps:$4 sm:$0xff]  }
 0x176   :  { %v10339_v55 = vld [vmem:[#allocation5 + $0x1c4] ss:$24 sps:$4 sm:$0xff]  }
 0x177   :  { %2777 = vmatmul.mubr.bf16.gmra.mrb[24].mxu1 %v11321_v60  ;;  %8651 = vmatmul.mubr.msk.bf16.gmra.mrb[24].mxu0 %vm11461_vm3, %v11834_v49  ;;  %v11858_v60 = vpack.c.bf16 %v456_v45, %v462_v62  ;;  %v10343_v45 = vld [vmem:[#allocation5 + $0x1f0] ss:$24 sps:$4 sm:$0xff]   ;;  %v10348_v62 = vld [vmem:[#allocation5 + $0x111c] ss:$24 sps:$4 sm:$0xff]  }
 0x178   :  { %2806 = vmatpush1.bf16.msra.mxu1 %v10304_v53  ;;  %4976 = vmatpush1.bf16.msra.mxu0 %v10307_v52  ;;  %v10331_v53 = vld [vmem:[#allocation5 + $0x190] ss:$24 sps:$4 sm:$0xff]   ;;  %v10336_v52 = vld [vmem:[#allocation5 + $0x10bc] ss:$24 sps:$4 sm:$0xff]  }
 0x179   :  { %2807 = vmatprep.subr.bf16.mxu1 %v10312_v36  ;;  %4977 = vmatprep.subr.bf16.mxu0 %v10315_v16  ;;  %v10334_v36 = vld [vmem:[#allocation5 + $0x10b8] ss:$24 sps:$4 sm:$0xff]  }
 0x17a   :  { %2786 = vmatprep.mubr.bf16.mxu1 %v11341_v12  ;;  %8654 = vmatprep.mubr.msk.bf16.mxu0 %vm11461_vm3, %v11843_v44  ;;  %v10322_v12 = vld [vmem:[#allocation5 + $0x1058] ss:$24 sps:$4 sm:$0xff]  }
 0x17b   :  { %v10337_v16 = vld [vmem:[#allocation5 + $0x1c0] ss:$24 sps:$4 sm:$0xff]  }
 0x17c   :  { %2808 = vmatpush1.bf16.msra.mxu1 %v10310_v5  ;;  %4978 = vmatpush1.bf16.msra.mxu0 %v10313_v57  ;;  %v10342_v5 = vld [vmem:[#allocation5 + $0x10ec] ss:$24 sps:$4 sm:$0xff]   ;;  %v10340_v57 = vld [vmem:[#allocation5 + $0x10e8] ss:$24 sps:$4 sm:$0xff]  }
 0x17d   :  { %2809 = vmatprep.subr.bf16.mxu1 %v10318_v63  ;;  %4979 = vmatprep.subr.bf16.mxu0 %v10321_v30  ;;  %v10351_v63 = vld [vmem:[#allocation5 + $0x224] ss:$24 sps:$4 sm:$0xff]   ;;  %v10346_v30 = vld [vmem:[#allocation5 + $0x1118] ss:$24 sps:$4 sm:$0xff]  }
 0x17f   :  { %2787 = vmatmul.mubr.bf16.gmra.mrb[28].mxu1 %v11357_v24  ;;  %8657 = vmatmul.mubr.msk.bf16.gmra.mrb[28].mxu0 %vm11461_vm3, %v11858_v60  ;;  %v10328_v24 = vld [vmem:[#allocation5 + $0x1088] ss:$24 sps:$4 sm:$0xff]  }
 0x180   :  { %2810 = vmatpush1.bf16.msra.mxu1 %v10316_v50  ;;  %4980 = vmatpush1.bf16.msra.mxu0 %v10319_v37  ;;  %v10349_v50 = vld [vmem:[#allocation5 + $0x220] ss:$24 sps:$4 sm:$0xff]   ;;  %v10354_v37 = vld [vmem:[#allocation5 + $0x114c] ss:$24 sps:$4 sm:$0xff]  }
 0x181   :  { %2811 = vmatprep.subr.bf16.mxu1 %v10324_v51  ;;  %4981 = vmatprep.subr.bf16.mxu0 %v10327_v56  ;;  %v10357_v51 = vld [vmem:[#allocation5 + $0x254] ss:$24 sps:$4 sm:$0xff]   ;;  %v10352_v56 = vld [vmem:[#allocation5 + $0x1148] ss:$24 sps:$4 sm:$0xff]  }
 0x182   :  { %2829 = vmatprep.mubr.bf16.mxu1 %v11366_v20  ;;  %8732 = vmatprep.mubr.msk.bf16.mxu0 %vm11461_vm3, %v11465_v11  ;;  %v10345_v20 = vld [vmem:[#allocation5 + $0x1f4] ss:$24 sps:$4 sm:$0xff]  }
 0x184   :  { %2812 = vmatpush1.bf16.msra.mxu1 %v10322_v12  ;;  %4982 = vmatpush1.bf16.msra.mxu0 %v10325_v3  ;;  %v10355_v12 = vld [vmem:[#allocation5 + $0x250] ss:$24 sps:$4 sm:$0xff]   ;;  %v10360_v3 = vld [vmem:[#allocation5 + $0x117c] ss:$24 sps:$4 sm:$0xff]  }
 0x185   :  { %2813 = vmatprep.subr.bf16.mxu1 %v10330_v7  ;;  %4983 = vmatprep.subr.bf16.mxu0 %v10333_v0  ;;  %v10363_v7 = vld [vmem:[#allocation5 + $0x284] ss:$24 sps:$4 sm:$0xff]   ;;  %v10358_v0 = vld [vmem:[#allocation5 + $0x1178] ss:$24 sps:$4 sm:$0xff]  }
 0x188   :  { %2814 = vmatpush1.bf16.msra.mxu1 %v10328_v24  ;;  %4984 = vmatpush1.bf16.msra.mxu0 %v10331_v53  ;;  %v10361_v24 = vld [vmem:[#allocation5 + $0x280] ss:$24 sps:$4 sm:$0xff]   ;;  %v10366_v53 = vld [vmem:[#allocation5 + $0x11ac] ss:$24 sps:$4 sm:$0xff]  }
 0x189   :  { %2815 = vmatprep.subr.bf16.mxu1 %v10336_v52  ;;  %4985 = vmatprep.subr.bf16.mxu0 %v10339_v55  ;;  %v10369_v52 = vld [vmem:[#allocation5 + $0x2b4] ss:$24 sps:$4 sm:$0xff]   ;;  %v10364_v55 = vld [vmem:[#allocation5 + $0x11a8] ss:$24 sps:$4 sm:$0xff]  }
 0x18c   :  { %2816 = vmatpush1.bf16.msra.mxu1 %v10334_v36  ;;  %4986 = vmatpush1.bf16.msra.mxu0 %v10337_v16  ;;  %v10367_v36 = vld [vmem:[#allocation5 + $0x2b0] ss:$24 sps:$4 sm:$0xff]   ;;  %v10372_v16 = vld [vmem:[#allocation5 + $0x11dc] ss:$24 sps:$4 sm:$0xff]  }
 0x18d   :  { %2817 = vmatprep.subr.bf16.mxu1 %v10342_v5  ;;  %4987 = vmatprep.subr.bf16.mxu0 %v10345_v20  ;;  %v10375_v5 = vld [vmem:[#allocation5 + $0x2e4] ss:$24 sps:$4 sm:$0xff]   ;;  %v10370_v20 = vld [vmem:[#allocation5 + $0x11d8] ss:$24 sps:$4 sm:$0xff]  }
 0x190   :  { %2818 = vmatpush1.bf16.msra.mxu1 %v10340_v57  ;;  %4988 = vmatpush1.bf16.msra.mxu0 %v10343_v45  ;;  %v10373_v57 = vld [vmem:[#allocation5 + $0x2e0] ss:$24 sps:$4 sm:$0xff]   ;;  %v10378_v45 = vld [vmem:[#allocation5 + $0x914] ss:$24 sps:$4 sm:$0xff]  }
 0x191   :  { %2819 = vmatprep.subr.bf16.mxu1 %v10348_v62  ;;  %4989 = vmatprep.subr.bf16.mxu0 %v10351_v63  ;;  %v10381_v62 = vld [vmem:[#allocation5 + $0x314] ss:$24 sps:$4 sm:$0xff]   ;;  %v10376_v63 = vld [vmem:[#allocation5 + $0x910] ss:$24 sps:$4 sm:$0xff]  }
 0x194   :  { %2820 = vmatpush1.bf16.msra.mxu1 %v10346_v30  ;;  %4990 = vmatpush1.bf16.msra.mxu0 %v10349_v50  ;;  %v10379_v30 = vld [vmem:[#allocation5 + $0x310] ss:$24 sps:$4 sm:$0xff]   ;;  %v10384_v50 = vld [vmem:[#allocation5 + $0x944] ss:$24 sps:$4 sm:$0xff]  }
 0x195   :  { %2821 = vmatprep.subr.bf16.mxu1 %v10354_v37  ;;  %4991 = vmatprep.subr.bf16.mxu0 %v10357_v51  ;;  %v10387_v37 = vld [vmem:[#allocation5 + $0x344] ss:$24 sps:$4 sm:$0xff]   ;;  %v10382_v51 = vld [vmem:[#allocation5 + $0x940] ss:$24 sps:$4 sm:$0xff]  }
 0x198   :  { %2822 = vmatpush1.bf16.msra.mxu1 %v10352_v56  ;;  %4992 = vmatpush1.bf16.msra.mxu0 %v10355_v12  ;;  %v10385_v56 = vld [vmem:[#allocation5 + $0x340] ss:$24 sps:$4 sm:$0xff]   ;;  %v10390_v12 = vld [vmem:[#allocation5 + $0x974] ss:$24 sps:$4 sm:$0xff]  }
 0x199   :  { %2823 = vmatprep.subr.bf16.mxu1 %v10360_v3  ;;  %4993 = vmatprep.subr.bf16.mxu0 %v10363_v7  ;;  %v10393_v3 = vld [vmem:[#allocation5 + $0x374] ss:$24 sps:$4 sm:$0xff]   ;;  %v10391_v7 = vld [vmem:[#allocation5 + $0x370] ss:$24 sps:$4 sm:$0xff]  }
 0x19c   :  { %2824 = vmatpush1.bf16.msra.mxu1 %v10358_v0  ;;  %4994 = vmatpush1.bf16.msra.mxu0 %v10361_v24  ;;  %v10396_v0 = vld [vmem:[#allocation5 + $0x9a4] ss:$24 sps:$4 sm:$0xff]  }
 0x19d   :  { %2825 = vmatprep.subr.bf16.mxu1 %v10366_v53  ;;  %4995 = vmatprep.subr.bf16.mxu0 %v10369_v52  ;;  %v10399_v24 = vld [vmem:[#allocation5 + $0x3a4] ss:$24 sps:$4 sm:$0xff]   ;;  %v10397_v53 = vld [vmem:[#allocation5 + $0x3a0] ss:$24 sps:$4 sm:$0xff]   ;;  %v10402_v52 = vld [vmem:[#allocation5 + $0x9d4] ss:$24 sps:$4 sm:$0xff]  }
 0x1a0   :  { %2826 = vmatpush1.bf16.msra.mxu1 %v10364_v55  ;;  %4996 = vmatpush1.bf16.msra.mxu0 %v10367_v36  ;;  %v10405_v55 = vld [vmem:[#allocation5 + $0x3d4] ss:$24 sps:$4 sm:$0xff]   ;;  %v10403_v36 = vld [vmem:[#allocation5 + $0x3d0] ss:$24 sps:$4 sm:$0xff]  }
 0x1a1   :  { %2827 = vmatprep.subr.bf16.mxu1 %v10372_v16  ;;  %4997 = vmatprep.subr.bf16.mxu0 %v10375_v5  ;;  %v10408_v16 = vld [vmem:[#allocation5 + $0xa04] ss:$24 sps:$4 sm:$0xff]  }
 0x1a2   :  { %v10411_v5 = vld [vmem:[#allocation5 + $0x404] ss:$24 sps:$4 sm:$0xff]  }
 0x1a4   :  { %2828 = vmatpush1.bf16.msra.mxu1 %v10370_v20  ;;  %4998 = vmatpush1.bf16.msra.mxu0 %v10373_v57  ;;  %v10409_v20 = vld [vmem:[#allocation5 + $0x400] ss:$24 sps:$4 sm:$0xff]   ;;  %v10414_v57 = vld [vmem:[#allocation5 + $0xa34] ss:$24 sps:$4 sm:$0xff]  }
 0x1a5   :  { %2870 = vmatprep.subr.bf16.mxu1 %v10378_v45  ;;  %5040 = vmatprep.subr.bf16.mxu0 %v10381_v62  ;;  %v10417_v45 = vld [vmem:[#allocation5 + $0x434] ss:$24 sps:$4 sm:$0xff]  }
 0x1a7   :  { %2830 = vmatmul.mubr.bf16.vlgmr.msra.gmra.mrb[16].mxu1 %v11402_v19  ;;  %8735 = vmatmul.mubr.msk.bf16.vlgmr.msra.gmra.mrb[0].mxu0 %vm11461_vm3, %v11354_v22  ;;  %v10388_v19 = vld [vmem:[#allocation5 + $0x970] ss:$24 sps:$4 sm:$0xff]  }
 0x1a8   :  { %2871 = vmatpush1.bf16.msra.mxu1 %v10376_v63  ;;  %5041 = vmatpush1.bf16.msra.mxu0 %v10379_v30  ;;  %v10412_v30 = vld [vmem:[#allocation5 + $0xa30] ss:$24 sps:$4 sm:$0xff]  }
 0x1a9   :  { %2872 = vmatprep.subr.bf16.mxu1 %v10384_v50  ;;  %5042 = vmatprep.subr.bf16.mxu0 %v10387_v37  ;;  %v10415_v50 = vld [vmem:[#allocation5 + $0x430] ss:$24 sps:$4 sm:$0xff]  }
 0x1aa   :  { %2839 = vmatprep.mubr.bf16.mxu1 %v11410_v33  ;;  %8738 = vmatprep.mubr.msk.bf16.mxu0 %vm11461_vm3, %v11505_v17  ;;  %v10394_v33 = vld [vmem:[#allocation5 + $0x9a0] ss:$24 sps:$4 sm:$0xff]  }
 0x1ac   :  { %2873 = vmatpush1.bf16.msra.mxu1 %v10382_v51  ;;  %5043 = vmatpush1.bf16.msra.mxu0 %v10385_v56  ;;  %v10420_v51 = vld [vmem:[#allocation5 + $0xa64] ss:$24 sps:$4 sm:$0xff]  }
 0x1ad   :  { %2874 = vmatprep.subr.bf16.mxu1 %v10390_v12  ;;  %5044 = vmatprep.subr.bf16.mxu0 %v10393_v3  ;;  %v10423_v56 = vld [vmem:[#allocation5 + $0x464] ss:$24 sps:$4 sm:$0xff]   ;;  %v10421_v12 = vld [vmem:[#allocation5 + $0x460] ss:$24 sps:$4 sm:$0xff]   ;;  %v10426_v3 = vld [vmem:[#allocation5 + $0xa94] ss:$24 sps:$4 sm:$0xff]  }
 0x1af   :  { %2840 = vmatmul.mubr.bf16.gmra.mrb[20].mxu1 %v11418_v59  ;;  %8741 = vmatmul.mubr.msk.bf16.gmra.mrb[4].mxu0 %vm11461_vm3, %v11385_v9  ;;  %v10400_v59 = vld [vmem:[#allocation5 + $0x9d0] ss:$24 sps:$4 sm:$0xff]  }
 0x1b0   :  { %2875 = vmatpush1.bf16.msra.mxu1 %v10388_v19  ;;  %5045 = vmatpush1.bf16.msra.mxu0 %v10391_v7  ;;  %v10429_v19 = vld [vmem:[#allocation5 + $0x494] ss:$24 sps:$4 sm:$0xff]  }
 0x1b1   :  { %2876 = vmatprep.subr.bf16.mxu1 %v10396_v0  ;;  %5046 = vmatprep.subr.bf16.mxu0 %v10399_v24  ;;  %v12778_v0 = vld [vmem:[#allocation13_spill] sm:$0xff] }
 0x1b2   :  { %2849 = vmatprep.mubr.bf16.mxu1 %v11420_v32  ;;  %8744 = vmatprep.mubr.msk.bf16.mxu0 %vm11461_vm3, %v11536_v41  ;;  %v10406_v32 = vld [vmem:[#allocation5 + $0xa00] ss:$24 sps:$4 sm:$0xff]   ;;  %v12779_v24 = vld [vmem:[#allocation33_spill] sm:$0xff] }
 0x1b4   :  { %2877 = vmatpush1.bf16.msra.mxu1 %v10394_v33  ;;  %5047 = vmatpush1.bf16.msra.mxu0 %v10397_v53  ;;  %v10424_v53 = vld [vmem:[#allocation5 + $0xa90] ss:$24 sps:$4 sm:$0xff]  }
 0x1b5   :  { %2878 = vmatprep.subr.bf16.mxu1 %v10402_v52  ;;  %5048 = vmatprep.subr.bf16.mxu0 %v10405_v55  ;;  %v10427_v52 = vld [vmem:[#allocation5 + $0x490] ss:$24 sps:$4 sm:$0xff]  }
 0x1b7   :  { %2850 = vmatmul.mubr.bf16.gmra.mrb[24].mxu1 %v11429_v1  ;;  %8747 = vmatmul.mubr.msk.bf16.gmra.mrb[8].mxu0 %vm11461_vm3, %v11565_v39 }
 0x1b8   :  { %2879 = vmatpush1.bf16.msra.mxu1 %v10400_v59  ;;  %5049 = vmatpush1.bf16.msra.mxu0 %v10403_v36  ;;  %v10432_v59 = vld [vmem:[#allocation5 + $0xac4] ss:$24 sps:$4 sm:$0xff]  }
 0x1b9   :  { %2880 = vmatprep.subr.bf16.mxu1 %v10408_v16  ;;  %5050 = vmatprep.subr.bf16.mxu0 %v10411_v5  ;;  %v10435_v36 = vld [vmem:[#allocation5 + $0x4c4] ss:$24 sps:$4 sm:$0xff]   ;;  %v10430_v16 = vld [vmem:[#allocation5 + $0xac0] ss:$24 sps:$4 sm:$0xff]  }
 0x1ba   :  { %v11888_v62 = vpop.f32.mrb[0].mxu1  ;;  %2859 = vmatprep.mubr.bf16.mxu1 %v11434_v43  ;;  %8750 = vmatprep.mubr.msk.bf16.mxu0 %vm11461_vm3, %v11574_v23  ;;  %v10418_v43 = vld [vmem:[#allocation5 + $0xa60] ss:$24 sps:$4 sm:$0xff]  }
 0x1bb   :  { %v11894_v1 = vpop.f32.mrb[1].mxu1  ;;  %v10433_v5 = vld [vmem:[#allocation5 + $0x4c0] ss:$24 sps:$4 sm:$0xff]  }
 0x1bc   :  { %v11896_v63 = vpop.f32.mrb[2].mxu1  ;;  %2881 = vmatpush1.bf16.msra.mxu1 %v10406_v32  ;;  %5051 = vmatpush1.bf16.msra.mxu0 %v10409_v20  ;;  %v10438_v32 = vld [vmem:[#allocation5 + $0xaf4] ss:$24 sps:$4 sm:$0xff]  }
 0x1bd   :  { %v11898_v37 = vpop.f32.mrb[3].mxu1  ;;  %2882 = vmatprep.subr.bf16.mxu1 %v10414_v57  ;;  %5052 = vmatprep.subr.bf16.mxu0 %v10417_v45  ;;  %v10441_v20 = vld [vmem:[#allocation5 + $0x4f4] ss:$24 sps:$4 sm:$0xff]  }
 0x1bf   :  { %2860 = vmatmul.mubr.bf16.gmra.mrb[28].mxu1 %v11452_v40  ;;  %8753 = vmatmul.mubr.msk.bf16.gmra.mrb[12].mxu0 %vm11461_vm3, %v11599_v29 }
 0x1c0   :  { %2883 = vmatpush1.bf16.msra.mxu1 %v10412_v30  ;;  %5053 = vmatpush1.bf16.msra.mxu0 %v10415_v50  ;;  %v10436_v50 = vld [vmem:[#allocation5 + $0xaf0] ss:$24 sps:$4 sm:$0xff]  }
 0x1c1   :  { %2884 = vmatprep.subr.bf16.mxu1 %v10420_v51  ;;  %5054 = vmatprep.subr.bf16.mxu0 %v10423_v56  ;;  %v10439_v51 = vld [vmem:[#allocation5 + $0x4f0] ss:$24 sps:$4 sm:$0xff]  }
 0x1c2   :  { %v11904_v7 = vpop.f32.mrb[4].mxu1  ;;  %2902 = vmatprep.mubr.bf16.mxu1 %v12778_v0  ;;  %8756 = vmatprep.mubr.msk.bf16.mxu0 %vm11461_vm3, %v12779_v24  ;;  %v10450_v0 = vld [vmem:[#allocation5 + $0xb54] ss:$24 sps:$4 sm:$0xff]  }
 0x1c3   :  { %v11910_v40 = vpop.f32.mrb[5].mxu1 }
 0x1c4   :  { %v11912_v33 = vpop.f32.mrb[6].mxu1  ;;  %2885 = vmatpush1.bf16.msra.mxu1 %v10418_v43  ;;  %5055 = vmatpush1.bf16.msra.mxu0 %v10421_v12  ;;  %v10444_v43 = vld [vmem:[#allocation5 + $0xb24] ss:$24 sps:$4 sm:$0xff]  }
 0x1c5   :  { %v11914_v55 = vpop.f32.mrb[7].mxu1  ;;  %2886 = vmatprep.subr.bf16.mxu1 %v10426_v3  ;;  %5056 = vmatprep.subr.bf16.mxu0 %v10429_v19  ;;  %v10447_v12 = vld [vmem:[#allocation5 + $0x524] ss:$24 sps:$4 sm:$0xff]   ;;  %v10442_v3 = vld [vmem:[#allocation5 + $0xb20] ss:$24 sps:$4 sm:$0xff]  }
 0x1c6   :  { %v10445_v19 = vld [vmem:[#allocation5 + $0x520] ss:$24 sps:$4 sm:$0xff]  }
 0x1c8   :  { %2887 = vmatpush1.bf16.msra.mxu1 %v10424_v53  ;;  %5057 = vmatpush1.bf16.msra.mxu0 %v10427_v52  ;;  %v10453_v53 = vld [vmem:[#allocation5 + $0x554] ss:$24 sps:$4 sm:$0xff]  }
 0x1c9   :  { %2888 = vmatprep.subr.bf16.mxu1 %v10432_v59  ;;  %5058 = vmatprep.subr.bf16.mxu0 %v10435_v36 }
 0x1ca   :  { %v11916_v57 = vpop.f32.mrb[8].mxu1 }
 0x1cb   :  { %v11918_v45 = vpop.f32.mrb[9].mxu1 }
 0x1cc   :  { %12780 = vst [vmem:[#allocation13_spill] sm:$0xff] %v11918_v45  ;;  %v11920_v30 = vpop.f32.mrb[10].mxu1  ;;  %2889 = vmatpush1.bf16.msra.mxu1 %v10430_v16  ;;  %5059 = vmatpush1.bf16.msra.mxu0 %v10433_v5  ;;  %v10448_v16 = vld [vmem:[#allocation5 + $0xb50] ss:$24 sps:$4 sm:$0xff]  }
 0x1cd   :  { %12781 = vst [vmem:[#allocation33_spill] sm:$0xff] %v11920_v30  ;;  %v11922_v56 = vpop.f32.mrb[11].mxu1  ;;  %2890 = vmatprep.subr.bf16.mxu1 %v10438_v32  ;;  %5060 = vmatprep.subr.bf16.mxu0 %v10441_v20  ;;  %v10451_v5 = vld [vmem:[#allocation5 + $0x550] ss:$24 sps:$4 sm:$0xff]   ;;  %v10456_v20 = vld [vmem:[#allocation5 + $0xb84] ss:$24 sps:$4 sm:$0xff]  }
 0x1ce   :  { %12782 = vst [vmem:[#allocation44_spill] sm:$0xff] %v11922_v56  ;;  %v10475_v56 = vld [vmem:[#allocation5 + $0x610] ss:$24 sps:$4 sm:$0xff]  }
 0x1d0   :  { %2891 = vmatpush1.bf16.msra.mxu1 %v10436_v50  ;;  %5061 = vmatpush1.bf16.msra.mxu0 %v10439_v51  ;;  %v10459_v50 = vld [vmem:[#allocation5 + $0x584] ss:$24 sps:$4 sm:$0xff]   ;;  %v10454_v51 = vld [vmem:[#allocation5 + $0xb80] ss:$24 sps:$4 sm:$0xff]  }
 0x1d1   :  { %2892 = vmatprep.subr.bf16.mxu1 %v10444_v43  ;;  %5062 = vmatprep.subr.bf16.mxu0 %v10447_v12  ;;  %v10457_v43 = vld [vmem:[#allocation5 + $0x580] ss:$24 sps:$4 sm:$0xff]   ;;  %v10462_v12 = vld [vmem:[#allocation5 + $0xbb4] ss:$24 sps:$4 sm:$0xff]  }
 0x1d2   :  { %v11924_v52 = vpop.f32.mrb[12].mxu1 }
 0x1d3   :  { %12783 = vst [vmem:[#allocation45_spill] sm:$0xff] %v11924_v52  ;;  %v11926_v59 = vpop.f32.mrb[13].mxu1  ;;  %v12791_v52 = vld [vmem:[#allocation16_spill] sm:$0xff] }
 0x1d4   :  { %12784 = vst [vmem:[#allocation46_spill] sm:$0xff] %v11926_v59  ;;  %v11928_v36 = vpop.f32.mrb[14].mxu1  ;;  %2893 = vmatpush1.bf16.msra.mxu1 %v10442_v3  ;;  %5063 = vmatpush1.bf16.msra.mxu0 %v10445_v19  ;;  %v10460_v3 = vld [vmem:[#allocation5 + $0xbb0] ss:$24 sps:$4 sm:$0xff]  }
 0x1d5   :  { %12785 = vst [vmem:[#allocation47_spill] sm:$0xff] %v11928_v36  ;;  %v11930_v32 = vpop.f32.mrb[15].mxu1  ;;  %2894 = vmatprep.subr.bf16.mxu1 %v10450_v0  ;;  %5064 = vmatprep.subr.bf16.mxu0 %v10453_v53  ;;  %v10463_v19 = vld [vmem:[#allocation5 + $0x5b0] ss:$24 sps:$4 sm:$0xff]   ;;  %v12787_v0 = vld [vmem:[#allocation11_spill] sm:$0xff] }
 0x1d6   :  { %12786 = vst [vmem:[#allocation48_spill] sm:$0xff] %v11930_v32  ;;  %v10471_v32 = vld [vmem:[#allocation5 + $0x5e4] ss:$24 sps:$4 sm:$0xff]   ;;  %v12788_v53 = vunpack.c.l.bf16 %v12787_v0 }
 0x1d8   :  { %2895 = vmatpush1.bf16.msra.mxu1 %v10448_v16  ;;  %5065 = vmatpush1.bf16.msra.mxu0 %v10451_v5  ;;  %v11934_v36 = vrot.slane %v12788_v53, 1  ;;  %v12789_v16 = vld [vmem:[#allocation12_spill] sm:$0xff] }
 0x1d9   :  { %2896 = vmatprep.subr.bf16.mxu1 %v10456_v20  ;;  %5066 = vmatprep.subr.bf16.mxu0 %v10459_v50  ;;  %v12790_v5 = vunpack.c.l.bf16 %v12789_v16  ;;  %v10466_v20 = vld [vmem:[#allocation5 + $0xbe0] ss:$24 sps:$4 sm:$0xff]  }
 0x1da   :  { %v10469_v50 = vld [vmem:[#allocation5 + $0x5e0] ss:$24 sps:$4 sm:$0xff]  }
 0x1db   :  { %v5480_v59 = vrot.slane %v12790_v5, 1  ;;  %v10472_v53 = vld [vmem:[#allocation5 + $0x8] ss:$24 sps:$4 sm:$0xff]  }
 0x1dc   :  { %2897 = vmatpush1.bf16.msra.mxu1 %v10454_v51  ;;  %5067 = vmatpush1.bf16.msra.mxu0 %v10457_v43  ;;  %v12792_v51 = vunpack.c.l.bf16 %v12791_v52 }
 0x1dd   :  { %2898 = vmatprep.subr.bf16.mxu1 %v10462_v12  ;;  %5068 = vmatprep.subr.bf16.mxu0 %v10465_v18  ;;  %v10474_v18 = vld [vmem:[#allocation5 + $0xc] ss:$24 sps:$4 sm:$0xff]  }
 0x1de   :  { %v11940_v43 = vrot.slane %v12792_v51, 1  ;;  %v10477_v12 = vld [vmem:[#allocation5 + $0x614] ss:$24 sps:$4 sm:$0xff]  }
 0x1df   :  { %v10486_v51 = vld [vmem:[#allocation5 + $0x6c] ss:$24 sps:$4 sm:$0xff]  }
 0x1e0   :  { %2899 = vmatpush1.bf16.msra.mxu1 %v10460_v3  ;;  %5069 = vmatpush1.bf16.msra.mxu0 %v10463_v19  ;;  %v10480_v3 = vld [vmem:[#allocation5 + $0x3c] ss:$24 sps:$4 sm:$0xff]   ;;  %v5553_v5 = vsel %vm5522_vm4, %v5480_v59, %v11940_v43 }
 0x1e1   :  { %2900 = vmatprep.subr.bf16.mxu1 %v10468_v48  ;;  %5070 = vmatprep.subr.bf16.mxu0 %v10471_v32  ;;  %v10483_v19 = vld [vmem:[#allocation5 + $0x644] ss:$24 sps:$4 sm:$0xff]   ;;  %v5559_v48 = vsel %vm5522_vm4, %v11934_v36, %v5480_v59  ;;  %v10487_v59 = vld [vmem:[#allocation5 + $0x670] ss:$24 sps:$4 sm:$0xff]  }
 0x1e2   :  { %v11949_v32 = vpack.c.bf16 %v5553_v5, %v5559_v48  ;;  %v10501_v5 = vld [vmem:[#allocation5 + $0x6d4] ss:$24 sps:$4 sm:$0xff]  }
 0x1e3   :  { %v12794_v48 = vld [vmem:[#allocation20_spill] sm:$0xff] }
 0x1e4   :  { %2901 = vmatpush1.bf16.msra.mxu1 %v10466_v20  ;;  %5071 = vmatpush1.bf16.msra.mxu0 %v10469_v50  ;;  %v10478_v20 = vld [vmem:[#allocation5 + $0x38] ss:$24 sps:$4 sm:$0xff]  }
 0x1e5   :  { %4748 = vmatprep.subr.bf16.mxu1 %v10474_v18  ;;  %5113 = vmatprep.subr.bf16.mxu0 %v10477_v12  ;;  %v10481_v50 = vld [vmem:[#allocation5 + $0x640] ss:$24 sps:$4 sm:$0xff]   ;;  %v10489_v18 = vld [vmem:[#allocation5 + $0x674] ss:$24 sps:$4 sm:$0xff]  }
 0x1e6   :  { %v12793_v12 = vld [vmem:[#allocation38_spill] sm:$0xff] }
 0x1e7   :  { %2903 = vmatmul.mubr.bf16.vlgmr.msra.gmra.mrb[32].mxu1 %v11270_v15  ;;  %8759 = vmatmul.mubr.msk.bf16.vlgmr.msra.gmra.mrb[0].mxu0 %vm11461_vm3, %v11412_v38  ;;  %v10484_v15 = vld [vmem:[#allocation5 + $0x68] ss:$24 sps:$4 sm:$0xff]  }
 0x1e8   :  { %4749 = vmatpush1.bf16.msra.mxu1 %v10472_v53  ;;  %5114 = vmatpush1.bf16.msra.mxu0 %v10475_v56  ;;  %v10492_v53 = vld [vmem:[#allocation5 + $0x9c] ss:$24 sps:$4 sm:$0xff]  }
 0x1e9   :  { %4750 = vmatprep.subr.bf16.mxu1 %v10480_v3  ;;  %5115 = vmatprep.subr.bf16.mxu0 %v10483_v19  ;;  %v10495_v56 = vld [vmem:[#allocation5 + $0x6a4] ss:$24 sps:$4 sm:$0xff]   ;;  %v10493_v3 = vld [vmem:[#allocation5 + $0x6a0] ss:$24 sps:$4 sm:$0xff]  }
 0x1ea   :  { %2912 = vmatprep.mubr.bf16.mxu1 %v11291_v31  ;;  %8762 = vmatprep.mubr.msk.bf16.mxu0 %vm11461_vm3, %v12793_v12  ;;  %v10490_v31 = vld [vmem:[#allocation5 + $0x98] ss:$24 sps:$4 sm:$0xff]   ;;  %v10498_v19 = vld [vmem:[#allocation5 + $0xcc] ss:$24 sps:$4 sm:$0xff]  }
 0x1ec   :  { %4751 = vmatpush1.bf16.msra.mxu1 %v10478_v20  ;;  %5116 = vmatpush1.bf16.msra.mxu0 %v10481_v50  ;;  %v12795_v20 = vld [vmem:[#allocation39_spill] sm:$0xff]  ;;  %v10499_v50 = vld [vmem:[#allocation5 + $0x6d0] ss:$24 sps:$4 sm:$0xff]  }
 0x1ed   :  { %4752 = vmatprep.subr.bf16.mxu1 %v10486_v51  ;;  %5117 = vmatprep.subr.bf16.mxu0 %v10489_v18  ;;  %v10504_v51 = vld [vmem:[#allocation5 + $0xfc] ss:$24 sps:$4 sm:$0xff]  }
 0x1ee   :  { %v10507_v18 = vld [vmem:[#allocation5 + $0x704] ss:$24 sps:$4 sm:$0xff]  }
 0x1ef   :  { %2913 = vmatmul.mubr.bf16.gmra.mrb[36].mxu1 %v11295_v34  ;;  %8765 = vmatmul.mubr.msk.bf16.gmra.mrb[4].mxu0 %vm11461_vm3, %v11668_v10  ;;  %v10496_v34 = vld [vmem:[#allocation5 + $0xc8] ss:$24 sps:$4 sm:$0xff]  }
 0x1f0   :  { %4753 = vmatpush1.bf16.msra.mxu1 %v10484_v15  ;;  %5118 = vmatpush1.bf16.msra.mxu0 %v10487_v59  ;;  %v10502_v15 = vld [vmem:[#allocation5 + $0xf8] ss:$24 sps:$4 sm:$0xff]  }
 0x1f1   :  { %4754 = vmatprep.subr.bf16.mxu1 %v10492_v53  ;;  %5119 = vmatprep.subr.bf16.mxu0 %v10495_v56  ;;  %v10505_v59 = vld [vmem:[#allocation5 + $0x700] ss:$24 sps:$4 sm:$0xff]   ;;  %v10510_v53 = vld [vmem:[#allocation5 + $0x12c] ss:$24 sps:$4 sm:$0xff]  }
 0x1f2   :  { %2922 = vmatprep.mubr.bf16.mxu1 %v12794_v48  ;;  %8768 = vmatprep.mubr.msk.bf16.mxu0 %vm11461_vm3, %v12795_v20  ;;  %v10513_v56 = vld [vmem:[#allocation5 + $0x734] ss:$24 sps:$4 sm:$0xff]  }
 0x1f3   :  { %v10522_v48 = vld [vmem:[#allocation5 + $0x18c] ss:$24 sps:$4 sm:$0xff]  }
 0x1f4   :  { %4755 = vmatpush1.bf16.msra.mxu1 %v10490_v31  ;;  %5120 = vmatpush1.bf16.msra.mxu0 %v10493_v3  ;;  %v10511_v31 = vld [vmem:[#allocation5 + $0x730] ss:$24 sps:$4 sm:$0xff]   ;;  %v10516_v3 = vld [vmem:[#allocation5 + $0x15c] ss:$24 sps:$4 sm:$0xff]  }
 0x1f5   :  { %4756 = vmatprep.subr.bf16.mxu1 %v10498_v19  ;;  %5121 = vmatprep.subr.bf16.mxu0 %v10501_v5  ;;  %v10519_v19 = vld [vmem:[#allocation5 + $0x764] ss:$24 sps:$4 sm:$0xff]   ;;  %v10517_v5 = vld [vmem:[#allocation5 + $0x760] ss:$24 sps:$4 sm:$0xff]  }
 0x1f7   :  { %2923 = vmatmul.mubr.bf16.gmra.mrb[40].mxu1 %v11318_v58  ;;  %8771 = vmatmul.mubr.msk.bf16.gmra.mrb[8].mxu0 %vm11461_vm3, %v11704_v42  ;;  %v10508_v58 = vld [vmem:[#allocation5 + $0x128] ss:$24 sps:$4 sm:$0xff]  }
 0x1f8   :  { %4757 = vmatpush1.bf16.msra.mxu1 %v10496_v34  ;;  %5122 = vmatpush1.bf16.msra.mxu0 %v10499_v50  ;;  %v10525_v34 = vld [vmem:[#allocation5 + $0x794] ss:$24 sps:$4 sm:$0xff]   ;;  %v10523_v50 = vld [vmem:[#allocation5 + $0x790] ss:$24 sps:$4 sm:$0xff]  }
 0x1f9   :  { %4758 = vmatprep.subr.bf16.mxu1 %v10504_v51  ;;  %5123 = vmatprep.subr.bf16.mxu0 %v10507_v18  ;;  %v10528_v51 = vld [vmem:[#allocation5 + $0x1bc] ss:$24 sps:$4 sm:$0xff]  }
 0x1fa   :  { %2932 = vmatprep.mubr.bf16.mxu1 %v11331_v2  ;;  %8774 = vmatprep.mubr.msk.bf16.mxu0 %vm11461_vm3, %v11713_v54  ;;  %v10514_v2 = vld [vmem:[#allocation5 + $0x158] ss:$24 sps:$4 sm:$0xff]   ;;  %v10531_v18 = vld [vmem:[#allocation5 + $0x7c4] ss:$24 sps:$4 sm:$0xff]  }
 0x1fc   :  { %4759 = vmatpush1.bf16.msra.mxu1 %v10502_v15  ;;  %5124 = vmatpush1.bf16.msra.mxu0 %v10505_v59  ;;  %v10526_v15 = vld [vmem:[#allocation5 + $0x1b8] ss:$24 sps:$4 sm:$0xff]  }
 0x1fd   :  { %4760 = vmatprep.subr.bf16.mxu1 %v10510_v53  ;;  %5125 = vmatprep.subr.bf16.mxu0 %v10513_v56  ;;  %v10529_v59 = vld [vmem:[#allocation5 + $0x7c0] ss:$24 sps:$4 sm:$0xff]   ;;  %v10534_v53 = vld [vmem:[#allocation5 + $0x1ec] ss:$24 sps:$4 sm:$0xff]  }
 0x1fe   :  { %v10532_v56 = vld [vmem:[#allocation5 + $0x1e8] ss:$24 sps:$4 sm:$0xff]  }
 0x1ff   :  { %2933 = vmatmul.mubr.bf16.gmra.mrb[44].mxu1 %v11351_v21  ;;  %8777 = vmatmul.mubr.msk.bf16.gmra.mrb[12].mxu0 %vm11461_vm3, %v11738_v14  ;;  %v10520_v21 = vld [vmem:[#allocation5 + $0x188] ss:$24 sps:$4 sm:$0xff]  }
 0x200   :  { %4761 = vmatpush1.bf16.msra.mxu1 %v10508_v58  ;;  %5126 = vmatpush1.bf16.msra.mxu0 %v10511_v31  ;;  %v10535_v58 = vld [vmem:[#allocation5 + $0x7f0] ss:$24 sps:$4 sm:$0xff]   ;;  %v10540_v31 = vld [vmem:[#allocation5 + $0x21c] ss:$24 sps:$4 sm:$0xff]  }
 0x201   :  { %4762 = vmatprep.subr.bf16.mxu1 %v10516_v3  ;;  %5127 = vmatprep.subr.bf16.mxu0 %v10519_v19  ;;  %v10543_v3 = vld [vmem:[#allocation5 + $0x824] ss:$24 sps:$4 sm:$0xff]   ;;  %v10538_v19 = vld [vmem:[#allocation5 + $0x218] ss:$24 sps:$4 sm:$0xff]  }
 0x202   :  { %8660 = vmatprep.mubr.msk.bf16.mxu1 %vm11461_vm3, %v11465_v11  ;;  %8780 = vmatprep.mubr.msk.bf16.mxu0 %vm11461_vm3, %v11746_v28  ;;  %v10537_v11 = vld [vmem:[#allocation5 + $0x7f4] ss:$24 sps:$4 sm:$0xff]  }
 0x204   :  { %4763 = vmatpush1.bf16.msra.mxu1 %v10514_v2  ;;  %5128 = vmatpush1.bf16.msra.mxu0 %v10517_v5  ;;  %v10541_v2 = vld [vmem:[#allocation5 + $0x820] ss:$24 sps:$4 sm:$0xff]   ;;  %v10546_v5 = vld [vmem:[#allocation5 + $0x24c] ss:$24 sps:$4 sm:$0xff]  }
 0x205   :  { %4764 = vmatprep.subr.bf16.mxu1 %v10522_v48  ;;  %5129 = vmatprep.subr.bf16.mxu0 %v10525_v34  ;;  %v10549_v48 = vld [vmem:[#allocation5 + $0x854] ss:$24 sps:$4 sm:$0xff]   ;;  %v10544_v34 = vld [vmem:[#allocation5 + $0x248] ss:$24 sps:$4 sm:$0xff]  }
 0x208   :  { %4765 = vmatpush1.bf16.msra.mxu1 %v10520_v21  ;;  %5130 = vmatpush1.bf16.msra.mxu0 %v10523_v50  ;;  %v10547_v21 = vld [vmem:[#allocation5 + $0x850] ss:$24 sps:$4 sm:$0xff]   ;;  %v10552_v50 = vld [vmem:[#allocation5 + $0x27c] ss:$24 sps:$4 sm:$0xff]  }
 0x209   :  { %4766 = vmatprep.subr.bf16.mxu1 %v10528_v51  ;;  %5131 = vmatprep.subr.bf16.mxu0 %v10531_v18  ;;  %v10555_v51 = vld [vmem:[#allocation5 + $0x884] ss:$24 sps:$4 sm:$0xff]   ;;  %v10550_v18 = vld [vmem:[#allocation5 + $0x278] ss:$24 sps:$4 sm:$0xff]  }
 0x20c   :  { %4767 = vmatpush1.bf16.msra.mxu1 %v10526_v15  ;;  %5132 = vmatpush1.bf16.msra.mxu0 %v10529_v59  ;;  %v10553_v15 = vld [vmem:[#allocation5 + $0x880] ss:$24 sps:$4 sm:$0xff]   ;;  %v10558_v59 = vld [vmem:[#allocation5 + $0x2ac] ss:$24 sps:$4 sm:$0xff]  }
 0x20d   :  { %4768 = vmatprep.subr.bf16.mxu1 %v10534_v53  ;;  %5133 = vmatprep.subr.bf16.mxu0 %v10537_v11  ;;  %v10561_v53 = vld [vmem:[#allocation5 + $0x8b4] ss:$24 sps:$4 sm:$0xff]   ;;  %v10556_v11 = vld [vmem:[#allocation5 + $0x2a8] ss:$24 sps:$4 sm:$0xff]  }
 0x210   :  { %4769 = vmatpush1.bf16.msra.mxu1 %v10532_v56  ;;  %5134 = vmatpush1.bf16.msra.mxu0 %v10535_v58  ;;  %v10559_v56 = vld [vmem:[#allocation5 + $0x8b0] ss:$24 sps:$4 sm:$0xff]   ;;  %v10564_v58 = vld [vmem:[#allocation5 + $0x2dc] ss:$24 sps:$4 sm:$0xff]  }
 0x211   :  { %4770 = vmatprep.subr.bf16.mxu1 %v10540_v31  ;;  %5135 = vmatprep.subr.bf16.mxu0 %v10543_v3  ;;  %v10567_v31 = vld [vmem:[#allocation5 + $0x8e4] ss:$24 sps:$4 sm:$0xff]  }
 0x212   :  { %v12796_v3 = vld [vmem:[#allocation14_spill] sm:$0xff] }
 0x214   :  { %4771 = vmatpush1.bf16.msra.mxu1 %v10538_v19  ;;  %5136 = vmatpush1.bf16.msra.mxu0 %v10541_v2  ;;  %v12797_v19 = vunpack.c.l.bf16 %v12796_v3  ;;  %v10568_v3 = vld [vmem:[#allocation5 + $0x308] ss:$24 sps:$4 sm:$0xff]  }
 0x215   :  { %4772 = vmatprep.subr.bf16.mxu1 %v10546_v5  ;;  %5137 = vmatprep.subr.bf16.mxu0 %v10549_v48  ;;  %v12798_v5 = vld [vmem:[#allocation15_spill] sm:$0xff] }
 0x216   :  { %v11987_v2 = vrot.slane %v12797_v19, 1  ;;  %v12799_v48 = vunpack.c.l.bf16 %v12798_v5  ;;  %v10571_v19 = vld [vmem:[#allocation5 + $0x1200] ss:$24 sps:$4 sm:$0xff]   ;;  %v10576_v5 = vld [vmem:[#allocation5 + $0x33c] ss:$24 sps:$4 sm:$0xff]  }
 0x218   :  { %4773 = vmatpush1.bf16.msra.mxu1 %v10544_v34  ;;  %5138 = vmatpush1.bf16.msra.mxu0 %v10547_v21  ;;  %v5482_v34 = vrot.slane %v12799_v48, 1  ;;  %v10562_v21 = vld [vmem:[#allocation5 + $0x2d8] ss:$24 sps:$4 sm:$0xff]   ;;  %v10579_v48 = vld [vmem:[#allocation5 + $0x1234] ss:$24 sps:$4 sm:$0xff]  }
 0x219   :  { %4774 = vmatprep.subr.bf16.mxu1 %v10552_v50  ;;  %5139 = vmatprep.subr.bf16.mxu0 %v10555_v51  ;;  %v10565_v50 = vld [vmem:[#allocation5 + $0x8e0] ss:$24 sps:$4 sm:$0xff]  }
 0x21a   :  { %v12800_v51 = vld [vmem:[#allocation34_spill] sm:$0xff] }
 0x21c   :  { %4775 = vmatpush1.bf16.msra.mxu1 %v10550_v18  ;;  %5140 = vmatpush1.bf16.msra.mxu0 %v10553_v15  ;;  %v12801_v18 = vunpack.c.l.bf16 %v12800_v51 }
 0x21d   :  { %4776 = vmatprep.subr.bf16.mxu1 %v10558_v59  ;;  %5141 = vmatprep.subr.bf16.mxu0 %v10561_v53  ;;  %v10570_v59 = vld [vmem:[#allocation5 + $0x30c] ss:$24 sps:$4 sm:$0xff]  }
 0x21e   :  { %v11993_v15 = vrot.slane %v12801_v18, 1  ;;  %v10573_v53 = vld [vmem:[#allocation5 + $0x1204] ss:$24 sps:$4 sm:$0xff]  }
 0x21f   :  { %v10585_v18 = vld [vmem:[#allocation5 + $0x1264] ss:$24 sps:$4 sm:$0xff]  }
 0x220   :  { %4777 = vmatpush1.bf16.msra.mxu1 %v10556_v11  ;;  %5142 = vmatpush1.bf16.msra.mxu0 %v10559_v56  ;;  %v5555_v11 = vsel %vm5522_vm4, %v5482_v34, %v11993_v15  ;;  %v5561_v56 = vsel %vm5522_vm4, %v11987_v2, %v5482_v34  ;;  %v10583_v34 = vld [vmem:[#allocation5 + $0x1260] ss:$24 sps:$4 sm:$0xff]  }
 0x221   :  { %4778 = vmatprep.subr.bf16.mxu1 %v10564_v58  ;;  %5143 = vmatprep.subr.bf16.mxu0 %v10567_v31  ;;  %v12001_v58 = vpack.c.bf16 %v5555_v11, %v5561_v56  ;;  %v10574_v31 = vld [vmem:[#allocation5 + $0x338] ss:$24 sps:$4 sm:$0xff]   ;;  %v10600_v56 = vld [vmem:[#allocation5 + $0x3fc] ss:$24 sps:$4 sm:$0xff]  }
 0x222   :  { %v10595_v11 = vld [vmem:[#allocation5 + $0x12c0] ss:$24 sps:$4 sm:$0xff]  }
 0x224   :  { %4779 = vmatpush1.bf16.msra.mxu1 %v10562_v21  ;;  %5144 = vmatpush1.bf16.msra.mxu0 %v10565_v50  ;;  %v10577_v21 = vld [vmem:[#allocation5 + $0x1230] ss:$24 sps:$4 sm:$0xff]   ;;  %v10582_v50 = vld [vmem:[#allocation5 + $0x36c] ss:$24 sps:$4 sm:$0xff]  }
 0x225   :  { %4821 = vmatprep.subr.bf16.mxu1 %v10570_v59  ;;  %7095 = vmatprep.subr.bf16.mxu0 %v10573_v53  ;;  %v10588_v59 = vld [vmem:[#allocation5 + $0x39c] ss:$24 sps:$4 sm:$0xff]  }
 0x226   :  { %v10591_v53 = vld [vmem:[#allocation5 + $0x1294] ss:$24 sps:$4 sm:$0xff]  }
 0x227   :  { %8663 = vmatmul.mubr.msk.bf16.vlgmr.msra.gmra.mrb[16].mxu1 %vm11461_vm3, %v11354_v22  ;;  %8783 = vmatmul.mubr.msk.bf16.vlgmr.msra.gmra.mrb[0].mxu0 %vm11461_vm3, %v11509_v35  ;;  %v10580_v22 = vld [vmem:[#allocation5 + $0x368] ss:$24 sps:$4 sm:$0xff]  }
 0x228   :  { %4822 = vmatpush1.bf16.msra.mxu1 %v10568_v3  ;;  %7096 = vmatpush1.bf16.msra.mxu0 %v10571_v19  ;;  %v10589_v3 = vld [vmem:[#allocation5 + $0x1290] ss:$24 sps:$4 sm:$0xff]   ;;  %v10594_v19 = vld [vmem:[#allocation5 + $0x3cc] ss:$24 sps:$4 sm:$0xff]  }
 0x229   :  { %4823 = vmatprep.subr.bf16.mxu1 %v10576_v5  ;;  %7097 = vmatprep.subr.bf16.mxu0 %v10579_v48  ;;  %v10597_v5 = vld [vmem:[#allocation5 + $0x12c4] ss:$24 sps:$4 sm:$0xff]   ;;  %v10592_v48 = vld [vmem:[#allocation5 + $0x3c8] ss:$24 sps:$4 sm:$0xff]  }
 0x22a   :  { %8666 = vmatprep.mubr.msk.bf16.mxu1 %vm11461_vm3, %v11505_v17  ;;  %8786 = vmatprep.mubr.msk.bf16.mxu0 %vm11461_vm3, %v11783_v8  ;;  %v10586_v17 = vld [vmem:[#allocation5 + $0x398] ss:$24 sps:$4 sm:$0xff]  }
 0x22c   :  { %4824 = vmatpush1.bf16.msra.mxu1 %v10574_v31  ;;  %7098 = vmatpush1.bf16.msra.mxu0 %v10577_v21  ;;  %v10603_v31 = vld [vmem:[#allocation5 + $0x12f4] ss:$24 sps:$4 sm:$0xff]  }
 0x22d   :  { %4825 = vmatprep.subr.bf16.mxu1 %v10582_v50  ;;  %7099 = vmatprep.subr.bf16.mxu0 %v10585_v18  ;;  %v12803_v50 = vunpack.c.h.bf16 %v12789_v16  ;;  %v10604_v16 = vld [vmem:[#allocation5 + $0x428] ss:$24 sps:$4 sm:$0xff]  }
 0x22f   :  { %8669 = vmatmul.mubr.msk.bf16.gmra.mrb[20].mxu1 %vm11461_vm3, %v11385_v9  ;;  %8789 = vmatmul.mubr.msk.bf16.gmra.mrb[4].mxu0 %vm11461_vm3, %v11807_v26  ;;  %v114_v9 = vadd.s32 8, %v11266_v13  ;;  %v5481_v18 = vrot.slane %v12803_v50, 1  ;;  %v10619_v50 = vld [vmem:[#allocation5 + $0x1380] ss:$24 sps:$4 sm:$0xff]   ;;  %v10900_v13 = vld [vmem:[#allocation5 + $0x165c] ss:$24 sps:$4 sm:$0xff]  }
 0x230   :  { %4826 = vmatpush1.bf16.msra.mxu1 %v10580_v22  ;;  %7100 = vmatpush1.bf16.msra.mxu0 %v10583_v34  ;;  %v12804_v22 = vunpack.c.h.bf16 %v12791_v52 }
 0x231   :  { %4827 = vmatprep.subr.bf16.mxu1 %v10588_v59  ;;  %7101 = vmatprep.subr.bf16.mxu0 %v10591_v53  ;;  %v5572_v59 = vadd.s32 1, %v114_v9  ;;  %v10598_v53 = vld [vmem:[#allocation5 + $0x3f8] ss:$24 sps:$4 sm:$0xff]  }
 0x232   :  { %8672 = vmatprep.mubr.msk.bf16.mxu1 %vm11461_vm3, %v11536_v41  ;;  %8792 = vmatprep.mubr.msk.bf16.mxu0 %vm11461_vm3, %v11817_v47  ;;  %v12802_v41 = vunpack.c.h.bf16 %v12787_v0  ;;  %v12042_v34 = vrot.slane %v12804_v22, 1  ;;  %v10627_v22 = vld [vmem:[#allocation5 + $0x13b4] ss:$24 sps:$4 sm:$0xff]  }
 0x233   :  { %vm5576_vm5 = vcmp.lt.s32.totalorder %v5572_v59, 16  ;;  %v10622_v59 = vld [vmem:[#allocation5 + $0x4b8] ss:$24 sps:$4 sm:$0xff]  }
 0x234   :  { %4828 = vmatpush1.bf16.msra.mxu1 %v10586_v17  ;;  %7102 = vmatpush1.bf16.msra.mxu0 %v10589_v3  ;;  %v12036_v21 = vrot.slane %v12802_v41, 1  ;;  %v10606_v17 = vld [vmem:[#allocation5 + $0x42c] ss:$24 sps:$4 sm:$0xff]   ;;  %v5554_v52 = vsel %vm5522_vm4, %v5481_v18, %v12042_v34  ;;  %vm12059_vm6 = vmpackc.low %vm5576_vm5, %vm11191_vm2 }
 0x235   :  { %4829 = vmatprep.subr.bf16.mxu1 %v10594_v19  ;;  %7103 = vmatprep.subr.bf16.mxu0 %v10597_v5  ;;  %v10609_v3 = vld [vmem:[#allocation5 + $0x1324] ss:$24 sps:$4 sm:$0xff]   ;;  %v10607_v19 = vld [vmem:[#allocation5 + $0x1320] ss:$24 sps:$4 sm:$0xff]   ;;  %v10615_v5 = vld [vmem:[#allocation5 + $0x1354] ss:$24 sps:$4 sm:$0xff]  }
 0x236   :  { %v5560_v0 = vsel %vm5522_vm4, %v12036_v21, %v5481_v18  ;;  %v10621_v41 = vld [vmem:[#allocation5 + $0x1384] ss:$24 sps:$4 sm:$0xff]  }
 0x237   :  { %8675 = vmatmul.mubr.msk.bf16.gmra.mrb[24].mxu1 %vm11461_vm3, %v11565_v39  ;;  %8795 = vmatmul.mubr.msk.bf16.gmra.mrb[8].mxu0 %vm11461_vm3, %v11834_v49  ;;  %v10601_v39 = vld [vmem:[#allocation5 + $0x12f0] ss:$24 sps:$4 sm:$0xff]   ;;  %v12056_v9 = vpack.c.bf16 %v5554_v52, %v5560_v0  ;;  %v10624_v18 = vld [vmem:[#allocation5 + $0x4bc] ss:$24 sps:$4 sm:$0xff]  }
 0x238   :  { %4830 = vmatpush1.bf16.msra.mxu1 %v10592_v48  ;;  %7104 = vmatpush1.bf16.msra.mxu0 %v10595_v11  ;;  %v10610_v11 = vld [vmem:[#allocation5 + $0x458] ss:$24 sps:$4 sm:$0xff]   ;;  %v10636_v52 = vld [vmem:[#allocation5 + $0x51c] ss:$24 sps:$4 sm:$0xff]  }
 0x239   :  { %4831 = vmatprep.subr.bf16.mxu1 %v10600_v56  ;;  %7105 = vmatprep.subr.bf16.mxu0 %v10603_v31  ;;  %v10613_v56 = vld [vmem:[#allocation5 + $0x1350] ss:$24 sps:$4 sm:$0xff]   ;;  %v10618_v31 = vld [vmem:[#allocation5 + $0x48c] ss:$24 sps:$4 sm:$0xff]  }
 0x23a   :  { %8678 = vmatprep.mubr.msk.bf16.mxu1 %vm11461_vm3, %v11574_v23  ;;  %8798 = vmatprep.mubr.msk.bf16.mxu0 %vm11461_vm3, %v11843_v44  ;;  %v10612_v23 = vld [vmem:[#allocation5 + $0x45c] ss:$24 sps:$4 sm:$0xff]  }
 0x23b   :  { %v10639_v0 = vld [vmem:[#allocation5 + $0x1414] ss:$24 sps:$4 sm:$0xff]  }
 0x23c   :  { %4832 = vmatpush1.bf16.msra.mxu1 %v10598_v53  ;;  %7106 = vmatpush1.bf16.msra.mxu0 %v10601_v39  ;;  %v10625_v53 = vld [vmem:[#allocation5 + $0x13b0] ss:$24 sps:$4 sm:$0xff]   ;;  %v10630_v39 = vld [vmem:[#allocation5 + $0x4ec] ss:$24 sps:$4 sm:$0xff]  }
 0x23d   :  { %4833 = vmatprep.subr.bf16.mxu1 %v10606_v17  ;;  %7107 = vmatprep.subr.bf16.mxu0 %v10609_v3  ;;  %v10628_v17 = vld [vmem:[#allocation5 + $0x4e8] ss:$24 sps:$4 sm:$0xff]  }
 0x23e   :  { %v10631_v3 = vld [vmem:[#allocation5 + $0x13e0] ss:$24 sps:$4 sm:$0xff]  }
 0x23f   :  { %8681 = vmatmul.mubr.msk.bf16.gmra.mrb[28].mxu1 %vm11461_vm3, %v11599_v29  ;;  %8801 = vmatmul.mubr.msk.bf16.gmra.mrb[12].mxu0 %vm11461_vm3, %v11858_v60  ;;  %v10616_v29 = vld [vmem:[#allocation5 + $0x488] ss:$24 sps:$4 sm:$0xff]  }
 0x240   :  { %4834 = vmatpush1.bf16.msra.mxu1 %v10604_v16  ;;  %7108 = vmatpush1.bf16.msra.mxu0 %v10607_v19  ;;  %v10634_v16 = vld [vmem:[#allocation5 + $0x518] ss:$24 sps:$4 sm:$0xff]  }
 0x241   :  { %4835 = vmatprep.subr.bf16.mxu1 %v10612_v23  ;;  %7109 = vmatprep.subr.bf16.mxu0 %v10615_v5  ;;  %v10637_v19 = vld [vmem:[#allocation5 + $0x1410] ss:$24 sps:$4 sm:$0xff]   ;;  %v10642_v23 = vld [vmem:[#allocation5 + $0x54c] ss:$24 sps:$4 sm:$0xff]  }
 0x242   :  { %8684 = vmatprep.mubr.msk.bf16.mxu1 %vm11461_vm3, %v12779_v24  ;;  %9092 = vmatprep.mubr.msk.bf16.mxu0 %vm12059_vm6, %v12056_v9  ;;  %v10633_v24 = vld [vmem:[#allocation5 + $0x13e4] ss:$24 sps:$4 sm:$0xff]  }
 0x243   :  { %v10645_v5 = vld [vmem:[#allocation5 + $0x1444] ss:$24 sps:$4 sm:$0xff]  }
 0x244   :  { %4836 = vmatpush1.bf16.msra.mxu1 %v10610_v11  ;;  %7110 = vmatpush1.bf16.msra.mxu0 %v10613_v56  ;;  %v10640_v11 = vld [vmem:[#allocation5 + $0x548] ss:$24 sps:$4 sm:$0xff]  }
 0x245   :  { %4837 = vmatprep.subr.bf16.mxu1 %v10618_v31  ;;  %7111 = vmatprep.subr.bf16.mxu0 %v10621_v41  ;;  %v10643_v56 = vld [vmem:[#allocation5 + $0x1440] ss:$24 sps:$4 sm:$0xff]   ;;  %v10648_v31 = vld [vmem:[#allocation5 + $0x57c] ss:$24 sps:$4 sm:$0xff]  }
 0x246   :  { %v10651_v41 = vld [vmem:[#allocation5 + $0x1474] ss:$24 sps:$4 sm:$0xff]  }
 0x248   :  { %4838 = vmatpush1.bf16.msra.mxu1 %v10616_v29  ;;  %7112 = vmatpush1.bf16.msra.mxu0 %v10619_v50  ;;  %v10646_v29 = vld [vmem:[#allocation5 + $0x578] ss:$24 sps:$4 sm:$0xff]  }
 0x249   :  { %4839 = vmatprep.subr.bf16.mxu1 %v10624_v18  ;;  %7113 = vmatprep.subr.bf16.mxu0 %v10627_v22  ;;  %v10649_v50 = vld [vmem:[#allocation5 + $0x1470] ss:$24 sps:$4 sm:$0xff]   ;;  %v10654_v18 = vld [vmem:[#allocation5 + $0x5ac] ss:$24 sps:$4 sm:$0xff]  }
 0x24a   :  { %v10657_v22 = vld [vmem:[#allocation5 + $0x14a4] ss:$24 sps:$4 sm:$0xff]  }
 0x24c   :  { %4840 = vmatpush1.bf16.msra.mxu1 %v10622_v59  ;;  %7114 = vmatpush1.bf16.msra.mxu0 %v10625_v53  ;;  %v10652_v59 = vld [vmem:[#allocation5 + $0x5a8] ss:$24 sps:$4 sm:$0xff]  }
 0x24d   :  { %4841 = vmatprep.subr.bf16.mxu1 %v10630_v39  ;;  %7115 = vmatprep.subr.bf16.mxu0 %v10633_v24  ;;  %v10655_v53 = vld [vmem:[#allocation5 + $0x14a0] ss:$24 sps:$4 sm:$0xff]   ;;  %v10660_v39 = vld [vmem:[#allocation5 + $0x5dc] ss:$24 sps:$4 sm:$0xff]  }
 0x24e   :  { %v10663_v24 = vld [vmem:[#allocation5 + $0x14d4] ss:$24 sps:$4 sm:$0xff]  }
 0x250   :  { %4842 = vmatpush1.bf16.msra.mxu1 %v10628_v17  ;;  %7116 = vmatpush1.bf16.msra.mxu0 %v10631_v3  ;;  %v12807_v17 = vld [vmem:[#allocation24_spill] sm:$0xff] }
 0x251   :  { %4843 = vmatprep.subr.bf16.mxu1 %v10636_v52  ;;  %7117 = vmatprep.subr.bf16.mxu0 %v10639_v0  ;;  %v12808_v3 = vunpack.c.l.bf16 %v12807_v17  ;;  %v12809_v0 = vld [vmem:[#allocation17_spill] sm:$0xff]  ;;  %v10666_v17 = vld [vmem:[#allocation5 + $0x60c] ss:$24 sps:$4 sm:$0xff]  }
 0x253   :  { %v12077_v52 = vrot.slane %v12808_v3, 1  ;;  %v10669_v3 = vld [vmem:[#allocation5 + $0x1504] ss:$24 sps:$4 sm:$0xff]  }
 0x254   :  { %4844 = vmatpush1.bf16.msra.mxu1 %v10634_v16  ;;  %7118 = vmatpush1.bf16.msra.mxu0 %v10637_v19  ;;  %v12810_v16 = vunpack.c.h.bf16 %v12809_v0 }
 0x255   :  { %4845 = vmatprep.subr.bf16.mxu1 %v10642_v23  ;;  %7119 = vmatprep.subr.bf16.mxu0 %v10645_v5  ;;  %v12811_v23 = vld [vmem:[#allocation18_spill] sm:$0xff] }
 0x256   :  { %v5493_v19 = vrot.slane %v12810_v16, 1  ;;  %v12812_v5 = vunpack.c.h.bf16 %v12811_v23 }
 0x258   :  { %4846 = vmatpush1.bf16.msra.mxu1 %v10640_v11  ;;  %7120 = vmatpush1.bf16.msra.mxu0 %v10643_v56  ;;  %v5499_v11 = vrot.slane %v12812_v5, 1  ;;  %v12813_v56 = vld [vmem:[#allocation25_spill] sm:$0xff]  ;;  %v5548_v23 = vsel %vm5522_vm4, %v12042_v34, %v5493_v19  ;;  %v10664_v5 = vld [vmem:[#allocation5 + $0x608] ss:$24 sps:$4 sm:$0xff]  }
 0x259   :  { %4847 = vmatprep.subr.bf16.mxu1 %v10648_v31  ;;  %7121 = vmatprep.subr.bf16.mxu0 %v10651_v41  ;;  %v12814_v31 = vunpack.c.l.bf16 %v12813_v56  ;;  %v10667_v56 = vld [vmem:[#allocation5 + $0x1500] ss:$24 sps:$4 sm:$0xff]   ;;  %v10672_v34 = vld [vmem:[#allocation5 + $0x63c] ss:$24 sps:$4 sm:$0xff]  }
 0x25a   :  { %v5542_v16 = vsel %vm5522_vm4, %v5493_v19, %v5499_v11  ;;  %v10675_v19 = vld [vmem:[#allocation5 + $0x1534] ss:$24 sps:$4 sm:$0xff]  }
 0x25b   :  { %v5484_v41 = vrot.slane %v12814_v31, 1  ;;  %v12817_v31 = vld [vmem:[#allocation27_spill] sm:$0xff] }
 0x25c   :  { %4848 = vmatpush1.bf16.msra.mxu1 %v10646_v29  ;;  %7122 = vmatpush1.bf16.msra.mxu0 %v10649_v50  ;;  %v12815_v29 = vunpack.c.l.bf16 %v11756_v6 }
 0x25d   :  { %4849 = vmatprep.subr.bf16.mxu1 %v10654_v18  ;;  %7123 = vmatprep.subr.bf16.mxu0 %v10657_v22  ;;  %v10658_v18 = vld [vmem:[#allocation5 + $0x5d8] ss:$24 sps:$4 sm:$0xff]   ;;  %v5563_v30 = vsel %vm5522_vm4, %v12077_v52, %v5484_v41 }
 0x25e   :  { %v12087_v50 = vrot.slane %v12815_v29, 1  ;;  %v10661_v22 = vld [vmem:[#allocation5 + $0x14d0] ss:$24 sps:$4 sm:$0xff]   ;;  %v12818_v29 = vunpack.c.l.bf16 %v12817_v31 }
 0x260   :  { %4850 = vmatpush1.bf16.msra.mxu1 %v10652_v59  ;;  %7124 = vmatpush1.bf16.msra.mxu0 %v10655_v53  ;;  %v12816_v59 = vunpack.c.l.bf16 %v12809_v0  ;;  %v12819_v0 = vld [vmem:[#allocation19_spill] sm:$0xff] }
 0x261   :  { %4851 = vmatprep.subr.bf16.mxu1 %v10660_v39  ;;  %7125 = vmatprep.subr.bf16.mxu0 %v10663_v24  ;;  %v5498_v39 = vrot.slane %v12818_v29, 1  ;;  %v5557_v24 = vsel %vm5522_vm4, %v5484_v41, %v12087_v50  ;;  %v12821_v41 = vld [vmem:[#allocation21_spill] sm:$0xff] }
 0x262   :  { %v5492_v53 = vrot.slane %v12816_v59, 1  ;;  %v12820_v59 = vunpack.c.h.bf16 %v12819_v0  ;;  %v10673_v29 = vld [vmem:[#allocation5 + $0x1530] ss:$24 sps:$4 sm:$0xff]  }
 0x264   :  { %4852 = vmatpush1.bf16.msra.mxu1 %v10658_v18  ;;  %7126 = vmatpush1.bf16.msra.mxu0 %v10661_v22  ;;  %v12104_v18 = vpack.c.bf16 %v5557_v24, %v5563_v30  ;;  %v12106_v22 = vpack.c.bf16 %v5542_v16, %v5548_v23  ;;  %v5505_v31 = vrot.slane %v12820_v59, 1  ;;  %v10670_v30 = vld [vmem:[#allocation5 + $0x638] ss:$24 sps:$4 sm:$0xff]   ;;  %v5541_v16 = vsel %vm5522_vm4, %v5492_v53, %v5498_v39  ;;  %v10678_v23 = vld [vmem:[#allocation5 + $0x66c] ss:$24 sps:$4 sm:$0xff]  }
 0x265   :  { %4894 = vmatprep.subr.bf16.mxu1 %v10666_v17  ;;  %7168 = vmatprep.subr.bf16.mxu0 %v10669_v3  ;;  %v12822_v17 = vunpack.c.h.bf16 %v12821_v41  ;;  %v10681_v24 = vld [vmem:[#allocation5 + $0x1564] ss:$24 sps:$4 sm:$0xff]  }
 0x267   :  { %8687 = vmatmul.mubr.msk.bf16.vlgmr.msra.gmra.mrb[16].mxu1 %vm11461_vm3, %v11412_v38  ;;  %9095 = vmatmul.mubr.msk.bf16.vlgmr.msra.gmra.mrb[16].mxu0 %vm12059_vm6, %v11949_v32  ;;  %v5511_v3 = vrot.slane %v12822_v17, 1  ;;  %v5547_v38 = vsel %vm5522_vm4, %v11940_v43, %v5492_v53  ;;  %v5536_v43 = vsel %vm5522_vm4, %v5499_v11, %v5505_v31  ;;  %v10676_v53 = vld [vmem:[#allocation5 + $0x668] ss:$24 sps:$4 sm:$0xff]   ;;  %v12827_v11 = vld [vmem:[#allocation22_spill] sm:$0xff] }
 0x268   :  { %4895 = vmatpush1.bf16.msra.mxu1 %v10664_v5  ;;  %7169 = vmatpush1.bf16.msra.mxu0 %v10667_v56  ;;  %v12129_v5 = vpack.c.bf16 %v5541_v16, %v5547_v38  ;;  %v10684_v16 = vld [vmem:[#allocation5 + $0x69c] ss:$24 sps:$4 sm:$0xff]  }
 0x269   :  { %4896 = vmatprep.subr.bf16.mxu1 %v10672_v34  ;;  %7170 = vmatprep.subr.bf16.mxu0 %v10675_v19  ;;  %v5530_v56 = vsel %vm5522_vm4, %v5505_v31, %v5511_v3  ;;  %v10679_v34 = vld [vmem:[#allocation5 + $0x1560] ss:$24 sps:$4 sm:$0xff]   ;;  %v12823_v19 = vld [vmem:[#allocation28_spill] sm:$0xff]  ;;  %v12828_v31 = vunpack.c.h.bf16 %v12827_v11 }
 0x26a   :  { %8690 = vmatprep.mubr.msk.bf16.mxu1 %vm11461_vm3, %v12793_v12  ;;  %9098 = vmatprep.mubr.msk.bf16.mxu0 %vm12059_vm6, %v12106_v22  ;;  %v12824_v0 = vunpack.c.l.bf16 %v12823_v19  ;;  %v12825_v12 = vld [vmem:[#allocation29_spill] sm:$0xff]  ;;  %v12139_v45 = vpack.c.bf16 %v5530_v56, %v5536_v43  ;;  %v10693_v43 = vld [vmem:[#allocation5 + $0x15c4] ss:$24 sps:$4 sm:$0xff]   ;;  %v10688_v19 = vld [vmem:[#allocation5 + $0x6c8] ss:$24 sps:$4 sm:$0xff]  }
 0x26b   :  { %v12826_v41 = vunpack.c.l.bf16 %v12825_v12  ;;  %v10687_v38 = vld [vmem:[#allocation5 + $0x1594] ss:$24 sps:$4 sm:$0xff]  }
 0x26c   :  { %4897 = vmatpush1.bf16.msra.mxu1 %v10670_v30  ;;  %7171 = vmatpush1.bf16.msra.mxu0 %v10673_v29  ;;  %v5504_v59 = vrot.slane %v12824_v0, 1  ;;  %v5517_v30 = vrot.slane %v12828_v31, 1  ;;  %v10682_v29 = vld [vmem:[#allocation5 + $0x698] ss:$24 sps:$4 sm:$0xff]   ;;  %v10696_v12 = vld [vmem:[#allocation5 + $0x6fc] ss:$24 sps:$4 sm:$0xff]  }
 0x26d   :  { %v5510_v17 = vrot.slane %v12826_v41, 1  ;;  %4898 = vmatprep.subr.bf16.mxu1 %v10678_v23  ;;  %7172 = vmatprep.subr.bf16.mxu0 %v10681_v24  ;;  %v10685_v23 = vld [vmem:[#allocation5 + $0x1590] ss:$24 sps:$4 sm:$0xff]   ;;  %v10691_v0 = vld [vmem:[#allocation5 + $0x15c0] ss:$24 sps:$4 sm:$0xff]  }
 0x26e   :  { %v5535_v56 = vsel %vm5522_vm4, %v5498_v39, %v5504_v59  ;;  %v5566_v39 = vsel %vm5522_vm4, %v5517_v30, %v12036_v21  ;;  %v10699_v41 = vld [vmem:[#allocation5 + $0x15f4] ss:$24 sps:$4 sm:$0xff]   ;;  %v12830_v21 = vld [vmem:[#allocation30_spill] sm:$0xff] }
 0x26f   :  { %8693 = vmatmul.mubr.msk.bf16.gmra.mrb[20].mxu1 %vm11461_vm3, %v11668_v10  ;;  %9101 = vmatmul.mubr.msk.bf16.gmra.mrb[20].mxu0 %vm12059_vm6, %v12129_v5  ;;  %v5529_v24 = vsel %vm5522_vm4, %v5504_v59, %v5510_v17  ;;  %v10690_v10 = vld [vmem:[#allocation5 + $0x6cc] ss:$24 sps:$4 sm:$0xff]   ;;  %v12829_v59 = vunpack.c.l.bf16 %v12827_v11 }
 0x270   :  { %4899 = vmatpush1.bf16.msra.mxu1 %v10676_v53  ;;  %7173 = vmatpush1.bf16.msra.mxu0 %v10679_v34  ;;  %v12159_v53 = vpack.c.bf16 %v5529_v24, %v5535_v56  ;;  %v5524_v34 = vsel %vm5522_vm4, %v5511_v3, %v5517_v30  ;;  %v12831_v3 = vunpack.c.h.bf16 %v12830_v21  ;;  %v12832_v11 = vld [vmem:[#allocation31_spill] sm:$0xff]  ;;  %v10694_v24 = vld [vmem:[#allocation5 + $0x6f8] ss:$24 sps:$4 sm:$0xff]  }
 0x271   :  { %4900 = vmatprep.subr.bf16.mxu1 %v10684_v16  ;;  %7174 = vmatprep.subr.bf16.mxu0 %v10687_v38  ;;  %v12168_v16 = vpack.c.bf16 %v5566_v39, %v5524_v34  ;;  %v12833_v31 = vunpack.c.h.bf16 %v12832_v11  ;;  %v10697_v56 = vld [vmem:[#allocation5 + $0x15f0] ss:$24 sps:$4 sm:$0xff]   ;;  %v10705_v34 = vld [vmem:[#allocation5 + $0x1624] ss:$24 sps:$4 sm:$0xff]  }
 0x272   :  { %8696 = vmatprep.mubr.msk.bf16.mxu1 %vm11461_vm3, %v12795_v20  ;;  %9104 = vmatprep.mubr.msk.bf16.mxu0 %vm12059_vm6, %v12139_v45  ;;  %v5516_v20 = vrot.slane %v12829_v59, 1  ;;  %v12178_v38 = vrot.slane %v12831_v3, 1  ;;  %v10700_v39 = vld [vmem:[#allocation5 + $0x728] ss:$24 sps:$4 sm:$0xff]   ;;  %v10717_v21 = vld [vmem:[#allocation5 + $0x1684] ss:$24 sps:$4 sm:$0xff]  }
 0x273   :  { %v5483_v30 = vrot.slane %v12833_v31, 1  ;;  %v10715_v3 = vld [vmem:[#allocation5 + $0x1680] ss:$24 sps:$4 sm:$0xff]   ;;  %v10720_v11 = vld [vmem:[#allocation5 + $0x7bc] ss:$24 sps:$4 sm:$0xff]  }
 0x274   :  { %4901 = vmatpush1.bf16.msra.mxu1 %v10682_v29  ;;  %7175 = vmatpush1.bf16.msra.mxu0 %v10685_v23  ;;  %v12834_v29 = vunpack.c.h.bf16 %v12800_v51  ;;  %v10723_v31 = vld [vmem:[#allocation5 + $0x16b4] ss:$24 sps:$4 sm:$0xff]  }
 0x275   :  { %4902 = vmatprep.subr.bf16.mxu1 %v10690_v10  ;;  %7176 = vmatprep.subr.bf16.mxu0 %v10693_v43  ;;  %v5565_v10 = vsel %vm5522_vm4, %v5516_v20, %v11934_v36  ;;  %v10702_v43 = vld [vmem:[#allocation5 + $0x72c] ss:$24 sps:$4 sm:$0xff]   ;;  %v5562_v36 = vsel %vm5522_vm4, %v12178_v38, %v5483_v30 }
 0x276   :  { %v12184_v23 = vrot.slane %v12834_v29, 1  ;;  %v10721_v29 = vld [vmem:[#allocation5 + $0x16b0] ss:$24 sps:$4 sm:$0xff]  }
 0x277   :  { %8699 = vmatmul.mubr.msk.bf16.gmra.mrb[24].mxu1 %vm11461_vm3, %v11704_v42  ;;  %9107 = vmatmul.mubr.msk.bf16.gmra.mrb[24].mxu0 %vm12059_vm6, %v12159_v53  ;;  %v5523_v42 = vsel %vm5522_vm4, %v5510_v17, %v5516_v20  ;;  %v10706_v20 = vld [vmem:[#allocation5 + $0x758] ss:$24 sps:$4 sm:$0xff]  }
 0x278   :  { %4903 = vmatpush1.bf16.msra.mxu1 %v10688_v19  ;;  %7177 = vmatpush1.bf16.msra.mxu0 %v10691_v0  ;;  %v12197_v51 = vpack.c.bf16 %v5565_v10, %v5523_v42  ;;  %v5556_v17 = vsel %vm5522_vm4, %v5483_v30, %v12184_v23  ;;  %v10703_v19 = vld [vmem:[#allocation5 + $0x1620] ss:$24 sps:$4 sm:$0xff]   ;;  %v10711_v0 = vld [vmem:[#allocation5 + $0x1654] ss:$24 sps:$4 sm:$0xff]  }
 0x279   :  { %4904 = vmatprep.subr.bf16.mxu1 %v10696_v12  ;;  %7178 = vmatprep.subr.bf16.mxu0 %v10699_v41  ;;  %v12205_v59 = vpack.c.bf16 %v5556_v17, %v5562_v36  ;;  %v10709_v12 = vld [vmem:[#allocation5 + $0x1650] ss:$24 sps:$4 sm:$0xff]   ;;  %v10714_v41 = vld [vmem:[#allocation5 + $0x78c] ss:$24 sps:$4 sm:$0xff]   ;;  %v10727_v42 = vld [vmem:[#allocation5 + $0x16e0] ss:$24 sps:$4 sm:$0xff]  }
 0x27a   :  { %8702 = vmatprep.mubr.msk.bf16.mxu1 %vm11461_vm3, %v11713_v54  ;;  %9110 = vmatprep.mubr.msk.bf16.mxu0 %vm12059_vm6, %v12168_v16  ;;  %v10708_v54 = vld [vmem:[#allocation5 + $0x75c] ss:$24 sps:$4 sm:$0xff]   ;;  %v10718_v30 = vld [vmem:[#allocation5 + $0x7b8] ss:$24 sps:$4 sm:$0xff]   ;;  %v10738_v36 = vld [vmem:[#allocation5 + $0x84c] ss:$24 sps:$4 sm:$0xff]  }
 0x27b   :  { %v10732_v10 = vld [vmem:[#allocation5 + $0x81c] ss:$24 sps:$4 sm:$0xff]   ;;  %v10733_v17 = vld [vmem:[#allocation5 + $0x1710] ss:$24 sps:$4 sm:$0xff]  }
 0x27c   :  { %4905 = vmatpush1.bf16.msra.mxu1 %v10694_v24  ;;  %7179 = vmatpush1.bf16.msra.mxu0 %v10697_v56  ;;  %v10726_v24 = vld [vmem:[#allocation5 + $0x7ec] ss:$24 sps:$4 sm:$0xff]   ;;  %v10724_v56 = vld [vmem:[#allocation5 + $0x7e8] ss:$24 sps:$4 sm:$0xff]  }
 0x27d   :  { %4906 = vmatprep.subr.bf16.mxu1 %v10702_v43  ;;  %7180 = vmatprep.subr.bf16.mxu0 %v10705_v34  ;;  %v10735_v43 = vld [vmem:[#allocation5 + $0x1714] ss:$24 sps:$4 sm:$0xff]   ;;  %v10730_v34 = vld [vmem:[#allocation5 + $0x818] ss:$24 sps:$4 sm:$0xff]  }
 0x27f   :  { %8705 = vmatmul.mubr.msk.bf16.gmra.mrb[28].mxu1 %vm11461_vm3, %v11738_v14  ;;  %9113 = vmatmul.mubr.msk.bf16.gmra.mrb[28].mxu0 %vm12059_vm6, %v12197_v51  ;;  %v10712_v14 = vld [vmem:[#allocation5 + $0x788] ss:$24 sps:$4 sm:$0xff]  }
 0x280   :  { %4907 = vmatpush1.bf16.msra.mxu1 %v10700_v39  ;;  %7181 = vmatpush1.bf16.msra.mxu0 %v10703_v19  ;;  %v10741_v39 = vld [vmem:[#allocation5 + $0x1744] ss:$24 sps:$4 sm:$0xff]   ;;  %v10736_v19 = vld [vmem:[#allocation5 + $0x848] ss:$24 sps:$4 sm:$0xff]  }
 0x281   :  { %4908 = vmatprep.subr.bf16.mxu1 %v10708_v54  ;;  %7182 = vmatprep.subr.bf16.mxu0 %v10711_v0  ;;  %v10739_v54 = vld [vmem:[#allocation5 + $0x1740] ss:$24 sps:$4 sm:$0xff]   ;;  %v10744_v0 = vld [vmem:[#allocation5 + $0x87c] ss:$24 sps:$4 sm:$0xff]  }
 0x282   :  { %8708 = vmatprep.mubr.msk.bf16.mxu1 %vm11461_vm3, %v11746_v28  ;;  %9116 = vmatprep.mubr.msk.bf16.mxu0 %vm12059_vm6, %v12205_v59  ;;  %v10729_v28 = vld [vmem:[#allocation5 + $0x16e4] ss:$24 sps:$4 sm:$0xff]  }
 0x284   :  { %4909 = vmatpush1.bf16.msra.mxu1 %v10706_v20  ;;  %7183 = vmatpush1.bf16.msra.mxu0 %v10709_v12  ;;  %v10747_v20 = vld [vmem:[#allocation5 + $0x1774] ss:$24 sps:$4 sm:$0xff]   ;;  %v10742_v12 = vld [vmem:[#allocation5 + $0x878] ss:$24 sps:$4 sm:$0xff]  }
 0x285   :  { %4910 = vmatprep.subr.bf16.mxu1 %v10714_v41  ;;  %7184 = vmatprep.subr.bf16.mxu0 %v10717_v21  ;;  %v10745_v41 = vld [vmem:[#allocation5 + $0x1770] ss:$24 sps:$4 sm:$0xff]   ;;  %v10750_v21 = vld [vmem:[#allocation5 + $0x8ac] ss:$24 sps:$4 sm:$0xff]  }
 0x288   :  { %4911 = vmatpush1.bf16.msra.mxu1 %v10712_v14  ;;  %7185 = vmatpush1.bf16.msra.mxu0 %v10715_v3  ;;  %v10753_v14 = vld [vmem:[#allocation5 + $0x17a4] ss:$24 sps:$4 sm:$0xff]   ;;  %v10748_v3 = vld [vmem:[#allocation5 + $0x8a8] ss:$24 sps:$4 sm:$0xff]  }
 0x289   :  { %4912 = vmatprep.subr.bf16.mxu1 %v10720_v11  ;;  %7186 = vmatprep.subr.bf16.mxu0 %v10723_v31  ;;  %v10751_v11 = vld [vmem:[#allocation5 + $0x17a0] ss:$24 sps:$4 sm:$0xff]   ;;  %v10756_v31 = vld [vmem:[#allocation5 + $0x8dc] ss:$24 sps:$4 sm:$0xff]  }
 0x28c   :  { %4913 = vmatpush1.bf16.msra.mxu1 %v10718_v30  ;;  %7187 = vmatpush1.bf16.msra.mxu0 %v10721_v29  ;;  %v10759_v30 = vld [vmem:[#allocation5 + $0x17d4] ss:$24 sps:$4 sm:$0xff]   ;;  %v12835_v29 = vld [vmem:[#allocation35_spill] sm:$0xff] }
 0x28d   :  { %4914 = vmatprep.subr.bf16.mxu1 %v10726_v24  ;;  %7188 = vmatprep.subr.bf16.mxu0 %v10729_v28  ;;  %v12836_v24 = vunpack.c.h.bf16 %v12835_v29 }
 0x28f   :  { %v5495_v28 = vrot.slane %v12836_v24, 1 }
 0x290   :  { %4915 = vmatpush1.bf16.msra.mxu1 %v10724_v56  ;;  %7189 = vmatpush1.bf16.msra.mxu0 %v10727_v42  ;;  %v12837_v56 = vld [vmem:[#allocation36_spill] sm:$0xff] }
 0x291   :  { %4916 = vmatprep.subr.bf16.mxu1 %v10732_v10  ;;  %7190 = vmatprep.subr.bf16.mxu0 %v10735_v43  ;;  %v12838_v42 = vunpack.c.h.bf16 %v12837_v56  ;;  %v10754_v43 = vld [vmem:[#allocation5 + $0x8d8] ss:$24 sps:$4 sm:$0xff]  }
 0x293   :  { %v5501_v10 = vrot.slane %v12838_v42, 1 }
 0x294   :  { %4917 = vmatpush1.bf16.msra.mxu1 %v10730_v34  ;;  %7191 = vmatpush1.bf16.msra.mxu0 %v10733_v17  ;;  %v10757_v34 = vld [vmem:[#allocation5 + $0x17d0] ss:$24 sps:$4 sm:$0xff]   ;;  %v10762_v17 = vld [vmem:[#allocation5 + $0x1804] ss:$24 sps:$4 sm:$0xff]  }
 0x295   :  { %4918 = vmatprep.subr.bf16.mxu1 %v10738_v36  ;;  %7192 = vmatprep.subr.bf16.mxu0 %v10741_v39  ;;  %v10765_v36 = vld [vmem:[#allocation5 + $0x120c] ss:$24 sps:$4 sm:$0xff]   ;;  %v5544_v39 = vsel %vm5522_vm4, %v5495_v28, %v5501_v10 }
 0x298   :  { %4919 = vmatpush1.bf16.msra.mxu1 %v10736_v19  ;;  %7193 = vmatpush1.bf16.msra.mxu0 %v10739_v54  ;;  %v5550_v19 = vsel %vm5522_vm4, %v12184_v23, %v5495_v28  ;;  %v10760_v54 = vld [vmem:[#allocation5 + $0x1800] ss:$24 sps:$4 sm:$0xff]   ;;  %v12841_v23 = vld [vmem:[#allocation37_spill] sm:$0xff] }
 0x299   :  { %4920 = vmatprep.subr.bf16.mxu1 %v10744_v0  ;;  %7194 = vmatprep.subr.bf16.mxu0 %v10747_v20  ;;  %v10763_v0 = vld [vmem:[#allocation5 + $0x1208] ss:$24 sps:$4 sm:$0xff]   ;;  %v12839_v20 = vunpack.c.l.bf16 %v12835_v29  ;;  %v12843_v29 = vunpack.c.h.bf16 %v11665_v27 }
 0x29a   :  { %v10766_v28 = vld [vmem:[#allocation5 + $0x1830] ss:$24 sps:$4 sm:$0xff]  }
 0x29b   :  { %v5513_v24 = vrot.slane %v12843_v29, 1 }
 0x29c   :  { %4921 = vmatpush1.bf16.msra.mxu1 %v10742_v12  ;;  %7195 = vmatpush1.bf16.msra.mxu0 %v10745_v41  ;;  %v5494_v12 = vrot.slane %v12839_v20, 1  ;;  %v12840_v41 = vunpack.c.l.bf16 %v12837_v56  ;;  %v10769_v56 = vld [vmem:[#allocation5 + $0x1238] ss:$24 sps:$4 sm:$0xff]   ;;  %v12845_v20 = vunpack.c.l.bf16 %v11665_v27 }
 0x29d   :  { %4922 = vmatprep.subr.bf16.mxu1 %v10750_v21  ;;  %7196 = vmatprep.subr.bf16.mxu0 %v10753_v14  ;;  %v10768_v14 = vld [vmem:[#allocation5 + $0x1834] ss:$24 sps:$4 sm:$0xff]   ;;  %v10778_v27 = vld [vmem:[#allocation5 + $0x1890] ss:$24 sps:$4 sm:$0xff]  }
 0x29e   :  { %v5500_v21 = vrot.slane %v12840_v41, 1  ;;  %v10783_v41 = vld [vmem:[#allocation5 + $0x129c] ss:$24 sps:$4 sm:$0xff]  }
 0x2a0   :  { %4923 = vmatpush1.bf16.msra.mxu1 %v10748_v3  ;;  %7197 = vmatpush1.bf16.msra.mxu0 %v10751_v11  ;;  %v10771_v3 = vld [vmem:[#allocation5 + $0x123c] ss:$24 sps:$4 sm:$0xff]   ;;  %v12232_v11 = vpack.c.bf16 %v5544_v39, %v5550_v19  ;;  %v5543_v42 = vsel %vm5522_vm4, %v5494_v12, %v5500_v21  ;;  %v10772_v39 = vld [vmem:[#allocation5 + $0x1860] ss:$24 sps:$4 sm:$0xff]  }
 0x2a1   :  { %4924 = vmatprep.subr.bf16.mxu1 %v10756_v31  ;;  %7198 = vmatprep.subr.bf16.mxu0 %v10759_v30  ;;  %v12842_v31 = vunpack.c.h.bf16 %v12841_v23  ;;  %v10775_v19 = vld [vmem:[#allocation5 + $0x1268] ss:$24 sps:$4 sm:$0xff]  }
 0x2a3   :  { %v5507_v30 = vrot.slane %v12842_v31, 1  ;;  %v10781_v31 = vld [vmem:[#allocation5 + $0x1298] ss:$24 sps:$4 sm:$0xff]  }
 0x2a4   :  { %4925 = vmatpush1.bf16.msra.mxu1 %v10754_v43  ;;  %7199 = vmatpush1.bf16.msra.mxu0 %v10757_v34  ;;  %v10774_v43 = vld [vmem:[#allocation5 + $0x1864] ss:$24 sps:$4 sm:$0xff]  }
 0x2a5   :  { %7241 = vmatprep.subr.bf16.mxu0 %v10762_v17  ;;  %7314 = vmatprep.subr.bf16.mxu1 %v10765_v36  ;;  %v10777_v34 = vld [vmem:[#allocation5 + $0x126c] ss:$24 sps:$4 sm:$0xff]   ;;  %v5532_v36 = vsel %vm5522_vm4, %v5507_v30, %v5513_v24 }
 0x2a7   :  { %8711 = vmatmul.mubr.msk.bf16.vlgmr.msra.gmra.mrb[16].mxu1 %vm11461_vm3, %v11509_v35  ;;  %9119 = vmatmul.mubr.msk.bf16.vlgmr.msra.gmra.mrb[16].mxu0 %vm12059_vm6, %v12001_v58  ;;  %v5549_v35 = vsel %vm5522_vm4, %v11993_v15, %v5494_v12  ;;  %v5538_v15 = vsel %vm5522_vm4, %v5501_v10, %v5507_v30  ;;  %v5512_v12 = vrot.slane %v12845_v20, 1  ;;  %v12846_v10 = vld [vmem:[#allocation32_spill] sm:$0xff] }
 0x2a8   :  { %7242 = vmatpush1.bf16.msra.mxu0 %v10760_v54  ;;  %7315 = vmatpush1.bf16.msra.mxu1 %v10763_v0  ;;  %v12255_v17 = vpack.c.bf16 %v5543_v42, %v5549_v35  ;;  %v12844_v54 = vunpack.c.l.bf16 %v12841_v23  ;;  %v10784_v35 = vld [vmem:[#allocation5 + $0x18c0] ss:$24 sps:$4 sm:$0xff]  }
 0x2a9   :  { %7243 = vmatprep.subr.bf16.mxu0 %v10768_v14  ;;  %7316 = vmatprep.subr.bf16.mxu1 %v10771_v3  ;;  %v12265_v14 = vpack.c.bf16 %v5532_v36, %v5538_v15  ;;  %v12847_v3 = vunpack.c.h.bf16 %v12846_v10 }
 0x2aa   :  { %9122 = vmatprep.mubr.msk.bf16.mxu0 %vm12059_vm6, %v12232_v11  ;;  %8714 = vmatprep.mubr.msk.bf16.mxu1 %vm11461_vm3, %v11783_v8  ;;  %v5506_v0 = vrot.slane %v12844_v54, 1  ;;  %v10780_v8 = vld [vmem:[#allocation5 + $0x1894] ss:$24 sps:$4 sm:$0xff]  }
 0x2ab   :  { %v5519_v23 = vrot.slane %v12847_v3, 1  ;;  %v10790_v3 = vld [vmem:[#allocation5 + $0x18f0] ss:$24 sps:$4 sm:$0xff]  }
 0x2ac   :  { %7244 = vmatpush1.bf16.msra.mxu0 %v10766_v28  ;;  %7317 = vmatpush1.bf16.msra.mxu1 %v10769_v56  ;;  %v5531_v30 = vsel %vm5522_vm4, %v5506_v0, %v5512_v12  ;;  %v5537_v29 = vsel %vm5522_vm4, %v5500_v21, %v5506_v0  ;;  %v10786_v28 = vld [vmem:[#allocation5 + $0x18c4] ss:$24 sps:$4 sm:$0xff]   ;;  %v12852_v0 = vld [vmem:[#allocation41_spill] sm:$0xff] }
 0x2ad   :  { %7245 = vmatprep.subr.bf16.mxu0 %v10774_v43  ;;  %7318 = vmatprep.subr.bf16.mxu1 %v10777_v34  ;;  %v10789_v56 = vld [vmem:[#allocation5 + $0x12cc] ss:$24 sps:$4 sm:$0xff]   ;;  %v5526_v42 = vsel %vm5522_vm4, %v5513_v24, %v5519_v23  ;;  %v5568_v21 = vsel %vm5522_vm4, %v5519_v23, %v12178_v38  ;;  %v10787_v43 = vld [vmem:[#allocation5 + $0x12c8] ss:$24 sps:$4 sm:$0xff]   ;;  %v12853_v20 = vunpack.c.h.bf16 %v12852_v0  ;;  %v10793_v23 = vld [vmem:[#allocation5 + $0x12f8] ss:$24 sps:$4 sm:$0xff]  }
 0x2ae   :  { %v12848_v34 = vld [vmem:[#allocation23_spill] sm:$0xff]  ;;  %v12850_v38 = vld [vmem:[#allocation40_spill] sm:$0xff] }
 0x2af   :  { %9125 = vmatmul.mubr.msk.bf16.gmra.mrb[20].mxu0 %vm12059_vm6, %v12255_v17  ;;  %8717 = vmatmul.mubr.msk.bf16.gmra.mrb[20].mxu1 %vm11461_vm3, %v11807_v26  ;;  %v12285_v26 = vpack.c.bf16 %v5531_v30, %v5537_v29  ;;  %v12849_v36 = vunpack.c.l.bf16 %v12848_v34  ;;  %v12851_v24 = vunpack.c.h.bf16 %v12850_v38  ;;  %v10801_v30 = vld [vmem:[#allocation5 + $0x132c] ss:$24 sps:$4 sm:$0xff]  }
 0x2b0   :  { %7246 = vmatpush1.bf16.msra.mxu0 %v10772_v39  ;;  %7319 = vmatpush1.bf16.msra.mxu1 %v10775_v19  ;;  %v10792_v39 = vld [vmem:[#allocation5 + $0x18f4] ss:$24 sps:$4 sm:$0xff]   ;;  %v12294_v19 = vpack.c.bf16 %v5568_v21, %v5526_v42  ;;  %v10796_v42 = vld [vmem:[#allocation5 + $0x1920] ss:$24 sps:$4 sm:$0xff]  }
 0x2b1   :  { %7247 = vmatprep.subr.bf16.mxu0 %v10780_v8  ;;  %7320 = vmatprep.subr.bf16.mxu1 %v10783_v41  ;;  %v5518_v15 = vrot.slane %v12849_v36, 1  ;;  %v12304_v54 = vrot.slane %v12851_v24, 1  ;;  %v5485_v8 = vrot.slane %v12853_v20, 1  ;;  %v12854_v41 = vunpack.c.h.bf16 %v11756_v6  ;;  %v10799_v21 = vld [vmem:[#allocation5 + $0x1328] ss:$24 sps:$4 sm:$0xff]  }
 0x2b2   :  { %9128 = vmatprep.mubr.msk.bf16.mxu0 %vm12059_vm6, %v12265_v14  ;;  %8720 = vmatprep.mubr.msk.bf16.mxu1 %vm11461_vm3, %v11817_v47  ;;  %v10795_v47 = vld [vmem:[#allocation5 + $0x12fc] ss:$24 sps:$4 sm:$0xff]   ;;  %v10802_v36 = vld [vmem:[#allocation5 + $0x1950] ss:$24 sps:$4 sm:$0xff]  }
 0x2b3   :  { %v12310_v10 = vrot.slane %v12854_v41, 1  ;;  %v10811_v24 = vld [vmem:[#allocation5 + $0x1388] ss:$24 sps:$4 sm:$0xff]   ;;  %v10816_v20 = vld [vmem:[#allocation5 + $0x19b4] ss:$24 sps:$4 sm:$0xff]  }
 0x2b4   :  { %7248 = vmatpush1.bf16.msra.mxu0 %v10778_v27  ;;  %7321 = vmatpush1.bf16.msra.mxu1 %v10781_v31  ;;  %v5525_v27 = vsel %vm5522_vm4, %v5512_v12, %v5518_v15  ;;  %v10798_v31 = vld [vmem:[#allocation5 + $0x1924] ss:$24 sps:$4 sm:$0xff]  }
 0x2b5   :  { %7249 = vmatprep.subr.bf16.mxu0 %v10786_v28  ;;  %7322 = vmatprep.subr.bf16.mxu1 %v10789_v56  ;;  %v5564_v28 = vsel %vm5522_vm4, %v12304_v54, %v5485_v8 }
 0x2b7   :  { %9131 = vmatmul.mubr.msk.bf16.gmra.mrb[24].mxu0 %vm12059_vm6, %v12285_v26  ;;  %8723 = vmatmul.mubr.msk.bf16.gmra.mrb[24].mxu1 %vm11461_vm3, %v11834_v49  ;;  %v5567_v49 = vsel %vm5522_vm4, %v5518_v15, %v11987_v2  ;;  %v5558_v2 = vsel %vm5522_vm4, %v5485_v8, %v12310_v10  ;;  %v10805_v15 = vld [vmem:[#allocation5 + $0x1358] ss:$24 sps:$4 sm:$0xff]   ;;  %v10819_v8 = vld [vmem:[#allocation5 + $0x13bc] ss:$24 sps:$4 sm:$0xff]  }
 0x2b8   :  { %7250 = vmatpush1.bf16.msra.mxu0 %v10784_v35  ;;  %7323 = vmatpush1.bf16.msra.mxu1 %v10787_v43  ;;  %v12327_v12 = vpack.c.bf16 %v5567_v49, %v5525_v27  ;;  %v10807_v43 = vld [vmem:[#allocation5 + $0x135c] ss:$24 sps:$4 sm:$0xff]   ;;  %v12339_v34 = vpack.c.bf16 %v5558_v2, %v5564_v28  ;;  %v10825_v49 = vld [vmem:[#allocation5 + $0x13ec] ss:$24 sps:$4 sm:$0xff]   ;;  %v10820_v2 = vld [vmem:[#allocation5 + $0x19e0] ss:$24 sps:$4 sm:$0xff]  }
 0x2b9   :  { %7251 = vmatprep.subr.bf16.mxu0 %v10792_v39  ;;  %7324 = vmatprep.subr.bf16.mxu1 %v10795_v47  ;;  %v10810_v39 = vld [vmem:[#allocation5 + $0x1984] ss:$24 sps:$4 sm:$0xff]   ;;  %v10823_v28 = vld [vmem:[#allocation5 + $0x13e8] ss:$24 sps:$4 sm:$0xff]  }
 0x2ba   :  { %v12317_v29 = vpop.f32.mrb[32].mxu1  ;;  %9134 = vmatprep.mubr.msk.bf16.mxu0 %vm12059_vm6, %v12294_v19  ;;  %8726 = vmatprep.mubr.msk.bf16.mxu1 %vm11461_vm3, %v11843_v44  ;;  %v10804_v44 = vld [vmem:[#allocation5 + $0x1954] ss:$24 sps:$4 sm:$0xff]   ;;  %v10822_v27 = vld [vmem:[#allocation5 + $0x19e4] ss:$24 sps:$4 sm:$0xff]  }
 0x2bb   :  { %v12325_v6 = vpop.f32.mrb[33].mxu1  ;;  %v10813_v47 = vld [vmem:[#allocation5 + $0x138c] ss:$24 sps:$4 sm:$0xff]  }
 0x2bc   :  { %v12335_v56 = vpop.f32.mrb[34].mxu1  ;;  %7252 = vmatpush1.bf16.msra.mxu0 %v10790_v3  ;;  %7325 = vmatpush1.bf16.msra.mxu1 %v10793_v23  ;;  %v10814_v3 = vld [vmem:[#allocation5 + $0x19b0] ss:$24 sps:$4 sm:$0xff]  }
 0x2bd   :  { %12855 = vst [vmem:[#allocation11_spill] sm:$0xff] %v12335_v56  ;;  %v12337_v35 = vpop.f32.mrb[35].mxu1  ;;  %7253 = vmatprep.subr.bf16.mxu0 %v10798_v31  ;;  %7326 = vmatprep.subr.bf16.mxu1 %v10801_v30  ;;  %v10817_v23 = vld [vmem:[#allocation5 + $0x13b8] ss:$24 sps:$4 sm:$0xff]  }
 0x2be   :  { %12856 = vst [vmem:[#allocation12_spill] sm:$0xff] %v12337_v35  ;;  %v10867_v35 = vld [vmem:[#allocation5 + $0x1244] ss:$24 sps:$4 sm:$0xff]  }
 0x2bf   :  { %9137 = vmatmul.mubr.msk.bf16.gmra.mrb[28].mxu0 %vm12059_vm6, %v12327_v12  ;;  %8729 = vmatmul.mubr.msk.bf16.gmra.mrb[28].mxu1 %vm11461_vm3, %v11858_v60  ;;  %v10808_v60 = vld [vmem:[#allocation5 + $0x1980] ss:$24 sps:$4 sm:$0xff]  }
 0x2c0   :  { %7254 = vmatpush1.bf16.msra.mxu0 %v10796_v42  ;;  %7327 = vmatpush1.bf16.msra.mxu1 %v10799_v21  ;;  %v10828_v21 = vld [vmem:[#allocation5 + $0x1a14] ss:$24 sps:$4 sm:$0xff]  }
 0x2c1   :  { %7255 = vmatprep.subr.bf16.mxu0 %v10804_v44  ;;  %7328 = vmatprep.subr.bf16.mxu1 %v10807_v43  ;;  %v10831_v44 = vld [vmem:[#allocation5 + $0x141c] ss:$24 sps:$4 sm:$0xff]  }
 0x2c2   :  { %v12347_v38 = vpop.f32.mrb[36].mxu1  ;;  %9140 = vmatprep.mubr.msk.bf16.mxu0 %vm12059_vm6, %v12339_v34  ;;  %9164 = vmatprep.mubr.msk.bf16.mxu1 %vm12059_vm6, %v12056_v9 }
 0x2c3   :  { %12857 = vst [vmem:[#allocation16_spill] sm:$0xff] %v12347_v38  ;;  %v12355_v61 = vpop.f32.mrb[37].mxu1  ;;  %v10859_v38 = vld [vmem:[#allocation5 + $0x1210] ss:$24 sps:$4 sm:$0xff]  }
 0x2c4   :  { %12858 = vst [vmem:[#allocation38_spill] sm:$0xff] %v12355_v61  ;;  %7256 = vmatpush1.bf16.msra.mxu0 %v10802_v36  ;;  %7329 = vmatpush1.bf16.msra.mxu1 %v10805_v15  ;;  %v12357_v0 = vpop.f32.mrb[38].mxu1  ;;  %v10826_v36 = vld [vmem:[#allocation5 + $0x1a10] ss:$24 sps:$4 sm:$0xff]  }
 0x2c5   :  { %12859 = vst [vmem:[#allocation20_spill] sm:$0xff] %v12357_v0  ;;  %7257 = vmatprep.subr.bf16.mxu0 %v10810_v39  ;;  %7330 = vmatprep.subr.bf16.mxu1 %v10813_v47  ;;  %v12359_v41 = vpop.f32.mrb[39].mxu1  ;;  %v10829_v15 = vld [vmem:[#allocation5 + $0x1418] ss:$24 sps:$4 sm:$0xff]   ;;  %v10834_v39 = vld [vmem:[#allocation5 + $0x1a44] ss:$24 sps:$4 sm:$0xff]  }
 0x2c6   :  { %12860 = vst [vmem:[#allocation39_spill] sm:$0xff] %v12359_v41  ;;  %v10837_v47 = vld [vmem:[#allocation5 + $0x144c] ss:$24 sps:$4 sm:$0xff]  }
 0x2c7   :  { %v12861_v41 = vld [vmem:[#allocation43_spill] sm:$0xff] }
 0x2c8   :  { %7258 = vmatpush1.bf16.msra.mxu0 %v10808_v60  ;;  %7331 = vmatpush1.bf16.msra.mxu1 %v10811_v24  ;;  %v12862_v0 = vunpack.c.h.bf16 %v12861_v41 }
 0x2c9   :  { %7259 = vmatprep.subr.bf16.mxu0 %v10816_v20  ;;  %7332 = vmatprep.subr.bf16.mxu1 %v10819_v8  ;;  %v10832_v20 = vld [vmem:[#allocation5 + $0x1a40] ss:$24 sps:$4 sm:$0xff]  }
 0x2ca   :  { %v12361_v31 = vpop.f32.mrb[40].mxu1  ;;  %v10835_v8 = vld [vmem:[#allocation5 + $0x1448] ss:$24 sps:$4 sm:$0xff]   ;;  %v5497_v61 = vrot.slane %v12862_v0, 1 }
 0x2cb   :  { %v12363_v30 = vpop.f32.mrb[41].mxu1  ;;  %v10856_v0 = vld [vmem:[#allocation5 + $0x1508] ss:$24 sps:$4 sm:$0xff]  }
 0x2cc   :  { %7260 = vmatpush1.bf16.msra.mxu0 %v10814_v3  ;;  %7333 = vmatpush1.bf16.msra.mxu1 %v10817_v23  ;;  %v12365_v42 = vpop.f32.mrb[42].mxu1  ;;  %v10840_v23 = vld [vmem:[#allocation5 + $0x1a74] ss:$24 sps:$4 sm:$0xff]  }
 0x2cd   :  { %7261 = vmatprep.subr.bf16.mxu0 %v10822_v27  ;;  %7334 = vmatprep.subr.bf16.mxu1 %v10825_v49  ;;  %v12367_v43 = vpop.f32.mrb[43].mxu1  ;;  %v10843_v27 = vld [vmem:[#allocation5 + $0x147c] ss:$24 sps:$4 sm:$0xff]  }
 0x2d0   :  { %7262 = vmatpush1.bf16.msra.mxu0 %v10820_v2  ;;  %7335 = vmatpush1.bf16.msra.mxu1 %v10823_v28  ;;  %v10838_v2 = vld [vmem:[#allocation5 + $0x1a70] ss:$24 sps:$4 sm:$0xff]  }
 0x2d1   :  { %7263 = vmatprep.subr.bf16.mxu0 %v10828_v21  ;;  %7336 = vmatprep.subr.bf16.mxu1 %v10831_v44  ;;  %v10841_v28 = vld [vmem:[#allocation5 + $0x1478] ss:$24 sps:$4 sm:$0xff]   ;;  %v10846_v21 = vld [vmem:[#allocation5 + $0x1aa4] ss:$24 sps:$4 sm:$0xff]  }
 0x2d2   :  { %v12369_v60 = vpop.f32.mrb[44].mxu1  ;;  %v10849_v44 = vld [vmem:[#allocation5 + $0x14ac] ss:$24 sps:$4 sm:$0xff]  }
 0x2d3   :  { %v12371_v24 = vpop.f32.mrb[45].mxu1 }
 0x2d4   :  { %7264 = vmatpush1.bf16.msra.mxu0 %v10826_v36  ;;  %7337 = vmatpush1.bf16.msra.mxu1 %v10829_v15  ;;  %v12373_v3 = vpop.f32.mrb[46].mxu1  ;;  %v10844_v36 = vld [vmem:[#allocation5 + $0x1aa0] ss:$24 sps:$4 sm:$0xff]  }
 0x2d5   :  { %7265 = vmatprep.subr.bf16.mxu0 %v10834_v39  ;;  %7338 = vmatprep.subr.bf16.mxu1 %v10837_v47  ;;  %v12375_v49 = vpop.f32.mrb[47].mxu1  ;;  %v10847_v15 = vld [vmem:[#allocation5 + $0x14a8] ss:$24 sps:$4 sm:$0xff]   ;;  %v10852_v39 = vld [vmem:[#allocation5 + $0x1ad4] ss:$24 sps:$4 sm:$0xff]  }
 0x2d6   :  { %v10855_v47 = vld [vmem:[#allocation5 + $0x14dc] ss:$24 sps:$4 sm:$0xff]  }
 0x2d8   :  { %7266 = vmatpush1.bf16.msra.mxu0 %v10832_v20  ;;  %7339 = vmatpush1.bf16.msra.mxu1 %v10835_v8  ;;  %v12863_v20 = vunpack.c.h.bf16 %v11768_v46 }
 0x2d9   :  { %7267 = vmatprep.subr.bf16.mxu0 %v10840_v23  ;;  %7340 = vmatprep.subr.bf16.mxu1 %v10843_v27  ;;  %v10850_v23 = vld [vmem:[#allocation5 + $0x1ad0] ss:$24 sps:$4 sm:$0xff]  }
 0x2da   :  { %v5503_v8 = vrot.slane %v12863_v20, 1  ;;  %v10853_v27 = vld [vmem:[#allocation5 + $0x14d8] ss:$24 sps:$4 sm:$0xff]   ;;  %v12865_v20 = vunpack.c.l.bf16 %v11768_v46  ;;  %v12867_v46 = vunpack.c.h.bf16 %v11804_v25 }
 0x2dc   :  { %7268 = vmatpush1.bf16.msra.mxu0 %v10838_v2  ;;  %7341 = vmatpush1.bf16.msra.mxu1 %v10841_v28  ;;  %v10858_v2 = vld [vmem:[#allocation5 + $0x150c] ss:$24 sps:$4 sm:$0xff]  }
 0x2dd   :  { %7269 = vmatprep.subr.bf16.mxu0 %v10846_v21  ;;  %7342 = vmatprep.subr.bf16.mxu1 %v10849_v44  ;;  %v10861_v28 = vld [vmem:[#allocation5 + $0x1214] ss:$24 sps:$4 sm:$0xff]   ;;  %v5546_v21 = vsel %vm5522_vm4, %v5497_v61, %v5503_v8  ;;  %v5552_v44 = vsel %vm5522_vm4, %v12310_v10, %v5497_v61  ;;  %v12866_v10 = vunpack.c.h.bf16 %v11771_v4 }
 0x2de   :  { %v12390_v56 = vpack.c.bf16 %v5546_v21, %v5552_v44  ;;  %v10870_v21 = vld [vmem:[#allocation5 + $0x156c] ss:$24 sps:$4 sm:$0xff]  }
 0x2df   :  { %v5509_v61 = vrot.slane %v12866_v10, 1  ;;  %v10873_v44 = vld [vmem:[#allocation5 + $0x1274] ss:$24 sps:$4 sm:$0xff]  }
 0x2e0   :  { %7270 = vmatpush1.bf16.msra.mxu0 %v10844_v36  ;;  %7343 = vmatpush1.bf16.msra.mxu1 %v10847_v15  ;;  %v12864_v36 = vunpack.c.l.bf16 %v12861_v41  ;;  %v5515_v41 = vrot.slane %v12867_v46, 1  ;;  %v10876_v46 = vld [vmem:[#allocation5 + $0x159c] ss:$24 sps:$4 sm:$0xff]  }
 0x2e1   :  { %7271 = vmatprep.subr.bf16.mxu0 %v10852_v39  ;;  %7344 = vmatprep.subr.bf16.mxu1 %v10855_v47  ;;  %v5502_v39 = vrot.slane %v12865_v20, 1  ;;  %v10864_v47 = vld [vmem:[#allocation5 + $0x153c] ss:$24 sps:$4 sm:$0xff]  }
 0x2e2   :  { %v5496_v15 = vrot.slane %v12864_v36, 1  ;;  %v10871_v36 = vld [vmem:[#allocation5 + $0x1270] ss:$24 sps:$4 sm:$0xff]  }
 0x2e4   :  { %7272 = vmatpush1.bf16.msra.mxu0 %v10850_v23  ;;  %7345 = vmatpush1.bf16.msra.mxu1 %v10853_v27  ;;  %v10862_v23 = vld [vmem:[#allocation5 + $0x1538] ss:$24 sps:$4 sm:$0xff]  }
 0x2e5   :  { %7387 = vmatprep.subr.bf16.mxu1 %v10858_v2  ;;  %7533 = vmatprep.subr.bf16.mxu0 %v10861_v28  ;;  %v10865_v27 = vld [vmem:[#allocation5 + $0x1240] ss:$24 sps:$4 sm:$0xff]   ;;  %v5545_v2 = vsel %vm5522_vm4, %v5496_v15, %v5502_v39  ;;  %v5551_v28 = vsel %vm5522_vm4, %v12087_v50, %v5496_v15  ;;  %v5540_v50 = vsel %vm5522_vm4, %v5503_v8, %v5509_v61  ;;  %v12868_v15 = vunpack.c.l.bf16 %v11771_v4 }
 0x2e6   :  { %v12870_v8 = vld [vmem:[#allocation42_spill] sm:$0xff] }
 0x2e7   :  { %9143 = vmatmul.mubr.msk.bf16.vlgmr.msra.gmra.mrb[16].mxu0 %vm12059_vm6, %v12104_v18  ;;  %9167 = vmatmul.mubr.msk.bf16.vlgmr.msra.gmra.mrb[16].mxu1 %vm12059_vm6, %v11949_v32  ;;  %v5508_v20 = vrot.slane %v12868_v15, 1  ;;  %v10874_v4 = vld [vmem:[#allocation5 + $0x1598] ss:$24 sps:$4 sm:$0xff]  }
 0x2e8   :  { %7388 = vmatpush1.bf16.msra.mxu1 %v10856_v0  ;;  %7534 = vmatpush1.bf16.msra.mxu0 %v10859_v38  ;;  %v12413_v38 = vpack.c.bf16 %v5545_v2, %v5551_v28  ;;  %v5534_v0 = vsel %vm5522_vm4, %v5509_v61, %v5515_v41  ;;  %v10879_v2 = vld [vmem:[#allocation5 + $0x12a4] ss:$24 sps:$4 sm:$0xff]   ;;  %v12871_v61 = vunpack.c.h.bf16 %v12870_v8  ;;  %v10883_v15 = vld [vmem:[#allocation5 + $0x12d0] ss:$24 sps:$4 sm:$0xff]  }
 0x2e9   :  { %7389 = vmatprep.subr.bf16.mxu1 %v10864_v47  ;;  %7535 = vmatprep.subr.bf16.mxu0 %v10867_v35  ;;  %v10868_v35 = vld [vmem:[#allocation5 + $0x1568] ss:$24 sps:$4 sm:$0xff]   ;;  %v12869_v47 = vunpack.c.l.bf16 %v11804_v25  ;;  %v12423_v28 = vpack.c.bf16 %v5534_v0, %v5540_v50  ;;  %v10885_v0 = vld [vmem:[#allocation5 + $0x12d4] ss:$24 sps:$4 sm:$0xff]   ;;  %v10891_v8 = vld [vmem:[#allocation5 + $0x1304] ss:$24 sps:$4 sm:$0xff]  }
 0x2ea   :  { %9146 = vmatprep.mubr.msk.bf16.mxu0 %vm12059_vm6, %v12390_v56  ;;  %9170 = vmatprep.mubr.msk.bf16.mxu1 %vm12059_vm6, %v12106_v22  ;;  %v10877_v25 = vld [vmem:[#allocation5 + $0x12a0] ss:$24 sps:$4 sm:$0xff]  }
 0x2eb   :  { %v5514_v10 = vrot.slane %v12869_v47, 1 }
 0x2ec   :  { %7390 = vmatpush1.bf16.msra.mxu1 %v10862_v23  ;;  %7536 = vmatpush1.bf16.msra.mxu0 %v10865_v27  ;;  %v5521_v23 = vrot.slane %v12871_v61, 1 }
 0x2ed   :  { %7391 = vmatprep.subr.bf16.mxu1 %v10870_v21  ;;  %7537 = vmatprep.subr.bf16.mxu0 %v10873_v44  ;;  %v5533_v27 = vsel %vm5522_vm4, %v5508_v20, %v5514_v10  ;;  %v5539_v21 = vsel %vm5522_vm4, %v5502_v39, %v5508_v20  ;;  %v10882_v44 = vld [vmem:[#allocation5 + $0x15cc] ss:$24 sps:$4 sm:$0xff]   ;;  %v12872_v20 = vld [vmem:[#allocation26_spill] sm:$0xff] }
 0x2ee   :  { %v12443_v50 = vpack.c.bf16 %v5533_v27, %v5539_v21  ;;  %v5570_v39 = vsel %vm5522_vm4, %v5521_v23, %v12304_v54  ;;  %v12873_v47 = vunpack.c.l.bf16 %v12872_v20  ;;  %v10886_v54 = vld [vmem:[#allocation5 + $0x15f8] ss:$24 sps:$4 sm:$0xff]   ;;  %v10897_v27 = vld [vmem:[#allocation5 + $0x1334] ss:$24 sps:$4 sm:$0xff]  }
 0x2ef   :  { %9149 = vmatmul.mubr.msk.bf16.gmra.mrb[20].mxu0 %vm12059_vm6, %v12413_v38  ;;  %9173 = vmatmul.mubr.msk.bf16.gmra.mrb[20].mxu1 %vm12059_vm6, %v12129_v5  ;;  %v10907_v20 = vld [vmem:[#allocation5 + $0x1390] ss:$24 sps:$4 sm:$0xff]  }
 0x2f0   :  { %7392 = vmatpush1.bf16.msra.mxu1 %v10868_v35  ;;  %7538 = vmatpush1.bf16.msra.mxu0 %v10871_v36  ;;  %v5528_v35 = vsel %vm5522_vm4, %v5515_v41, %v5521_v23  ;;  %v10880_v36 = vld [vmem:[#allocation5 + $0x15c8] ss:$24 sps:$4 sm:$0xff]  }
 0x2f1   :  { %7393 = vmatprep.subr.bf16.mxu1 %v10876_v46  ;;  %7539 = vmatprep.subr.bf16.mxu0 %v10879_v2  ;;  %v5520_v46 = vrot.slane %v12873_v47, 1  ;;  %v10888_v2 = vld [vmem:[#allocation5 + $0x15fc] ss:$24 sps:$4 sm:$0xff]   ;;  %v12452_v61 = vpack.c.bf16 %v5570_v39, %v5528_v35  ;;  %v10889_v41 = vld [vmem:[#allocation5 + $0x1300] ss:$24 sps:$4 sm:$0xff]  }
 0x2f2   :  { %9152 = vmatprep.mubr.msk.bf16.mxu0 %vm12059_vm6, %v12423_v28  ;;  %9176 = vmatprep.mubr.msk.bf16.mxu1 %vm12059_vm6, %v12139_v45  ;;  %v10901_v35 = vld [vmem:[#allocation5 + $0x1360] ss:$24 sps:$4 sm:$0xff]   ;;  %v10906_v39 = vld [vmem:[#allocation5 + $0x168c] ss:$24 sps:$4 sm:$0xff]   ;;  %v10912_v47 = vld [vmem:[#allocation5 + $0x16bc] ss:$24 sps:$4 sm:$0xff]  }
 0x2f3   :  { %v5527_v23 = vsel %vm5522_vm4, %v5514_v10, %v5520_v46  ;;  %v10892_v10 = vld [vmem:[#allocation5 + $0x1628] ss:$24 sps:$4 sm:$0xff]  }
 0x2f4   :  { %7394 = vmatpush1.bf16.msra.mxu1 %v10874_v4  ;;  %7540 = vmatpush1.bf16.msra.mxu0 %v10877_v25  ;;  %v5569_v4 = vsel %vm5522_vm4, %v5520_v46, %v12077_v52  ;;  %v10894_v25 = vld [vmem:[#allocation5 + $0x162c] ss:$24 sps:$4 sm:$0xff]  }
 0x2f5   :  { %7395 = vmatprep.subr.bf16.mxu1 %v10882_v44  ;;  %7541 = vmatprep.subr.bf16.mxu0 %v10885_v0  ;;  %v12471_v21 = vpack.c.bf16 %v5569_v4, %v5527_v23  ;;  %v10895_v44 = vld [vmem:[#allocation5 + $0x1330] ss:$24 sps:$4 sm:$0xff]   ;;  %v10903_v52 = vld [vmem:[#allocation5 + $0x1364] ss:$24 sps:$4 sm:$0xff]  }
 0x2f6   :  { %v10898_v0 = vld [vmem:[#allocation5 + $0x1658] ss:$24 sps:$4 sm:$0xff]   ;;  %v10915_v46 = vld [vmem:[#allocation5 + $0x13c4] ss:$24 sps:$4 sm:$0xff]   ;;  %v10916_v23 = vld [vmem:[#allocation5 + $0x16e8] ss:$24 sps:$4 sm:$0xff]  }
 0x2f7   :  { %9155 = vmatmul.mubr.msk.bf16.gmra.mrb[24].mxu0 %vm12059_vm6, %v12443_v50  ;;  %9179 = vmatmul.mubr.msk.bf16.gmra.mrb[24].mxu1 %vm12059_vm6, %v12159_v53  ;;  %v10924_v4 = vld [vmem:[#allocation5 + $0x171c] ss:$24 sps:$4 sm:$0xff]  }
 0x2f8   :  { %7396 = vmatpush1.bf16.msra.mxu1 %v10880_v36  ;;  %7542 = vmatpush1.bf16.msra.mxu0 %v10883_v15  ;;  %v10909_v36 = vld [vmem:[#allocation5 + $0x1394] ss:$24 sps:$4 sm:$0xff]   ;;  %v10904_v15 = vld [vmem:[#allocation5 + $0x1688] ss:$24 sps:$4 sm:$0xff]  }
 0x2f9   :  { %7397 = vmatprep.subr.bf16.mxu1 %v10888_v2  ;;  %7543 = vmatprep.subr.bf16.mxu0 %v10891_v8  ;;  %v10910_v2 = vld [vmem:[#allocation5 + $0x16b8] ss:$24 sps:$4 sm:$0xff]  }
 0x2fa   :  { %9158 = vmatprep.mubr.msk.bf16.mxu0 %vm12059_vm6, %v12452_v61  ;;  %9182 = vmatprep.mubr.msk.bf16.mxu1 %vm12059_vm6, %v12168_v16  ;;  %v10913_v8 = vld [vmem:[#allocation5 + $0x13c0] ss:$24 sps:$4 sm:$0xff]  }
 0x2fc   :  { %7398 = vmatpush1.bf16.msra.mxu1 %v10886_v54  ;;  %7544 = vmatpush1.bf16.msra.mxu0 %v10889_v41  ;;  %v10918_v54 = vld [vmem:[#allocation5 + $0x16ec] ss:$24 sps:$4 sm:$0xff]  }
 0x2fd   :  { %7399 = vmatprep.subr.bf16.mxu1 %v10894_v25  ;;  %7545 = vmatprep.subr.bf16.mxu0 %v10897_v27  ;;  %v10921_v41 = vld [vmem:[#allocation5 + $0x13f4] ss:$24 sps:$4 sm:$0xff]   ;;  %v10927_v25 = vld [vmem:[#allocation5 + $0x1424] ss:$24 sps:$4 sm:$0xff]   ;;  %v10922_v27 = vld [vmem:[#allocation5 + $0x1718] ss:$24 sps:$4 sm:$0xff]  }
 0x2ff   :  { %9161 = vmatmul.mubr.msk.bf16.gmra.mrb[28].mxu0 %vm12059_vm6, %v12471_v21  ;;  %9185 = vmatmul.mubr.msk.bf16.gmra.mrb[28].mxu1 %vm12059_vm6, %v12197_v51 }
 0x300   :  { %7400 = vmatpush1.bf16.msra.mxu1 %v10892_v10  ;;  %7546 = vmatpush1.bf16.msra.mxu0 %v10895_v44  ;;  %v10925_v10 = vld [vmem:[#allocation5 + $0x1420] ss:$24 sps:$4 sm:$0xff]   ;;  %v10930_v44 = vld [vmem:[#allocation5 + $0x174c] ss:$24 sps:$4 sm:$0xff]  }
 0x301   :  { %7401 = vmatprep.subr.bf16.mxu1 %v10900_v13  ;;  %7547 = vmatprep.subr.bf16.mxu0 %v10903_v52  ;;  %v10933_v13 = vld [vmem:[#allocation5 + $0x1454] ss:$24 sps:$4 sm:$0xff]   ;;  %v10928_v52 = vld [vmem:[#allocation5 + $0x1748] ss:$24 sps:$4 sm:$0xff]  }
 0x302   :  { %9188 = vmatprep.mubr.msk.bf16.mxu1 %vm12059_vm6, %v12205_v59  ;;  %9236 = vmatprep.mubr.msk.bf16.mxu0 %vm12059_vm6, %v12056_v9  ;;  %v10919_v9 = vld [vmem:[#allocation5 + $0x13f0] ss:$24 sps:$4 sm:$0xff]  }
 0x304   :  { %7402 = vmatpush1.bf16.msra.mxu1 %v10898_v0  ;;  %7548 = vmatpush1.bf16.msra.mxu0 %v10901_v35  ;;  %v10931_v0 = vld [vmem:[#allocation5 + $0x1450] ss:$24 sps:$4 sm:$0xff]   ;;  %v10936_v35 = vld [vmem:[#allocation5 + $0x177c] ss:$24 sps:$4 sm:$0xff]  }
 0x305   :  { %7403 = vmatprep.subr.bf16.mxu1 %v10906_v39  ;;  %7549 = vmatprep.subr.bf16.mxu0 %v10909_v36  ;;  %v10939_v39 = vld [vmem:[#allocation5 + $0x1484] ss:$24 sps:$4 sm:$0xff]   ;;  %v10934_v36 = vld [vmem:[#allocation5 + $0x1778] ss:$24 sps:$4 sm:$0xff]  }
 0x308   :  { %7404 = vmatpush1.bf16.msra.mxu1 %v10904_v15  ;;  %7550 = vmatpush1.bf16.msra.mxu0 %v10907_v20  ;;  %v10937_v15 = vld [vmem:[#allocation5 + $0x1480] ss:$24 sps:$4 sm:$0xff]   ;;  %v10942_v20 = vld [vmem:[#allocation5 + $0x17ac] ss:$24 sps:$4 sm:$0xff]  }
 0x309   :  { %7405 = vmatprep.subr.bf16.mxu1 %v10912_v47  ;;  %7551 = vmatprep.subr.bf16.mxu0 %v10915_v46  ;;  %v10945_v47 = vld [vmem:[#allocation5 + $0x14b4] ss:$24 sps:$4 sm:$0xff]   ;;  %v10940_v46 = vld [vmem:[#allocation5 + $0x17a8] ss:$24 sps:$4 sm:$0xff]  }
 0x30c   :  { %7406 = vmatpush1.bf16.msra.mxu1 %v10910_v2  ;;  %7552 = vmatpush1.bf16.msra.mxu0 %v10913_v8  ;;  %v10943_v2 = vld [vmem:[#allocation5 + $0x14b0] ss:$24 sps:$4 sm:$0xff]   ;;  %v10948_v8 = vld [vmem:[#allocation5 + $0x17dc] ss:$24 sps:$4 sm:$0xff]  }
 0x30d   :  { %7407 = vmatprep.subr.bf16.mxu1 %v10918_v54  ;;  %7553 = vmatprep.subr.bf16.mxu0 %v10921_v41  ;;  %v10951_v54 = vld [vmem:[#allocation5 + $0x14e4] ss:$24 sps:$4 sm:$0xff]   ;;  %v10946_v41 = vld [vmem:[#allocation5 + $0x17d8] ss:$24 sps:$4 sm:$0xff]  }
 0x310   :  { %7408 = vmatpush1.bf16.msra.mxu1 %v10916_v23  ;;  %7554 = vmatpush1.bf16.msra.mxu0 %v10919_v9  ;;  %v10949_v23 = vld [vmem:[#allocation5 + $0x14e0] ss:$24 sps:$4 sm:$0xff]   ;;  %v10954_v9 = vld [vmem:[#allocation5 + $0x180c] ss:$24 sps:$4 sm:$0xff]  }
 0x311   :  { %7409 = vmatprep.subr.bf16.mxu1 %v10924_v4  ;;  %7555 = vmatprep.subr.bf16.mxu0 %v10927_v25  ;;  %v10957_v4 = vld [vmem:[#allocation5 + $0x1514] ss:$24 sps:$4 sm:$0xff]   ;;  %v10952_v25 = vld [vmem:[#allocation5 + $0x1808] ss:$24 sps:$4 sm:$0xff]  }
 0x314   :  { %7410 = vmatpush1.bf16.msra.mxu1 %v10922_v27  ;;  %7556 = vmatpush1.bf16.msra.mxu0 %v10925_v10  ;;  %v10955_v27 = vld [vmem:[#allocation5 + $0x1510] ss:$24 sps:$4 sm:$0xff]   ;;  %v10960_v10 = vld [vmem:[#allocation5 + $0x183c] ss:$24 sps:$4 sm:$0xff]  }
 0x315   :  { %7411 = vmatprep.subr.bf16.mxu1 %v10930_v44  ;;  %7557 = vmatprep.subr.bf16.mxu0 %v10933_v13  ;;  %v10963_v44 = vld [vmem:[#allocation5 + $0x1544] ss:$24 sps:$4 sm:$0xff]   ;;  %v10958_v13 = vld [vmem:[#allocation5 + $0x1838] ss:$24 sps:$4 sm:$0xff]  }
 0x318   :  { %7412 = vmatpush1.bf16.msra.mxu1 %v10928_v52  ;;  %7558 = vmatpush1.bf16.msra.mxu0 %v10931_v0  ;;  %v10961_v52 = vld [vmem:[#allocation5 + $0x1540] ss:$24 sps:$4 sm:$0xff]   ;;  %v10966_v0 = vld [vmem:[#allocation5 + $0x186c] ss:$24 sps:$4 sm:$0xff]  }
 0x319   :  { %7413 = vmatprep.subr.bf16.mxu1 %v10936_v35  ;;  %7559 = vmatprep.subr.bf16.mxu0 %v10939_v39  ;;  %v10969_v35 = vld [vmem:[#allocation5 + $0x1574] ss:$24 sps:$4 sm:$0xff]   ;;  %v10964_v39 = vld [vmem:[#allocation5 + $0x1868] ss:$24 sps:$4 sm:$0xff]  }
 0x31c   :  { %7414 = vmatpush1.bf16.msra.mxu1 %v10934_v36  ;;  %7560 = vmatpush1.bf16.msra.mxu0 %v10937_v15  ;;  %v10972_v36 = vld [vmem:[#allocation5 + $0x189c] ss:$24 sps:$4 sm:$0xff]  }
 0x31d   :  { %7415 = vmatprep.subr.bf16.mxu1 %v10942_v20  ;;  %7561 = vmatprep.subr.bf16.mxu0 %v10945_v47  ;;  %v10975_v15 = vld [vmem:[#allocation5 + $0x15a4] ss:$24 sps:$4 sm:$0xff]   ;;  %v10970_v20 = vld [vmem:[#allocation5 + $0x1898] ss:$24 sps:$4 sm:$0xff]  }
 0x31e   :  { %v10978_v47 = vld [vmem:[#allocation5 + $0x18cc] ss:$24 sps:$4 sm:$0xff]  }
 0x320   :  { %7416 = vmatpush1.bf16.msra.mxu1 %v10940_v46  ;;  %7562 = vmatpush1.bf16.msra.mxu0 %v10943_v2  ;;  %v10981_v46 = vld [vmem:[#allocation5 + $0x15d4] ss:$24 sps:$4 sm:$0xff]   ;;  %v10976_v2 = vld [vmem:[#allocation5 + $0x18c8] ss:$24 sps:$4 sm:$0xff]  }
 0x321   :  { %7417 = vmatprep.subr.bf16.mxu1 %v10948_v8  ;;  %7563 = vmatprep.subr.bf16.mxu0 %v10951_v54  ;;  %v10984_v8 = vld [vmem:[#allocation5 + $0x18fc] ss:$24 sps:$4 sm:$0xff]  }
 0x322   :  { %v10987_v54 = vld [vmem:[#allocation5 + $0x1604] ss:$24 sps:$4 sm:$0xff]  }
 0x324   :  { %7418 = vmatpush1.bf16.msra.mxu1 %v10946_v41  ;;  %7564 = vmatpush1.bf16.msra.mxu0 %v10949_v23  ;;  %v10982_v41 = vld [vmem:[#allocation5 + $0x18f8] ss:$24 sps:$4 sm:$0xff]   ;;  %v10990_v23 = vld [vmem:[#allocation5 + $0x192c] ss:$24 sps:$4 sm:$0xff]  }
 0x325   :  { %7460 = vmatprep.subr.bf16.mxu1 %v10954_v9  ;;  %7606 = vmatprep.subr.bf16.mxu0 %v10957_v4  ;;  %v10993_v9 = vld [vmem:[#allocation5 + $0x1634] ss:$24 sps:$4 sm:$0xff]   ;;  %v10988_v4 = vld [vmem:[#allocation5 + $0x1928] ss:$24 sps:$4 sm:$0xff]  }
 0x327   :  { %9191 = vmatmul.mubr.msk.bf16.vlgmr.msra.gmra.mrb[16].mxu1 %vm12059_vm6, %v12001_v58  ;;  %9239 = vmatmul.mubr.msk.bf16.vlgmr.msra.gmra.mrb[0].mxu0 %vm12059_vm6, %v11949_v32  ;;  %v10967_v32 = vld [vmem:[#allocation5 + $0x1570] ss:$24 sps:$4 sm:$0xff]  }
 0x328   :  { %7461 = vmatpush1.bf16.msra.mxu1 %v10952_v25  ;;  %7607 = vmatpush1.bf16.msra.mxu0 %v10955_v27  ;;  %v10996_v25 = vld [vmem:[#allocation5 + $0x195c] ss:$24 sps:$4 sm:$0xff]  }
 0x329   :  { %7462 = vmatprep.subr.bf16.mxu1 %v10960_v10  ;;  %7608 = vmatprep.subr.bf16.mxu0 %v10963_v44  ;;  %v10999_v27 = vld [vmem:[#allocation5 + $0x1664] ss:$24 sps:$4 sm:$0xff]   ;;  %v10994_v10 = vld [vmem:[#allocation5 + $0x1958] ss:$24 sps:$4 sm:$0xff]  }
 0x32a   :  { %9194 = vmatprep.mubr.msk.bf16.mxu1 %vm12059_vm6, %v12232_v11  ;;  %9242 = vmatprep.mubr.msk.bf16.mxu0 %vm12059_vm6, %v12106_v22  ;;  %v10973_v22 = vld [vmem:[#allocation5 + $0x15a0] ss:$24 sps:$4 sm:$0xff]   ;;  %v11002_v44 = vld [vmem:[#allocation5 + $0x198c] ss:$24 sps:$4 sm:$0xff]  }
 0x32c   :  { %7463 = vmatpush1.bf16.msra.mxu1 %v10958_v13  ;;  %7609 = vmatpush1.bf16.msra.mxu0 %v10961_v52  ;;  %v11005_v13 = vld [vmem:[#allocation5 + $0x1694] ss:$24 sps:$4 sm:$0xff]   ;;  %v11000_v52 = vld [vmem:[#allocation5 + $0x1988] ss:$24 sps:$4 sm:$0xff]  }
 0x32d   :  { %7464 = vmatprep.subr.bf16.mxu1 %v10966_v0  ;;  %7610 = vmatprep.subr.bf16.mxu0 %v10969_v35  ;;  %v11008_v0 = vld [vmem:[#allocation5 + $0x19bc] ss:$24 sps:$4 sm:$0xff]  }
 0x32e   :  { %v11011_v35 = vld [vmem:[#allocation5 + $0x16c4] ss:$24 sps:$4 sm:$0xff]  }
 0x32f   :  { %9197 = vmatmul.mubr.msk.bf16.gmra.mrb[20].mxu1 %vm12059_vm6, %v12255_v17  ;;  %9245 = vmatmul.mubr.msk.bf16.gmra.mrb[4].mxu0 %vm12059_vm6, %v12129_v5  ;;  %v10979_v5 = vld [vmem:[#allocation5 + $0x15d0] ss:$24 sps:$4 sm:$0xff]  }
 0x330   :  { %7465 = vmatpush1.bf16.msra.mxu1 %v10964_v39  ;;  %7611 = vmatpush1.bf16.msra.mxu0 %v10967_v32  ;;  %v11006_v39 = vld [vmem:[#allocation5 + $0x19b8] ss:$24 sps:$4 sm:$0xff]  }
 0x331   :  { %7466 = vmatprep.subr.bf16.mxu1 %v10972_v36  ;;  %7612 = vmatprep.subr.bf16.mxu0 %v10975_v15  ;;  %v11009_v32 = vld [vmem:[#allocation5 + $0x16c0] ss:$24 sps:$4 sm:$0xff]   ;;  %v11014_v36 = vld [vmem:[#allocation5 + $0x19ec] ss:$24 sps:$4 sm:$0xff]  }
 0x332   :  { %9200 = vmatprep.mubr.msk.bf16.mxu1 %vm12059_vm6, %v12265_v14  ;;  %9248 = vmatprep.mubr.msk.bf16.mxu0 %vm12059_vm6, %v12139_v45  ;;  %v10985_v45 = vld [vmem:[#allocation5 + $0x1600] ss:$24 sps:$4 sm:$0xff]   ;;  %v11017_v15 = vld [vmem:[#allocation5 + $0x16f4] ss:$24 sps:$4 sm:$0xff]  }
 0x334   :  { %7467 = vmatpush1.bf16.msra.mxu1 %v10970_v20  ;;  %7613 = vmatpush1.bf16.msra.mxu0 %v10973_v22  ;;  %v11012_v20 = vld [vmem:[#allocation5 + $0x19e8] ss:$24 sps:$4 sm:$0xff]   ;;  %v11020_v22 = vld [vmem:[#allocation5 + $0x1a1c] ss:$24 sps:$4 sm:$0xff]  }
 0x335   :  { %7468 = vmatprep.subr.bf16.mxu1 %v10978_v47  ;;  %7614 = vmatprep.subr.bf16.mxu0 %v10981_v46  ;;  %v11023_v47 = vld [vmem:[#allocation5 + $0x1724] ss:$24 sps:$4 sm:$0xff]   ;;  %v11018_v46 = vld [vmem:[#allocation5 + $0x1a18] ss:$24 sps:$4 sm:$0xff]  }
 0x337   :  { %9203 = vmatmul.mubr.msk.bf16.gmra.mrb[24].mxu1 %vm12059_vm6, %v12285_v26  ;;  %9251 = vmatmul.mubr.msk.bf16.gmra.mrb[8].mxu0 %vm12059_vm6, %v12159_v53  ;;  %v10991_v53 = vld [vmem:[#allocation5 + $0x1630] ss:$24 sps:$4 sm:$0xff]  }
 0x338   :  { %7469 = vmatpush1.bf16.msra.mxu1 %v10976_v2  ;;  %7615 = vmatpush1.bf16.msra.mxu0 %v10979_v5  ;;  %v11021_v2 = vld [vmem:[#allocation5 + $0x1720] ss:$24 sps:$4 sm:$0xff]   ;;  %v11026_v5 = vld [vmem:[#allocation5 + $0x1a4c] ss:$24 sps:$4 sm:$0xff]  }
 0x339   :  { %7470 = vmatprep.subr.bf16.mxu1 %v10984_v8  ;;  %7616 = vmatprep.subr.bf16.mxu0 %v10987_v54  ;;  %v11029_v8 = vld [vmem:[#allocation5 + $0x1754] ss:$24 sps:$4 sm:$0xff]   ;;  %v11024_v54 = vld [vmem:[#allocation5 + $0x1a48] ss:$24 sps:$4 sm:$0xff]  }
 0x33a   :  { %9206 = vmatprep.mubr.msk.bf16.mxu1 %vm12059_vm6, %v12294_v19  ;;  %9254 = vmatprep.mubr.msk.bf16.mxu0 %vm12059_vm6, %v12168_v16  ;;  %v10997_v16 = vld [vmem:[#allocation5 + $0x1660] ss:$24 sps:$4 sm:$0xff]  }
 0x33c   :  { %7471 = vmatpush1.bf16.msra.mxu1 %v10982_v41  ;;  %7617 = vmatpush1.bf16.msra.mxu0 %v10985_v45  ;;  %v11027_v41 = vld [vmem:[#allocation5 + $0x1750] ss:$24 sps:$4 sm:$0xff]   ;;  %v11032_v45 = vld [vmem:[#allocation5 + $0x1a7c] ss:$24 sps:$4 sm:$0xff]  }
 0x33d   :  { %7472 = vmatprep.subr.bf16.mxu1 %v10990_v23  ;;  %7618 = vmatprep.subr.bf16.mxu0 %v10993_v9  ;;  %v11035_v23 = vld [vmem:[#allocation5 + $0x1784] ss:$24 sps:$4 sm:$0xff]   ;;  %v11030_v9 = vld [vmem:[#allocation5 + $0x1a78] ss:$24 sps:$4 sm:$0xff]  }
 0x33f   :  { %9209 = vmatmul.mubr.msk.bf16.gmra.mrb[28].mxu1 %vm12059_vm6, %v12327_v12  ;;  %9257 = vmatmul.mubr.msk.bf16.gmra.mrb[12].mxu0 %vm12059_vm6, %v12197_v51  ;;  %v11003_v51 = vld [vmem:[#allocation5 + $0x1690] ss:$24 sps:$4 sm:$0xff]  }
 0x340   :  { %7473 = vmatpush1.bf16.msra.mxu1 %v10988_v4  ;;  %7619 = vmatpush1.bf16.msra.mxu0 %v10991_v53  ;;  %v11033_v4 = vld [vmem:[#allocation5 + $0x1780] ss:$24 sps:$4 sm:$0xff]   ;;  %v11038_v53 = vld [vmem:[#allocation5 + $0x1aac] ss:$24 sps:$4 sm:$0xff]  }
 0x341   :  { %7474 = vmatprep.subr.bf16.mxu1 %v10996_v25  ;;  %7620 = vmatprep.subr.bf16.mxu0 %v10999_v27  ;;  %v11041_v25 = vld [vmem:[#allocation5 + $0x17b4] ss:$24 sps:$4 sm:$0xff]   ;;  %v11036_v27 = vld [vmem:[#allocation5 + $0x1aa8] ss:$24 sps:$4 sm:$0xff]  }
 0x342   :  { %9212 = vmatprep.mubr.msk.bf16.mxu1 %vm12059_vm6, %v12339_v34  ;;  %9260 = vmatprep.mubr.msk.bf16.mxu0 %vm12059_vm6, %v12205_v59  ;;  %v11015_v59 = vld [vmem:[#allocation5 + $0x16f0] ss:$24 sps:$4 sm:$0xff]  }
 0x344   :  { %7475 = vmatpush1.bf16.msra.mxu1 %v10994_v10  ;;  %7621 = vmatpush1.bf16.msra.mxu0 %v10997_v16  ;;  %v11039_v10 = vld [vmem:[#allocation5 + $0x17b0] ss:$24 sps:$4 sm:$0xff]   ;;  %v11044_v16 = vld [vmem:[#allocation5 + $0x1adc] ss:$24 sps:$4 sm:$0xff]  }
 0x345   :  { %7476 = vmatprep.subr.bf16.mxu1 %v11002_v44  ;;  %7622 = vmatprep.subr.bf16.mxu0 %v11005_v13  ;;  %v11047_v44 = vld [vmem:[#allocation5 + $0x17e4] ss:$24 sps:$4 sm:$0xff]   ;;  %v11042_v13 = vld [vmem:[#allocation5 + $0x1ad8] ss:$24 sps:$4 sm:$0xff]  }
 0x348   :  { %7477 = vmatpush1.bf16.msra.mxu1 %v11000_v52  ;;  %7623 = vmatpush1.bf16.msra.mxu0 %v11003_v51  ;;  %v11045_v52 = vld [vmem:[#allocation5 + $0x17e0] ss:$24 sps:$4 sm:$0xff]   ;;  %v11050_v51 = vld [vmem:[#allocation5 + $0x1814] ss:$24 sps:$4 sm:$0xff]  }
 0x349   :  { %7478 = vmatprep.subr.bf16.mxu1 %v11008_v0  ;;  %7624 = vmatprep.subr.bf16.mxu0 %v11011_v35  ;;  %v11048_v0 = vld [vmem:[#allocation5 + $0x1810] ss:$24 sps:$4 sm:$0xff]   ;;  %v11053_v35 = vld [vmem:[#allocation5 + $0x1844] ss:$24 sps:$4 sm:$0xff]  }
 0x34c   :  { %7479 = vmatpush1.bf16.msra.mxu1 %v11006_v39  ;;  %7625 = vmatpush1.bf16.msra.mxu0 %v11009_v32  ;;  %v11051_v39 = vld [vmem:[#allocation5 + $0x1840] ss:$24 sps:$4 sm:$0xff]   ;;  %v11056_v32 = vld [vmem:[#allocation5 + $0x1874] ss:$24 sps:$4 sm:$0xff]  }
 0x34d   :  { %7480 = vmatprep.subr.bf16.mxu1 %v11014_v36  ;;  %7626 = vmatprep.subr.bf16.mxu0 %v11017_v15  ;;  %v11054_v36 = vld [vmem:[#allocation5 + $0x1870] ss:$24 sps:$4 sm:$0xff]   ;;  %v11057_v15 = vld [vmem:[#allocation5 + $0x18a0] ss:$24 sps:$4 sm:$0xff]  }
 0x350   :  { %7481 = vmatpush1.bf16.msra.mxu1 %v11012_v20  ;;  %7627 = vmatpush1.bf16.msra.mxu0 %v11015_v59  ;;  %v11060_v20 = vld [vmem:[#allocation5 + $0x18d0] ss:$24 sps:$4 sm:$0xff]   ;;  %v11063_v59 = vld [vmem:[#allocation5 + $0x1900] ss:$24 sps:$4 sm:$0xff]  }
 0x351   :  { %7482 = vmatprep.subr.bf16.mxu1 %v11020_v22  ;;  %7628 = vmatprep.subr.bf16.mxu0 %v11023_v47  ;;  %v11066_v22 = vld [vmem:[#allocation5 + $0x1930] ss:$24 sps:$4 sm:$0xff]   ;;  %v11069_v47 = vld [vmem:[#allocation5 + $0x1960] ss:$24 sps:$4 sm:$0xff]  }
 0x354   :  { %7483 = vmatpush1.bf16.msra.mxu1 %v11018_v46  ;;  %7629 = vmatpush1.bf16.msra.mxu0 %v11021_v2  ;;  %v11072_v46 = vld [vmem:[#allocation5 + $0x1990] ss:$24 sps:$4 sm:$0xff]   ;;  %v11075_v2 = vld [vmem:[#allocation5 + $0x19c0] ss:$24 sps:$4 sm:$0xff]  }
 0x355   :  { %7484 = vmatprep.subr.bf16.mxu1 %v11026_v5  ;;  %7630 = vmatprep.subr.bf16.mxu0 %v11029_v8  ;;  %v11080_v5 = vld [vmem:[#allocation5 + $0x19f4] ss:$24 sps:$4 sm:$0xff]   ;;  %v11078_v8 = vld [vmem:[#allocation5 + $0x19f0] ss:$24 sps:$4 sm:$0xff]  }
 0x358   :  { %7485 = vmatpush1.bf16.msra.mxu1 %v11024_v54  ;;  %7631 = vmatpush1.bf16.msra.mxu0 %v11027_v41  ;;  %v11086_v54 = vld [vmem:[#allocation5 + $0x1a54] ss:$24 sps:$4 sm:$0xff]   ;;  %v11084_v41 = vld [vmem:[#allocation5 + $0x1a50] ss:$24 sps:$4 sm:$0xff]  }
 0x359   :  { %7486 = vmatprep.subr.bf16.mxu1 %v11032_v45  ;;  %7632 = vmatprep.subr.bf16.mxu0 %v11035_v23  ;;  %v11089_v45 = vld [vmem:[#allocation5 + $0x1a84] ss:$24 sps:$4 sm:$0xff]   ;;  %v11087_v23 = vld [vmem:[#allocation5 + $0x1a80] ss:$24 sps:$4 sm:$0xff]  }
 0x35c   :  { %7487 = vmatpush1.bf16.msra.mxu1 %v11030_v9  ;;  %7633 = vmatpush1.bf16.msra.mxu0 %v11033_v4  ;;  %v11092_v9 = vld [vmem:[#allocation5 + $0x1ab4] ss:$24 sps:$4 sm:$0xff]   ;;  %v11090_v4 = vld [vmem:[#allocation5 + $0x1ab0] ss:$24 sps:$4 sm:$0xff]  }
 0x35d   :  { %7488 = vmatprep.subr.bf16.mxu1 %v11038_v53  ;;  %7634 = vmatprep.subr.bf16.mxu0 %v11041_v25  ;;  %v11095_v53 = vld [vmem:[#allocation5 + $0x1ae4] ss:$24 sps:$4 sm:$0xff]   ;;  %v11093_v25 = vld [vmem:[#allocation5 + $0x1ae0] ss:$24 sps:$4 sm:$0xff]  }
 0x360   :  { %7489 = vmatpush1.bf16.msra.mxu1 %v11036_v27  ;;  %7635 = vmatpush1.bf16.msra.mxu0 %v11039_v10 }
 0x361   :  { %7490 = vmatprep.subr.bf16.mxu1 %v11044_v16  ;;  %7636 = vmatprep.subr.bf16.mxu0 %v11047_v44 }
 0x364   :  { %7491 = vmatpush1.bf16.msra.mxu1 %v11042_v13  ;;  %7637 = vmatpush1.bf16.msra.mxu0 %v11045_v52 }
 0x365   :  { %7679 = vmatprep.subr.bf16.mxu0 %v11050_v51  ;;  %9354 = vmatprep.subr.bf16.mxu1 %v11050_v51 }
 0x367   :  { %9215 = vmatmul.mubr.msk.bf16.vlgmr.msra.gmra.mrb[16].mxu1 %vm12059_vm6, %v12104_v18  ;;  %9263 = vmatmul.mubr.msk.bf16.vlgmr.msra.gmra.mrb[0].mxu0 %vm12059_vm6, %v12001_v58  ;;  %v11059_v58 = vld [vmem:[#allocation5 + $0x18a4] ss:$24 sps:$4 sm:$0xff]  }
 0x368   :  { %7680 = vmatpush1.bf16.msra.mxu0 %v11048_v0  ;;  %9370 = vmatpush1.bf16.msra.mxu1 %v11048_v0 }
 0x369   :  { %7681 = vmatprep.subr.bf16.mxu0 %v11053_v35  ;;  %9355 = vmatprep.subr.bf16.mxu1 %v11053_v35 }
 0x36a   :  { %9218 = vmatprep.mubr.msk.bf16.mxu1 %vm12059_vm6, %v12390_v56  ;;  %9266 = vmatprep.mubr.msk.bf16.mxu0 %vm12059_vm6, %v12232_v11  ;;  %v11062_v11 = vld [vmem:[#allocation5 + $0x18d4] ss:$24 sps:$4 sm:$0xff]  }
 0x36c   :  { %7682 = vmatpush1.bf16.msra.mxu0 %v11051_v39  ;;  %9371 = vmatpush1.bf16.msra.mxu1 %v11051_v39 }
 0x36d   :  { %7683 = vmatprep.subr.bf16.mxu0 %v11056_v32  ;;  %9356 = vmatprep.subr.bf16.mxu1 %v11056_v32 }
 0x36f   :  { %9221 = vmatmul.mubr.msk.bf16.gmra.mrb[20].mxu1 %vm12059_vm6, %v12413_v38  ;;  %9269 = vmatmul.mubr.msk.bf16.gmra.mrb[4].mxu0 %vm12059_vm6, %v12255_v17  ;;  %v11065_v17 = vld [vmem:[#allocation5 + $0x1904] ss:$24 sps:$4 sm:$0xff]  }
 0x370   :  { %7684 = vmatpush1.bf16.msra.mxu0 %v11054_v36  ;;  %9372 = vmatpush1.bf16.msra.mxu1 %v11054_v36 }
 0x371   :  { %7685 = vmatprep.subr.bf16.mxu0 %v11059_v58  ;;  %9357 = vmatprep.subr.bf16.mxu1 %v11059_v58  ;;  %v12874_v58 = vld [vmem:[#allocation13_spill] sm:$0xff] }
 0x372   :  { %9224 = vmatprep.mubr.msk.bf16.mxu1 %vm12059_vm6, %v12423_v28  ;;  %9272 = vmatprep.mubr.msk.bf16.mxu0 %vm12059_vm6, %v12265_v14  ;;  %v11068_v14 = vld [vmem:[#allocation5 + $0x1934] ss:$24 sps:$4 sm:$0xff]  }
 0x374   :  { %7686 = vmatpush1.bf16.msra.mxu0 %v11057_v15  ;;  %9373 = vmatpush1.bf16.msra.mxu1 %v11057_v15 }
 0x375   :  { %7687 = vmatprep.subr.bf16.mxu0 %v11062_v11  ;;  %9358 = vmatprep.subr.bf16.mxu1 %v11062_v11  ;;  %v12875_v11 = vld [vmem:[#allocation33_spill] sm:$0xff] }
 0x377   :  { %9227 = vmatmul.mubr.msk.bf16.gmra.mrb[24].mxu1 %vm12059_vm6, %v12443_v50  ;;  %9275 = vmatmul.mubr.msk.bf16.gmra.mrb[8].mxu0 %vm12059_vm6, %v12285_v26  ;;  %v11071_v26 = vld [vmem:[#allocation5 + $0x1964] ss:$24 sps:$4 sm:$0xff]  }
 0x378   :  { %7688 = vmatpush1.bf16.msra.mxu0 %v11060_v20  ;;  %9374 = vmatpush1.bf16.msra.mxu1 %v11060_v20 }
 0x379   :  { %7689 = vmatprep.subr.bf16.mxu0 %v11065_v17  ;;  %9359 = vmatprep.subr.bf16.mxu1 %v11065_v17 }
 0x37a   :  { %9230 = vmatprep.mubr.msk.bf16.mxu1 %vm12059_vm6, %v12452_v61  ;;  %9278 = vmatprep.mubr.msk.bf16.mxu0 %vm12059_vm6, %v12294_v19  ;;  %v11074_v19 = vld [vmem:[#allocation5 + $0x1994] ss:$24 sps:$4 sm:$0xff]  }
 0x37c   :  { %7690 = vmatpush1.bf16.msra.mxu0 %v11063_v59  ;;  %9375 = vmatpush1.bf16.msra.mxu1 %v11063_v59  ;;  %v12876_v59 = vld [vmem:[#allocation44_spill] sm:$0xff] }
 0x37d   :  { %7691 = vmatprep.subr.bf16.mxu0 %v11068_v14  ;;  %9360 = vmatprep.subr.bf16.mxu1 %v11068_v14 }
 0x37f   :  { %9233 = vmatmul.mubr.msk.bf16.gmra.mrb[28].mxu1 %vm12059_vm6, %v12471_v21  ;;  %9281 = vmatmul.mubr.msk.bf16.gmra.mrb[12].mxu0 %vm12059_vm6, %v12327_v12  ;;  %v11077_v12 = vld [vmem:[#allocation5 + $0x19c4] ss:$24 sps:$4 sm:$0xff]  }
 0x380   :  { %7692 = vmatpush1.bf16.msra.mxu0 %v11066_v22  ;;  %9376 = vmatpush1.bf16.msra.mxu1 %v11066_v22  ;;  %v12877_v22 = vld [vmem:[#allocation45_spill] sm:$0xff] }
 0x381   :  { %7693 = vmatprep.subr.bf16.mxu0 %v11071_v26  ;;  %9361 = vmatprep.subr.bf16.mxu1 %v11071_v26 }
 0x382   :  { %9284 = vmatprep.mubr.msk.bf16.mxu0 %vm12059_vm6, %v12339_v34  ;;  %9296 = vmatprep.mubr.msk.bf16.mxu1 %vm12059_vm6, %v12423_v28  ;;  %v11083_v34 = vld [vmem:[#allocation5 + $0x1a24] ss:$24 sps:$4 sm:$0xff]   ;;  %v11081_v28 = vld [vmem:[#allocation5 + $0x1a20] ss:$24 sps:$4 sm:$0xff]  }
 0x384   :  { %7694 = vmatpush1.bf16.msra.mxu0 %v11069_v47  ;;  %9377 = vmatpush1.bf16.msra.mxu1 %v11069_v47 }
 0x385   :  { %7695 = vmatprep.subr.bf16.mxu0 %v11074_v19  ;;  %9362 = vmatprep.subr.bf16.mxu1 %v11074_v19  ;;  %v12878_v19 = vld [vmem:[#allocation46_spill] sm:$0xff] }
 0x388   :  { %7696 = vmatpush1.bf16.msra.mxu0 %v11072_v46  ;;  %9378 = vmatpush1.bf16.msra.mxu1 %v11072_v46 }
 0x389   :  { %7697 = vmatprep.subr.bf16.mxu0 %v11077_v12  ;;  %9363 = vmatprep.subr.bf16.mxu1 %v11077_v12  ;;  %v12879_v12 = vld [vmem:[#allocation47_spill] sm:$0xff] }
 0x38c   :  { %7698 = vmatpush1.bf16.msra.mxu0 %v11075_v2  ;;  %9379 = vmatpush1.bf16.msra.mxu1 %v11075_v2 }
 0x38d   :  { %7699 = vmatprep.subr.bf16.mxu0 %v11080_v5  ;;  %9364 = vmatprep.subr.bf16.mxu1 %v11080_v5 }
 0x390   :  { %7700 = vmatpush1.bf16.msra.mxu0 %v11078_v8  ;;  %9380 = vmatpush1.bf16.msra.mxu1 %v11078_v8 }
 0x391   :  { %7701 = vmatprep.subr.bf16.mxu0 %v11083_v34  ;;  %9365 = vmatprep.subr.bf16.mxu1 %v11083_v34  ;;  %v12880_v34 = vld [vmem:[#allocation48_spill] sm:$0xff] }
 0x394   :  { %7702 = vmatpush1.bf16.msra.mxu0 %v11081_v28  ;;  %9381 = vmatpush1.bf16.msra.mxu1 %v11081_v28 }
 0x395   :  { %7703 = vmatprep.subr.bf16.mxu0 %v11086_v54  ;;  %9366 = vmatprep.subr.bf16.mxu1 %v11086_v54 }
 0x398   :  { %7704 = vmatpush1.bf16.msra.mxu0 %v11084_v41  ;;  %9382 = vmatpush1.bf16.msra.mxu1 %v11084_v41 }
 0x399   :  { %7705 = vmatprep.subr.bf16.mxu0 %v11089_v45  ;;  %9367 = vmatprep.subr.bf16.mxu1 %v11089_v45 }
 0x39c   :  { %7706 = vmatpush1.bf16.msra.mxu0 %v11087_v23  ;;  %9383 = vmatpush1.bf16.msra.mxu1 %v11087_v23 }
 0x39d   :  { %7707 = vmatprep.subr.bf16.mxu0 %v11092_v9  ;;  %9368 = vmatprep.subr.bf16.mxu1 %v11092_v9 }
 0x3a0   :  { %7708 = vmatpush1.bf16.msra.mxu0 %v11090_v4  ;;  %9384 = vmatpush1.bf16.msra.mxu1 %v11090_v4 }
 0x3a1   :  { %7709 = vmatprep.subr.bf16.mxu0 %v11095_v53  ;;  %9369 = vmatprep.subr.bf16.mxu1 %v11095_v53 }
 0x3a4   :  { %7710 = vmatpush1.bf16.msra.mxu0 %v11093_v25  ;;  %9385 = vmatpush1.bf16.msra.mxu1 %v11093_v25 }
 0x3a7   :  { %9287 = vmatmul.mubr.msk.bf16.vlgmr.msra.gmra.mrb[0].mxu0 %vm12059_vm6, %v12104_v18  ;;  %9299 = vmatmul.mubr.msk.bf16.vlgmr.msra.gmra.mrb[48].mxu1 %vm12059_vm6, %v12443_v50 }
 0x3a8   :  { %9290 = vmatprep.mubr.msk.bf16.mxu0 %vm12059_vm6, %v12390_v56  ;;  %9302 = vmatprep.mubr.msk.bf16.mxu1 %vm12059_vm6, %v12452_v61 }
 0x3af   :  { %9293 = vmatmul.mubr.msk.bf16.gmra.mrb[4].mxu0 %vm12059_vm6, %v12413_v38  ;;  %9305 = vmatmul.mubr.msk.bf16.gmra.mrb[52].mxu1 %vm12059_vm6, %v12471_v21 }
 0x3ba   :  { %v7275_v18 = vpop.f32.mrb[16].mxu0 }
 0x3bb   :  { %v9386_v27 = vadd.f32 %v7275_v18, %v11888_v62  ;;  %v7277_v50 = vpop.f32.mrb[17].mxu0 }
 0x3bc   :  { %v9387_v10 = vadd.f32 %v7277_v50, %v11894_v1  ;;  %v7279_v16 = vpop.f32.mrb[18].mxu0 }
 0x3bd   :  { %v9388_v56 = vadd.f32 %v7279_v16, %v11896_v63  ;;  %v7281_v44 = vpop.f32.mrb[19].mxu0 }
 0x3be   :  { %v9330_v13 = vpack.c.bf16 %v9387_v10, %v9386_v27  ;;  %v9389_v61 = vadd.f32 %v7281_v44, %v11898_v37 }
 0x3c0   :  { %7944 = vst [vmem:[#allocation7] sm:$0xff] %v9330_v13  ;;  %v9333_v52 = vpack.c.bf16 %v9389_v61, %v9388_v56 }
 0x3c2   :  { %7947 = vst [vmem:[#allocation7 + $0x18] sm:$0xff] %v9333_v52  ;;  %v7285_v38 = vpop.f32.mrb[20].mxu0 }
 0x3c3   :  { %v9390_v48 = vadd.f32 %v7285_v38, %v11904_v7  ;;  %v7287_v21 = vpop.f32.mrb[21].mxu0 }
 0x3c4   :  { %v9391_v51 = vadd.f32 %v7287_v21, %v11910_v40  ;;  %v7289_v62 = vpop.f32.mrb[22].mxu0 }
 0x3c5   :  { %v9392_v0 = vadd.f32 %v7289_v62, %v11912_v33  ;;  %v7291_v1 = vpop.f32.mrb[23].mxu0 }
 0x3c6   :  { %v9336_v35 = vpack.c.bf16 %v9391_v51, %v9390_v48  ;;  %v9393_v63 = vadd.f32 %v7291_v1, %v11914_v55 }
 0x3c8   :  { %7950 = vst [vmem:[#allocation7 + $0x30] sm:$0xff] %v9336_v35  ;;  %v9339_v39 = vpack.c.bf16 %v9393_v63, %v9392_v0 }
 0x3ca   :  { %7953 = vst [vmem:[#allocation7 + $0x48] sm:$0xff] %v9339_v39  ;;  %v7295_v37 = vpop.f32.mrb[24].mxu0 }
 0x3cb   :  { %v9394_v32 = vadd.f32 %v7295_v37, %v11916_v57  ;;  %v7297_v36 = vpop.f32.mrb[25].mxu0 }
 0x3cc   :  { %v9395_v15 = vadd.f32 %v7297_v36, %v12874_v58  ;;  %v7299_v7 = vpop.f32.mrb[26].mxu0 }
 0x3cd   :  { %v9396_v20 = vadd.f32 %v7299_v7, %v12875_v11  ;;  %v7301_v40 = vpop.f32.mrb[27].mxu0 }
 0x3ce   :  { %v9342_v17 = vpack.c.bf16 %v9395_v15, %v9394_v32  ;;  %v9397_v33 = vadd.f32 %v7301_v40, %v12876_v59 }
 0x3d0   :  { %7956 = vst [vmem:[#allocation7 + $0x60] sm:$0xff] %v9342_v17  ;;  %v9345_v14 = vpack.c.bf16 %v9397_v33, %v9396_v20 }
 0x3d2   :  { %7959 = vst [vmem:[#allocation7 + $0x78] sm:$0xff] %v9345_v14  ;;  %v7305_v55 = vpop.f32.mrb[28].mxu0 }
 0x3d3   :  { %v9398_v26 = vadd.f32 %v7305_v55, %v12877_v22  ;;  %v7307_v47 = vpop.f32.mrb[29].mxu0 }
 0x3d4   :  { %v9399_v46 = vadd.f32 %v7307_v47, %v12878_v19  ;;  %v7309_v57 = vpop.f32.mrb[30].mxu0 }
 0x3d5   :  { %v9400_v2 = vadd.f32 %v7309_v57, %v12879_v12  ;;  %v7311_v5 = vpop.f32.mrb[31].mxu0 }
 0x3d6   :  { %v9348_v8 = vpack.c.bf16 %v9399_v46, %v9398_v26  ;;  %v9401_v28 = vadd.f32 %v7311_v5, %v12880_v34  ;;  %v12882_v5 = vld [vmem:[#allocation12_spill] sm:$0xff] }
 0x3d8   :  { %7962 = vst [vmem:[#allocation7 + $0x90] sm:$0xff] %v9348_v8  ;;  %v9351_v54 = vpack.c.bf16 %v9401_v28, %v9400_v2 }
 0x3da   :  { %7965 = vst [vmem:[#allocation7 + $0xa8] sm:$0xff] %v9351_v54 }
 0x43a   :  { %v7494_v41 = vpop.f32.mrb[16].mxu1 }
 0x43b   :  { %v7496_v45 = vpop.f32.mrb[17].mxu1 }
 0x43c   :  { %v9331_v23 = vpack.c.bf16 %v7496_v45, %v7494_v41  ;;  %v7498_v9 = vpop.f32.mrb[18].mxu1  ;;  %v12883_v41 = vld [vmem:[#allocation16_spill] sm:$0xff] }
 0x43d   :  { %v7500_v4 = vpop.f32.mrb[19].mxu1 }
 0x43e   :  { %7945 = vst [vmem:[#allocation7 + $0x8] sm:$0xff] %v9331_v23  ;;  %v9334_v53 = vpack.c.bf16 %v7500_v4, %v7498_v9 }
 0x440   :  { %7948 = vst [vmem:[#allocation7 + $0x20] sm:$0xff] %v9334_v53  ;;  %v12884_v53 = vld [vmem:[#allocation38_spill] sm:$0xff] }
 0x442   :  { %v7504_v25 = vpop.f32.mrb[20].mxu1 }
 0x443   :  { %v7506_v18 = vpop.f32.mrb[21].mxu1 }
 0x444   :  { %v9337_v27 = vpack.c.bf16 %v7506_v18, %v7504_v25  ;;  %v7508_v50 = vpop.f32.mrb[22].mxu1 }
 0x445   :  { %v7510_v10 = vpop.f32.mrb[23].mxu1 }
 0x446   :  { %7951 = vst [vmem:[#allocation7 + $0x38] sm:$0xff] %v9337_v27  ;;  %v9340_v16 = vpack.c.bf16 %v7510_v10, %v7508_v50  ;;  %v12885_v10 = vld [vmem:[#allocation20_spill] sm:$0xff] }
 0x448   :  { %7954 = vst [vmem:[#allocation7 + $0x50] sm:$0xff] %v9340_v16 }
 0x44a   :  { %v7514_v56 = vpop.f32.mrb[24].mxu1  ;;  %v7660_v44 = vpop.f32.mrb[8].mxu0 }
 0x44b   :  { %v9410_v13 = vadd.f32 %v7660_v44, %v12361_v31  ;;  %v7516_v61 = vpop.f32.mrb[25].mxu1  ;;  %v7662_v52 = vpop.f32.mrb[9].mxu0 }
 0x44c   :  { %v9343_v38 = vpack.c.bf16 %v7516_v61, %v7514_v56  ;;  %v9412_v48 = vadd.f32 %v7662_v52, %v12363_v30  ;;  %v7518_v21 = vpop.f32.mrb[26].mxu1  ;;  %v7664_v51 = vpop.f32.mrb[10].mxu0 }
 0x44d   :  { %v9414_v62 = vadd.f32 %v7664_v51, %v12365_v42  ;;  %v7520_v0 = vpop.f32.mrb[27].mxu1  ;;  %v7666_v1 = vpop.f32.mrb[11].mxu0 }
 0x44e   :  { %7957 = vst [vmem:[#allocation7 + $0x68] sm:$0xff] %v9343_v38  ;;  %v9346_v35 = vpack.c.bf16 %v7520_v0, %v7518_v21  ;;  %v9416_v63 = vadd.f32 %v7666_v1, %v12367_v43  ;;  %v12886_v38 = vld [vmem:[#allocation39_spill] sm:$0xff] }
 0x450   :  { %7960 = vst [vmem:[#allocation7 + $0x80] sm:$0xff] %v9346_v35 }
 0x452   :  { %v7524_v39 = vpop.f32.mrb[28].mxu1  ;;  %v7670_v37 = vpop.f32.mrb[12].mxu0 }
 0x453   :  { %v9418_v31 = vadd.f32 %v7670_v37, %v12369_v60  ;;  %v7526_v32 = vpop.f32.mrb[29].mxu1  ;;  %v7672_v36 = vpop.f32.mrb[13].mxu0 }
 0x454   :  { %v9349_v58 = vpack.c.bf16 %v7526_v32, %v7524_v39  ;;  %v9420_v30 = vadd.f32 %v7672_v36, %v12371_v24  ;;  %v7528_v15 = vpop.f32.mrb[30].mxu1  ;;  %v7674_v7 = vpop.f32.mrb[14].mxu0 }
 0x455   :  { %v9422_v42 = vadd.f32 %v7674_v7, %v12373_v3  ;;  %v7530_v11 = vpop.f32.mrb[31].mxu1  ;;  %v7676_v20 = vpop.f32.mrb[15].mxu0  ;;  %v12881_v3 = vld [vmem:[#allocation11_spill] sm:$0xff] }
 0x456   :  { %7963 = vst [vmem:[#allocation7 + $0x98] sm:$0xff] %v9349_v58  ;;  %v9352_v40 = vpack.c.bf16 %v7530_v11, %v7528_v15  ;;  %v9424_v43 = vadd.f32 %v7676_v20, %v12375_v49 }
 0x458   :  { %7966 = vst [vmem:[#allocation7 + $0xb0] sm:$0xff] %v9352_v40 }
 0x47a   :  { %v7713_v17 = vpop.f32.mrb[0].mxu0  ;;  %v7733_v59 = vpop.f32.mrb[48].mxu1 }
 0x47b   :  { %v9402_v60 = vadd.f32 %v7713_v17, %v12317_v29  ;;  %v9411_v33 = vadd.f32 %v9410_v13, %v7733_v59  ;;  %v7715_v14 = vpop.f32.mrb[1].mxu0  ;;  %v7735_v55 = vpop.f32.mrb[49].mxu1 }
 0x47c   :  { %v9403_v24 = vadd.f32 %v7715_v14, %v12325_v6  ;;  %v9413_v22 = vadd.f32 %v9412_v48, %v7735_v55  ;;  %v7717_v26 = vpop.f32.mrb[2].mxu0  ;;  %v7737_v47 = vpop.f32.mrb[50].mxu1 }
 0x47d   :  { %v9404_v19 = vadd.f32 %v7717_v26, %v12881_v3  ;;  %v9415_v46 = vadd.f32 %v9414_v62, %v7737_v47  ;;  %v7719_v57 = vpop.f32.mrb[3].mxu0  ;;  %v7739_v12 = vpop.f32.mrb[51].mxu1 }
 0x47e   :  { %v9332_v2 = vpack.c.bf16 %v9403_v24, %v9402_v60  ;;  %v9344_v49 = vpack.c.bf16 %v9413_v22, %v9411_v33  ;;  %v9405_v8 = vadd.f32 %v7719_v57, %v12882_v5  ;;  %v9417_v34 = vadd.f32 %v9416_v63, %v7739_v12 }
 0x480   :  { %7946 = vst [vmem:[#allocation7 + $0x10] sm:$0xff] %v9332_v2  ;;  %7958 = vst [vmem:[#allocation7 + $0x70] sm:$0xff] %v9344_v49  ;;  %v9335_v29 = vpack.c.bf16 %v9405_v8, %v9404_v19  ;;  %v9347_v28 = vpack.c.bf16 %v9417_v34, %v9415_v46 }
 0x482   :  { %7949 = vst [vmem:[#allocation7 + $0x28] sm:$0xff] %v9335_v29  ;;  %7961 = vst [vmem:[#allocation7 + $0x88] sm:$0xff] %v9347_v28  ;;  %v7723_v6 = vpop.f32.mrb[4].mxu0  ;;  %v7743_v54 = vpop.f32.mrb[52].mxu1 }
 0x483   :  { %v9406_v45 = vadd.f32 %v7723_v6, %v12883_v41  ;;  %v9419_v23 = vadd.f32 %v9418_v31, %v7743_v54  ;;  %v7725_v9 = vpop.f32.mrb[5].mxu0  ;;  %v7745_v4 = vpop.f32.mrb[53].mxu1 }
 0x484   :  { %v9407_v25 = vadd.f32 %v7725_v9, %v12884_v53  ;;  %v9421_v18 = vadd.f32 %v9420_v30, %v7745_v4  ;;  %v7727_v27 = vpop.f32.mrb[6].mxu0  ;;  %v7747_v50 = vpop.f32.mrb[54].mxu1 }
 0x485   :  { %v9408_v16 = vadd.f32 %v7727_v27, %v12885_v10  ;;  %v9423_v56 = vadd.f32 %v9422_v42, %v7747_v50  ;;  %v7729_v44 = vpop.f32.mrb[7].mxu0  ;;  %v7749_v13 = vpop.f32.mrb[55].mxu1 }
 0x486   :  { %v9338_v61 = vpack.c.bf16 %v9407_v25, %v9406_v45  ;;  %v9350_v52 = vpack.c.bf16 %v9421_v18, %v9419_v23  ;;  %v9409_v48 = vadd.f32 %v7729_v44, %v12886_v38  ;;  %v9425_v21 = vadd.f32 %v9424_v43, %v7749_v13 }
 0x488   :  { %7952 = vst [vmem:[#allocation7 + $0x40] sm:$0xff] %v9338_v61  ;;  %7964 = vst [vmem:[#allocation7 + $0xa0] sm:$0xff] %v9350_v52  ;;  %v9341_v51 = vpack.c.bf16 %v9409_v48, %v9408_v16  ;;  %v9353_v62 = vpack.c.bf16 %v9425_v21, %v9423_v56 }
 0x48a   :  { %7955 = vst [vmem:[#allocation7 + $0x58] sm:$0xff] %v9341_v51  ;;  %7967 = vst [vmem:[#allocation7 + $0xb8] sm:$0xff] %v9353_v62 }
 0x48b   :  { %11170 = shalt.err (!%p11167_p6)
}
 0x48c   :  { %s11171_s10 = scalar_lea.hbm %s12648_s2, 3072 }
 0x48d   :  { %p11172_p7 = scmp.ne.s32.totalorder %s12648_s2, %s11171_s10  ;;  %p11175_p8 = scmp.lt.u32.totalorder %s11171_s10, %s12648_s2 }
 0x48f   :  { %p11177_p9 = pnand %p11175_p8, %p11172_p7 }
 0x491   :  { %11180 = shalt.err (!%p11177_p9)
}
 0x492   :  { %7979 = dma.vmem_to_hbm [thread:$0]  %s7974_s6, 3072, %s12648_s2, [#allocation4], %s11188_s19, %s11188_s19, %s11189_s20  }
 0x493   :  { %11185 = dma.done.wait [#allocation4], 3072  }
 0x494   :  { %11186 = vsyncadd [#allocation4], 4294964224 }
 0x495   :  { %7983 = vsyncpa [#allocation3], 1 }
 0x496   :  { %7984 = vsyncpa [#allocation6], 1 }
 0x497   :  { %7985 = vsyncpa [#allocation4], 1 }

</bundles_post_ra>
